<compile_context>
chip_gen: v5e
topology: v5e:2x2
jax: 0.10.0
libtpu: 0.0.40
codegen_flags: <defaults>
</compile_context>

<pallas_src>
import functools

import jax
import jax.numpy as jnp
from jax.experimental import pallas as pl
from jax.experimental.pallas import tpu as pltpu


_VMEM_SPEC = pl.BlockSpec(memory_space=pltpu.MemorySpace.VMEM)
_VMEM_LIMIT = 48 * 1024 * 1024   # explicit scoped-VMEM budget with headroom (<= v7x 64 MiB)


def _row_tile(n):
    """Largest friendly row tile that divides n (fallback: whole extent)."""
    for t in (1024, 512, 256, 128, 64, 32, 16, 8):
        if n % t == 0:
            return t
    return n


# --------------------------------------------------------------------- tiled matmul+bias
def _matmul_bias_kernel(x_ref, w_ref, b_ref, o_ref):
    o_ref[...] = (
        jnp.dot(x_ref[...].astype(jnp.bfloat16), w_ref[...],
                preferred_element_type=jnp.float32)
        + b_ref[...]
    ).astype(o_ref.dtype)


def matmul_bias(x, w, b):
    """(N, I) @ (I, O) + (1, O); rows tiled over a parallel grid, weights VMEM-resident."""
    N, I = x.shape
    O = w.shape[1]
    tn = _row_tile(N)
    cost = pl.CostEstimate(flops=2 * N * I * O, transcendentals=0,
                           bytes_accessed=4 * N * (I + O) + 2 * I * O)
    return pl.pallas_call(
        _matmul_bias_kernel,
        out_shape=jax.ShapeDtypeStruct((N, O), jnp.float32),
        grid=(N // tn,),
        in_specs=[
            pl.BlockSpec((tn, I), lambda i: (i, 0)),
            pl.BlockSpec((I, O), lambda i: (0, 0)),
            pl.BlockSpec((1, O), lambda i: (0, 0)),
        ],
        out_specs=pl.BlockSpec((tn, O), lambda i: (i, 0)),
        compiler_params=pltpu.CompilerParams(
            dimension_semantics=("parallel",),
            vmem_limit_bytes=_VMEM_LIMIT,
        ),
        cost_estimate=cost,
    )(x, w, b)


# ------------------------------------------------------------------------ fused WaveBlock
def _wave_block_kernel(x_ref, w0_ref, b0_ref, wfg_ref, bfg_ref, wo_ref, bo_ref,
                       o_ref, xp_ref, *, num_rates, d_max):
    T, C = o_ref.shape
    bf16 = jnp.bfloat16

    # 1x1 entry conv.
    x = jnp.dot(x_ref[...].astype(bf16), w0_ref[...],
                preferred_element_type=jnp.float32) + b0_ref[...]
    res = x

    # Zero the "same"-padding halo once; only the centre band is rewritten per layer.
    xp_ref[...] = jnp.zeros_like(xp_ref)

    for i in range(num_rates):                     # unrolled; activation stays in VMEM
        d = 2 ** i
        xp_ref[pl.ds(d_max, T), :] = x
        xl = xp_ref[pl.ds(d_max - d, T), :].astype(bf16)   # x[t - d]
        xm = xp_ref[pl.ds(d_max, T), :].astype(bf16)       # x[t]
        xr = xp_ref[pl.ds(d_max + d, T), :].astype(bf16)   # x[t + d]
        # filter|gate concatenated on the output axis: 3 matmuls of (T, C) x (C, 2C).
        fg = (jnp.dot(xl, wfg_ref[i, 0], preferred_element_type=jnp.float32)
              + jnp.dot(xm, wfg_ref[i, 1], preferred_element_type=jnp.float32)
              + jnp.dot(xr, wfg_ref[i, 2], preferred_element_type=jnp.float32)
              + bfg_ref[i])
        y = jnp.tanh(fg[:, :C]) * jax.nn.sigmoid(fg[:, C:])
        x = jnp.dot(y.astype(bf16), wo_ref[i],
                    preferred_element_type=jnp.float32) + bo_ref[i]
        res = res + x

    o_ref[...] = res


def wave_block(x, p, num_rates):
    """Wave_Block.forward, channels-last. x: (B, T, Cin) -> (B, T, Cout)."""
    B, T, Cin = x.shape
    C = p["w0"].shape[1]
    d_max = 2 ** (num_rates - 1)
    kern = functools.partial(_wave_block_kernel, num_rates=num_rates, d_max=d_max)
    cost = pl.CostEstimate(
        flops=2 * B * T * (Cin * C + num_rates * (3 * C * 2 * C + C * C)),
        transcendentals=2 * B * T * C * num_rates,
        bytes_accessed=4 * B * T * (Cin + C),
    )
    # TODO(synk): for very long sequences, additionally tile T with a (sum of dilations)
    # halo instead of keeping a whole (T, C) batch slice resident.
    return pl.pallas_call(
        kern,
        out_shape=jax.ShapeDtypeStruct((B, T, C), jnp.float32),
        grid=(B,),
        in_specs=[
            pl.BlockSpec((None, T, Cin), lambda b: (b, 0, 0)),
            pl.BlockSpec((Cin, C), lambda b: (0, 0)),
            pl.BlockSpec((1, C), lambda b: (0, 0)),
            pl.BlockSpec((num_rates, 3, C, 2 * C), lambda b: (0, 0, 0, 0)),
            pl.BlockSpec((num_rates, 1, 2 * C), lambda b: (0, 0, 0)),
            pl.BlockSpec((num_rates, C, C), lambda b: (0, 0, 0)),
            pl.BlockSpec((num_rates, 1, C), lambda b: (0, 0, 0)),
        ],
        out_specs=pl.BlockSpec((None, T, C), lambda b: (b, 0, 0)),
        scratch_shapes=[pltpu.VMEM((T + 2 * d_max, C), jnp.float32)],
        compiler_params=pltpu.CompilerParams(
            dimension_semantics=("parallel",),
            vmem_limit_bytes=_VMEM_LIMIT,
        ),
        cost_estimate=cost,
    )(x, p["w0"], p["b0"], p["wfg"], p["bfg"], p["wo"], p["bo"])


# -------------------------------------------------------------- fused bidirectional GRU
def _gru_rec_kernel(gi_ref, whh_ref, bhh_ref, o_ref, hf_ref, hb_ref, of_ref, ob_ref,
                    *, T, H):
    # gi: (T, B, 6H) precomputed x @ W_ih + b_ih for [fwd r,z,n | bwd r,z,n].
    hf_ref[...] = jnp.zeros_like(hf_ref)
    hb_ref[...] = jnp.zeros_like(hb_ref)

    def cell(gi, h, w, b):
        gh = jnp.dot(h.astype(jnp.bfloat16), w,
                     preferred_element_type=jnp.float32) + b
        r = jax.nn.sigmoid(gi[:, 0:H] + gh[:, 0:H])
        z = jax.nn.sigmoid(gi[:, H:2 * H] + gh[:, H:2 * H])
        n = jnp.tanh(gi[:, 2 * H:3 * H] + r * gh[:, 2 * H:3 * H])
        return (1.0 - z) * n + z * h

    @pl.loop(0, T)
    def _(t):
        tb = T - 1 - t
        gi_f = gi_ref[t][:, 0:3 * H]
        gi_b = gi_ref[tb][:, 3 * H:6 * H]
        hf = cell(gi_f, hf_ref[...], whh_ref[0], bhh_ref[0])   # forward at time t
        hb = cell(gi_b, hb_ref[...], whh_ref[1], bhh_ref[1])   # backward at time T-1-t
        hf_ref[...] = hf
        hb_ref[...] = hb
        of_ref[t] = hf
        ob_ref[tb] = hb

    # One bulk lane-dense store of the concatenated output (replaces per-step 2-row stores).
    o_ref[...] = jnp.concatenate([of_ref[...], ob_ref[...]], axis=-1)


def gru_layer(h_tbi, wih, bih, whh, bhh):
    """One bidirectional GRU layer (PyTorch gate order r,z,n). (T, B, I) -> (T, B, 2H)."""
    T, B, I = h_tbi.shape
    H = whh.shape[1]
    # Hoisted input projection for BOTH directions: one (T*B, I) x (I, 6H) matmul.
    gi = matmul_bias(h_tbi.reshape(T * B, I), wih, bih).reshape(T, B, 6 * H)
    kern = functools.partial(_gru_rec_kernel, T=T, H=H)
    cost = pl.CostEstimate(
        flops=2 * 2 * T * B * H * 3 * H,
        transcendentals=2 * T * B * 3 * H,
        bytes_accessed=4 * T * B * (6 * H + 2 * H),
    )
    # TODO(synk): for very long sequences, chunk the time axis with manual DMA instead of
    # keeping the whole (T, B, 6H) projection resident in VMEM.
    return pl.pallas_call(
        kern,
        out_shape=jax.ShapeDtypeStruct((T, B, 2 * H), jnp.float32),
        in_specs=[_VMEM_SPEC] * 3,
        out_specs=_VMEM_SPEC,
        scratch_shapes=[
            pltpu.VMEM((B, H), jnp.float32),
            pltpu.VMEM((B, H), jnp.float32),
            pltpu.VMEM((T, B, H), jnp.float32),
            pltpu.VMEM((T, B, H), jnp.float32),
        ],
        compiler_params=pltpu.CompilerParams(vmem_limit_bytes=_VMEM_LIMIT),
        cost_estimate=cost,
    )(gi, whh, bhh)


# ---------------------------------------------------------------------------- forward
def ampnet_forward(x, params):
    """x: (B, T, 3) -> (out, out, out), out: (B, T, 3). Channels-last == the NCW permutes."""
    B, T, _ = x.shape
    x = wave_block(x, params["wb2"], 8)      # (B, T, 32)
    x = wave_block(x, params["wb3"], 4)      # (B, T, 64)
    x = wave_block(x, params["wb4"], 1)      # (B, T, 128)

    h = jnp.transpose(x, (1, 0, 2))          # time-major (T, B, 128) for the recurrence
    for layer in params["gru"]:
        h = gru_layer(h, layer["wih"], layer["bih"], layer["whh"], layer["bhh"])

    # Lane-dense (128-wide padded) head; the 3 real channels are sliced outside the kernel.
    y = matmul_bias(h.reshape(T * B, 2 * 128), params["fc1_w"], params["fc1_b"])
    y = y[:, :3].reshape(T, B, 3)
    out = jnp.transpose(y, (1, 0, 2))        # back to batch-first (B, T, 3)
    return out, out, out


# ------------------------------------------------------------------------------ params
def init_params(key):
    keys = iter(jax.random.split(key, 64))

    def nrm(shape, dtype=jnp.float32, scale=0.1):
        return (scale * jax.random.normal(next(keys), shape)).astype(dtype)

    bf16 = jnp.bfloat16

    def wave_params(cin, c, num_rates):
        return {
            "w0": nrm((cin, c), bf16),                     # 1x1 entry conv (Cin, Cout)
            "b0": nrm((1, c)),
            "wfg": nrm((num_rates, 3, c, 2 * c), bf16),    # (rate, tap, Cin, [filter|gate])
            "bfg": nrm((num_rates, 1, 2 * c)),
            "wo": nrm((num_rates, c, c), bf16),            # 1x1 conv per rate
            "bo": nrm((num_rates, 1, c)),
        }

    H = 128
    params = {
        "wb2": wave_params(3, 32, 8),
        "wb3": wave_params(32, 64, 4),
        "wb4": wave_params(64, 128, 1),
        "gru": [],
        # fc1 (256 -> 3), zero-padded to 128 output lanes for lane-dense stores.
        "fc1_w": jnp.pad(nrm((2 * H, 3)), ((0, 0), (0, 125))).astype(bf16),
        "fc1_b": jnp.pad(nrm((1, 3)), ((0, 0), (0, 125))),
    }
    for l in range(4):
        I = H if l == 0 else 2 * H
        params["gru"].append({
            "wih": nrm((I, 6 * H), bf16),      # [fwd r,z,n | bwd r,z,n] W_ih^T, concatenated
            "bih": nrm((1, 6 * H)),
            "whh": nrm((2, H, 3 * H), bf16),   # [fwd, bwd] W_hh^T
            "bhh": nrm((2, 1, 3 * H)),
        })
    return params


# -------------------------------------------------------------------------------- main
if __name__ == "__main__":
    key = jax.random.PRNGKey(0)
    pkey, xkey = jax.random.split(key)
    params = init_params(pkey)

    B, T = 2, 16                                   # small shapes; inch = 3
    x = jax.random.normal(xkey, (B, T, 3), dtype=jnp.float32)

    fwd = jax.jit(ampnet_forward)
    o1, o2, o3 = fwd(x, params)
    jax.block_until_ready(o1)

    assert o1.shape == (B, T, 3) and o1.dtype == jnp.float32
    assert o2.shape == (B, T, 3) and o3.shape == (B, T, 3)
    print("KERNEL_OK")
</pallas_src>

<mosaic_0001>
module attributes {stable_mosaic.version = 11 : i64} {
  func.func @_wave_block_kernel(%arg0: i32, %arg1: memref<1x16x3xf32, #tpu.memory_space<vmem>>, %arg2: memref<3x32xbf16, #tpu.memory_space<vmem>>, %arg3: memref<1x32xf32, #tpu.memory_space<vmem>>, %arg4: memref<8x3x32x64xbf16, #tpu.memory_space<vmem>>, %arg5: memref<8x1x64xf32, #tpu.memory_space<vmem>>, %arg6: memref<8x32x32xbf16, #tpu.memory_space<vmem>>, %arg7: memref<8x1x32xf32, #tpu.memory_space<vmem>>, %arg8: memref<1x16x32xf32, #tpu.memory_space<vmem>>, %arg9: memref<272x32xf32, #tpu.memory_space<vmem>>) attributes {dimension_semantics = [#tpu.dimension_semantics<parallel>], iteration_bounds = array<i64: 2>, scalar_prefetch = 0 : i64, scratch_operands = 1 : i64, tpu.core_type = #tpu.core_type<tc>, window_params = [{transform_indices = @transform_0, window_bounds = array<i64: 1, 16, 3>}, {pipeline_mode = #tpu.pipeline_mode<synchronous>, transform_indices = @transform_1, window_bounds = array<i64: 3, 32>}, {pipeline_mode = #tpu.pipeline_mode<synchronous>, transform_indices = @transform_2, window_bounds = array<i64: 1, 32>}, {pipeline_mode = #tpu.pipeline_mode<synchronous>, transform_indices = @transform_3, window_bounds = array<i64: 8, 3, 32, 64>}, {pipeline_mode = #tpu.pipeline_mode<synchronous>, transform_indices = @transform_4, window_bounds = array<i64: 8, 1, 64>}, {pipeline_mode = #tpu.pipeline_mode<synchronous>, transform_indices = @transform_5, window_bounds = array<i64: 8, 32, 32>}, {pipeline_mode = #tpu.pipeline_mode<synchronous>, transform_indices = @transform_6, window_bounds = array<i64: 8, 1, 32>}, {transform_indices = @transform_7, window_bounds = array<i64: 1, 16, 32>}]} {
    %c0 = arith.constant 0 : index
    %c0_0 = arith.constant 0 : index
    %c0_1 = arith.constant 0 : index
    %0 = vector.load %arg1[%c0, %c0_0, %c0_1] : memref<1x16x3xf32, #tpu.memory_space<vmem>>, vector<1x16x3xf32>
    %1 = vector.shape_cast %0 : vector<1x16x3xf32> to vector<16x3xf32>
    %2 = arith.truncf %1 : vector<16x3xf32> to vector<16x3xbf16>
    %c0_2 = arith.constant 0 : index
    %c0_3 = arith.constant 0 : index
    %3 = vector.load %arg2[%c0_2, %c0_3] : memref<3x32xbf16, #tpu.memory_space<vmem>>, vector<3x32xbf16>
    %cst = arith.constant dense<0.000000e+00> : vector<16x32xf32>
    %4 = tpu.matmul %2, %3, %cst {dimension_numbers = #tpu.dot_dimension_numbers<[1], [0], [0], [1], [0, 0, 1, 1], [], []>} : vector<16x3xbf16>, vector<3x32xbf16>, vector<16x32xf32> -> vector<16x32xf32>
    %c0_4 = arith.constant 0 : index
    %c0_5 = arith.constant 0 : index
    %5 = vector.load %arg3[%c0_4, %c0_5] : memref<1x32xf32, #tpu.memory_space<vmem>>, vector<1x32xf32>
    %6 = vector.broadcast %5 : vector<1x32xf32> to vector<16x32xf32>
    %7 = arith.addf %4, %6 : vector<16x32xf32>
    %cst_6 = arith.constant 0.000000e+00 : f32
    %8 = vector.broadcast %cst_6 : f32 to vector<272x32xf32>
    %c0_7 = arith.constant 0 : index
    %c0_8 = arith.constant 0 : index
    %9 = vector.load %arg9[%c0_7, %c0_8] : memref<272x32xf32, #tpu.memory_space<vmem>>, vector<272x32xf32>
    tpu.vector_store %arg9[%c0_7, %c0_8], %8 {strides = array<i32>} : memref<272x32xf32, #tpu.memory_space<vmem>>, vector<272x32xf32>,
    %c128 = arith.constant 128 : index
    %c0_9 = arith.constant 0 : index
    %10 = vector.load %arg9[%c128, %c0_9] : memref<272x32xf32, #tpu.memory_space<vmem>>, vector<16x32xf32>
    tpu.vector_store %arg9[%c128, %c0_9], %7 {strides = array<i32>} : memref<272x32xf32, #tpu.memory_space<vmem>>, vector<16x32xf32>,
    %c127 = arith.constant 127 : index
    %c0_10 = arith.constant 0 : index
    %11 = vector.load %arg9[%c127, %c0_10] : memref<272x32xf32, #tpu.memory_space<vmem>>, vector<16x32xf32>
    %12 = arith.truncf %11 : vector<16x32xf32> to vector<16x32xbf16>
    %c128_11 = arith.constant 128 : index
    %c0_12 = arith.constant 0 : index
    %13 = vector.load %arg9[%c128_11, %c0_12] : memref<272x32xf32, #tpu.memory_space<vmem>>, vector<16x32xf32>
    %14 = arith.truncf %13 : vector<16x32xf32> to vector<16x32xbf16>
    %c129 = arith.constant 129 : index
    %c0_13 = arith.constant 0 : index
    %15 = vector.load %arg9[%c129, %c0_13] : memref<272x32xf32, #tpu.memory_space<vmem>>, vector<16x32xf32>
    %16 = arith.truncf %15 : vector<16x32xf32> to vector<16x32xbf16>
    %c0_14 = arith.constant 0 : index
    %c0_15 = arith.constant 0 : index
    %c0_16 = arith.constant 0 : index
    %c0_17 = arith.constant 0 : index
    %17 = vector.load %arg4[%c0_14, %c0_15, %c0_16, %c0_17] : memref<8x3x32x64xbf16, #tpu.memory_space<vmem>>, vector<1x1x32x64xbf16>
    %18 = vector.shape_cast %17 : vector<1x1x32x64xbf16> to vector<32x64xbf16>
    %cst_18 = arith.constant dense<0.000000e+00> : vector<16x64xf32>
    %19 = tpu.matmul %12, %18, %cst_18 {dimension_numbers = #tpu.dot_dimension_numbers<[1], [0], [0], [1], [0, 0, 1, 1], [], []>} : vector<16x32xbf16>, vector<32x64xbf16>, vector<16x64xf32> -> vector<16x64xf32>
    %c0_19 = arith.constant 0 : index
    %c1 = arith.constant 1 : index
    %c0_20 = arith.constant 0 : index
    %c0_21 = arith.constant 0 : index
    %20 = vector.load %arg4[%c0_19, %c1, %c0_20, %c0_21] : memref<8x3x32x64xbf16, #tpu.memory_space<vmem>>, vector<1x1x32x64xbf16>
    %21 = vector.shape_cast %20 : vector<1x1x32x64xbf16> to vector<32x64xbf16>
    %cst_22 = arith.constant dense<0.000000e+00> : vector<16x64xf32>
    %22 = tpu.matmul %14, %21, %cst_22 {dimension_numbers = #tpu.dot_dimension_numbers<[1], [0], [0], [1], [0, 0, 1, 1], [], []>} : vector<16x32xbf16>, vector<32x64xbf16>, vector<16x64xf32> -> vector<16x64xf32>
    %23 = arith.addf %19, %22 : vector<16x64xf32>
    %c0_23 = arith.constant 0 : index
    %c2 = arith.constant 2 : index
    %c0_24 = arith.constant 0 : index
    %c0_25 = arith.constant 0 : index
    %24 = vector.load %arg4[%c0_23, %c2, %c0_24, %c0_25] : memref<8x3x32x64xbf16, #tpu.memory_space<vmem>>, vector<1x1x32x64xbf16>
    %25 = vector.shape_cast %24 : vector<1x1x32x64xbf16> to vector<32x64xbf16>
    %cst_26 = arith.constant dense<0.000000e+00> : vector<16x64xf32>
    %26 = tpu.matmul %16, %25, %cst_26 {dimension_numbers = #tpu.dot_dimension_numbers<[1], [0], [0], [1], [0, 0, 1, 1], [], []>} : vector<16x32xbf16>, vector<32x64xbf16>, vector<16x64xf32> -> vector<16x64xf32>
    %27 = arith.addf %23, %26 : vector<16x64xf32>
    %c0_27 = arith.constant 0 : index
    %c0_28 = arith.constant 0 : index
    %c0_29 = arith.constant 0 : index
    %28 = vector.load %arg5[%c0_27, %c0_28, %c0_29] : memref<8x1x64xf32, #tpu.memory_space<vmem>>, vector<1x1x64xf32>
    %29 = vector.shape_cast %28 : vector<1x1x64xf32> to vector<1x64xf32>
    %30 = vector.broadcast %29 : vector<1x64xf32> to vector<16x64xf32>
    %31 = arith.addf %27, %30 : vector<16x64xf32>
    %32 = vector.extract_strided_slice %31 {offsets = [0, 0], sizes = [16, 32], strides = [1, 1]} : vector<16x64xf32> to vector<16x32xf32>
    %33 = math.tanh %32 : vector<16x32xf32>
    %34 = vector.extract_strided_slice %31 {offsets = [0, 32], sizes = [16, 32], strides = [1, 1]} : vector<16x64xf32> to vector<16x32xf32>
    %35 = arith.negf %34 : vector<16x32xf32>
    %36 = math.exp %35 : vector<16x32xf32>
    %cst_30 = arith.constant 1.000000e+00 : f32
    %37 = vector.broadcast %cst_30 : f32 to vector<16x32xf32>
    %38 = arith.addf %37, %36 : vector<16x32xf32>
    %39 = arith.divf %37, %38 : vector<16x32xf32>
    %40 = arith.mulf %33, %39 : vector<16x32xf32>
    %41 = arith.truncf %40 : vector<16x32xf32> to vector<16x32xbf16>
    %c0_31 = arith.constant 0 : index
    %c0_32 = arith.constant 0 : index
    %c0_33 = arith.constant 0 : index
    %42 = vector.load %arg6[%c0_31, %c0_32, %c0_33] : memref<8x32x32xbf16, #tpu.memory_space<vmem>>, vector<1x32x32xbf16>
    %43 = vector.shape_cast %42 : vector<1x32x32xbf16> to vector<32x32xbf16>
    %cst_34 = arith.constant dense<0.000000e+00> : vector<16x32xf32>
    %44 = tpu.matmul %41, %43, %cst_34 {dimension_numbers = #tpu.dot_dimension_numbers<[1], [0], [0], [1], [0, 0, 1, 1], [], []>} : vector<16x32xbf16>, vector<32x32xbf16>, vector<16x32xf32> -> vector<16x32xf32>
    %c0_35 = arith.constant 0 : index
    %c0_36 = arith.constant 0 : index
    %c0_37 = arith.constant 0 : index
    %45 = vector.load %arg7[%c0_35, %c0_36, %c0_37] : memref<8x1x32xf32, #tpu.memory_space<vmem>>, vector<1x1x32xf32>
    %46 = vector.shape_cast %45 : vector<1x1x32xf32> to vector<1x32xf32>
    %47 = vector.broadcast %46 : vector<1x32xf32> to vector<16x32xf32>
    %48 = arith.addf %44, %47 : vector<16x32xf32>
    %49 = arith.addf %7, %48 : vector<16x32xf32>
    %c128_38 = arith.constant 128 : index
    %c0_39 = arith.constant 0 : index
    %50 = vector.load %arg9[%c128_38, %c0_39] : memref<272x32xf32, #tpu.memory_space<vmem>>, vector<16x32xf32>
    tpu.vector_store %arg9[%c128_38, %c0_39], %48 {strides = array<i32>} : memref<272x32xf32, #tpu.memory_space<vmem>>, vector<16x32xf32>,
    %c126 = arith.constant 126 : index
    %c0_40 = arith.constant 0 : index
    %51 = vector.load %arg9[%c126, %c0_40] : memref<272x32xf32, #tpu.memory_space<vmem>>, vector<16x32xf32>
    %52 = arith.truncf %51 : vector<16x32xf32> to vector<16x32xbf16>
    %c128_41 = arith.constant 128 : index
    %c0_42 = arith.constant 0 : index
    %53 = vector.load %arg9[%c128_41, %c0_42] : memref<272x32xf32, #tpu.memory_space<vmem>>, vector<16x32xf32>
    %54 = arith.truncf %53 : vector<16x32xf32> to vector<16x32xbf16>
    %c130 = arith.constant 130 : index
    %c0_43 = arith.constant 0 : index
    %55 = vector.load %arg9[%c130, %c0_43] : memref<272x32xf32, #tpu.memory_space<vmem>>, vector<16x32xf32>
    %56 = arith.truncf %55 : vector<16x32xf32> to vector<16x32xbf16>
    %c1_44 = arith.constant 1 : index
    %c0_45 = arith.constant 0 : index
    %c0_46 = arith.constant 0 : index
    %c0_47 = arith.constant 0 : index
    %57 = vector.load %arg4[%c1_44, %c0_45, %c0_46, %c0_47] : memref<8x3x32x64xbf16, #tpu.memory_space<vmem>>, vector<1x1x32x64xbf16>
    %58 = vector.shape_cast %57 : vector<1x1x32x64xbf16> to vector<32x64xbf16>
    %cst_48 = arith.constant dense<0.000000e+00> : vector<16x64xf32>
    %59 = tpu.matmul %52, %58, %cst_48 {dimension_numbers = #tpu.dot_dimension_numbers<[1], [0], [0], [1], [0, 0, 1, 1], [], []>} : vector<16x32xbf16>, vector<32x64xbf16>, vector<16x64xf32> -> vector<16x64xf32>
    %c1_49 = arith.constant 1 : index
    %c1_50 = arith.constant 1 : index
    %c0_51 = arith.constant 0 : index
    %c0_52 = arith.constant 0 : index
    %60 = vector.load %arg4[%c1_49, %c1_50, %c0_51, %c0_52] : memref<8x3x32x64xbf16, #tpu.memory_space<vmem>>, vector<1x1x32x64xbf16>
    %61 = vector.shape_cast %60 : vector<1x1x32x64xbf16> to vector<32x64xbf16>
    %cst_53 = arith.constant dense<0.000000e+00> : vector<16x64xf32>
    %62 = tpu.matmul %54, %61, %cst_53 {dimension_numbers = #tpu.dot_dimension_numbers<[1], [0], [0], [1], [0, 0, 1, 1], [], []>} : vector<16x32xbf16>, vector<32x64xbf16>, vector<16x64xf32> -> vector<16x64xf32>
    %63 = arith.addf %59, %62 : vector<16x64xf32>
    %c1_54 = arith.constant 1 : index
    %c2_55 = arith.constant 2 : index
    %c0_56 = arith.constant 0 : index
    %c0_57 = arith.constant 0 : index
    %64 = vector.load %arg4[%c1_54, %c2_55, %c0_56, %c0_57] : memref<8x3x32x64xbf16, #tpu.memory_space<vmem>>, vector<1x1x32x64xbf16>
    %65 = vector.shape_cast %64 : vector<1x1x32x64xbf16> to vector<32x64xbf16>
    %cst_58 = arith.constant dense<0.000000e+00> : vector<16x64xf32>
    %66 = tpu.matmul %56, %65, %cst_58 {dimension_numbers = #tpu.dot_dimension_numbers<[1], [0], [0], [1], [0, 0, 1, 1], [], []>} : vector<16x32xbf16>, vector<32x64xbf16>, vector<16x64xf32> -> vector<16x64xf32>
    %67 = arith.addf %63, %66 : vector<16x64xf32>
    %c1_59 = arith.constant 1 : index
    %c0_60 = arith.constant 0 : index
    %c0_61 = arith.constant 0 : index
    %68 = vector.load %arg5[%c1_59, %c0_60, %c0_61] : memref<8x1x64xf32, #tpu.memory_space<vmem>>, vector<1x1x64xf32>
    %69 = vector.shape_cast %68 : vector<1x1x64xf32> to vector<1x64xf32>
    %70 = vector.broadcast %69 : vector<1x64xf32> to vector<16x64xf32>
    %71 = arith.addf %67, %70 : vector<16x64xf32>
    %72 = vector.extract_strided_slice %71 {offsets = [0, 0], sizes = [16, 32], strides = [1, 1]} : vector<16x64xf32> to vector<16x32xf32>
    %73 = math.tanh %72 : vector<16x32xf32>
    %74 = vector.extract_strided_slice %71 {offsets = [0, 32], sizes = [16, 32], strides = [1, 1]} : vector<16x64xf32> to vector<16x32xf32>
    %75 = arith.negf %74 : vector<16x32xf32>
    %76 = math.exp %75 : vector<16x32xf32>
    %cst_62 = arith.constant 1.000000e+00 : f32
    %77 = vector.broadcast %cst_62 : f32 to vector<16x32xf32>
    %78 = arith.addf %77, %76 : vector<16x32xf32>
    %79 = arith.divf %77, %78 : vector<16x32xf32>
    %80 = arith.mulf %73, %79 : vector<16x32xf32>
    %81 = arith.truncf %80 : vector<16x32xf32> to vector<16x32xbf16>
    %c1_63 = arith.constant 1 : index
    %c0_64 = arith.constant 0 : index
    %c0_65 = arith.constant 0 : index
    %82 = vector.load %arg6[%c1_63, %c0_64, %c0_65] : memref<8x32x32xbf16, #tpu.memory_space<vmem>>, vector<1x32x32xbf16>
    %83 = vector.shape_cast %82 : vector<1x32x32xbf16> to vector<32x32xbf16>
    %cst_66 = arith.constant dense<0.000000e+00> : vector<16x32xf32>
    %84 = tpu.matmul %81, %83, %cst_66 {dimension_numbers = #tpu.dot_dimension_numbers<[1], [0], [0], [1], [0, 0, 1, 1], [], []>} : vector<16x32xbf16>, vector<32x32xbf16>, vector<16x32xf32> -> vector<16x32xf32>
    %c1_67 = arith.constant 1 : index
    %c0_68 = arith.constant 0 : index
    %c0_69 = arith.constant 0 : index
    %85 = vector.load %arg7[%c1_67, %c0_68, %c0_69] : memref<8x1x32xf32, #tpu.memory_space<vmem>>, vector<1x1x32xf32>
    %86 = vector.shape_cast %85 : vector<1x1x32xf32> to vector<1x32xf32>
    %87 = vector.broadcast %86 : vector<1x32xf32> to vector<16x32xf32>
    %88 = arith.addf %84, %87 : vector<16x32xf32>
    %89 = arith.addf %49, %88 : vector<16x32xf32>
    %c128_70 = arith.constant 128 : index
    %c0_71 = arith.constant 0 : index
    %90 = vector.load %arg9[%c128_70, %c0_71] : memref<272x32xf32, #tpu.memory_space<vmem>>, vector<16x32xf32>
    tpu.vector_store %arg9[%c128_70, %c0_71], %88 {strides = array<i32>} : memref<272x32xf32, #tpu.memory_space<vmem>>, vector<16x32xf32>,
    %c124 = arith.constant 124 : index
    %c0_72 = arith.constant 0 : index
    %91 = vector.load %arg9[%c124, %c0_72] : memref<272x32xf32, #tpu.memory_space<vmem>>, vector<16x32xf32>
    %92 = arith.truncf %91 : vector<16x32xf32> to vector<16x32xbf16>
    %c128_73 = arith.constant 128 : index
    %c0_74 = arith.constant 0 : index
    %93 = vector.load %arg9[%c128_73, %c0_74] : memref<272x32xf32, #tpu.memory_space<vmem>>, vector<16x32xf32>
    %94 = arith.truncf %93 : vector<16x32xf32> to vector<16x32xbf16>
    %c132 = arith.constant 132 : index
    %c0_75 = arith.constant 0 : index
    %95 = vector.load %arg9[%c132, %c0_75] : memref<272x32xf32, #tpu.memory_space<vmem>>, vector<16x32xf32>
    %96 = arith.truncf %95 : vector<16x32xf32> to vector<16x32xbf16>
    %c2_76 = arith.constant 2 : index
    %c0_77 = arith.constant 0 : index
    %c0_78 = arith.constant 0 : index
    %c0_79 = arith.constant 0 : index
    %97 = vector.load %arg4[%c2_76, %c0_77, %c0_78, %c0_79] : memref<8x3x32x64xbf16, #tpu.memory_space<vmem>>, vector<1x1x32x64xbf16>
    %98 = vector.shape_cast %97 : vector<1x1x32x64xbf16> to vector<32x64xbf16>
    %cst_80 = arith.constant dense<0.000000e+00> : vector<16x64xf32>
    %99 = tpu.matmul %92, %98, %cst_80 {dimension_numbers = #tpu.dot_dimension_numbers<[1], [0], [0], [1], [0, 0, 1, 1], [], []>} : vector<16x32xbf16>, vector<32x64xbf16>, vector<16x64xf32> -> vector<16x64xf32>
    %c2_81 = arith.constant 2 : index
    %c1_82 = arith.constant 1 : index
    %c0_83 = arith.constant 0 : index
    %c0_84 = arith.constant 0 : index
    %100 = vector.load %arg4[%c2_81, %c1_82, %c0_83, %c0_84] : memref<8x3x32x64xbf16, #tpu.memory_space<vmem>>, vector<1x1x32x64xbf16>
    %101 = vector.shape_cast %100 : vector<1x1x32x64xbf16> to vector<32x64xbf16>
    %cst_85 = arith.constant dense<0.000000e+00> : vector<16x64xf32>
    %102 = tpu.matmul %94, %101, %cst_85 {dimension_numbers = #tpu.dot_dimension_numbers<[1], [0], [0], [1], [0, 0, 1, 1], [], []>} : vector<16x32xbf16>, vector<32x64xbf16>, vector<16x64xf32> -> vector<16x64xf32>
    %103 = arith.addf %99, %102 : vector<16x64xf32>
    %c2_86 = arith.constant 2 : index
    %c2_87 = arith.constant 2 : index
    %c0_88 = arith.constant 0 : index
    %c0_89 = arith.constant 0 : index
    %104 = vector.load %arg4[%c2_86, %c2_87, %c0_88, %c0_89] : memref<8x3x32x64xbf16, #tpu.memory_space<vmem>>, vector<1x1x32x64xbf16>
    %105 = vector.shape_cast %104 : vector<1x1x32x64xbf16> to vector<32x64xbf16>
    %cst_90 = arith.constant dense<0.000000e+00> : vector<16x64xf32>
    %106 = tpu.matmul %96, %105, %cst_90 {dimension_numbers = #tpu.dot_dimension_numbers<[1], [0], [0], [1], [0, 0, 1, 1], [], []>} : vector<16x32xbf16>, vector<32x64xbf16>, vector<16x64xf32> -> vector<16x64xf32>
    %107 = arith.addf %103, %106 : vector<16x64xf32>
    %c2_91 = arith.constant 2 : index
    %c0_92 = arith.constant 0 : index
    %c0_93 = arith.constant 0 : index
    %108 = vector.load %arg5[%c2_91, %c0_92, %c0_93] : memref<8x1x64xf32, #tpu.memory_space<vmem>>, vector<1x1x64xf32>
    %109 = vector.shape_cast %108 : vector<1x1x64xf32> to vector<1x64xf32>
    %110 = vector.broadcast %109 : vector<1x64xf32> to vector<16x64xf32>
    %111 = arith.addf %107, %110 : vector<16x64xf32>
    %112 = vector.extract_strided_slice %111 {offsets = [0, 0], sizes = [16, 32], strides = [1, 1]} : vector<16x64xf32> to vector<16x32xf32>
    %113 = math.tanh %112 : vector<16x32xf32>
    %114 = vector.extract_strided_slice %111 {offsets = [0, 32], sizes = [16, 32], strides = [1, 1]} : vector<16x64xf32> to vector<16x32xf32>
    %115 = arith.negf %114 : vector<16x32xf32>
    %116 = math.exp %115 : vector<16x32xf32>
    %cst_94 = arith.constant 1.000000e+00 : f32
    %117 = vector.broadcast %cst_94 : f32 to vector<16x32xf32>
    %118 = arith.addf %117, %116 : vector<16x32xf32>
    %119 = arith.divf %117, %118 : vector<16x32xf32>
    %120 = arith.mulf %113, %119 : vector<16x32xf32>
    %121 = arith.truncf %120 : vector<16x32xf32> to vector<16x32xbf16>
    %c2_95 = arith.constant 2 : index
    %c0_96 = arith.constant 0 : index
    %c0_97 = arith.constant 0 : index
    %122 = vector.load %arg6[%c2_95, %c0_96, %c0_97] : memref<8x32x32xbf16, #tpu.memory_space<vmem>>, vector<1x32x32xbf16>
    %123 = vector.shape_cast %122 : vector<1x32x32xbf16> to vector<32x32xbf16>
    %cst_98 = arith.constant dense<0.000000e+00> : vector<16x32xf32>
    %124 = tpu.matmul %121, %123, %cst_98 {dimension_numbers = #tpu.dot_dimension_numbers<[1], [0], [0], [1], [0, 0, 1, 1], [], []>} : vector<16x32xbf16>, vector<32x32xbf16>, vector<16x32xf32> -> vector<16x32xf32>
    %c2_99 = arith.constant 2 : index
    %c0_100 = arith.constant 0 : index
    %c0_101 = arith.constant 0 : index
    %125 = vector.load %arg7[%c2_99, %c0_100, %c0_101] : memref<8x1x32xf32, #tpu.memory_space<vmem>>, vector<1x1x32xf32>
    %126 = vector.shape_cast %125 : vector<1x1x32xf32> to vector<1x32xf32>
    %127 = vector.broadcast %126 : vector<1x32xf32> to vector<16x32xf32>
    %128 = arith.addf %124, %127 : vector<16x32xf32>
    %129 = arith.addf %89, %128 : vector<16x32xf32>
    %c128_102 = arith.constant 128 : index
    %c0_103 = arith.constant 0 : index
    %130 = vector.load %arg9[%c128_102, %c0_103] : memref<272x32xf32, #tpu.memory_space<vmem>>, vector<16x32xf32>
    tpu.vector_store %arg9[%c128_102, %c0_103], %128 {strides = array<i32>} : memref<272x32xf32, #tpu.memory_space<vmem>>, vector<16x32xf32>,
    %c120 = arith.constant 120 : index
    %c0_104 = arith.constant 0 : index
    %131 = vector.load %arg9[%c120, %c0_104] : memref<272x32xf32, #tpu.memory_space<vmem>>, vector<16x32xf32>
    %132 = arith.truncf %131 : vector<16x32xf32> to vector<16x32xbf16>
    %c128_105 = arith.constant 128 : index
    %c0_106 = arith.constant 0 : index
    %133 = vector.load %arg9[%c128_105, %c0_106] : memref<272x32xf32, #tpu.memory_space<vmem>>, vector<16x32xf32>
    %134 = arith.truncf %133 : vector<16x32xf32> to vector<16x32xbf16>
    %c136 = arith.constant 136 : index
    %c0_107 = arith.constant 0 : index
    %135 = vector.load %arg9[%c136, %c0_107] : memref<272x32xf32, #tpu.memory_space<vmem>>, vector<16x32xf32>
    %136 = arith.truncf %135 : vector<16x32xf32> to vector<16x32xbf16>
    %c3 = arith.constant 3 : index
    %c0_108 = arith.constant 0 : index
    %c0_109 = arith.constant 0 : index
    %c0_110 = arith.constant 0 : index
    %137 = vector.load %arg4[%c3, %c0_108, %c0_109, %c0_110] : memref<8x3x32x64xbf16, #tpu.memory_space<vmem>>, vector<1x1x32x64xbf16>
    %138 = vector.shape_cast %137 : vector<1x1x32x64xbf16> to vector<32x64xbf16>
    %cst_111 = arith.constant dense<0.000000e+00> : vector<16x64xf32>
    %139 = tpu.matmul %132, %138, %cst_111 {dimension_numbers = #tpu.dot_dimension_numbers<[1], [0], [0], [1], [0, 0, 1, 1], [], []>} : vector<16x32xbf16>, vector<32x64xbf16>, vector<16x64xf32> -> vector<16x64xf32>
    %c3_112 = arith.constant 3 : index
    %c1_113 = arith.constant 1 : index
    %c0_114 = arith.constant 0 : index
    %c0_115 = arith.constant 0 : index
    %140 = vector.load %arg4[%c3_112, %c1_113, %c0_114, %c0_115] : memref<8x3x32x64xbf16, #tpu.memory_space<vmem>>, vector<1x1x32x64xbf16>
    %141 = vector.shape_cast %140 : vector<1x1x32x64xbf16> to vector<32x64xbf16>
    %cst_116 = arith.constant dense<0.000000e+00> : vector<16x64xf32>
    %142 = tpu.matmul %134, %141, %cst_116 {dimension_numbers = #tpu.dot_dimension_numbers<[1], [0], [0], [1], [0, 0, 1, 1], [], []>} : vector<16x32xbf16>, vector<32x64xbf16>, vector<16x64xf32> -> vector<16x64xf32>
    %143 = arith.addf %139, %142 : vector<16x64xf32>
    %c3_117 = arith.constant 3 : index
    %c2_118 = arith.constant 2 : index
    %c0_119 = arith.constant 0 : index
    %c0_120 = arith.constant 0 : index
    %144 = vector.load %arg4[%c3_117, %c2_118, %c0_119, %c0_120] : memref<8x3x32x64xbf16, #tpu.memory_space<vmem>>, vector<1x1x32x64xbf16>
    %145 = vector.shape_cast %144 : vector<1x1x32x64xbf16> to vector<32x64xbf16>
    %cst_121 = arith.constant dense<0.000000e+00> : vector<16x64xf32>
    %146 = tpu.matmul %136, %145, %cst_121 {dimension_numbers = #tpu.dot_dimension_numbers<[1], [0], [0], [1], [0, 0, 1, 1], [], []>} : vector<16x32xbf16>, vector<32x64xbf16>, vector<16x64xf32> -> vector<16x64xf32>
    %147 = arith.addf %143, %146 : vector<16x64xf32>
    %c3_122 = arith.constant 3 : index
    %c0_123 = arith.constant 0 : index
    %c0_124 = arith.constant 0 : index
    %148 = vector.load %arg5[%c3_122, %c0_123, %c0_124] : memref<8x1x64xf32, #tpu.memory_space<vmem>>, vector<1x1x64xf32>
    %149 = vector.shape_cast %148 : vector<1x1x64xf32> to vector<1x64xf32>
    %150 = vector.broadcast %149 : vector<1x64xf32> to vector<16x64xf32>
    %151 = arith.addf %147, %150 : vector<16x64xf32>
    %152 = vector.extract_strided_slice %151 {offsets = [0, 0], sizes = [16, 32], strides = [1, 1]} : vector<16x64xf32> to vector<16x32xf32>
    %153 = math.tanh %152 : vector<16x32xf32>
    %154 = vector.extract_strided_slice %151 {offsets = [0, 32], sizes = [16, 32], strides = [1, 1]} : vector<16x64xf32> to vector<16x32xf32>
    %155 = arith.negf %154 : vector<16x32xf32>
    %156 = math.exp %155 : vector<16x32xf32>
    %cst_125 = arith.constant 1.000000e+00 : f32
    %157 = vector.broadcast %cst_125 : f32 to vector<16x32xf32>
    %158 = arith.addf %157, %156 : vector<16x32xf32>
    %159 = arith.divf %157, %158 : vector<16x32xf32>
    %160 = arith.mulf %153, %159 : vector<16x32xf32>
    %161 = arith.truncf %160 : vector<16x32xf32> to vector<16x32xbf16>
    %c3_126 = arith.constant 3 : index
    %c0_127 = arith.constant 0 : index
    %c0_128 = arith.constant 0 : index
    %162 = vector.load %arg6[%c3_126, %c0_127, %c0_128] : memref<8x32x32xbf16, #tpu.memory_space<vmem>>, vector<1x32x32xbf16>
    %163 = vector.shape_cast %162 : vector<1x32x32xbf16> to vector<32x32xbf16>
    %cst_129 = arith.constant dense<0.000000e+00> : vector<16x32xf32>
    %164 = tpu.matmul %161, %163, %cst_129 {dimension_numbers = #tpu.dot_dimension_numbers<[1], [0], [0], [1], [0, 0, 1, 1], [], []>} : vector<16x32xbf16>, vector<32x32xbf16>, vector<16x32xf32> -> vector<16x32xf32>
    %c3_130 = arith.constant 3 : index
    %c0_131 = arith.constant 0 : index
    %c0_132 = arith.constant 0 : index
    %165 = vector.load %arg7[%c3_130, %c0_131, %c0_132] : memref<8x1x32xf32, #tpu.memory_space<vmem>>, vector<1x1x32xf32>
    %166 = vector.shape_cast %165 : vector<1x1x32xf32> to vector<1x32xf32>
    %167 = vector.broadcast %166 : vector<1x32xf32> to vector<16x32xf32>
    %168 = arith.addf %164, %167 : vector<16x32xf32>
    %169 = arith.addf %129, %168 : vector<16x32xf32>
    %c128_133 = arith.constant 128 : index
    %c0_134 = arith.constant 0 : index
    %170 = vector.load %arg9[%c128_133, %c0_134] : memref<272x32xf32, #tpu.memory_space<vmem>>, vector<16x32xf32>
    tpu.vector_store %arg9[%c128_133, %c0_134], %168 {strides = array<i32>} : memref<272x32xf32, #tpu.memory_space<vmem>>, vector<16x32xf32>,
    %c112 = arith.constant 112 : index
    %c0_135 = arith.constant 0 : index
    %171 = vector.load %arg9[%c112, %c0_135] : memref<272x32xf32, #tpu.memory_space<vmem>>, vector<16x32xf32>
    %172 = arith.truncf %171 : vector<16x32xf32> to vector<16x32xbf16>
    %c128_136 = arith.constant 128 : index
    %c0_137 = arith.constant 0 : index
    %173 = vector.load %arg9[%c128_136, %c0_137] : memref<272x32xf32, #tpu.memory_space<vmem>>, vector<16x32xf32>
    %174 = arith.truncf %173 : vector<16x32xf32> to vector<16x32xbf16>
    %c144 = arith.constant 144 : index
    %c0_138 = arith.constant 0 : index
    %175 = vector.load %arg9[%c144, %c0_138] : memref<272x32xf32, #tpu.memory_space<vmem>>, vector<16x32xf32>
    %176 = arith.truncf %175 : vector<16x32xf32> to vector<16x32xbf16>
    %c4 = arith.constant 4 : index
    %c0_139 = arith.constant 0 : index
    %c0_140 = arith.constant 0 : index
    %c0_141 = arith.constant 0 : index
    %177 = vector.load %arg4[%c4, %c0_139, %c0_140, %c0_141] : memref<8x3x32x64xbf16, #tpu.memory_space<vmem>>, vector<1x1x32x64xbf16>
    %178 = vector.shape_cast %177 : vector<1x1x32x64xbf16> to vector<32x64xbf16>
    %cst_142 = arith.constant dense<0.000000e+00> : vector<16x64xf32>
    %179 = tpu.matmul %172, %178, %cst_142 {dimension_numbers = #tpu.dot_dimension_numbers<[1], [0], [0], [1], [0, 0, 1, 1], [], []>} : vector<16x32xbf16>, vector<32x64xbf16>, vector<16x64xf32> -> vector<16x64xf32>
    %c4_143 = arith.constant 4 : index
    %c1_144 = arith.constant 1 : index
    %c0_145 = arith.constant 0 : index
    %c0_146 = arith.constant 0 : index
    %180 = vector.load %arg4[%c4_143, %c1_144, %c0_145, %c0_146] : memref<8x3x32x64xbf16, #tpu.memory_space<vmem>>, vector<1x1x32x64xbf16>
    %181 = vector.shape_cast %180 : vector<1x1x32x64xbf16> to vector<32x64xbf16>
    %cst_147 = arith.constant dense<0.000000e+00> : vector<16x64xf32>
    %182 = tpu.matmul %174, %181, %cst_147 {dimension_numbers = #tpu.dot_dimension_numbers<[1], [0], [0], [1], [0, 0, 1, 1], [], []>} : vector<16x32xbf16>, vector<32x64xbf16>, vector<16x64xf32> -> vector<16x64xf32>
    %183 = arith.addf %179, %182 : vector<16x64xf32>
    %c4_148 = arith.constant 4 : index
    %c2_149 = arith.constant 2 : index
    %c0_150 = arith.constant 0 : index
    %c0_151 = arith.constant 0 : index
    %184 = vector.load %arg4[%c4_148, %c2_149, %c0_150, %c0_151] : memref<8x3x32x64xbf16, #tpu.memory_space<vmem>>, vector<1x1x32x64xbf16>
    %185 = vector.shape_cast %184 : vector<1x1x32x64xbf16> to vector<32x64xbf16>
    %cst_152 = arith.constant dense<0.000000e+00> : vector<16x64xf32>
    %186 = tpu.matmul %176, %185, %cst_152 {dimension_numbers = #tpu.dot_dimension_numbers<[1], [0], [0], [1], [0, 0, 1, 1], [], []>} : vector<16x32xbf16>, vector<32x64xbf16>, vector<16x64xf32> -> vector<16x64xf32>
    %187 = arith.addf %183, %186 : vector<16x64xf32>
    %c4_153 = arith.constant 4 : index
    %c0_154 = arith.constant 0 : index
    %c0_155 = arith.constant 0 : index
    %188 = vector.load %arg5[%c4_153, %c0_154, %c0_155] : memref<8x1x64xf32, #tpu.memory_space<vmem>>, vector<1x1x64xf32>
    %189 = vector.shape_cast %188 : vector<1x1x64xf32> to vector<1x64xf32>
    %190 = vector.broadcast %189 : vector<1x64xf32> to vector<16x64xf32>
    %191 = arith.addf %187, %190 : vector<16x64xf32>
    %192 = vector.extract_strided_slice %191 {offsets = [0, 0], sizes = [16, 32], strides = [1, 1]} : vector<16x64xf32> to vector<16x32xf32>
    %193 = math.tanh %192 : vector<16x32xf32>
    %194 = vector.extract_strided_slice %191 {offsets = [0, 32], sizes = [16, 32], strides = [1, 1]} : vector<16x64xf32> to vector<16x32xf32>
    %195 = arith.negf %194 : vector<16x32xf32>
    %196 = math.exp %195 : vector<16x32xf32>
    %cst_156 = arith.constant 1.000000e+00 : f32
    %197 = vector.broadcast %cst_156 : f32 to vector<16x32xf32>
    %198 = arith.addf %197, %196 : vector<16x32xf32>
    %199 = arith.divf %197, %198 : vector<16x32xf32>
    %200 = arith.mulf %193, %199 : vector<16x32xf32>
    %201 = arith.truncf %200 : vector<16x32xf32> to vector<16x32xbf16>
    %c4_157 = arith.constant 4 : index
    %c0_158 = arith.constant 0 : index
    %c0_159 = arith.constant 0 : index
    %202 = vector.load %arg6[%c4_157, %c0_158, %c0_159] : memref<8x32x32xbf16, #tpu.memory_space<vmem>>, vector<1x32x32xbf16>
    %203 = vector.shape_cast %202 : vector<1x32x32xbf16> to vector<32x32xbf16>
    %cst_160 = arith.constant dense<0.000000e+00> : vector<16x32xf32>
    %204 = tpu.matmul %201, %203, %cst_160 {dimension_numbers = #tpu.dot_dimension_numbers<[1], [0], [0], [1], [0, 0, 1, 1], [], []>} : vector<16x32xbf16>, vector<32x32xbf16>, vector<16x32xf32> -> vector<16x32xf32>
    %c4_161 = arith.constant 4 : index
    %c0_162 = arith.constant 0 : index
    %c0_163 = arith.constant 0 : index
    %205 = vector.load %arg7[%c4_161, %c0_162, %c0_163] : memref<8x1x32xf32, #tpu.memory_space<vmem>>, vector<1x1x32xf32>
    %206 = vector.shape_cast %205 : vector<1x1x32xf32> to vector<1x32xf32>
    %207 = vector.broadcast %206 : vector<1x32xf32> to vector<16x32xf32>
    %208 = arith.addf %204, %207 : vector<16x32xf32>
    %209 = arith.addf %169, %208 : vector<16x32xf32>
    %c128_164 = arith.constant 128 : index
    %c0_165 = arith.constant 0 : index
    %210 = vector.load %arg9[%c128_164, %c0_165] : memref<272x32xf32, #tpu.memory_space<vmem>>, vector<16x32xf32>
    tpu.vector_store %arg9[%c128_164, %c0_165], %208 {strides = array<i32>} : memref<272x32xf32, #tpu.memory_space<vmem>>, vector<16x32xf32>,
    %c96 = arith.constant 96 : index
    %c0_166 = arith.constant 0 : index
    %211 = vector.load %arg9[%c96, %c0_166] : memref<272x32xf32, #tpu.memory_space<vmem>>, vector<16x32xf32>
    %212 = arith.truncf %211 : vector<16x32xf32> to vector<16x32xbf16>
    %c128_167 = arith.constant 128 : index
    %c0_168 = arith.constant 0 : index
    %213 = vector.load %arg9[%c128_167, %c0_168] : memref<272x32xf32, #tpu.memory_space<vmem>>, vector<16x32xf32>
    %214 = arith.truncf %213 : vector<16x32xf32> to vector<16x32xbf16>
    %c160 = arith.constant 160 : index
    %c0_169 = arith.constant 0 : index
    %215 = vector.load %arg9[%c160, %c0_169] : memref<272x32xf32, #tpu.memory_space<vmem>>, vector<16x32xf32>
    %216 = arith.truncf %215 : vector<16x32xf32> to vector<16x32xbf16>
    %c5 = arith.constant 5 : index
    %c0_170 = arith.constant 0 : index
    %c0_171 = arith.constant 0 : index
    %c0_172 = arith.constant 0 : index
    %217 = vector.load %arg4[%c5, %c0_170, %c0_171, %c0_172] : memref<8x3x32x64xbf16, #tpu.memory_space<vmem>>, vector<1x1x32x64xbf16>
    %218 = vector.shape_cast %217 : vector<1x1x32x64xbf16> to vector<32x64xbf16>
    %cst_173 = arith.constant dense<0.000000e+00> : vector<16x64xf32>
    %219 = tpu.matmul %212, %218, %cst_173 {dimension_numbers = #tpu.dot_dimension_numbers<[1], [0], [0], [1], [0, 0, 1, 1], [], []>} : vector<16x32xbf16>, vector<32x64xbf16>, vector<16x64xf32> -> vector<16x64xf32>
    %c5_174 = arith.constant 5 : index
    %c1_175 = arith.constant 1 : index
    %c0_176 = arith.constant 0 : index
    %c0_177 = arith.constant 0 : index
    %220 = vector.load %arg4[%c5_174, %c1_175, %c0_176, %c0_177] : memref<8x3x32x64xbf16, #tpu.memory_space<vmem>>, vector<1x1x32x64xbf16>
    %221 = vector.shape_cast %220 : vector<1x1x32x64xbf16> to vector<32x64xbf16>
    %cst_178 = arith.constant dense<0.000000e+00> : vector<16x64xf32>
    %222 = tpu.matmul %214, %221, %cst_178 {dimension_numbers = #tpu.dot_dimension_numbers<[1], [0], [0], [1], [0, 0, 1, 1], [], []>} : vector<16x32xbf16>, vector<32x64xbf16>, vector<16x64xf32> -> vector<16x64xf32>
    %223 = arith.addf %219, %222 : vector<16x64xf32>
    %c5_179 = arith.constant 5 : index
    %c2_180 = arith.constant 2 : index
    %c0_181 = arith.constant 0 : index
    %c0_182 = arith.constant 0 : index
    %224 = vector.load %arg4[%c5_179, %c2_180, %c0_181, %c0_182] : memref<8x3x32x64xbf16, #tpu.memory_space<vmem>>, vector<1x1x32x64xbf16>
    %225 = vector.shape_cast %224 : vector<1x1x32x64xbf16> to vector<32x64xbf16>
    %cst_183 = arith.constant dense<0.000000e+00> : vector<16x64xf32>
    %226 = tpu.matmul %216, %225, %cst_183 {dimension_numbers = #tpu.dot_dimension_numbers<[1], [0], [0], [1], [0, 0, 1, 1], [], []>} : vector<16x32xbf16>, vector<32x64xbf16>, vector<16x64xf32> -> vector<16x64xf32>
    %227 = arith.addf %223, %226 : vector<16x64xf32>
    %c5_184 = arith.constant 5 : index
    %c0_185 = arith.constant 0 : index
    %c0_186 = arith.constant 0 : index
    %228 = vector.load %arg5[%c5_184, %c0_185, %c0_186] : memref<8x1x64xf32, #tpu.memory_space<vmem>>, vector<1x1x64xf32>
    %229 = vector.shape_cast %228 : vector<1x1x64xf32> to vector<1x64xf32>
    %230 = vector.broadcast %229 : vector<1x64xf32> to vector<16x64xf32>
    %231 = arith.addf %227, %230 : vector<16x64xf32>
    %232 = vector.extract_strided_slice %231 {offsets = [0, 0], sizes = [16, 32], strides = [1, 1]} : vector<16x64xf32> to vector<16x32xf32>
    %233 = math.tanh %232 : vector<16x32xf32>
    %234 = vector.extract_strided_slice %231 {offsets = [0, 32], sizes = [16, 32], strides = [1, 1]} : vector<16x64xf32> to vector<16x32xf32>
    %235 = arith.negf %234 : vector<16x32xf32>
    %236 = math.exp %235 : vector<16x32xf32>
    %cst_187 = arith.constant 1.000000e+00 : f32
    %237 = vector.broadcast %cst_187 : f32 to vector<16x32xf32>
    %238 = arith.addf %237, %236 : vector<16x32xf32>
    %239 = arith.divf %237, %238 : vector<16x32xf32>
    %240 = arith.mulf %233, %239 : vector<16x32xf32>
    %241 = arith.truncf %240 : vector<16x32xf32> to vector<16x32xbf16>
    %c5_188 = arith.constant 5 : index
    %c0_189 = arith.constant 0 : index
    %c0_190 = arith.constant 0 : index
    %242 = vector.load %arg6[%c5_188, %c0_189, %c0_190] : memref<8x32x32xbf16, #tpu.memory_space<vmem>>, vector<1x32x32xbf16>
    %243 = vector.shape_cast %242 : vector<1x32x32xbf16> to vector<32x32xbf16>
    %cst_191 = arith.constant dense<0.000000e+00> : vector<16x32xf32>
    %244 = tpu.matmul %241, %243, %cst_191 {dimension_numbers = #tpu.dot_dimension_numbers<[1], [0], [0], [1], [0, 0, 1, 1], [], []>} : vector<16x32xbf16>, vector<32x32xbf16>, vector<16x32xf32> -> vector<16x32xf32>
    %c5_192 = arith.constant 5 : index
    %c0_193 = arith.constant 0 : index
    %c0_194 = arith.constant 0 : index
    %245 = vector.load %arg7[%c5_192, %c0_193, %c0_194] : memref<8x1x32xf32, #tpu.memory_space<vmem>>, vector<1x1x32xf32>
    %246 = vector.shape_cast %245 : vector<1x1x32xf32> to vector<1x32xf32>
    %247 = vector.broadcast %246 : vector<1x32xf32> to vector<16x32xf32>
    %248 = arith.addf %244, %247 : vector<16x32xf32>
    %249 = arith.addf %209, %248 : vector<16x32xf32>
    %c128_195 = arith.constant 128 : index
    %c0_196 = arith.constant 0 : index
    %250 = vector.load %arg9[%c128_195, %c0_196] : memref<272x32xf32, #tpu.memory_space<vmem>>, vector<16x32xf32>
    tpu.vector_store %arg9[%c128_195, %c0_196], %248 {strides = array<i32>} : memref<272x32xf32, #tpu.memory_space<vmem>>, vector<16x32xf32>,
    %c64 = arith.constant 64 : index
    %c0_197 = arith.constant 0 : index
    %251 = vector.load %arg9[%c64, %c0_197] : memref<272x32xf32, #tpu.memory_space<vmem>>, vector<16x32xf32>
    %252 = arith.truncf %251 : vector<16x32xf32> to vector<16x32xbf16>
    %c128_198 = arith.constant 128 : index
    %c0_199 = arith.constant 0 : index
    %253 = vector.load %arg9[%c128_198, %c0_199] : memref<272x32xf32, #tpu.memory_space<vmem>>, vector<16x32xf32>
    %254 = arith.truncf %253 : vector<16x32xf32> to vector<16x32xbf16>
    %c192 = arith.constant 192 : index
    %c0_200 = arith.constant 0 : index
    %255 = vector.load %arg9[%c192, %c0_200] : memref<272x32xf32, #tpu.memory_space<vmem>>, vector<16x32xf32>
    %256 = arith.truncf %255 : vector<16x32xf32> to vector<16x32xbf16>
    %c6 = arith.constant 6 : index
    %c0_201 = arith.constant 0 : index
    %c0_202 = arith.constant 0 : index
    %c0_203 = arith.constant 0 : index
    %257 = vector.load %arg4[%c6, %c0_201, %c0_202, %c0_203] : memref<8x3x32x64xbf16, #tpu.memory_space<vmem>>, vector<1x1x32x64xbf16>
    %258 = vector.shape_cast %257 : vector<1x1x32x64xbf16> to vector<32x64xbf16>
    %cst_204 = arith.constant dense<0.000000e+00> : vector<16x64xf32>
    %259 = tpu.matmul %252, %258, %cst_204 {dimension_numbers = #tpu.dot_dimension_numbers<[1], [0], [0], [1], [0, 0, 1, 1], [], []>} : vector<16x32xbf16>, vector<32x64xbf16>, vector<16x64xf32> -> vector<16x64xf32>
    %c6_205 = arith.constant 6 : index
    %c1_206 = arith.constant 1 : index
    %c0_207 = arith.constant 0 : index
    %c0_208 = arith.constant 0 : index
    %260 = vector.load %arg4[%c6_205, %c1_206, %c0_207, %c0_208] : memref<8x3x32x64xbf16, #tpu.memory_space<vmem>>, vector<1x1x32x64xbf16>
    %261 = vector.shape_cast %260 : vector<1x1x32x64xbf16> to vector<32x64xbf16>
    %cst_209 = arith.constant dense<0.000000e+00> : vector<16x64xf32>
    %262 = tpu.matmul %254, %261, %cst_209 {dimension_numbers = #tpu.dot_dimension_numbers<[1], [0], [0], [1], [0, 0, 1, 1], [], []>} : vector<16x32xbf16>, vector<32x64xbf16>, vector<16x64xf32> -> vector<16x64xf32>
    %263 = arith.addf %259, %262 : vector<16x64xf32>
    %c6_210 = arith.constant 6 : index
    %c2_211 = arith.constant 2 : index
    %c0_212 = arith.constant 0 : index
    %c0_213 = arith.constant 0 : index
    %264 = vector.load %arg4[%c6_210, %c2_211, %c0_212, %c0_213] : memref<8x3x32x64xbf16, #tpu.memory_space<vmem>>, vector<1x1x32x64xbf16>
    %265 = vector.shape_cast %264 : vector<1x1x32x64xbf16> to vector<32x64xbf16>
    %cst_214 = arith.constant dense<0.000000e+00> : vector<16x64xf32>
    %266 = tpu.matmul %256, %265, %cst_214 {dimension_numbers = #tpu.dot_dimension_numbers<[1], [0], [0], [1], [0, 0, 1, 1], [], []>} : vector<16x32xbf16>, vector<32x64xbf16>, vector<16x64xf32> -> vector<16x64xf32>
    %267 = arith.addf %263, %266 : vector<16x64xf32>
    %c6_215 = arith.constant 6 : index
    %c0_216 = arith.constant 0 : index
    %c0_217 = arith.constant 0 : index
    %268 = vector.load %arg5[%c6_215, %c0_216, %c0_217] : memref<8x1x64xf32, #tpu.memory_space<vmem>>, vector<1x1x64xf32>
    %269 = vector.shape_cast %268 : vector<1x1x64xf32> to vector<1x64xf32>
    %270 = vector.broadcast %269 : vector<1x64xf32> to vector<16x64xf32>
    %271 = arith.addf %267, %270 : vector<16x64xf32>
    %272 = vector.extract_strided_slice %271 {offsets = [0, 0], sizes = [16, 32], strides = [1, 1]} : vector<16x64xf32> to vector<16x32xf32>
    %273 = math.tanh %272 : vector<16x32xf32>
    %274 = vector.extract_strided_slice %271 {offsets = [0, 32], sizes = [16, 32], strides = [1, 1]} : vector<16x64xf32> to vector<16x32xf32>
    %275 = arith.negf %274 : vector<16x32xf32>
    %276 = math.exp %275 : vector<16x32xf32>
    %cst_218 = arith.constant 1.000000e+00 : f32
    %277 = vector.broadcast %cst_218 : f32 to vector<16x32xf32>
    %278 = arith.addf %277, %276 : vector<16x32xf32>
    %279 = arith.divf %277, %278 : vector<16x32xf32>
    %280 = arith.mulf %273, %279 : vector<16x32xf32>
    %281 = arith.truncf %280 : vector<16x32xf32> to vector<16x32xbf16>
    %c6_219 = arith.constant 6 : index
    %c0_220 = arith.constant 0 : index
    %c0_221 = arith.constant 0 : index
    %282 = vector.load %arg6[%c6_219, %c0_220, %c0_221] : memref<8x32x32xbf16, #tpu.memory_space<vmem>>, vector<1x32x32xbf16>
    %283 = vector.shape_cast %282 : vector<1x32x32xbf16> to vector<32x32xbf16>
    %cst_222 = arith.constant dense<0.000000e+00> : vector<16x32xf32>
    %284 = tpu.matmul %281, %283, %cst_222 {dimension_numbers = #tpu.dot_dimension_numbers<[1], [0], [0], [1], [0, 0, 1, 1], [], []>} : vector<16x32xbf16>, vector<32x32xbf16>, vector<16x32xf32> -> vector<16x32xf32>
    %c6_223 = arith.constant 6 : index
    %c0_224 = arith.constant 0 : index
    %c0_225 = arith.constant 0 : index
    %285 = vector.load %arg7[%c6_223, %c0_224, %c0_225] : memref<8x1x32xf32, #tpu.memory_space<vmem>>, vector<1x1x32xf32>
    %286 = vector.shape_cast %285 : vector<1x1x32xf32> to vector<1x32xf32>
    %287 = vector.broadcast %286 : vector<1x32xf32> to vector<16x32xf32>
    %288 = arith.addf %284, %287 : vector<16x32xf32>
    %289 = arith.addf %249, %288 : vector<16x32xf32>
    %c128_226 = arith.constant 128 : index
    %c0_227 = arith.constant 0 : index
    %290 = vector.load %arg9[%c128_226, %c0_227] : memref<272x32xf32, #tpu.memory_space<vmem>>, vector<16x32xf32>
    tpu.vector_store %arg9[%c128_226, %c0_227], %288 {strides = array<i32>} : memref<272x32xf32, #tpu.memory_space<vmem>>, vector<16x32xf32>,
    %c0_228 = arith.constant 0 : index
    %c0_229 = arith.constant 0 : index
    %291 = vector.load %arg9[%c0_228, %c0_229] : memref<272x32xf32, #tpu.memory_space<vmem>>, vector<16x32xf32>
    %292 = arith.truncf %291 : vector<16x32xf32> to vector<16x32xbf16>
    %c128_230 = arith.constant 128 : index
    %c0_231 = arith.constant 0 : index
    %293 = vector.load %arg9[%c128_230, %c0_231] : memref<272x32xf32, #tpu.memory_space<vmem>>, vector<16x32xf32>
    %294 = arith.truncf %293 : vector<16x32xf32> to vector<16x32xbf16>
    %c256 = arith.constant 256 : index
    %c0_232 = arith.constant 0 : index
    %295 = vector.load %arg9[%c256, %c0_232] : memref<272x32xf32, #tpu.memory_space<vmem>>, vector<16x32xf32>
    %296 = arith.truncf %295 : vector<16x32xf32> to vector<16x32xbf16>
    %c7 = arith.constant 7 : index
    %c0_233 = arith.constant 0 : index
    %c0_234 = arith.constant 0 : index
    %c0_235 = arith.constant 0 : index
    %297 = vector.load %arg4[%c7, %c0_233, %c0_234, %c0_235] : memref<8x3x32x64xbf16, #tpu.memory_space<vmem>>, vector<1x1x32x64xbf16>
    %298 = vector.shape_cast %297 : vector<1x1x32x64xbf16> to vector<32x64xbf16>
    %cst_236 = arith.constant dense<0.000000e+00> : vector<16x64xf32>
    %299 = tpu.matmul %292, %298, %cst_236 {dimension_numbers = #tpu.dot_dimension_numbers<[1], [0], [0], [1], [0, 0, 1, 1], [], []>} : vector<16x32xbf16>, vector<32x64xbf16>, vector<16x64xf32> -> vector<16x64xf32>
    %c7_237 = arith.constant 7 : index
    %c1_238 = arith.constant 1 : index
    %c0_239 = arith.constant 0 : index
    %c0_240 = arith.constant 0 : index
    %300 = vector.load %arg4[%c7_237, %c1_238, %c0_239, %c0_240] : memref<8x3x32x64xbf16, #tpu.memory_space<vmem>>, vector<1x1x32x64xbf16>
    %301 = vector.shape_cast %300 : vector<1x1x32x64xbf16> to vector<32x64xbf16>
    %cst_241 = arith.constant dense<0.000000e+00> : vector<16x64xf32>
    %302 = tpu.matmul %294, %301, %cst_241 {dimension_numbers = #tpu.dot_dimension_numbers<[1], [0], [0], [1], [0, 0, 1, 1], [], []>} : vector<16x32xbf16>, vector<32x64xbf16>, vector<16x64xf32> -> vector<16x64xf32>
    %303 = arith.addf %299, %302 : vector<16x64xf32>
    %c7_242 = arith.constant 7 : index
    %c2_243 = arith.constant 2 : index
    %c0_244 = arith.constant 0 : index
    %c0_245 = arith.constant 0 : index
    %304 = vector.load %arg4[%c7_242, %c2_243, %c0_244, %c0_245] : memref<8x3x32x64xbf16, #tpu.memory_space<vmem>>, vector<1x1x32x64xbf16>
    %305 = vector.shape_cast %304 : vector<1x1x32x64xbf16> to vector<32x64xbf16>
    %cst_246 = arith.constant dense<0.000000e+00> : vector<16x64xf32>
    %306 = tpu.matmul %296, %305, %cst_246 {dimension_numbers = #tpu.dot_dimension_numbers<[1], [0], [0], [1], [0, 0, 1, 1], [], []>} : vector<16x32xbf16>, vector<32x64xbf16>, vector<16x64xf32> -> vector<16x64xf32>
    %307 = arith.addf %303, %306 : vector<16x64xf32>
    %c7_247 = arith.constant 7 : index
    %c0_248 = arith.constant 0 : index
    %c0_249 = arith.constant 0 : index
    %308 = vector.load %arg5[%c7_247, %c0_248, %c0_249] : memref<8x1x64xf32, #tpu.memory_space<vmem>>, vector<1x1x64xf32>
    %309 = vector.shape_cast %308 : vector<1x1x64xf32> to vector<1x64xf32>
    %310 = vector.broadcast %309 : vector<1x64xf32> to vector<16x64xf32>
    %311 = arith.addf %307, %310 : vector<16x64xf32>
    %312 = vector.extract_strided_slice %311 {offsets = [0, 0], sizes = [16, 32], strides = [1, 1]} : vector<16x64xf32> to vector<16x32xf32>
    %313 = math.tanh %312 : vector<16x32xf32>
    %314 = vector.extract_strided_slice %311 {offsets = [0, 32], sizes = [16, 32], strides = [1, 1]} : vector<16x64xf32> to vector<16x32xf32>
    %315 = arith.negf %314 : vector<16x32xf32>
    %316 = math.exp %315 : vector<16x32xf32>
    %cst_250 = arith.constant 1.000000e+00 : f32
    %317 = vector.broadcast %cst_250 : f32 to vector<16x32xf32>
    %318 = arith.addf %317, %316 : vector<16x32xf32>
    %319 = arith.divf %317, %318 : vector<16x32xf32>
    %320 = arith.mulf %313, %319 : vector<16x32xf32>
    %321 = arith.truncf %320 : vector<16x32xf32> to vector<16x32xbf16>
    %c7_251 = arith.constant 7 : index
    %c0_252 = arith.constant 0 : index
    %c0_253 = arith.constant 0 : index
    %322 = vector.load %arg6[%c7_251, %c0_252, %c0_253] : memref<8x32x32xbf16, #tpu.memory_space<vmem>>, vector<1x32x32xbf16>
    %323 = vector.shape_cast %322 : vector<1x32x32xbf16> to vector<32x32xbf16>
    %cst_254 = arith.constant dense<0.000000e+00> : vector<16x32xf32>
    %324 = tpu.matmul %321, %323, %cst_254 {dimension_numbers = #tpu.dot_dimension_numbers<[1], [0], [0], [1], [0, 0, 1, 1], [], []>} : vector<16x32xbf16>, vector<32x32xbf16>, vector<16x32xf32> -> vector<16x32xf32>
    %c7_255 = arith.constant 7 : index
    %c0_256 = arith.constant 0 : index
    %c0_257 = arith.constant 0 : index
    %325 = vector.load %arg7[%c7_255, %c0_256, %c0_257] : memref<8x1x32xf32, #tpu.memory_space<vmem>>, vector<1x1x32xf32>
    %326 = vector.shape_cast %325 : vector<1x1x32xf32> to vector<1x32xf32>
    %327 = vector.broadcast %326 : vector<1x32xf32> to vector<16x32xf32>
    %328 = arith.addf %324, %327 : vector<16x32xf32>
    %329 = arith.addf %289, %328 : vector<16x32xf32>
    %c0_258 = arith.constant 0 : index
    %c0_259 = arith.constant 0 : index
    %c0_260 = arith.constant 0 : index
    %330 = vector.load %arg8[%c0_258, %c0_259, %c0_260] : memref<1x16x32xf32, #tpu.memory_space<vmem>>, vector<1x16x32xf32>
    %331 = vector.shape_cast %330 : vector<1x16x32xf32> to vector<16x32xf32>
    %332 = vector.shape_cast %329 : vector<16x32xf32> to vector<1x16x32xf32>
    tpu.vector_store %arg8[%c0_258, %c0_259, %c0_260], %332 {strides = array<i32>} : memref<1x16x32xf32, #tpu.memory_space<vmem>>, vector<1x16x32xf32>,
    return
  }
  func.func @transform_0(%arg0: i32) -> (i32, i32, i32) {
    %c0_i32 = arith.constant 0 : i32
    %c0_i32_0 = arith.constant 0 : i32
    %c0_i32_1 = arith.constant 0 : i32
    return %arg0, %c0_i32, %c0_i32_0 : i32, i32, i32
  }
  func.func @transform_1(%arg0: i32) -> (i32, i32) {
    %c0_i32 = arith.constant 0 : i32
    %c0_i32_0 = arith.constant 0 : i32
    %c0_i32_1 = arith.constant 0 : i32
    return %c0_i32, %c0_i32_0 : i32, i32
  }
  func.func @transform_2(%arg0: i32) -> (i32, i32) {
    %c0_i32 = arith.constant 0 : i32
    %c0_i32_0 = arith.constant 0 : i32
    %c0_i32_1 = arith.constant 0 : i32
    return %c0_i32, %c0_i32_0 : i32, i32
  }
  func.func @transform_3(%arg0: i32) -> (i32, i32, i32, i32) {
    %c0_i32 = arith.constant 0 : i32
    %c0_i32_0 = arith.constant 0 : i32
    %c0_i32_1 = arith.constant 0 : i32
    %c0_i32_2 = arith.constant 0 : i32
    %c0_i32_3 = arith.constant 0 : i32
    return %c0_i32, %c0_i32_0, %c0_i32_1, %c0_i32_2 : i32, i32, i32, i32
  }
  func.func @transform_4(%arg0: i32) -> (i32, i32, i32) {
    %c0_i32 = arith.constant 0 : i32
    %c0_i32_0 = arith.constant 0 : i32
    %c0_i32_1 = arith.constant 0 : i32
    %c0_i32_2 = arith.constant 0 : i32
    return %c0_i32, %c0_i32_0, %c0_i32_1 : i32, i32, i32
  }
  func.func @transform_5(%arg0: i32) -> (i32, i32, i32) {
    %c0_i32 = arith.constant 0 : i32
    %c0_i32_0 = arith.constant 0 : i32
    %c0_i32_1 = arith.constant 0 : i32
    %c0_i32_2 = arith.constant 0 : i32
    return %c0_i32, %c0_i32_0, %c0_i32_1 : i32, i32, i32
  }
  func.func @transform_6(%arg0: i32) -> (i32, i32, i32) {
    %c0_i32 = arith.constant 0 : i32
    %c0_i32_0 = arith.constant 0 : i32
    %c0_i32_1 = arith.constant 0 : i32
    %c0_i32_2 = arith.constant 0 : i32
    return %c0_i32, %c0_i32_0, %c0_i32_1 : i32, i32, i32
  }
  func.func @transform_7(%arg0: i32) -> (i32, i32, i32) {
    %c0_i32 = arith.constant 0 : i32
    %c0_i32_0 = arith.constant 0 : i32
    %c0_i32_1 = arith.constant 0 : i32
    return %arg0, %c0_i32, %c0_i32_0 : i32, i32, i32
  }
}

module attributes {stable_mosaic.version = 11 : i64} {
  func.func @_wave_block_kernel(%arg0: i32, %arg1: memref<1x16x64xf32, #tpu.memory_space<vmem>>, %arg2: memref<64x128xbf16, #tpu.memory_space<vmem>>, %arg3: memref<1x128xf32, #tpu.memory_space<vmem>>, %arg4: memref<1x3x128x256xbf16, #tpu.memory_space<vmem>>, %arg5: memref<1x1x256xf32, #tpu.memory_space<vmem>>, %arg6: memref<1x128x128xbf16, #tpu.memory_space<vmem>>, %arg7: memref<1x1x128xf32, #tpu.memory_space<vmem>>, %arg8: memref<1x16x128xf32, #tpu.memory_space<vmem>>, %arg9: memref<18x128xf32, #tpu.memory_space<vmem>>) attributes {dimension_semantics = [#tpu.dimension_semantics<parallel>], iteration_bounds = array<i64: 2>, scalar_prefetch = 0 : i64, scratch_operands = 1 : i64, tpu.core_type = #tpu.core_type<tc>, window_params = [{transform_indices = @transform_0, window_bounds = array<i64: 1, 16, 64>}, {pipeline_mode = #tpu.pipeline_mode<synchronous>, transform_indices = @transform_1, window_bounds = array<i64: 64, 128>}, {pipeline_mode = #tpu.pipeline_mode<synchronous>, transform_indices = @transform_2, window_bounds = array<i64: 1, 128>}, {pipeline_mode = #tpu.pipeline_mode<synchronous>, transform_indices = @transform_3, window_bounds = array<i64: 1, 3, 128, 256>}, {pipeline_mode = #tpu.pipeline_mode<synchronous>, transform_indices = @transform_4, window_bounds = array<i64: 1, 1, 256>}, {pipeline_mode = #tpu.pipeline_mode<synchronous>, transform_indices = @transform_5, window_bounds = array<i64: 1, 128, 128>}, {pipeline_mode = #tpu.pipeline_mode<synchronous>, transform_indices = @transform_6, window_bounds = array<i64: 1, 1, 128>}, {transform_indices = @transform_7, window_bounds = array<i64: 1, 16, 128>}]} {
    %c0 = arith.constant 0 : index
    %c0_0 = arith.constant 0 : index
    %c0_1 = arith.constant 0 : index
    %0 = vector.load %arg1[%c0, %c0_0, %c0_1] : memref<1x16x64xf32, #tpu.memory_space<vmem>>, vector<1x16x64xf32>
    %1 = vector.shape_cast %0 : vector<1x16x64xf32> to vector<16x64xf32>
    %2 = arith.truncf %1 : vector<16x64xf32> to vector<16x64xbf16>
    %c0_2 = arith.constant 0 : index
    %c0_3 = arith.constant 0 : index
    %3 = vector.load %arg2[%c0_2, %c0_3] : memref<64x128xbf16, #tpu.memory_space<vmem>>, vector<64x128xbf16>
    %cst = arith.constant dense<0.000000e+00> : vector<16x128xf32>
    %4 = tpu.matmul %2, %3, %cst {dimension_numbers = #tpu.dot_dimension_numbers<[1], [0], [0], [1], [0, 0, 1, 1], [], []>} : vector<16x64xbf16>, vector<64x128xbf16>, vector<16x128xf32> -> vector<16x128xf32>
    %c0_4 = arith.constant 0 : index
    %c0_5 = arith.constant 0 : index
    %5 = vector.load %arg3[%c0_4, %c0_5] : memref<1x128xf32, #tpu.memory_space<vmem>>, vector<1x128xf32>
    %6 = vector.broadcast %5 : vector<1x128xf32> to vector<16x128xf32>
    %7 = arith.addf %4, %6 : vector<16x128xf32>
    %cst_6 = arith.constant 0.000000e+00 : f32
    %8 = vector.broadcast %cst_6 : f32 to vector<18x128xf32>
    %c0_7 = arith.constant 0 : index
    %c0_8 = arith.constant 0 : index
    %9 = vector.load %arg9[%c0_7, %c0_8] : memref<18x128xf32, #tpu.memory_space<vmem>>, vector<18x128xf32>
    tpu.vector_store %arg9[%c0_7, %c0_8], %8 {strides = array<i32>} : memref<18x128xf32, #tpu.memory_space<vmem>>, vector<18x128xf32>,
    %c1 = arith.constant 1 : index
    %c0_9 = arith.constant 0 : index
    %10 = vector.load %arg9[%c1, %c0_9] : memref<18x128xf32, #tpu.memory_space<vmem>>, vector<16x128xf32>
    tpu.vector_store %arg9[%c1, %c0_9], %7 {strides = array<i32>} : memref<18x128xf32, #tpu.memory_space<vmem>>, vector<16x128xf32>,
    %c0_10 = arith.constant 0 : index
    %c0_11 = arith.constant 0 : index
    %11 = vector.load %arg9[%c0_10, %c0_11] : memref<18x128xf32, #tpu.memory_space<vmem>>, vector<16x128xf32>
    %12 = arith.truncf %11 : vector<16x128xf32> to vector<16x128xbf16>
    %c1_12 = arith.constant 1 : index
    %c0_13 = arith.constant 0 : index
    %13 = vector.load %arg9[%c1_12, %c0_13] : memref<18x128xf32, #tpu.memory_space<vmem>>, vector<16x128xf32>
    %14 = arith.truncf %13 : vector<16x128xf32> to vector<16x128xbf16>
    %c2 = arith.constant 2 : index
    %c0_14 = arith.constant 0 : index
    %15 = vector.load %arg9[%c2, %c0_14] : memref<18x128xf32, #tpu.memory_space<vmem>>, vector<16x128xf32>
    %16 = arith.truncf %15 : vector<16x128xf32> to vector<16x128xbf16>
    %c0_15 = arith.constant 0 : index
    %c0_16 = arith.constant 0 : index
    %c0_17 = arith.constant 0 : index
    %c0_18 = arith.constant 0 : index
    %17 = vector.load %arg4[%c0_15, %c0_16, %c0_17, %c0_18] : memref<1x3x128x256xbf16, #tpu.memory_space<vmem>>, vector<1x1x128x256xbf16>
    %18 = vector.shape_cast %17 : vector<1x1x128x256xbf16> to vector<128x256xbf16>
    %cst_19 = arith.constant dense<0.000000e+00> : vector<16x256xf32>
    %19 = tpu.matmul %12, %18, %cst_19 {dimension_numbers = #tpu.dot_dimension_numbers<[1], [0], [0], [1], [0, 0, 1, 1], [], []>} : vector<16x128xbf16>, vector<128x256xbf16>, vector<16x256xf32> -> vector<16x256xf32>
    %c0_20 = arith.constant 0 : index
    %c1_21 = arith.constant 1 : index
    %c0_22 = arith.constant 0 : index
    %c0_23 = arith.constant 0 : index
    %20 = vector.load %arg4[%c0_20, %c1_21, %c0_22, %c0_23] : memref<1x3x128x256xbf16, #tpu.memory_space<vmem>>, vector<1x1x128x256xbf16>
    %21 = vector.shape_cast %20 : vector<1x1x128x256xbf16> to vector<128x256xbf16>
    %cst_24 = arith.constant dense<0.000000e+00> : vector<16x256xf32>
    %22 = tpu.matmul %14, %21, %cst_24 {dimension_numbers = #tpu.dot_dimension_numbers<[1], [0], [0], [1], [0, 0, 1, 1], [], []>} : vector<16x128xbf16>, vector<128x256xbf16>, vector<16x256xf32> -> vector<16x256xf32>
    %23 = arith.addf %19, %22 : vector<16x256xf32>
    %c0_25 = arith.constant 0 : index
    %c2_26 = arith.constant 2 : index
    %c0_27 = arith.constant 0 : index
    %c0_28 = arith.constant 0 : index
    %24 = vector.load %arg4[%c0_25, %c2_26, %c0_27, %c0_28] : memref<1x3x128x256xbf16, #tpu.memory_space<vmem>>, vector<1x1x128x256xbf16>
    %25 = vector.shape_cast %24 : vector<1x1x128x256xbf16> to vector<128x256xbf16>
    %cst_29 = arith.constant dense<0.000000e+00> : vector<16x256xf32>
    %26 = tpu.matmul %16, %25, %cst_29 {dimension_numbers = #tpu.dot_dimension_numbers<[1], [0], [0], [1], [0, 0, 1, 1], [], []>} : vector<16x128xbf16>, vector<128x256xbf16>, vector<16x256xf32> -> vector<16x256xf32>
    %27 = arith.addf %23, %26 : vector<16x256xf32>
    %c0_30 = arith.constant 0 : index
    %c0_31 = arith.constant 0 : index
    %c0_32 = arith.constant 0 : index
    %28 = vector.load %arg5[%c0_30, %c0_31, %c0_32] : memref<1x1x256xf32, #tpu.memory_space<vmem>>, vector<1x1x256xf32>
    %29 = vector.shape_cast %28 : vector<1x1x256xf32> to vector<1x256xf32>
    %30 = vector.broadcast %29 : vector<1x256xf32> to vector<16x256xf32>
    %31 = arith.addf %27, %30 : vector<16x256xf32>
    %32 = vector.extract_strided_slice %31 {offsets = [0, 0], sizes = [16, 128], strides = [1, 1]} : vector<16x256xf32> to vector<16x128xf32>
    %33 = math.tanh %32 : vector<16x128xf32>
    %34 = vector.extract_strided_slice %31 {offsets = [0, 128], sizes = [16, 128], strides = [1, 1]} : vector<16x256xf32> to vector<16x128xf32>
    %35 = arith.negf %34 : vector<16x128xf32>
    %36 = math.exp %35 : vector<16x128xf32>
    %cst_33 = arith.constant 1.000000e+00 : f32
    %37 = vector.broadcast %cst_33 : f32 to vector<16x128xf32>
    %38 = arith.addf %37, %36 : vector<16x128xf32>
    %39 = arith.divf %37, %38 : vector<16x128xf32>
    %40 = arith.mulf %33, %39 : vector<16x128xf32>
    %41 = arith.truncf %40 : vector<16x128xf32> to vector<16x128xbf16>
    %c0_34 = arith.constant 0 : index
    %c0_35 = arith.constant 0 : index
    %c0_36 = arith.constant 0 : index
    %42 = vector.load %arg6[%c0_34, %c0_35, %c0_36] : memref<1x128x128xbf16, #tpu.memory_space<vmem>>, vector<1x128x128xbf16>
    %43 = vector.shape_cast %42 : vector<1x128x128xbf16> to vector<128x128xbf16>
    %cst_37 = arith.constant dense<0.000000e+00> : vector<16x128xf32>
    %44 = tpu.matmul %41, %43, %cst_37 {dimension_numbers = #tpu.dot_dimension_numbers<[1], [0], [0], [1], [0, 0, 1, 1], [], []>} : vector<16x128xbf16>, vector<128x128xbf16>, vector<16x128xf32> -> vector<16x128xf32>
    %c0_38 = arith.constant 0 : index
    %c0_39 = arith.constant 0 : index
    %c0_40 = arith.constant 0 : index
    %45 = vector.load %arg7[%c0_38, %c0_39, %c0_40] : memref<1x1x128xf32, #tpu.memory_space<vmem>>, vector<1x1x128xf32>
    %46 = vector.shape_cast %45 : vector<1x1x128xf32> to vector<1x128xf32>
    %47 = vector.broadcast %46 : vector<1x128xf32> to vector<16x128xf32>
    %48 = arith.addf %44, %47 : vector<16x128xf32>
    %49 = arith.addf %7, %48 : vector<16x128xf32>
    %c0_41 = arith.constant 0 : index
    %c0_42 = arith.constant 0 : index
    %c0_43 = arith.constant 0 : index
    %50 = vector.load %arg8[%c0_41, %c0_42, %c0_43] : memref<1x16x128xf32, #tpu.memory_space<vmem>>, vector<1x16x128xf32>
    %51 = vector.shape_cast %50 : vector<1x16x128xf32> to vector<16x128xf32>
    %52 = vector.shape_cast %49 : vector<16x128xf32> to vector<1x16x128xf32>
    tpu.vector_store %arg8[%c0_41, %c0_42, %c0_43], %52 {strides = array<i32>} : memref<1x16x128xf32, #tpu.memory_space<vmem>>, vector<1x16x128xf32>,
    return
  }
  func.func @transform_0(%arg0: i32) -> (i32, i32, i32) {
    %c0_i32 = arith.constant 0 : i32
    %c0_i32_0 = arith.constant 0 : i32
    %c0_i32_1 = arith.constant 0 : i32
    return %arg0, %c0_i32, %c0_i32_0 : i32, i32, i32
  }
  func.func @transform_1(%arg0: i32) -> (i32, i32) {
    %c0_i32 = arith.constant 0 : i32
    %c0_i32_0 = arith.constant 0 : i32
    %c0_i32_1 = arith.constant 0 : i32
    return %c0_i32, %c0_i32_0 : i32, i32
  }
  func.func @transform_2(%arg0: i32) -> (i32, i32) {
    %c0_i32 = arith.constant 0 : i32
    %c0_i32_0 = arith.constant 0 : i32
    %c0_i32_1 = arith.constant 0 : i32
    return %c0_i32, %c0_i32_0 : i32, i32
  }
  func.func @transform_3(%arg0: i32) -> (i32, i32, i32, i32) {
    %c0_i32 = arith.constant 0 : i32
    %c0_i32_0 = arith.constant 0 : i32
    %c0_i32_1 = arith.constant 0 : i32
    %c0_i32_2 = arith.constant 0 : i32
    %c0_i32_3 = arith.constant 0 : i32
    return %c0_i32, %c0_i32_0, %c0_i32_1, %c0_i32_2 : i32, i32, i32, i32
  }
  func.func @transform_4(%arg0: i32) -> (i32, i32, i32) {
    %c0_i32 = arith.constant 0 : i32
    %c0_i32_0 = arith.constant 0 : i32
    %c0_i32_1 = arith.constant 0 : i32
    %c0_i32_2 = arith.constant 0 : i32
    return %c0_i32, %c0_i32_0, %c0_i32_1 : i32, i32, i32
  }
  func.func @transform_5(%arg0: i32) -> (i32, i32, i32) {
    %c0_i32 = arith.constant 0 : i32
    %c0_i32_0 = arith.constant 0 : i32
    %c0_i32_1 = arith.constant 0 : i32
    %c0_i32_2 = arith.constant 0 : i32
    return %c0_i32, %c0_i32_0, %c0_i32_1 : i32, i32, i32
  }
  func.func @transform_6(%arg0: i32) -> (i32, i32, i32) {
    %c0_i32 = arith.constant 0 : i32
    %c0_i32_0 = arith.constant 0 : i32
    %c0_i32_1 = arith.constant 0 : i32
    %c0_i32_2 = arith.constant 0 : i32
    return %c0_i32, %c0_i32_0, %c0_i32_1 : i32, i32, i32
  }
  func.func @transform_7(%arg0: i32) -> (i32, i32, i32) {
    %c0_i32 = arith.constant 0 : i32
    %c0_i32_0 = arith.constant 0 : i32
    %c0_i32_1 = arith.constant 0 : i32
    return %arg0, %c0_i32, %c0_i32_0 : i32, i32, i32
  }
}

module attributes {stable_mosaic.version = 11 : i64} {
  func.func @_wave_block_kernel(%arg0: i32, %arg1: memref<1x16x32xf32, #tpu.memory_space<vmem>>, %arg2: memref<32x64xbf16, #tpu.memory_space<vmem>>, %arg3: memref<1x64xf32, #tpu.memory_space<vmem>>, %arg4: memref<4x3x64x128xbf16, #tpu.memory_space<vmem>>, %arg5: memref<4x1x128xf32, #tpu.memory_space<vmem>>, %arg6: memref<4x64x64xbf16, #tpu.memory_space<vmem>>, %arg7: memref<4x1x64xf32, #tpu.memory_space<vmem>>, %arg8: memref<1x16x64xf32, #tpu.memory_space<vmem>>, %arg9: memref<32x64xf32, #tpu.memory_space<vmem>>) attributes {dimension_semantics = [#tpu.dimension_semantics<parallel>], iteration_bounds = array<i64: 2>, scalar_prefetch = 0 : i64, scratch_operands = 1 : i64, tpu.core_type = #tpu.core_type<tc>, window_params = [{transform_indices = @transform_0, window_bounds = array<i64: 1, 16, 32>}, {pipeline_mode = #tpu.pipeline_mode<synchronous>, transform_indices = @transform_1, window_bounds = array<i64: 32, 64>}, {pipeline_mode = #tpu.pipeline_mode<synchronous>, transform_indices = @transform_2, window_bounds = array<i64: 1, 64>}, {pipeline_mode = #tpu.pipeline_mode<synchronous>, transform_indices = @transform_3, window_bounds = array<i64: 4, 3, 64, 128>}, {pipeline_mode = #tpu.pipeline_mode<synchronous>, transform_indices = @transform_4, window_bounds = array<i64: 4, 1, 128>}, {pipeline_mode = #tpu.pipeline_mode<synchronous>, transform_indices = @transform_5, window_bounds = array<i64: 4, 64, 64>}, {pipeline_mode = #tpu.pipeline_mode<synchronous>, transform_indices = @transform_6, window_bounds = array<i64: 4, 1, 64>}, {transform_indices = @transform_7, window_bounds = array<i64: 1, 16, 64>}]} {
    %c0 = arith.constant 0 : index
    %c0_0 = arith.constant 0 : index
    %c0_1 = arith.constant 0 : index
    %0 = vector.load %arg1[%c0, %c0_0, %c0_1] : memref<1x16x32xf32, #tpu.memory_space<vmem>>, vector<1x16x32xf32>
    %1 = vector.shape_cast %0 : vector<1x16x32xf32> to vector<16x32xf32>
    %2 = arith.truncf %1 : vector<16x32xf32> to vector<16x32xbf16>
    %c0_2 = arith.constant 0 : index
    %c0_3 = arith.constant 0 : index
    %3 = vector.load %arg2[%c0_2, %c0_3] : memref<32x64xbf16, #tpu.memory_space<vmem>>, vector<32x64xbf16>
    %cst = arith.constant dense<0.000000e+00> : vector<16x64xf32>
    %4 = tpu.matmul %2, %3, %cst {dimension_numbers = #tpu.dot_dimension_numbers<[1], [0], [0], [1], [0, 0, 1, 1], [], []>} : vector<16x32xbf16>, vector<32x64xbf16>, vector<16x64xf32> -> vector<16x64xf32>
    %c0_4 = arith.constant 0 : index
    %c0_5 = arith.constant 0 : index
    %5 = vector.load %arg3[%c0_4, %c0_5] : memref<1x64xf32, #tpu.memory_space<vmem>>, vector<1x64xf32>
    %6 = vector.broadcast %5 : vector<1x64xf32> to vector<16x64xf32>
    %7 = arith.addf %4, %6 : vector<16x64xf32>
    %cst_6 = arith.constant 0.000000e+00 : f32
    %8 = vector.broadcast %cst_6 : f32 to vector<32x64xf32>
    %c0_7 = arith.constant 0 : index
    %c0_8 = arith.constant 0 : index
    %9 = vector.load %arg9[%c0_7, %c0_8] : memref<32x64xf32, #tpu.memory_space<vmem>>, vector<32x64xf32>
    tpu.vector_store %arg9[%c0_7, %c0_8], %8 {strides = array<i32>} : memref<32x64xf32, #tpu.memory_space<vmem>>, vector<32x64xf32>,
    %c8 = arith.constant 8 : index
    %c0_9 = arith.constant 0 : index
    %10 = vector.load %arg9[%c8, %c0_9] : memref<32x64xf32, #tpu.memory_space<vmem>>, vector<16x64xf32>
    tpu.vector_store %arg9[%c8, %c0_9], %7 {strides = array<i32>} : memref<32x64xf32, #tpu.memory_space<vmem>>, vector<16x64xf32>,
    %c7 = arith.constant 7 : index
    %c0_10 = arith.constant 0 : index
    %11 = vector.load %arg9[%c7, %c0_10] : memref<32x64xf32, #tpu.memory_space<vmem>>, vector<16x64xf32>
    %12 = arith.truncf %11 : vector<16x64xf32> to vector<16x64xbf16>
    %c8_11 = arith.constant 8 : index
    %c0_12 = arith.constant 0 : index
    %13 = vector.load %arg9[%c8_11, %c0_12] : memref<32x64xf32, #tpu.memory_space<vmem>>, vector<16x64xf32>
    %14 = arith.truncf %13 : vector<16x64xf32> to vector<16x64xbf16>
    %c9 = arith.constant 9 : index
    %c0_13 = arith.constant 0 : index
    %15 = vector.load %arg9[%c9, %c0_13] : memref<32x64xf32, #tpu.memory_space<vmem>>, vector<16x64xf32>
    %16 = arith.truncf %15 : vector<16x64xf32> to vector<16x64xbf16>
    %c0_14 = arith.constant 0 : index
    %c0_15 = arith.constant 0 : index
    %c0_16 = arith.constant 0 : index
    %c0_17 = arith.constant 0 : index
    %17 = vector.load %arg4[%c0_14, %c0_15, %c0_16, %c0_17] : memref<4x3x64x128xbf16, #tpu.memory_space<vmem>>, vector<1x1x64x128xbf16>
    %18 = vector.shape_cast %17 : vector<1x1x64x128xbf16> to vector<64x128xbf16>
    %cst_18 = arith.constant dense<0.000000e+00> : vector<16x128xf32>
    %19 = tpu.matmul %12, %18, %cst_18 {dimension_numbers = #tpu.dot_dimension_numbers<[1], [0], [0], [1], [0, 0, 1, 1], [], []>} : vector<16x64xbf16>, vector<64x128xbf16>, vector<16x128xf32> -> vector<16x128xf32>
    %c0_19 = arith.constant 0 : index
    %c1 = arith.constant 1 : index
    %c0_20 = arith.constant 0 : index
    %c0_21 = arith.constant 0 : index
    %20 = vector.load %arg4[%c0_19, %c1, %c0_20, %c0_21] : memref<4x3x64x128xbf16, #tpu.memory_space<vmem>>, vector<1x1x64x128xbf16>
    %21 = vector.shape_cast %20 : vector<1x1x64x128xbf16> to vector<64x128xbf16>
    %cst_22 = arith.constant dense<0.000000e+00> : vector<16x128xf32>
    %22 = tpu.matmul %14, %21, %cst_22 {dimension_numbers = #tpu.dot_dimension_numbers<[1], [0], [0], [1], [0, 0, 1, 1], [], []>} : vector<16x64xbf16>, vector<64x128xbf16>, vector<16x128xf32> -> vector<16x128xf32>
    %23 = arith.addf %19, %22 : vector<16x128xf32>
    %c0_23 = arith.constant 0 : index
    %c2 = arith.constant 2 : index
    %c0_24 = arith.constant 0 : index
    %c0_25 = arith.constant 0 : index
    %24 = vector.load %arg4[%c0_23, %c2, %c0_24, %c0_25] : memref<4x3x64x128xbf16, #tpu.memory_space<vmem>>, vector<1x1x64x128xbf16>
    %25 = vector.shape_cast %24 : vector<1x1x64x128xbf16> to vector<64x128xbf16>
    %cst_26 = arith.constant dense<0.000000e+00> : vector<16x128xf32>
    %26 = tpu.matmul %16, %25, %cst_26 {dimension_numbers = #tpu.dot_dimension_numbers<[1], [0], [0], [1], [0, 0, 1, 1], [], []>} : vector<16x64xbf16>, vector<64x128xbf16>, vector<16x128xf32> -> vector<16x128xf32>
    %27 = arith.addf %23, %26 : vector<16x128xf32>
    %c0_27 = arith.constant 0 : index
    %c0_28 = arith.constant 0 : index
    %c0_29 = arith.constant 0 : index
    %28 = vector.load %arg5[%c0_27, %c0_28, %c0_29] : memref<4x1x128xf32, #tpu.memory_space<vmem>>, vector<1x1x128xf32>
    %29 = vector.shape_cast %28 : vector<1x1x128xf32> to vector<1x128xf32>
    %30 = vector.broadcast %29 : vector<1x128xf32> to vector<16x128xf32>
    %31 = arith.addf %27, %30 : vector<16x128xf32>
    %32 = vector.extract_strided_slice %31 {offsets = [0, 0], sizes = [16, 64], strides = [1, 1]} : vector<16x128xf32> to vector<16x64xf32>
    %33 = math.tanh %32 : vector<16x64xf32>
    %34 = vector.extract_strided_slice %31 {offsets = [0, 64], sizes = [16, 64], strides = [1, 1]} : vector<16x128xf32> to vector<16x64xf32>
    %35 = arith.negf %34 : vector<16x64xf32>
    %36 = math.exp %35 : vector<16x64xf32>
    %cst_30 = arith.constant 1.000000e+00 : f32
    %37 = vector.broadcast %cst_30 : f32 to vector<16x64xf32>
    %38 = arith.addf %37, %36 : vector<16x64xf32>
    %39 = arith.divf %37, %38 : vector<16x64xf32>
    %40 = arith.mulf %33, %39 : vector<16x64xf32>
    %41 = arith.truncf %40 : vector<16x64xf32> to vector<16x64xbf16>
    %c0_31 = arith.constant 0 : index
    %c0_32 = arith.constant 0 : index
    %c0_33 = arith.constant 0 : index
    %42 = vector.load %arg6[%c0_31, %c0_32, %c0_33] : memref<4x64x64xbf16, #tpu.memory_space<vmem>>, vector<1x64x64xbf16>
    %43 = vector.shape_cast %42 : vector<1x64x64xbf16> to vector<64x64xbf16>
    %cst_34 = arith.constant dense<0.000000e+00> : vector<16x64xf32>
    %44 = tpu.matmul %41, %43, %cst_34 {dimension_numbers = #tpu.dot_dimension_numbers<[1], [0], [0], [1], [0, 0, 1, 1], [], []>} : vector<16x64xbf16>, vector<64x64xbf16>, vector<16x64xf32> -> vector<16x64xf32>
    %c0_35 = arith.constant 0 : index
    %c0_36 = arith.constant 0 : index
    %c0_37 = arith.constant 0 : index
    %45 = vector.load %arg7[%c0_35, %c0_36, %c0_37] : memref<4x1x64xf32, #tpu.memory_space<vmem>>, vector<1x1x64xf32>
    %46 = vector.shape_cast %45 : vector<1x1x64xf32> to vector<1x64xf32>
    %47 = vector.broadcast %46 : vector<1x64xf32> to vector<16x64xf32>
    %48 = arith.addf %44, %47 : vector<16x64xf32>
    %49 = arith.addf %7, %48 : vector<16x64xf32>
    %c8_38 = arith.constant 8 : index
    %c0_39 = arith.constant 0 : index
    %50 = vector.load %arg9[%c8_38, %c0_39] : memref<32x64xf32, #tpu.memory_space<vmem>>, vector<16x64xf32>
    tpu.vector_store %arg9[%c8_38, %c0_39], %48 {strides = array<i32>} : memref<32x64xf32, #tpu.memory_space<vmem>>, vector<16x64xf32>,
    %c6 = arith.constant 6 : index
    %c0_40 = arith.constant 0 : index
    %51 = vector.load %arg9[%c6, %c0_40] : memref<32x64xf32, #tpu.memory_space<vmem>>, vector<16x64xf32>
    %52 = arith.truncf %51 : vector<16x64xf32> to vector<16x64xbf16>
    %c8_41 = arith.constant 8 : index
    %c0_42 = arith.constant 0 : index
    %53 = vector.load %arg9[%c8_41, %c0_42] : memref<32x64xf32, #tpu.memory_space<vmem>>, vector<16x64xf32>
    %54 = arith.truncf %53 : vector<16x64xf32> to vector<16x64xbf16>
    %c10 = arith.constant 10 : index
    %c0_43 = arith.constant 0 : index
    %55 = vector.load %arg9[%c10, %c0_43] : memref<32x64xf32, #tpu.memory_space<vmem>>, vector<16x64xf32>
    %56 = arith.truncf %55 : vector<16x64xf32> to vector<16x64xbf16>
    %c1_44 = arith.constant 1 : index
    %c0_45 = arith.constant 0 : index
    %c0_46 = arith.constant 0 : index
    %c0_47 = arith.constant 0 : index
    %57 = vector.load %arg4[%c1_44, %c0_45, %c0_46, %c0_47] : memref<4x3x64x128xbf16, #tpu.memory_space<vmem>>, vector<1x1x64x128xbf16>
    %58 = vector.shape_cast %57 : vector<1x1x64x128xbf16> to vector<64x128xbf16>
    %cst_48 = arith.constant dense<0.000000e+00> : vector<16x128xf32>
    %59 = tpu.matmul %52, %58, %cst_48 {dimension_numbers = #tpu.dot_dimension_numbers<[1], [0], [0], [1], [0, 0, 1, 1], [], []>} : vector<16x64xbf16>, vector<64x128xbf16>, vector<16x128xf32> -> vector<16x128xf32>
    %c1_49 = arith.constant 1 : index
    %c1_50 = arith.constant 1 : index
    %c0_51 = arith.constant 0 : index
    %c0_52 = arith.constant 0 : index
    %60 = vector.load %arg4[%c1_49, %c1_50, %c0_51, %c0_52] : memref<4x3x64x128xbf16, #tpu.memory_space<vmem>>, vector<1x1x64x128xbf16>
    %61 = vector.shape_cast %60 : vector<1x1x64x128xbf16> to vector<64x128xbf16>
    %cst_53 = arith.constant dense<0.000000e+00> : vector<16x128xf32>
    %62 = tpu.matmul %54, %61, %cst_53 {dimension_numbers = #tpu.dot_dimension_numbers<[1], [0], [0], [1], [0, 0, 1, 1], [], []>} : vector<16x64xbf16>, vector<64x128xbf16>, vector<16x128xf32> -> vector<16x128xf32>
    %63 = arith.addf %59, %62 : vector<16x128xf32>
    %c1_54 = arith.constant 1 : index
    %c2_55 = arith.constant 2 : index
    %c0_56 = arith.constant 0 : index
    %c0_57 = arith.constant 0 : index
    %64 = vector.load %arg4[%c1_54, %c2_55, %c0_56, %c0_57] : memref<4x3x64x128xbf16, #tpu.memory_space<vmem>>, vector<1x1x64x128xbf16>
    %65 = vector.shape_cast %64 : vector<1x1x64x128xbf16> to vector<64x128xbf16>
    %cst_58 = arith.constant dense<0.000000e+00> : vector<16x128xf32>
    %66 = tpu.matmul %56, %65, %cst_58 {dimension_numbers = #tpu.dot_dimension_numbers<[1], [0], [0], [1], [0, 0, 1, 1], [], []>} : vector<16x64xbf16>, vector<64x128xbf16>, vector<16x128xf32> -> vector<16x128xf32>
    %67 = arith.addf %63, %66 : vector<16x128xf32>
    %c1_59 = arith.constant 1 : index
    %c0_60 = arith.constant 0 : index
    %c0_61 = arith.constant 0 : index
    %68 = vector.load %arg5[%c1_59, %c0_60, %c0_61] : memref<4x1x128xf32, #tpu.memory_space<vmem>>, vector<1x1x128xf32>
    %69 = vector.shape_cast %68 : vector<1x1x128xf32> to vector<1x128xf32>
    %70 = vector.broadcast %69 : vector<1x128xf32> to vector<16x128xf32>
    %71 = arith.addf %67, %70 : vector<16x128xf32>
    %72 = vector.extract_strided_slice %71 {offsets = [0, 0], sizes = [16, 64], strides = [1, 1]} : vector<16x128xf32> to vector<16x64xf32>
    %73 = math.tanh %72 : vector<16x64xf32>
    %74 = vector.extract_strided_slice %71 {offsets = [0, 64], sizes = [16, 64], strides = [1, 1]} : vector<16x128xf32> to vector<16x64xf32>
    %75 = arith.negf %74 : vector<16x64xf32>
    %76 = math.exp %75 : vector<16x64xf32>
    %cst_62 = arith.constant 1.000000e+00 : f32
    %77 = vector.broadcast %cst_62 : f32 to vector<16x64xf32>
    %78 = arith.addf %77, %76 : vector<16x64xf32>
    %79 = arith.divf %77, %78 : vector<16x64xf32>
    %80 = arith.mulf %73, %79 : vector<16x64xf32>
    %81 = arith.truncf %80 : vector<16x64xf32> to vector<16x64xbf16>
    %c1_63 = arith.constant 1 : index
    %c0_64 = arith.constant 0 : index
    %c0_65 = arith.constant 0 : index
    %82 = vector.load %arg6[%c1_63, %c0_64, %c0_65] : memref<4x64x64xbf16, #tpu.memory_space<vmem>>, vector<1x64x64xbf16>
    %83 = vector.shape_cast %82 : vector<1x64x64xbf16> to vector<64x64xbf16>
    %cst_66 = arith.constant dense<0.000000e+00> : vector<16x64xf32>
    %84 = tpu.matmul %81, %83, %cst_66 {dimension_numbers = #tpu.dot_dimension_numbers<[1], [0], [0], [1], [0, 0, 1, 1], [], []>} : vector<16x64xbf16>, vector<64x64xbf16>, vector<16x64xf32> -> vector<16x64xf32>
    %c1_67 = arith.constant 1 : index
    %c0_68 = arith.constant 0 : index
    %c0_69 = arith.constant 0 : index
    %85 = vector.load %arg7[%c1_67, %c0_68, %c0_69] : memref<4x1x64xf32, #tpu.memory_space<vmem>>, vector<1x1x64xf32>
    %86 = vector.shape_cast %85 : vector<1x1x64xf32> to vector<1x64xf32>
    %87 = vector.broadcast %86 : vector<1x64xf32> to vector<16x64xf32>
    %88 = arith.addf %84, %87 : vector<16x64xf32>
    %89 = arith.addf %49, %88 : vector<16x64xf32>
    %c8_70 = arith.constant 8 : index
    %c0_71 = arith.constant 0 : index
    %90 = vector.load %arg9[%c8_70, %c0_71] : memref<32x64xf32, #tpu.memory_space<vmem>>, vector<16x64xf32>
    tpu.vector_store %arg9[%c8_70, %c0_71], %88 {strides = array<i32>} : memref<32x64xf32, #tpu.memory_space<vmem>>, vector<16x64xf32>,
    %c4 = arith.constant 4 : index
    %c0_72 = arith.constant 0 : index
    %91 = vector.load %arg9[%c4, %c0_72] : memref<32x64xf32, #tpu.memory_space<vmem>>, vector<16x64xf32>
    %92 = arith.truncf %91 : vector<16x64xf32> to vector<16x64xbf16>
    %c8_73 = arith.constant 8 : index
    %c0_74 = arith.constant 0 : index
    %93 = vector.load %arg9[%c8_73, %c0_74] : memref<32x64xf32, #tpu.memory_space<vmem>>, vector<16x64xf32>
    %94 = arith.truncf %93 : vector<16x64xf32> to vector<16x64xbf16>
    %c12 = arith.constant 12 : index
    %c0_75 = arith.constant 0 : index
    %95 = vector.load %arg9[%c12, %c0_75] : memref<32x64xf32, #tpu.memory_space<vmem>>, vector<16x64xf32>
    %96 = arith.truncf %95 : vector<16x64xf32> to vector<16x64xbf16>
    %c2_76 = arith.constant 2 : index
    %c0_77 = arith.constant 0 : index
    %c0_78 = arith.constant 0 : index
    %c0_79 = arith.constant 0 : index
    %97 = vector.load %arg4[%c2_76, %c0_77, %c0_78, %c0_79] : memref<4x3x64x128xbf16, #tpu.memory_space<vmem>>, vector<1x1x64x128xbf16>
    %98 = vector.shape_cast %97 : vector<1x1x64x128xbf16> to vector<64x128xbf16>
    %cst_80 = arith.constant dense<0.000000e+00> : vector<16x128xf32>
    %99 = tpu.matmul %92, %98, %cst_80 {dimension_numbers = #tpu.dot_dimension_numbers<[1], [0], [0], [1], [0, 0, 1, 1], [], []>} : vector<16x64xbf16>, vector<64x128xbf16>, vector<16x128xf32> -> vector<16x128xf32>
    %c2_81 = arith.constant 2 : index
    %c1_82 = arith.constant 1 : index
    %c0_83 = arith.constant 0 : index
    %c0_84 = arith.constant 0 : index
    %100 = vector.load %arg4[%c2_81, %c1_82, %c0_83, %c0_84] : memref<4x3x64x128xbf16, #tpu.memory_space<vmem>>, vector<1x1x64x128xbf16>
    %101 = vector.shape_cast %100 : vector<1x1x64x128xbf16> to vector<64x128xbf16>
    %cst_85 = arith.constant dense<0.000000e+00> : vector<16x128xf32>
    %102 = tpu.matmul %94, %101, %cst_85 {dimension_numbers = #tpu.dot_dimension_numbers<[1], [0], [0], [1], [0, 0, 1, 1], [], []>} : vector<16x64xbf16>, vector<64x128xbf16>, vector<16x128xf32> -> vector<16x128xf32>
    %103 = arith.addf %99, %102 : vector<16x128xf32>
    %c2_86 = arith.constant 2 : index
    %c2_87 = arith.constant 2 : index
    %c0_88 = arith.constant 0 : index
    %c0_89 = arith.constant 0 : index
    %104 = vector.load %arg4[%c2_86, %c2_87, %c0_88, %c0_89] : memref<4x3x64x128xbf16, #tpu.memory_space<vmem>>, vector<1x1x64x128xbf16>
    %105 = vector.shape_cast %104 : vector<1x1x64x128xbf16> to vector<64x128xbf16>
    %cst_90 = arith.constant dense<0.000000e+00> : vector<16x128xf32>
    %106 = tpu.matmul %96, %105, %cst_90 {dimension_numbers = #tpu.dot_dimension_numbers<[1], [0], [0], [1], [0, 0, 1, 1], [], []>} : vector<16x64xbf16>, vector<64x128xbf16>, vector<16x128xf32> -> vector<16x128xf32>
    %107 = arith.addf %103, %106 : vector<16x128xf32>
    %c2_91 = arith.constant 2 : index
    %c0_92 = arith.constant 0 : index
    %c0_93 = arith.constant 0 : index
    %108 = vector.load %arg5[%c2_91, %c0_92, %c0_93] : memref<4x1x128xf32, #tpu.memory_space<vmem>>, vector<1x1x128xf32>
    %109 = vector.shape_cast %108 : vector<1x1x128xf32> to vector<1x128xf32>
    %110 = vector.broadcast %109 : vector<1x128xf32> to vector<16x128xf32>
    %111 = arith.addf %107, %110 : vector<16x128xf32>
    %112 = vector.extract_strided_slice %111 {offsets = [0, 0], sizes = [16, 64], strides = [1, 1]} : vector<16x128xf32> to vector<16x64xf32>
    %113 = math.tanh %112 : vector<16x64xf32>
    %114 = vector.extract_strided_slice %111 {offsets = [0, 64], sizes = [16, 64], strides = [1, 1]} : vector<16x128xf32> to vector<16x64xf32>
    %115 = arith.negf %114 : vector<16x64xf32>
    %116 = math.exp %115 : vector<16x64xf32>
    %cst_94 = arith.constant 1.000000e+00 : f32
    %117 = vector.broadcast %cst_94 : f32 to vector<16x64xf32>
    %118 = arith.addf %117, %116 : vector<16x64xf32>
    %119 = arith.divf %117, %118 : vector<16x64xf32>
    %120 = arith.mulf %113, %119 : vector<16x64xf32>
    %121 = arith.truncf %120 : vector<16x64xf32> to vector<16x64xbf16>
    %c2_95 = arith.constant 2 : index
    %c0_96 = arith.constant 0 : index
    %c0_97 = arith.constant 0 : index
    %122 = vector.load %arg6[%c2_95, %c0_96, %c0_97] : memref<4x64x64xbf16, #tpu.memory_space<vmem>>, vector<1x64x64xbf16>
    %123 = vector.shape_cast %122 : vector<1x64x64xbf16> to vector<64x64xbf16>
    %cst_98 = arith.constant dense<0.000000e+00> : vector<16x64xf32>
    %124 = tpu.matmul %121, %123, %cst_98 {dimension_numbers = #tpu.dot_dimension_numbers<[1], [0], [0], [1], [0, 0, 1, 1], [], []>} : vector<16x64xbf16>, vector<64x64xbf16>, vector<16x64xf32> -> vector<16x64xf32>
    %c2_99 = arith.constant 2 : index
    %c0_100 = arith.constant 0 : index
    %c0_101 = arith.constant 0 : index
    %125 = vector.load %arg7[%c2_99, %c0_100, %c0_101] : memref<4x1x64xf32, #tpu.memory_space<vmem>>, vector<1x1x64xf32>
    %126 = vector.shape_cast %125 : vector<1x1x64xf32> to vector<1x64xf32>
    %127 = vector.broadcast %126 : vector<1x64xf32> to vector<16x64xf32>
    %128 = arith.addf %124, %127 : vector<16x64xf32>
    %129 = arith.addf %89, %128 : vector<16x64xf32>
    %c8_102 = arith.constant 8 : index
    %c0_103 = arith.constant 0 : index
    %130 = vector.load %arg9[%c8_102, %c0_103] : memref<32x64xf32, #tpu.memory_space<vmem>>, vector<16x64xf32>
    tpu.vector_store %arg9[%c8_102, %c0_103], %128 {strides = array<i32>} : memref<32x64xf32, #tpu.memory_space<vmem>>, vector<16x64xf32>,
    %c0_104 = arith.constant 0 : index
    %c0_105 = arith.constant 0 : index
    %131 = vector.load %arg9[%c0_104, %c0_105] : memref<32x64xf32, #tpu.memory_space<vmem>>, vector<16x64xf32>
    %132 = arith.truncf %131 : vector<16x64xf32> to vector<16x64xbf16>
    %c8_106 = arith.constant 8 : index
    %c0_107 = arith.constant 0 : index
    %133 = vector.load %arg9[%c8_106, %c0_107] : memref<32x64xf32, #tpu.memory_space<vmem>>, vector<16x64xf32>
    %134 = arith.truncf %133 : vector<16x64xf32> to vector<16x64xbf16>
    %c16 = arith.constant 16 : index
    %c0_108 = arith.constant 0 : index
    %135 = vector.load %arg9[%c16, %c0_108] : memref<32x64xf32, #tpu.memory_space<vmem>>, vector<16x64xf32>
    %136 = arith.truncf %135 : vector<16x64xf32> to vector<16x64xbf16>
    %c3 = arith.constant 3 : index
    %c0_109 = arith.constant 0 : index
    %c0_110 = arith.constant 0 : index
    %c0_111 = arith.constant 0 : index
    %137 = vector.load %arg4[%c3, %c0_109, %c0_110, %c0_111] : memref<4x3x64x128xbf16, #tpu.memory_space<vmem>>, vector<1x1x64x128xbf16>
    %138 = vector.shape_cast %137 : vector<1x1x64x128xbf16> to vector<64x128xbf16>
    %cst_112 = arith.constant dense<0.000000e+00> : vector<16x128xf32>
    %139 = tpu.matmul %132, %138, %cst_112 {dimension_numbers = #tpu.dot_dimension_numbers<[1], [0], [0], [1], [0, 0, 1, 1], [], []>} : vector<16x64xbf16>, vector<64x128xbf16>, vector<16x128xf32> -> vector<16x128xf32>
    %c3_113 = arith.constant 3 : index
    %c1_114 = arith.constant 1 : index
    %c0_115 = arith.constant 0 : index
    %c0_116 = arith.constant 0 : index
    %140 = vector.load %arg4[%c3_113, %c1_114, %c0_115, %c0_116] : memref<4x3x64x128xbf16, #tpu.memory_space<vmem>>, vector<1x1x64x128xbf16>
    %141 = vector.shape_cast %140 : vector<1x1x64x128xbf16> to vector<64x128xbf16>
    %cst_117 = arith.constant dense<0.000000e+00> : vector<16x128xf32>
    %142 = tpu.matmul %134, %141, %cst_117 {dimension_numbers = #tpu.dot_dimension_numbers<[1], [0], [0], [1], [0, 0, 1, 1], [], []>} : vector<16x64xbf16>, vector<64x128xbf16>, vector<16x128xf32> -> vector<16x128xf32>
    %143 = arith.addf %139, %142 : vector<16x128xf32>
    %c3_118 = arith.constant 3 : index
    %c2_119 = arith.constant 2 : index
    %c0_120 = arith.constant 0 : index
    %c0_121 = arith.constant 0 : index
    %144 = vector.load %arg4[%c3_118, %c2_119, %c0_120, %c0_121] : memref<4x3x64x128xbf16, #tpu.memory_space<vmem>>, vector<1x1x64x128xbf16>
    %145 = vector.shape_cast %144 : vector<1x1x64x128xbf16> to vector<64x128xbf16>
    %cst_122 = arith.constant dense<0.000000e+00> : vector<16x128xf32>
    %146 = tpu.matmul %136, %145, %cst_122 {dimension_numbers = #tpu.dot_dimension_numbers<[1], [0], [0], [1], [0, 0, 1, 1], [], []>} : vector<16x64xbf16>, vector<64x128xbf16>, vector<16x128xf32> -> vector<16x128xf32>
    %147 = arith.addf %143, %146 : vector<16x128xf32>
    %c3_123 = arith.constant 3 : index
    %c0_124 = arith.constant 0 : index
    %c0_125 = arith.constant 0 : index
    %148 = vector.load %arg5[%c3_123, %c0_124, %c0_125] : memref<4x1x128xf32, #tpu.memory_space<vmem>>, vector<1x1x128xf32>
    %149 = vector.shape_cast %148 : vector<1x1x128xf32> to vector<1x128xf32>
    %150 = vector.broadcast %149 : vector<1x128xf32> to vector<16x128xf32>
    %151 = arith.addf %147, %150 : vector<16x128xf32>
    %152 = vector.extract_strided_slice %151 {offsets = [0, 0], sizes = [16, 64], strides = [1, 1]} : vector<16x128xf32> to vector<16x64xf32>
    %153 = math.tanh %152 : vector<16x64xf32>
    %154 = vector.extract_strided_slice %151 {offsets = [0, 64], sizes = [16, 64], strides = [1, 1]} : vector<16x128xf32> to vector<16x64xf32>
    %155 = arith.negf %154 : vector<16x64xf32>
    %156 = math.exp %155 : vector<16x64xf32>
    %cst_126 = arith.constant 1.000000e+00 : f32
    %157 = vector.broadcast %cst_126 : f32 to vector<16x64xf32>
    %158 = arith.addf %157, %156 : vector<16x64xf32>
    %159 = arith.divf %157, %158 : vector<16x64xf32>
    %160 = arith.mulf %153, %159 : vector<16x64xf32>
    %161 = arith.truncf %160 : vector<16x64xf32> to vector<16x64xbf16>
    %c3_127 = arith.constant 3 : index
    %c0_128 = arith.constant 0 : index
    %c0_129 = arith.constant 0 : index
    %162 = vector.load %arg6[%c3_127, %c0_128, %c0_129] : memref<4x64x64xbf16, #tpu.memory_space<vmem>>, vector<1x64x64xbf16>
    %163 = vector.shape_cast %162 : vector<1x64x64xbf16> to vector<64x64xbf16>
    %cst_130 = arith.constant dense<0.000000e+00> : vector<16x64xf32>
    %164 = tpu.matmul %161, %163, %cst_130 {dimension_numbers = #tpu.dot_dimension_numbers<[1], [0], [0], [1], [0, 0, 1, 1], [], []>} : vector<16x64xbf16>, vector<64x64xbf16>, vector<16x64xf32> -> vector<16x64xf32>
    %c3_131 = arith.constant 3 : index
    %c0_132 = arith.constant 0 : index
    %c0_133 = arith.constant 0 : index
    %165 = vector.load %arg7[%c3_131, %c0_132, %c0_133] : memref<4x1x64xf32, #tpu.memory_space<vmem>>, vector<1x1x64xf32>
    %166 = vector.shape_cast %165 : vector<1x1x64xf32> to vector<1x64xf32>
    %167 = vector.broadcast %166 : vector<1x64xf32> to vector<16x64xf32>
    %168 = arith.addf %164, %167 : vector<16x64xf32>
    %169 = arith.addf %129, %168 : vector<16x64xf32>
    %c0_134 = arith.constant 0 : index
    %c0_135 = arith.constant 0 : index
    %c0_136 = arith.constant 0 : index
    %170 = vector.load %arg8[%c0_134, %c0_135, %c0_136] : memref<1x16x64xf32, #tpu.memory_space<vmem>>, vector<1x16x64xf32>
    %171 = vector.shape_cast %170 : vector<1x16x64xf32> to vector<16x64xf32>
    %172 = vector.shape_cast %169 : vector<16x64xf32> to vector<1x16x64xf32>
    tpu.vector_store %arg8[%c0_134, %c0_135, %c0_136], %172 {strides = array<i32>} : memref<1x16x64xf32, #tpu.memory_space<vmem>>, vector<1x16x64xf32>,
    return
  }
  func.func @transform_0(%arg0: i32) -> (i32, i32, i32) {
    %c0_i32 = arith.constant 0 : i32
    %c0_i32_0 = arith.constant 0 : i32
    %c0_i32_1 = arith.constant 0 : i32
    return %arg0, %c0_i32, %c0_i32_0 : i32, i32, i32
  }
  func.func @transform_1(%arg0: i32) -> (i32, i32) {
    %c0_i32 = arith.constant 0 : i32
    %c0_i32_0 = arith.constant 0 : i32
    %c0_i32_1 = arith.constant 0 : i32
    return %c0_i32, %c0_i32_0 : i32, i32
  }
  func.func @transform_2(%arg0: i32) -> (i32, i32) {
    %c0_i32 = arith.constant 0 : i32
    %c0_i32_0 = arith.constant 0 : i32
    %c0_i32_1 = arith.constant 0 : i32
    return %c0_i32, %c0_i32_0 : i32, i32
  }
  func.func @transform_3(%arg0: i32) -> (i32, i32, i32, i32) {
    %c0_i32 = arith.constant 0 : i32
    %c0_i32_0 = arith.constant 0 : i32
    %c0_i32_1 = arith.constant 0 : i32
    %c0_i32_2 = arith.constant 0 : i32
    %c0_i32_3 = arith.constant 0 : i32
    return %c0_i32, %c0_i32_0, %c0_i32_1, %c0_i32_2 : i32, i32, i32, i32
  }
  func.func @transform_4(%arg0: i32) -> (i32, i32, i32) {
    %c0_i32 = arith.constant 0 : i32
    %c0_i32_0 = arith.constant 0 : i32
    %c0_i32_1 = arith.constant 0 : i32
    %c0_i32_2 = arith.constant 0 : i32
    return %c0_i32, %c0_i32_0, %c0_i32_1 : i32, i32, i32
  }
  func.func @transform_5(%arg0: i32) -> (i32, i32, i32) {
    %c0_i32 = arith.constant 0 : i32
    %c0_i32_0 = arith.constant 0 : i32
    %c0_i32_1 = arith.constant 0 : i32
    %c0_i32_2 = arith.constant 0 : i32
    return %c0_i32, %c0_i32_0, %c0_i32_1 : i32, i32, i32
  }
  func.func @transform_6(%arg0: i32) -> (i32, i32, i32) {
    %c0_i32 = arith.constant 0 : i32
    %c0_i32_0 = arith.constant 0 : i32
    %c0_i32_1 = arith.constant 0 : i32
    %c0_i32_2 = arith.constant 0 : i32
    return %c0_i32, %c0_i32_0, %c0_i32_1 : i32, i32, i32
  }
  func.func @transform_7(%arg0: i32) -> (i32, i32, i32) {
    %c0_i32 = arith.constant 0 : i32
    %c0_i32_0 = arith.constant 0 : i32
    %c0_i32_1 = arith.constant 0 : i32
    return %arg0, %c0_i32, %c0_i32_0 : i32, i32, i32
  }
}

module attributes {stable_mosaic.version = 11 : i64} {
  func.func @_matmul_bias_kernel(%arg0: i32, %arg1: memref<32x128xf32, #tpu.memory_space<vmem>>, %arg2: memref<128x768xbf16, #tpu.memory_space<vmem>>, %arg3: memref<1x768xf32, #tpu.memory_space<vmem>>, %arg4: memref<32x768xf32, #tpu.memory_space<vmem>>) attributes {dimension_semantics = [#tpu.dimension_semantics<parallel>], iteration_bounds = array<i64: 1>, scalar_prefetch = 0 : i64, scratch_operands = 0 : i64, tpu.core_type = #tpu.core_type<tc>, window_params = [{transform_indices = @transform_0, window_bounds = array<i64: 32, 128>}, {pipeline_mode = #tpu.pipeline_mode<synchronous>, transform_indices = @transform_1, window_bounds = array<i64: 128, 768>}, {pipeline_mode = #tpu.pipeline_mode<synchronous>, transform_indices = @transform_2, window_bounds = array<i64: 1, 768>}, {transform_indices = @transform_3, window_bounds = array<i64: 32, 768>}]} {
    %c0 = arith.constant 0 : index
    %c0_0 = arith.constant 0 : index
    %0 = vector.load %arg1[%c0, %c0_0] : memref<32x128xf32, #tpu.memory_space<vmem>>, vector<32x128xf32>
    %1 = arith.truncf %0 : vector<32x128xf32> to vector<32x128xbf16>
    %c0_1 = arith.constant 0 : index
    %c0_2 = arith.constant 0 : index
    %2 = vector.load %arg2[%c0_1, %c0_2] : memref<128x768xbf16, #tpu.memory_space<vmem>>, vector<128x768xbf16>
    %cst = arith.constant dense<0.000000e+00> : vector<32x768xf32>
    %3 = tpu.matmul %1, %2, %cst {dimension_numbers = #tpu.dot_dimension_numbers<[1], [0], [0], [1], [0, 0, 1, 1], [], []>} : vector<32x128xbf16>, vector<128x768xbf16>, vector<32x768xf32> -> vector<32x768xf32>
    %c0_3 = arith.constant 0 : index
    %c0_4 = arith.constant 0 : index
    %4 = vector.load %arg3[%c0_3, %c0_4] : memref<1x768xf32, #tpu.memory_space<vmem>>, vector<1x768xf32>
    %5 = vector.broadcast %4 : vector<1x768xf32> to vector<32x768xf32>
    %6 = arith.addf %3, %5 : vector<32x768xf32>
    %c0_5 = arith.constant 0 : index
    %c0_6 = arith.constant 0 : index
    %7 = vector.load %arg4[%c0_5, %c0_6] : memref<32x768xf32, #tpu.memory_space<vmem>>, vector<32x768xf32>
    tpu.vector_store %arg4[%c0_5, %c0_6], %6 {strides = array<i32>} : memref<32x768xf32, #tpu.memory_space<vmem>>, vector<32x768xf32>,
    return
  }
  func.func @transform_0(%arg0: i32) -> (i32, i32) {
    %c0_i32 = arith.constant 0 : i32
    %c0_i32_0 = arith.constant 0 : i32
    return %arg0, %c0_i32 : i32, i32
  }
  func.func @transform_1(%arg0: i32) -> (i32, i32) {
    %c0_i32 = arith.constant 0 : i32
    %c0_i32_0 = arith.constant 0 : i32
    %c0_i32_1 = arith.constant 0 : i32
    return %c0_i32, %c0_i32_0 : i32, i32
  }
  func.func @transform_2(%arg0: i32) -> (i32, i32) {
    %c0_i32 = arith.constant 0 : i32
    %c0_i32_0 = arith.constant 0 : i32
    %c0_i32_1 = arith.constant 0 : i32
    return %c0_i32, %c0_i32_0 : i32, i32
  }
  func.func @transform_3(%arg0: i32) -> (i32, i32) {
    %c0_i32 = arith.constant 0 : i32
    %c0_i32_0 = arith.constant 0 : i32
    return %arg0, %c0_i32 : i32, i32
  }
}

module attributes {stable_mosaic.version = 11 : i64} {
  func.func @_gru_rec_kernel(%arg0: memref<16x2x768xf32, #tpu.memory_space<vmem>>, %arg1: memref<2x128x384xbf16, #tpu.memory_space<vmem>>, %arg2: memref<2x1x384xf32, #tpu.memory_space<vmem>>, %arg3: memref<16x2x256xf32, #tpu.memory_space<vmem>>, %arg4: memref<2x128xf32, #tpu.memory_space<vmem>>, %arg5: memref<2x128xf32, #tpu.memory_space<vmem>>, %arg6: memref<16x2x128xf32, #tpu.memory_space<vmem>>, %arg7: memref<16x2x128xf32, #tpu.memory_space<vmem>>) attributes {dimension_semantics = [], scalar_prefetch = 0 : i64, scratch_operands = 4 : i64, tpu.core_type = #tpu.core_type<tc>} {
    %cst = arith.constant 0.000000e+00 : f32
    %0 = vector.broadcast %cst : f32 to vector<2x128xf32>
    %c0 = arith.constant 0 : index
    %c0_0 = arith.constant 0 : index
    %1 = vector.load %arg4[%c0, %c0_0] : memref<2x128xf32, #tpu.memory_space<vmem>>, vector<2x128xf32>
    tpu.vector_store %arg4[%c0, %c0_0], %0 {strides = array<i32>} : memref<2x128xf32, #tpu.memory_space<vmem>>, vector<2x128xf32>,
    %cst_1 = arith.constant 0.000000e+00 : f32
    %2 = vector.broadcast %cst_1 : f32 to vector<2x128xf32>
    %c0_2 = arith.constant 0 : index
    %c0_3 = arith.constant 0 : index
    %3 = vector.load %arg5[%c0_2, %c0_3] : memref<2x128xf32, #tpu.memory_space<vmem>>, vector<2x128xf32>
    tpu.vector_store %arg5[%c0_2, %c0_3], %2 {strides = array<i32>} : memref<2x128xf32, #tpu.memory_space<vmem>>, vector<2x128xf32>,
    %c0_i32 = arith.constant 0 : i32
    %c16_i32 = arith.constant 16 : i32
    %4 = arith.addi %c0_i32, %c16_i32 : i32
    %c1_i32 = arith.constant 1 : i32
    scf.for %arg8 = %c0_i32 to %4 step %c1_i32  : i32 {
      %c1_i32_14 = arith.constant 1 : i32
      %9 = arith.muli %arg8, %c1_i32_14 : i32
      %c0_i32_15 = arith.constant 0 : i32
      %10 = arith.addi %c0_i32_15, %9 : i32
      %c15_i32 = arith.constant 15 : i32
      %11 = arith.subi %c15_i32, %10 : i32
      %12 = arith.index_cast %10 : i32 to index
      %c0_16 = arith.constant 0 : index
      %c0_17 = arith.constant 0 : index
      %13 = vector.load %arg0[%12, %c0_16, %c0_17] : memref<16x2x768xf32, #tpu.memory_space<vmem>>, vector<1x2x768xf32>
      %14 = vector.shape_cast %13 : vector<1x2x768xf32> to vector<2x768xf32>
      %15 = vector.extract_strided_slice %14 {offsets = [0, 0], sizes = [2, 384], strides = [1, 1]} : vector<2x768xf32> to vector<2x384xf32>
      %16 = arith.index_cast %11 : i32 to index
      %c0_18 = arith.constant 0 : index
      %c0_19 = arith.constant 0 : index
      %17 = vector.load %arg0[%16, %c0_18, %c0_19] : memref<16x2x768xf32, #tpu.memory_space<vmem>>, vector<1x2x768xf32>
      %18 = vector.shape_cast %17 : vector<1x2x768xf32> to vector<2x768xf32>
      %19 = vector.extract_strided_slice %18 {offsets = [0, 384], sizes = [2, 384], strides = [1, 1]} : vector<2x768xf32> to vector<2x384xf32>
      %c0_20 = arith.constant 0 : index
      %c0_21 = arith.constant 0 : index
      %20 = vector.load %arg4[%c0_20, %c0_21] : memref<2x128xf32, #tpu.memory_space<vmem>>, vector<2x128xf32>
      %c0_22 = arith.constant 0 : index
      %c0_23 = arith.constant 0 : index
      %c0_24 = arith.constant 0 : index
      %21 = vector.load %arg1[%c0_22, %c0_23, %c0_24] : memref<2x128x384xbf16, #tpu.memory_space<vmem>>, vector<1x128x384xbf16>
      %22 = vector.shape_cast %21 : vector<1x128x384xbf16> to vector<128x384xbf16>
      %c0_25 = arith.constant 0 : index
      %c0_26 = arith.constant 0 : index
      %c0_27 = arith.constant 0 : index
      %23 = vector.load %arg2[%c0_25, %c0_26, %c0_27] : memref<2x1x384xf32, #tpu.memory_space<vmem>>, vector<1x1x384xf32>
      %24 = vector.shape_cast %23 : vector<1x1x384xf32> to vector<1x384xf32>
      %25 = arith.truncf %20 : vector<2x128xf32> to vector<2x128xbf16>
      %cst_28 = arith.constant dense<0.000000e+00> : vector<2x384xf32>
      %26 = tpu.matmul %25, %22, %cst_28 {dimension_numbers = #tpu.dot_dimension_numbers<[1], [0], [0], [1], [0, 0, 1, 1], [], []>} : vector<2x128xbf16>, vector<128x384xbf16>, vector<2x384xf32> -> vector<2x384xf32>
      %27 = vector.broadcast %24 : vector<1x384xf32> to vector<2x384xf32>
      %28 = arith.addf %26, %27 : vector<2x384xf32>
      %29 = vector.extract_strided_slice %15 {offsets = [0, 0], sizes = [2, 128], strides = [1, 1]} : vector<2x384xf32> to vector<2x128xf32>
      %30 = vector.extract_strided_slice %28 {offsets = [0, 0], sizes = [2, 128], strides = [1, 1]} : vector<2x384xf32> to vector<2x128xf32>
      %31 = arith.addf %29, %30 : vector<2x128xf32>
      %32 = arith.negf %31 : vector<2x128xf32>
      %33 = math.exp %32 : vector<2x128xf32>
      %cst_29 = arith.constant 1.000000e+00 : f32
      %34 = vector.broadcast %cst_29 : f32 to vector<2x128xf32>
      %35 = arith.addf %34, %33 : vector<2x128xf32>
      %36 = arith.divf %34, %35 : vector<2x128xf32>
      %37 = vector.extract_strided_slice %15 {offsets = [0, 128], sizes = [2, 128], strides = [1, 1]} : vector<2x384xf32> to vector<2x128xf32>
      %38 = vector.extract_strided_slice %28 {offsets = [0, 128], sizes = [2, 128], strides = [1, 1]} : vector<2x384xf32> to vector<2x128xf32>
      %39 = arith.addf %37, %38 : vector<2x128xf32>
      %40 = arith.negf %39 : vector<2x128xf32>
      %41 = math.exp %40 : vector<2x128xf32>
      %cst_30 = arith.constant 1.000000e+00 : f32
      %42 = vector.broadcast %cst_30 : f32 to vector<2x128xf32>
      %43 = arith.addf %42, %41 : vector<2x128xf32>
      %44 = arith.divf %42, %43 : vector<2x128xf32>
      %45 = vector.extract_strided_slice %15 {offsets = [0, 256], sizes = [2, 128], strides = [1, 1]} : vector<2x384xf32> to vector<2x128xf32>
      %46 = vector.extract_strided_slice %28 {offsets = [0, 256], sizes = [2, 128], strides = [1, 1]} : vector<2x384xf32> to vector<2x128xf32>
      %47 = arith.mulf %36, %46 : vector<2x128xf32>
      %48 = arith.addf %45, %47 : vector<2x128xf32>
      %49 = math.tanh %48 : vector<2x128xf32>
      %cst_31 = arith.constant 1.000000e+00 : f32
      %50 = vector.broadcast %cst_31 : f32 to vector<2x128xf32>
      %51 = arith.subf %50, %44 : vector<2x128xf32>
      %52 = arith.mulf %51, %49 : vector<2x128xf32>
      %53 = arith.mulf %44, %20 : vector<2x128xf32>
      %54 = arith.addf %52, %53 : vector<2x128xf32>
      %c0_32 = arith.constant 0 : index
      %c0_33 = arith.constant 0 : index
      %55 = vector.load %arg5[%c0_32, %c0_33] : memref<2x128xf32, #tpu.memory_space<vmem>>, vector<2x128xf32>
      %c1 = arith.constant 1 : index
      %c0_34 = arith.constant 0 : index
      %c0_35 = arith.constant 0 : index
      %56 = vector.load %arg1[%c1, %c0_34, %c0_35] : memref<2x128x384xbf16, #tpu.memory_space<vmem>>, vector<1x128x384xbf16>
      %57 = vector.shape_cast %56 : vector<1x128x384xbf16> to vector<128x384xbf16>
      %c1_36 = arith.constant 1 : index
      %c0_37 = arith.constant 0 : index
      %c0_38 = arith.constant 0 : index
      %58 = vector.load %arg2[%c1_36, %c0_37, %c0_38] : memref<2x1x384xf32, #tpu.memory_space<vmem>>, vector<1x1x384xf32>
      %59 = vector.shape_cast %58 : vector<1x1x384xf32> to vector<1x384xf32>
      %60 = arith.truncf %55 : vector<2x128xf32> to vector<2x128xbf16>
      %cst_39 = arith.constant dense<0.000000e+00> : vector<2x384xf32>
      %61 = tpu.matmul %60, %57, %cst_39 {dimension_numbers = #tpu.dot_dimension_numbers<[1], [0], [0], [1], [0, 0, 1, 1], [], []>} : vector<2x128xbf16>, vector<128x384xbf16>, vector<2x384xf32> -> vector<2x384xf32>
      %62 = vector.broadcast %59 : vector<1x384xf32> to vector<2x384xf32>
      %63 = arith.addf %61, %62 : vector<2x384xf32>
      %64 = vector.extract_strided_slice %19 {offsets = [0, 0], sizes = [2, 128], strides = [1, 1]} : vector<2x384xf32> to vector<2x128xf32>
      %65 = vector.extract_strided_slice %63 {offsets = [0, 0], sizes = [2, 128], strides = [1, 1]} : vector<2x384xf32> to vector<2x128xf32>
      %66 = arith.addf %64, %65 : vector<2x128xf32>
      %67 = arith.negf %66 : vector<2x128xf32>
      %68 = math.exp %67 : vector<2x128xf32>
      %cst_40 = arith.constant 1.000000e+00 : f32
      %69 = vector.broadcast %cst_40 : f32 to vector<2x128xf32>
      %70 = arith.addf %69, %68 : vector<2x128xf32>
      %71 = arith.divf %69, %70 : vector<2x128xf32>
      %72 = vector.extract_strided_slice %19 {offsets = [0, 128], sizes = [2, 128], strides = [1, 1]} : vector<2x384xf32> to vector<2x128xf32>
      %73 = vector.extract_strided_slice %63 {offsets = [0, 128], sizes = [2, 128], strides = [1, 1]} : vector<2x384xf32> to vector<2x128xf32>
      %74 = arith.addf %72, %73 : vector<2x128xf32>
      %75 = arith.negf %74 : vector<2x128xf32>
      %76 = math.exp %75 : vector<2x128xf32>
      %cst_41 = arith.constant 1.000000e+00 : f32
      %77 = vector.broadcast %cst_41 : f32 to vector<2x128xf32>
      %78 = arith.addf %77, %76 : vector<2x128xf32>
      %79 = arith.divf %77, %78 : vector<2x128xf32>
      %80 = vector.extract_strided_slice %19 {offsets = [0, 256], sizes = [2, 128], strides = [1, 1]} : vector<2x384xf32> to vector<2x128xf32>
      %81 = vector.extract_strided_slice %63 {offsets = [0, 256], sizes = [2, 128], strides = [1, 1]} : vector<2x384xf32> to vector<2x128xf32>
      %82 = arith.mulf %71, %81 : vector<2x128xf32>
      %83 = arith.addf %80, %82 : vector<2x128xf32>
      %84 = math.tanh %83 : vector<2x128xf32>
      %cst_42 = arith.constant 1.000000e+00 : f32
      %85 = vector.broadcast %cst_42 : f32 to vector<2x128xf32>
      %86 = arith.subf %85, %79 : vector<2x128xf32>
      %87 = arith.mulf %86, %84 : vector<2x128xf32>
      %88 = arith.mulf %79, %55 : vector<2x128xf32>
      %89 = arith.addf %87, %88 : vector<2x128xf32>
      %c0_43 = arith.constant 0 : index
      %c0_44 = arith.constant 0 : index
      %90 = vector.load %arg4[%c0_43, %c0_44] : memref<2x128xf32, #tpu.memory_space<vmem>>, vector<2x128xf32>
      tpu.vector_store %arg4[%c0_43, %c0_44], %54 {strides = array<i32>} : memref<2x128xf32, #tpu.memory_space<vmem>>, vector<2x128xf32>,
      %c0_45 = arith.constant 0 : index
      %c0_46 = arith.constant 0 : index
      %91 = vector.load %arg5[%c0_45, %c0_46] : memref<2x128xf32, #tpu.memory_space<vmem>>, vector<2x128xf32>
      tpu.vector_store %arg5[%c0_45, %c0_46], %89 {strides = array<i32>} : memref<2x128xf32, #tpu.memory_space<vmem>>, vector<2x128xf32>,
      %92 = arith.index_cast %10 : i32 to index
      %c0_47 = arith.constant 0 : index
      %c0_48 = arith.constant 0 : index
      %93 = vector.load %arg6[%92, %c0_47, %c0_48] : memref<16x2x128xf32, #tpu.memory_space<vmem>>, vector<1x2x128xf32>
      %94 = vector.shape_cast %93 : vector<1x2x128xf32> to vector<2x128xf32>
      %95 = vector.shape_cast %54 : vector<2x128xf32> to vector<1x2x128xf32>
      tpu.vector_store %arg6[%92, %c0_47, %c0_48], %95 {strides = array<i32>} : memref<16x2x128xf32, #tpu.memory_space<vmem>>, vector<1x2x128xf32>,
      %96 = arith.index_cast %11 : i32 to index
      %c0_49 = arith.constant 0 : index
      %c0_50 = arith.constant 0 : index
      %97 = vector.load %arg7[%96, %c0_49, %c0_50] : memref<16x2x128xf32, #tpu.memory_space<vmem>>, vector<1x2x128xf32>
      %98 = vector.shape_cast %97 : vector<1x2x128xf32> to vector<2x128xf32>
      %99 = vector.shape_cast %89 : vector<2x128xf32> to vector<1x2x128xf32>
      tpu.vector_store %arg7[%96, %c0_49, %c0_50], %99 {strides = array<i32>} : memref<16x2x128xf32, #tpu.memory_space<vmem>>, vector<1x2x128xf32>,
    }
    %c16_i32_4 = arith.constant 16 : i32
    %c0_5 = arith.constant 0 : index
    %c0_6 = arith.constant 0 : index
    %c0_7 = arith.constant 0 : index
    %5 = vector.load %arg6[%c0_5, %c0_6, %c0_7] : memref<16x2x128xf32, #tpu.memory_space<vmem>>, vector<16x2x128xf32>
    %c0_8 = arith.constant 0 : index
    %c0_9 = arith.constant 0 : index
    %c0_10 = arith.constant 0 : index
    %6 = vector.load %arg7[%c0_8, %c0_9, %c0_10] : memref<16x2x128xf32, #tpu.memory_space<vmem>>, vector<16x2x128xf32>
    %7 = tpu.concatenate %5, %6 in 2 : vector<16x2x128xf32>, vector<16x2x128xf32> -> vector<16x2x256xf32>
    %c0_11 = arith.constant 0 : index
    %c0_12 = arith.constant 0 : index
    %c0_13 = arith.constant 0 : index
    %8 = vector.load %arg3[%c0_11, %c0_12, %c0_13] : memref<16x2x256xf32, #tpu.memory_space<vmem>>, vector<16x2x256xf32>
    tpu.vector_store %arg3[%c0_11, %c0_12, %c0_13], %7 {strides = array<i32>} : memref<16x2x256xf32, #tpu.memory_space<vmem>>, vector<16x2x256xf32>,
    return
  }
}

module attributes {stable_mosaic.version = 11 : i64} {
  func.func @_matmul_bias_kernel(%arg0: i32, %arg1: memref<32x256xf32, #tpu.memory_space<vmem>>, %arg2: memref<256x128xbf16, #tpu.memory_space<vmem>>, %arg3: memref<1x128xf32, #tpu.memory_space<vmem>>, %arg4: memref<32x128xf32, #tpu.memory_space<vmem>>) attributes {dimension_semantics = [#tpu.dimension_semantics<parallel>], iteration_bounds = array<i64: 1>, scalar_prefetch = 0 : i64, scratch_operands = 0 : i64, tpu.core_type = #tpu.core_type<tc>, window_params = [{transform_indices = @transform_0, window_bounds = array<i64: 32, 256>}, {pipeline_mode = #tpu.pipeline_mode<synchronous>, transform_indices = @transform_1, window_bounds = array<i64: 256, 128>}, {pipeline_mode = #tpu.pipeline_mode<synchronous>, transform_indices = @transform_2, window_bounds = array<i64: 1, 128>}, {transform_indices = @transform_3, window_bounds = array<i64: 32, 128>}]} {
    %c0 = arith.constant 0 : index
    %c0_0 = arith.constant 0 : index
    %0 = vector.load %arg1[%c0, %c0_0] : memref<32x256xf32, #tpu.memory_space<vmem>>, vector<32x256xf32>
    %1 = arith.truncf %0 : vector<32x256xf32> to vector<32x256xbf16>
    %c0_1 = arith.constant 0 : index
    %c0_2 = arith.constant 0 : index
    %2 = vector.load %arg2[%c0_1, %c0_2] : memref<256x128xbf16, #tpu.memory_space<vmem>>, vector<256x128xbf16>
    %cst = arith.constant dense<0.000000e+00> : vector<32x128xf32>
    %3 = tpu.matmul %1, %2, %cst {dimension_numbers = #tpu.dot_dimension_numbers<[1], [0], [0], [1], [0, 0, 1, 1], [], []>} : vector<32x256xbf16>, vector<256x128xbf16>, vector<32x128xf32> -> vector<32x128xf32>
    %c0_3 = arith.constant 0 : index
    %c0_4 = arith.constant 0 : index
    %4 = vector.load %arg3[%c0_3, %c0_4] : memref<1x128xf32, #tpu.memory_space<vmem>>, vector<1x128xf32>
    %5 = vector.broadcast %4 : vector<1x128xf32> to vector<32x128xf32>
    %6 = arith.addf %3, %5 : vector<32x128xf32>
    %c0_5 = arith.constant 0 : index
    %c0_6 = arith.constant 0 : index
    %7 = vector.load %arg4[%c0_5, %c0_6] : memref<32x128xf32, #tpu.memory_space<vmem>>, vector<32x128xf32>
    tpu.vector_store %arg4[%c0_5, %c0_6], %6 {strides = array<i32>} : memref<32x128xf32, #tpu.memory_space<vmem>>, vector<32x128xf32>,
    return
  }
  func.func @transform_0(%arg0: i32) -> (i32, i32) {
    %c0_i32 = arith.constant 0 : i32
    %c0_i32_0 = arith.constant 0 : i32
    return %arg0, %c0_i32 : i32, i32
  }
  func.func @transform_1(%arg0: i32) -> (i32, i32) {
    %c0_i32 = arith.constant 0 : i32
    %c0_i32_0 = arith.constant 0 : i32
    %c0_i32_1 = arith.constant 0 : i32
    return %c0_i32, %c0_i32_0 : i32, i32
  }
  func.func @transform_2(%arg0: i32) -> (i32, i32) {
    %c0_i32 = arith.constant 0 : i32
    %c0_i32_0 = arith.constant 0 : i32
    %c0_i32_1 = arith.constant 0 : i32
    return %c0_i32, %c0_i32_0 : i32, i32
  }
  func.func @transform_3(%arg0: i32) -> (i32, i32) {
    %c0_i32 = arith.constant 0 : i32
    %c0_i32_0 = arith.constant 0 : i32
    return %arg0, %c0_i32 : i32, i32
  }
}

module attributes {stable_mosaic.version = 11 : i64} {
  func.func @_matmul_bias_kernel(%arg0: i32, %arg1: memref<32x256xf32, #tpu.memory_space<vmem>>, %arg2: memref<256x768xbf16, #tpu.memory_space<vmem>>, %arg3: memref<1x768xf32, #tpu.memory_space<vmem>>, %arg4: memref<32x768xf32, #tpu.memory_space<vmem>>) attributes {dimension_semantics = [#tpu.dimension_semantics<parallel>], iteration_bounds = array<i64: 1>, scalar_prefetch = 0 : i64, scratch_operands = 0 : i64, tpu.core_type = #tpu.core_type<tc>, window_params = [{transform_indices = @transform_0, window_bounds = array<i64: 32, 256>}, {pipeline_mode = #tpu.pipeline_mode<synchronous>, transform_indices = @transform_1, window_bounds = array<i64: 256, 768>}, {pipeline_mode = #tpu.pipeline_mode<synchronous>, transform_indices = @transform_2, window_bounds = array<i64: 1, 768>}, {transform_indices = @transform_3, window_bounds = array<i64: 32, 768>}]} {
    %c0 = arith.constant 0 : index
    %c0_0 = arith.constant 0 : index
    %0 = vector.load %arg1[%c0, %c0_0] : memref<32x256xf32, #tpu.memory_space<vmem>>, vector<32x256xf32>
    %1 = arith.truncf %0 : vector<32x256xf32> to vector<32x256xbf16>
    %c0_1 = arith.constant 0 : index
    %c0_2 = arith.constant 0 : index
    %2 = vector.load %arg2[%c0_1, %c0_2] : memref<256x768xbf16, #tpu.memory_space<vmem>>, vector<256x768xbf16>
    %cst = arith.constant dense<0.000000e+00> : vector<32x768xf32>
    %3 = tpu.matmul %1, %2, %cst {dimension_numbers = #tpu.dot_dimension_numbers<[1], [0], [0], [1], [0, 0, 1, 1], [], []>} : vector<32x256xbf16>, vector<256x768xbf16>, vector<32x768xf32> -> vector<32x768xf32>
    %c0_3 = arith.constant 0 : index
    %c0_4 = arith.constant 0 : index
    %4 = vector.load %arg3[%c0_3, %c0_4] : memref<1x768xf32, #tpu.memory_space<vmem>>, vector<1x768xf32>
    %5 = vector.broadcast %4 : vector<1x768xf32> to vector<32x768xf32>
    %6 = arith.addf %3, %5 : vector<32x768xf32>
    %c0_5 = arith.constant 0 : index
    %c0_6 = arith.constant 0 : index
    %7 = vector.load %arg4[%c0_5, %c0_6] : memref<32x768xf32, #tpu.memory_space<vmem>>, vector<32x768xf32>
    tpu.vector_store %arg4[%c0_5, %c0_6], %6 {strides = array<i32>} : memref<32x768xf32, #tpu.memory_space<vmem>>, vector<32x768xf32>,
    return
  }
  func.func @transform_0(%arg0: i32) -> (i32, i32) {
    %c0_i32 = arith.constant 0 : i32
    %c0_i32_0 = arith.constant 0 : i32
    return %arg0, %c0_i32 : i32, i32
  }
  func.func @transform_1(%arg0: i32) -> (i32, i32) {
    %c0_i32 = arith.constant 0 : i32
    %c0_i32_0 = arith.constant 0 : i32
    %c0_i32_1 = arith.constant 0 : i32
    return %c0_i32, %c0_i32_0 : i32, i32
  }
  func.func @transform_2(%arg0: i32) -> (i32, i32) {
    %c0_i32 = arith.constant 0 : i32
    %c0_i32_0 = arith.constant 0 : i32
    %c0_i32_1 = arith.constant 0 : i32
    return %c0_i32, %c0_i32_0 : i32, i32
  }
  func.func @transform_3(%arg0: i32) -> (i32, i32) {
    %c0_i32 = arith.constant 0 : i32
    %c0_i32_0 = arith.constant 0 : i32
    return %arg0, %c0_i32 : i32, i32
  }
}

</mosaic_0001>

<bundles_post_ra>
// kernel: ampnet_forward.14
= control target key start
LH: loop header
LB: loop body
LE: loop exit
PB: predicated region body
PF: predicated region fallthrough
CT: control target
= control target key end

     0   :  { %12 = vsyncpa [#allocation4], 0  ;;  %s1560_s0 = inlined_call_operand.vmem [shape: f32[2,16,64], index: 0, kind: input, shape index: {}]   ;;  %s1561_s1 = inlined_call_operand.vmem [shape: bf16[64,128], index: 1, kind: input, shape index: {}]   ;;  %s1562_s2 = inlined_call_operand.hbm [shape: f32[1,128], index: 2, kind: input, shape index: {}]   ;;  %s1563_s3 = inlined_call_operand.hbm [shape: bf16[1,3,128,256], index: 3, kind: input, shape index: {}]   ;;  %s1564_s4 = inlined_call_operand.vmem [shape: f32[1,1,256], index: 4, kind: input, shape index: {}]   ;;  %s1565_s5 = inlined_call_operand.vmem [shape: bf16[1,128,128], index: 5, kind: input, shape index: {}]   ;;  %s1566_s6 = inlined_call_operand.vmem [shape: f32[1,1,128], index: 6, kind: input, shape index: {}]   ;;  %s1567_s7 = inlined_call_operand.vmem [shape: f32[2,16,128], index: 7, kind: output, shape index: {}]  }
   0x1   :  { %13 = vsyncpa [#allocation6], 0  ;;  %s1464_s24 = smov 0  }
   0x2 LB: > { %s217_s27 = sshll.u32 %s1562_s2, 4  ;;  %s977_s28 = sadd.s32 4294967295, %s1417_s24   ;;  %s1417_s24 = sphi %s1464_s24, %s19_s24   ;;  %s218_s27 = int_to_ptr.hbm [resolvable:$true] %s217_s27 }
   0x3   : > { %p979_p0 = scmp.ge.s32.totalorder %s1417_s24, 1  ;;  %p202_p1 = scmp.lt.s32.totalorder %s1417_s24, 3 }
   0x4   : > { %p1312_p2 = scmp.eq.s32.totalorder %s977_s28, 0  ;;  %s1419_s30 = smov [#allocation3]  }
   0x5   : > { %p1475_p3 = pnand %p979_p0, %p202_p1  ;;  %s219_s8 = sshll.u32 %s1419_s30, 4  ;;  %s220_s8 = int_to_ptr.vmem [resolvable:$true] %s219_s8 }
   0x6   : > { %s228_s11 = sshll.u32 %s1563_s3, 4  ;;  %s1420_s12 = smov [#allocation5]   ;;  %s229_s11 = int_to_ptr.hbm [resolvable:$true] %s228_s11 }
   0x7   : > { %p1305_p4 = pneg %p1475_p3  ;;  %s230_s13 = sshll.u32 %s1420_s12, 4  ;;  %s231_s13 = int_to_ptr.vmem [resolvable:$true] %s230_s13 }
   0x8   : > { %s1421_s14 = smov 128   ;;  %s1422_s15 = smov 8  }
   0x9   : > { %p1306_p5 = pnand %p1312_p2, %p1305_p4  ;;  %263 = sbr.rel (%p1475_p3) target bundleno = 508 (0x1fc), region = 48 }
   0xb   : > { %1308 = dma.hbm_to_vmem [thread:$0]  (!%p1306_p5), %s218_s27, 16, %s220_s8, [#allocation4]  }
   0xc   : > { %1311 = dma.hbm_to_vmem [thread:$0]  (!%p1306_p5), %s229_s11, 6144, %s231_s13, [#allocation6], %s1421_s14, %s1421_s14, %s1422_s15  }
   0xe   : > { %1408 = dma.done.wait (%p1312_p2), [#allocation4], 16  }
   0xf   : > { %1410 = vsyncadd (%p1312_p2), [#allocation4], 4294967280 }
  0x10   : > { %1412 = dma.done.wait (%p1312_p2), [#allocation6], 6144  }
  0x11   : > { %1414 = vsyncadd (%p1312_p2), [#allocation6], 4294961152  ;;  %p301_p6 = scmp.lt.s32.totalorder %s977_s28, 1  ;;  %v1240_v0 = vld [vmem:[%s1561_s1 + $0x18] sm:$0xff]  ;;  %v1239_v1 = vld [vmem:[%s1561_s1 + $0x10] sm:$0xff]  ;;  %vm351_vm0 = vcmask 523264  }
  0x12   : > { %359 = vmatpush.bf16.msra.mxu0 %v1240_v0  ;;  %v1065_v2 = vld [vmem:[#allocation5 + $0xf0] sm:$0xf]  ;;  %v1272_v3 = vld [vmem:[#allocation5 + $0xf4] sm:$0xf0]  ;;  %v1271_v4 = vld [vmem:[#allocation5 + $0xf4] sm:$0xf] }
  0x13   : > { %s1570_s28 = smov (!%p301_p6, %s977_s28), 1  ;;  %v1066_v5 = vor.u32 %v1272_v3, %v1065_v2  ;;  %v1067_v6 = vld [vmem:[#allocation5 + $0xf8] sm:$0xf0]  ;;  %v1057_v7 = vld [vmem:[#allocation5 + $0xe0] sm:$0xf]  ;;  %v1238_v12 = vld [vmem:[%s1561_s1 + $0x8] sm:$0xff] }
  0x14   : > { %s1235_s20 = sshll.u32 %s1570_s28, 4  ;;  %v1270_v8 = vld [vmem:[#allocation5 + $0xe4] sm:$0xf0]  ;;  %v1070_v9 = vor.u32 %v1271_v4, %v1067_v6  ;;  %v1269_v10 = vld [vmem:[#allocation5 + $0xe4] sm:$0xf] }
  0x15   : > { %v1059_v11 = vld [vmem:[#allocation5 + $0xe8] sm:$0xf0]  ;;  %496 = vmatpush.bf16.msra.mxu1 %v1066_v5  ;;  %v1058_v13 = vor.u32 %v1270_v8, %v1057_v7  ;;  %s305_s26 = scalar_lea.vmem %s1560_s0, %s1235_s20  ;;  %v1049_v15 = vld [vmem:[#allocation5 + $0xd0] sm:$0xf]  ;;  %v1268_v16 = vld [vmem:[#allocation5 + $0xd4] sm:$0xf0]  ;;  %s310_s9 = scalar_lea.vmem %s1567_s7, %s1235_s20 }
  0x16   : > { %360 = vmatpush.bf16.msra.mxu0 %v1239_v1  ;;  %510 = vmatpush.bf16.msra.mxu2 %v1070_v9  ;;  %v1062_v14 = vor.u32 %v1269_v10, %v1059_v11  ;;  %v1267_v17 = vld [vmem:[#allocation5 + $0xd4] sm:$0xf]  ;;  %v1051_v18 = vld [vmem:[#allocation5 + $0xd8] sm:$0xf0]  ;;  %v1129_v19 = vld [vmem:[#allocation5 + $0x70] sm:$0xf]  ;;  %v1050_v27 = vor.u32 %v1268_v16, %v1049_v15 }
  0x17   : > { %v1256_v20 = vld [vmem:[#allocation5 + $0x74] sm:$0xf0]  ;;  %v1237_v21 = vld [vmem:[%s1561_s1] sm:$0xff]  ;;  %v1255_v23 = vld [vmem:[#allocation5 + $0x74] sm:$0xf]  ;;  %v1054_v29 = vor.u32 %v1267_v17, %v1051_v18 }
  0x18   : > { %v1130_v22 = vor.u32 %v1256_v20, %v1129_v19  ;;  %v1131_v24 = vld [vmem:[#allocation5 + $0x78] sm:$0xf0]  ;;  %v312_v25 = vld [vmem:[%s305_s26] sm:$0xff]  ;;  %v313_v26 = vld [vmem:[%s305_s26 + $0x8] sm:$0xff] }
  0x19   : > { %497 = vmatpush.bf16.msra.mxu1 %v1058_v13  ;;  %v1041_v28 = vld [vmem:[#allocation5 + $0xc0] sm:$0xf]  ;;  %v1266_v30 = vld [vmem:[#allocation5 + $0xc4] sm:$0xf0]  ;;  %v1265_v33 = vld [vmem:[#allocation5 + $0xc4] sm:$0xf]  ;;  %v1134_v35 = vor.u32 %v1255_v23, %v1131_v24  ;;  %v314_v40 = vpack.c.bf16 %v313_v26, %v312_v25 }
  0x1a   : > { %361 = vmatpush.bf16.msra.mxu0 %v1238_v12  ;;  %511 = vmatpush.bf16.msra.mxu2 %v1062_v14  ;;  %v1121_v31 = vld [vmem:[#allocation5 + $0x60] sm:$0xf]  ;;  %v1254_v32 = vld [vmem:[#allocation5 + $0x64] sm:$0xf0]  ;;  %v1043_v34 = vld [vmem:[#allocation5 + $0xc8] sm:$0xf0]  ;;  %v1042_v41 = vor.u32 %v1266_v30, %v1041_v28 }
  0x1b   : > { %604 = vmatpush.bf16.msra.mxu3 %v1130_v22  ;;  %v1122_v36 = vor.u32 %v1254_v32, %v1121_v31  ;;  %v1253_v37 = vld [vmem:[#allocation5 + $0x64] sm:$0xf]  ;;  %v1123_v38 = vld [vmem:[#allocation5 + $0x68] sm:$0xf0]  ;;  %v1113_v39 = vld [vmem:[#allocation5 + $0x50] sm:$0xf]  ;;  %v1046_v44 = vor.u32 %v1265_v33, %v1043_v34 }
  0x1c   : > { %v1033_v42 = vld [vmem:[#allocation5 + $0xb0] sm:$0xf]  ;;  %v1252_v43 = vld [vmem:[#allocation5 + $0x54] sm:$0xf0]  ;;  %v1263_v46 = vld [vmem:[#allocation5 + $0xb4] sm:$0xf]  ;;  %v1126_v48 = vor.u32 %v1253_v37, %v1123_v38 }
  0x1d   : > { %498 = vmatpush.bf16.msra.mxu1 %v1050_v27  ;;  %v1264_v45 = vld [vmem:[#allocation5 + $0xb4] sm:$0xf0]  ;;  %v1035_v47 = vld [vmem:[#allocation5 + $0xb8] sm:$0xf0]  ;;  %v1114_v49 = vor.u32 %v1252_v43, %v1113_v39  ;;  %v1251_v50 = vld [vmem:[#allocation5 + $0x54] sm:$0xf] }
  0x1e   : > { %362 = vmatpush.bf16.msra.mxu0 %v1237_v21  ;;  %512 = vmatpush.bf16.msra.mxu2 %v1054_v29  ;;  %v1115_v51 = vld [vmem:[#allocation5 + $0x58] sm:$0xf0]  ;;  %v1034_v52 = vor.u32 %v1264_v45, %v1033_v42  ;;  %v1038_v53 = vor.u32 %v1263_v46, %v1035_v47  ;;  %v1025_v54 = vld [vmem:[#allocation5 + $0xa0] sm:$0xf]  ;;  %v1262_v55 = vld [vmem:[#allocation5 + $0xa4] sm:$0xf0] }
  0x1f   : > { %605 = vmatpush.bf16.msra.mxu3 %v1122_v36  ;;  %v1261_v56 = vld [vmem:[#allocation5 + $0xa4] sm:$0xf]  ;;  %v1027_v57 = vld [vmem:[#allocation5 + $0xa8] sm:$0xf0]  ;;  %v1118_v58 = vor.u32 %v1251_v50, %v1115_v51  ;;  %v1026_v59 = vor.u32 %v1262_v55, %v1025_v54  ;;  %v1017_v61 = vld [vmem:[#allocation5 + $0x90] sm:$0xf] }
  0x20   : > { %v1030_v60 = vor.u32 %v1261_v56, %v1027_v57  ;;  %v1260_v62 = vld [vmem:[#allocation5 + $0x94] sm:$0xf0]  ;;  %v1259_v63 = vld [vmem:[#allocation5 + $0x94] sm:$0xf]  ;;  %v1019_v1 = vld [vmem:[#allocation5 + $0x98] sm:$0xf0] }
  0x21   : > { %1006 = vmatmul.msk.bf16.vlgmr.msra.gmra.mxu0 %vm351_vm0, %v314_v40  ;;  %499 = vmatpush.bf16.msra.mxu1 %v1042_v41  ;;  %v1018_v0 = vor.u32 %v1260_v62, %v1017_v61  ;;  %v1022_v2 = vor.u32 %v1259_v63, %v1019_v1  ;;  %v1009_v3 = vld [vmem:[#allocation5 + $0x80] sm:$0xf]  ;;  %v1258_v4 = vld [vmem:[#allocation5 + $0x84] sm:$0xf0]  ;;  %v1257_v5 = vld [vmem:[#allocation5 + $0x84] sm:$0xf] }
  0x22   : > { %618 = vmatpush.bf16.msrb.mxu0 %v1134_v35  ;;  %513 = vmatpush.bf16.msra.mxu2 %v1046_v44  ;;  %v1010_v6 = vor.u32 %v1258_v4, %v1009_v3  ;;  %v1011_v7 = vld [vmem:[#allocation5 + $0x88] sm:$0xf0]  ;;  %v1193_v8 = vld [vmem:[#allocation5 + $0x170] sm:$0xf]  ;;  %v1288_v9 = vld [vmem:[#allocation5 + $0x174] sm:$0xf0] }
  0x23   : > { %606 = vmatpush.bf16.msra.mxu3 %v1114_v49  ;;  %v1014_v10 = vor.u32 %v1257_v5, %v1011_v7  ;;  %v1194_v11 = vor.u32 %v1288_v9, %v1193_v8  ;;  %v1287_v12 = vld [vmem:[#allocation5 + $0x174] sm:$0xf]  ;;  %v1195_v13 = vld [vmem:[#allocation5 + $0x178] sm:$0xf0]  ;;  %v1105_v15 = vld [vmem:[#allocation5 + $0x40] sm:$0xf] }
  0x24   : > { %v1198_v14 = vor.u32 %v1287_v12, %v1195_v13  ;;  %v1250_v16 = vld [vmem:[#allocation5 + $0x44] sm:$0xf0]  ;;  %v1249_v17 = vld [vmem:[#allocation5 + $0x44] sm:$0xf]  ;;  %v1107_v19 = vld [vmem:[#allocation5 + $0x48] sm:$0xf0] }
  0x25   : > { %500 = vmatpush.bf16.msra.mxu1 %v1034_v52  ;;  %v1106_v18 = vor.u32 %v1250_v16, %v1105_v15  ;;  %v1185_v20 = vld [vmem:[#allocation5 + $0x160] sm:$0xf]  ;;  %v1286_v21 = vld [vmem:[#allocation5 + $0x164] sm:$0xf0]  ;;  %v1110_v22 = vor.u32 %v1249_v17, %v1107_v19  ;;  %v1285_v24 = vld [vmem:[#allocation5 + $0x164] sm:$0xf] }
  0x26   : > { %619 = vmatpush.bf16.msrb.mxu0 %v1126_v48  ;;  %514 = vmatpush.bf16.msra.mxu2 %v1038_v53  ;;  %v1186_v23 = vor.u32 %v1286_v21, %v1185_v20  ;;  %v1187_v25 = vld [vmem:[#allocation5 + $0x168] sm:$0xf0]  ;;  %v1423_v26 = vmov 0.0   ;;  %v1097_v28 = vld [vmem:[#allocation5 + $0x30] sm:$0xf] }
  0x27   : > { %369 = vst [vmem:[#allocation2] sm:$0xff] %v1423_v26  ;;  %607 = vmatpush.bf16.msra.mxu3 %v1106_v18  ;;  %v1190_v27 = vor.u32 %v1285_v24, %v1187_v25  ;;  %v1248_v29 = vld [vmem:[#allocation5 + $0x34] sm:$0xf0]  ;;  %v1247_v31 = vld [vmem:[#allocation5 + $0x34] sm:$0xf] }
  0x28   : > { %370 = vst [vmem:[#allocation2 + $0x8] sm:$0xff] %v1423_v26  ;;  %v1098_v30 = vor.u32 %v1248_v29, %v1097_v28  ;;  %v1099_v32 = vld [vmem:[#allocation5 + $0x38] sm:$0xf0]  ;;  %v1177_v34 = vld [vmem:[#allocation5 + $0x150] sm:$0xf] }
  0x29   : > { %501 = vmatpush.bf16.msra.mxu1 %v1026_v59  ;;  %371 = vst [vmem:[#allocation2 + $0x10] sm:$0x3] %v1423_v26  ;;  %v1102_v33 = vor.u32 %v1247_v31, %v1099_v32  ;;  %v1284_v35 = vld [vmem:[#allocation5 + $0x154] sm:$0xf0]  ;;  %v1283_v36 = vld [vmem:[#allocation5 + $0x154] sm:$0xf] }
  0x2a   : > { %620 = vmatpush.bf16.msrb.mxu0 %v1118_v58  ;;  %515 = vmatpush.bf16.msra.mxu2 %v1030_v60  ;;  %v1178_v37 = vor.u32 %v1284_v35, %v1177_v34  ;;  %v1179_v38 = vld [vmem:[#allocation5 + $0x158] sm:$0xf0]  ;;  %v1089_v39 = vld [vmem:[#allocation5 + $0x20] sm:$0xf]  ;;  %v1246_v40 = vld [vmem:[#allocation5 + $0x24] sm:$0xf0] }
  0x2b   : > { %608 = vmatpush.bf16.msra.mxu3 %v1098_v30  ;;  %v1245_v41 = vld [vmem:[#allocation5 + $0x24] sm:$0xf]  ;;  %v1182_v42 = vor.u32 %v1283_v36, %v1179_v38  ;;  %v1090_v43 = vor.u32 %v1246_v40, %v1089_v39  ;;  %v1091_v44 = vld [vmem:[#allocation5 + $0x28] sm:$0xf0]  ;;  %v1169_v45 = vld [vmem:[#allocation5 + $0x140] sm:$0xf] }
  0x2c   : > { %v1282_v46 = vld [vmem:[#allocation5 + $0x144] sm:$0xf0]  ;;  %v1094_v47 = vor.u32 %v1245_v41, %v1091_v44  ;;  %v1281_v49 = vld [vmem:[#allocation5 + $0x144] sm:$0xf]  ;;  %v1171_v50 = vld [vmem:[#allocation5 + $0x148] sm:$0xf0] }
  0x2d   : > { %502 = vmatpush.bf16.msra.mxu1 %v1018_v0  ;;  %v1170_v48 = vor.u32 %v1282_v46, %v1169_v45  ;;  %v1174_v51 = vor.u32 %v1281_v49, %v1171_v50  ;;  %v1081_v52 = vld [vmem:[#allocation5 + $0x10] sm:$0xf]  ;;  %v1244_v53 = vld [vmem:[#allocation5 + $0x14] sm:$0xf0]  ;;  %v1243_v54 = vld [vmem:[#allocation5 + $0x14] sm:$0xf] }
  0x2e   : > { %516 = vmatpush.bf16.msra.mxu2 %v1022_v2  ;;  %621 = vmatpush.bf16.msrb.mxu0 %v1110_v22  ;;  %v1082_v55 = vor.u32 %v1244_v53, %v1081_v52  ;;  %v1083_v56 = vld [vmem:[#allocation5 + $0x18] sm:$0xf0]  ;;  %v1073_v57 = vld [vmem:[#allocation5] sm:$0xf]  ;;  %v1242_v58 = vld [vmem:[#allocation5 + $0x4] sm:$0xf0] }
  0x2f   : > { %609 = vmatpush.bf16.msra.mxu3 %v1090_v43  ;;  %v1086_v59 = vor.u32 %v1243_v54, %v1083_v56  ;;  %v1241_v60 = vld [vmem:[#allocation5 + $0x4] sm:$0xf]  ;;  %v1075_v61 = vld [vmem:[#allocation5 + $0x8] sm:$0xf0]  ;;  %v1161_v62 = vld [vmem:[#allocation5 + $0x130] sm:$0xf]  ;;  %v1074_v63 = vor.u32 %v1242_v58, %v1073_v57 }
  0x30   : > { %v1280_v0 = vld [vmem:[#allocation5 + $0x134] sm:$0xf0]  ;;  %v1279_v1 = vld [vmem:[#allocation5 + $0x134] sm:$0xf]  ;;  %v1163_v2 = vld [vmem:[#allocation5 + $0x138] sm:$0xf0]  ;;  %v1078_v3 = vor.u32 %v1241_v60, %v1075_v61 }
  0x31   : > { %503 = vmatpush.bf16.msra.mxu1 %v1010_v6  ;;  %v1162_v4 = vor.u32 %v1280_v0, %v1161_v62  ;;  %v1166_v5 = vor.u32 %v1279_v1, %v1163_v2  ;;  %v1153_v6 = vld [vmem:[#allocation5 + $0x120] sm:$0xf]  ;;  %v1278_v7 = vld [vmem:[#allocation5 + $0x124] sm:$0xf0]  ;;  %v1277_v8 = vld [vmem:[#allocation5 + $0x124] sm:$0xf] }
  0x32   : > { %517 = vmatpush.bf16.msra.mxu2 %v1014_v10  ;;  %622 = vmatpush.bf16.msrb.mxu0 %v1102_v33  ;;  %v1155_v9 = vld [vmem:[#allocation5 + $0x128] sm:$0xf0]  ;;  %v1154_v10 = vor.u32 %v1278_v7, %v1153_v6  ;;  %v1145_v12 = vld [vmem:[#allocation5 + $0x110] sm:$0xf]  ;;  %v1276_v13 = vld [vmem:[#allocation5 + $0x114] sm:$0xf0] }
  0x33   : > { %610 = vmatpush.bf16.msra.mxu3 %v1082_v55  ;;  %v1147_v15 = vld [vmem:[#allocation5 + $0x118] sm:$0xf0]  ;;  %v1146_v16 = vor.u32 %v1276_v13, %v1145_v12  ;;  %v1137_v18 = vld [vmem:[#allocation5 + $0x100] sm:$0xf]  ;;  %v1274_v19 = vld [vmem:[#allocation5 + $0x104] sm:$0xf0] }
  0x34   : > { %v1273_v20 = vld [vmem:[#allocation5 + $0x104] sm:$0xf]  ;;  %v1139_v21 = vld [vmem:[#allocation5 + $0x108] sm:$0xf0]  ;;  %v1138_v22 = vor.u32 %v1274_v19, %v1137_v18  ;;  %v1329_v24 = vld [vmem:[#allocation3] ss:$0 sm:$0xff] }
  0x35   : > { %729 = vmatpush.bf16.msrb.mxu1 %v1194_v11  ;;  %v1158_v11 = vor.u32 %v1277_v8, %v1155_v9  ;;  %v1296_v36 = vld [vmem:[%s1565_s5 + $0x38] sm:$0xff]  ;;  %v1295_v38 = vld [vmem:[%s1565_s5 + $0x30] sm:$0xff]  ;;  %v1294_v39 = vld [vmem:[%s1565_s5 + $0x28] sm:$0xff] }
  0x36   : > { %743 = vmatpush.bf16.msrb.mxu2 %v1198_v14  ;;  %623 = vmatpush.bf16.msrb.mxu0 %v1094_v47  ;;  %v1275_v14 = vld [vmem:[#allocation5 + $0x114] sm:$0xf]  ;;  %v1292_v44 = vld [vmem:[%s1565_s5 + $0x18] sm:$0xff]  ;;  %v761_v45 = vld [vmem:[%s1564_s4] sm:$0x3] }
  0x37   : > { %611 = vmatpush.bf16.msra.mxu3 %v1074_v63  ;;  %v1150_v17 = vor.u32 %v1275_v14, %v1147_v15  ;;  %v764_v47 = vperm.slane %v761_v45, 1  ;;  %v1290_v53 = vld [vmem:[%s1565_s5 + $0x8] sm:$0xff]  ;;  %v1289_v57 = vld [vmem:[%s1565_s5] sm:$0xff] }
  0x39   : > { %730 = vmatpush.bf16.msrb.mxu1 %v1186_v23  ;;  %v1142_v23 = vor.u32 %v1273_v20, %v1139_v21 }
  0x3a   : > { %744 = vmatpush.bf16.msrb.mxu2 %v1190_v27  ;;  %624 = vmatpush.bf16.msrb.mxu0 %v1086_v59 }
  0x3b   : > { %882 = vmatpush.bf16.msrb.mxu3 %v1296_v36 }
  0x3d   : > { %731 = vmatpush.bf16.msrb.mxu1 %v1178_v37 }
  0x3e   : > { %745 = vmatpush.bf16.msrb.mxu2 %v1182_v42  ;;  %625 = vmatpush.bf16.msrb.mxu0 %v1078_v3  ;;  %v1293_v42 = vld [vmem:[%s1565_s5 + $0x20] sm:$0xff] }
  0x3f   : > { %883 = vmatpush.bf16.msrb.mxu3 %v1295_v38 }
  0x41   : > { %732 = vmatpush.bf16.msrb.mxu1 %v1170_v48  ;;  %v1291_v48 = vld [vmem:[%s1565_s5 + $0x10] sm:$0xff] }
  0x42   : > { %746 = vmatpush.bf16.msrb.mxu2 %v1174_v51 }
  0x43   : > { %884 = vmatpush.bf16.msrb.mxu3 %v1294_v39 }
  0x45   : > { %733 = vmatpush.bf16.msrb.mxu1 %v1162_v4 }
  0x46   : > { %747 = vmatpush.bf16.msrb.mxu2 %v1166_v5 }
  0x47   : > { %885 = vmatpush.bf16.msrb.mxu3 %v1293_v42 }
  0x49   : > { %734 = vmatpush.bf16.msrb.mxu1 %v1154_v10 }
  0x4a   : > { %748 = vmatpush.bf16.msrb.mxu2 %v1158_v11  ;;  %v763_v11 = vperm.slane %v761_v45, 0 }
  0x4b   : > { %886 = vmatpush.bf16.msrb.mxu3 %v1292_v44 }
  0x4d   : > { %735 = vmatpush.bf16.msrb.mxu1 %v1146_v16 }
  0x4e   : > { %749 = vmatpush.bf16.msrb.mxu2 %v1150_v17 }
  0x4f   : > { %887 = vmatpush.bf16.msrb.mxu3 %v1291_v48 }
  0x51   : > { %736 = vmatpush.bf16.msrb.mxu1 %v1138_v22 }
  0x52   : > { %750 = vmatpush.bf16.msrb.mxu2 %v1142_v23 }
  0x53   : > { %888 = vmatpush.bf16.msrb.mxu3 %v1290_v53 }
  0x57   : > { %889 = vmatpush.bf16.msrb.mxu3 %v1289_v57 }
  0x9e   : > { %v364_v25 = vpop.f32.mrf.mxu0 }
  0x9f   : > { %v1512_v26 = vadd.f32 %v1329_v24, %v364_v25 }
  0xa1   : > { %372 = vst [vmem:[#allocation2 + $0x1] sm:$0xff] %v1512_v26 }
  0xa6   : > { %v366_v27 = vpop.f32.mrf.mxu0 }
  0xa7   : > { %v1515_v28 = vadd.f32 %v1329_v24, %v366_v27 }
  0xa8   : > { %v374_v30 = vld [vmem:[#allocation2] sm:$0xff] }
  0xa9   : > { %373 = vst [vmem:[#allocation2 + $0x9] sm:$0xff] %v1515_v28  ;;  %v379_v29 = vpack.c.bf16 %v1515_v28, %v1512_v26 }
  0xab   : > { %504 = vmatmul.bf16.vlgmr.msra.gmra.mxu1 %v379_v29  ;;  %518 = vmatmul.bf16.vlgmr.msra.gmra.mxu2 %v379_v29 }
  0xb0   : > { %v375_v31 = vld [vmem:[#allocation2 + $0x8] sm:$0xff] }
  0xb1   : > { %v376_v32 = vpack.c.bf16 %v375_v31, %v374_v30  ;;  %v380_v33 = vld [vmem:[#allocation2 + $0x2] sm:$0xff]  ;;  %v381_v34 = vld [vmem:[#allocation2 + $0xa] sm:$0xff] }
  0xb2   : > { %v382_v35 = vpack.c.bf16 %v381_v34, %v380_v33 }
  0xb3   : > { %612 = vmatmul.bf16.vlgmr.msra.gmra.mxu3 %v376_v32  ;;  %626 = vmatmul.bf16.vlgmr.msrb.gmra.mxu0 %v376_v32 }
  0xbb   : > { %737 = vmatmul.bf16.vlgmr.msrb.gmra.mxu1 %v382_v35  ;;  %751 = vmatmul.bf16.vlgmr.msrb.gmra.mxu2 %v382_v35 }
 0x128   : > { %v505_v41 = vpop.f32.mrf.mxu1 }
 0x12e   : > { %v519_v37 = vpop.f32.mrf.mxu2 }
 0x130   : > { %v627_v43 = vpop.f32.mrf.mxu0  ;;  %v507_v51 = vpop.f32.mrf.mxu1 }
 0x131   : > { %v628_v46 = vadd.f32 %v627_v43, %v519_v37 }
 0x136   : > { %v521_v40 = vpop.f32.mrf.mxu2  ;;  %v613_v59 = vpop.f32.mrf.mxu3 }
 0x137   : > { %v614_v4 = vadd.f32 %v613_v59, %v505_v41 }
 0x138   : > { %v629_v54 = vpop.f32.mrf.mxu0  ;;  %v738_v63 = vpop.f32.mrf.mxu1 }
 0x139   : > { %v630_v56 = vadd.f32 %v629_v54, %v521_v40  ;;  %v757_v10 = vadd.f32 %v738_v63, %v614_v4  ;;  %v1330_v40 = vld [vmem:[%s1566_s6] ss:$0 sm:$0xff] }
 0x13b   : > { %v767_v15 = vadd.f32 %v763_v11, %v757_v10 }
 0x13e   : > { %v752_v49 = vpop.f32.mrf.mxu2  ;;  %v615_v2 = vpop.f32.mrf.mxu3 }
 0x13f   : > { %v758_v50 = vadd.f32 %v752_v49, %v628_v46  ;;  %v616_v6 = vadd.f32 %v615_v2, %v507_v51 }
 0x140   : > { %v740_v9 = vpop.f32.mrf.mxu1 }
 0x141   : > { %v768_v52 = vadd.f32 %v764_v47, %v758_v50  ;;  %v759_v13 = vadd.f32 %v740_v9, %v616_v6 }
 0x143   : > { %v1199_v55 = vmul.f32 -1.442695, %v768_v52  ;;  %v769_v17 = vadd.f32 %v763_v11, %v759_v13 }
 0x145   : > { %1331 = vpow2.f32 %v1199_v55 }
 0x146   : > { %v754_v58 = vpop.f32.mrf.mxu2 }
 0x147   : > { %v760_v60 = vadd.f32 %v754_v58, %v630_v56 }
 0x149   : > { %v770_v61 = vadd.f32 %v764_v47, %v760_v60 }
 0x14b   : > { %v1332_v62 = vpop.eup %1331  ;;  %v1200_v0 = vmul.f32 -1.442695, %v770_v61 }
 0x14c   : > { %v779_v1 = vadd.f32 1.0, %v1332_v62 }
 0x14d   : > { %1333 = vpow2.f32 %v1200_v0 }
 0x14e   : > { %1335 = vrcp.f32 %v779_v1  ;;  %v792_v20 = vand.u32 2147483648, %v779_v1  ;;  %vm786_vm2 = vweird.f32 %v779_v1  ;;  %v790_v21 = vand.u32 2147483647, %v779_v1 }
 0x150   : > { %v793_v29 = vor.u32 1.1754944e-38, %v792_v20  ;;  %vm791_vm5 = vcmp.eq.f32.partialorder %v790_v21, 8.507059e+37 }
 0x153   : > { %v1334_v3 = vpop.eup %1333 }
 0x154   : > { %v1336_v5 = vpop.eup %1335  ;;  %v780_v7 = vadd.f32 1.0, %v1334_v3 }
 0x155   : > { %v782_v8 = vmul.f32 %v1336_v5, %v779_v1  ;;  %vm787_vm1 = vweird.f32 %v1336_v5 }
 0x156   : > { %1337 = vrcp.f32 %v780_v7  ;;  %vm788_vm3 = vmor %vm786_vm2, %vm787_vm1  ;;  %v807_v23 = vand.u32 2147483648, %v780_v7  ;;  %v805_v27 = vand.u32 2147483647, %v780_v7  ;;  %vm801_vm6 = vweird.f32 %v780_v7 }
 0x157   : > { %v783_v12 = vsub.f32 1.0, %v782_v8  ;;  %1339 = vtanh.f32 %v767_v15 }
 0x158   : > { %1341 = vtanh.f32 %v769_v17  ;;  %v808_v32 = vor.u32 1.1754944e-38, %v807_v23  ;;  %vm806_vm8 = vcmp.eq.f32.partialorder %v805_v27, 8.507059e+37 }
 0x159   : > { %v784_v14 = vmul.f32 %v1336_v5, %v783_v12 }
 0x15b   : > { %v785_v19 = vadd.f32 %v1336_v5, %v784_v14 }
 0x15c   : > { %v1338_v16 = vpop.eup %1337 }
 0x15d   : > { %v797_v18 = vmul.f32 %v1338_v16, %v780_v7  ;;  %v789_v24 = vsel %vm788_vm3, %v1336_v5, %v785_v19  ;;  %vm802_vm4 = vweird.f32 %v1338_v16  ;;  %v1340_v33 = vpop.eup %1339 }
 0x15e   : > { %v794_v31 = vsel %vm791_vm5, %v793_v29, %v789_v24  ;;  %vm803_vm7 = vmor %vm801_vm6, %vm802_vm4  ;;  %v1342_v35 = vpop.eup %1341 }
 0x15f   : > { %v798_v22 = vsub.f32 1.0, %v797_v18  ;;  %v811_v37 = vmul.f32 %v1340_v33, %v794_v31 }
 0x161   : > { %v799_v25 = vmul.f32 %v1338_v16, %v798_v22 }
 0x163   : > { %v800_v30 = vadd.f32 %v1338_v16, %v799_v25 }
 0x165   : > { %v804_v34 = vsel %vm803_vm7, %v1338_v16, %v800_v30 }
 0x166   : > { %v809_v36 = vsel %vm806_vm8, %v808_v32, %v804_v34 }
 0x167   : > { %v812_v38 = vmul.f32 %v1342_v35, %v809_v36 }
 0x169   : > { %v813_v39 = vpack.c.bf16 %v812_v38, %v811_v37 }
 0x16b   : > { %890 = vmatmul.bf16.vlgmr.msrb.gmra.mxu3 %v813_v39 }
 0x1ee   : > { %v891_v41 = vpop.f32.mrf.mxu3 }
 0x1ef   : > { %v892_v42 = vadd.f32 %v1330_v40, %v891_v41 }
 0x1f1   : > { %v896_v43 = vadd.f32 %v892_v42, %v1512_v26 }
 0x1f3   : > { %898 = vst [vmem:[%s310_s9] sm:$0xff] %v896_v43 }
 0x1f6   : > { %v893_v44 = vpop.f32.mrf.mxu3 }
 0x1f7   : > { %v894_v45 = vadd.f32 %v1330_v40, %v893_v44 }
 0x1f9   : > { %v897_v46 = vadd.f32 %v894_v45, %v1515_v28 }
 0x1fb   : > { %899 = vst [vmem:[%s310_s9 + $0x8] sm:$0xff] %v897_v46 }
 0x1fc PF: > { %s19_s24 = sadd.s32 1, %s1417_s24  }
 0x1fd   : > { %p16_p7 = scmp.ge.s32.totalorder %s19_s24, 4  }
 0x1ff   :  { %18 = sbr.rel (!%p16_p7) target bundleno = 2 (0x2), region = 89 }
 0x204   :  { %921 = vsyncpa [#allocation4], 1 }
 0x205   :  { %923 = vsyncpa [#allocation4 + $0x1], 1 }
 0x206   :  { %924 = vsyncpa [#allocation6], 1 }

// kernel: ampnet_forward.15
= control target key start
LH: loop header
LB: loop body
LE: loop exit
PB: predicated region body
PF: predicated region fallthrough
CT: control target
= control target key end

     0   :  { %8 = vsyncpa [#allocation3], 0  ;;  %s766_s15 = smov [#allocation2]   ;;  %s767_s17 = smov 384   ;;  %s887_s0 = inlined_call_operand.vmem [shape: f32[32,128], index: 0, kind: input, shape index: {}]   ;;  %s888_s1 = inlined_call_operand.hbm [shape: bf16[128,768], index: 1, kind: input, shape index: {}]   ;;  %s889_s2 = inlined_call_operand.vmem [shape: f32[1,768], index: 2, kind: input, shape index: {}]   ;;  %s890_s3 = inlined_call_operand.vmem [shape: f32[32,768], index: 3, kind: output, shape index: {}]  }
   0x1   :  { %s15_s14 = sshll.u32 %s888_s1, 4  ;;  %s17_s16 = sshll.u32 %s766_s15, 4  ;;  %s16_s14 = int_to_ptr.hbm [resolvable:$true] %s15_s14  ;;  %s18_s16 = int_to_ptr.vmem [resolvable:$true] %s17_s16 }
   0x2   :  { %s768_s18 = smov 24  }
   0x3   :  { %23 = dma.hbm_to_vmem [thread:$0]  %s16_s14, 6144, %s18_s16, [#allocation3], %s767_s17, %s767_s17, %s768_s18  }
   0x4   :  { %764 = dma.done.wait [#allocation3], 6144  }
   0x5   :  { %765 = vsyncadd [#allocation3], 4294961152  ;;  %v651_v0 = vld [vmem:[#allocation2 + $0x150] sm:$0xf]  ;;  %v718_v1 = vld [vmem:[#allocation2 + $0x164] sm:$0xf0] }
   0x6   :  { %v715_v2 = vld [vmem:[#allocation2 + $0x154] sm:$0xf]  ;;  %v652_v3 = vor.u32 %v718_v1, %v651_v0  ;;  %v653_v4 = vld [vmem:[#allocation2 + $0x168] sm:$0xf0]  ;;  %v659_v5 = vld [vmem:[#allocation2 + $0x158] sm:$0xf] }
   0x7   :  { %v719_v6 = vld [vmem:[#allocation2 + $0x16c] sm:$0xf0]  ;;  %v656_v7 = vor.u32 %v715_v2, %v653_v4  ;;  %v716_v9 = vld [vmem:[#allocation2 + $0x15c] sm:$0xf]  ;;  %v661_v10 = vld [vmem:[#allocation2 + $0x170] sm:$0xf0] }
   0x8   :  { %v660_v8 = vor.u32 %v719_v6, %v659_v5  ;;  %v627_v11 = vld [vmem:[#allocation2 + $0x120] sm:$0xf]  ;;  %338 = vmatpush.bf16.msra.mxu0 %v652_v3  ;;  %v664_v12 = vor.u32 %v716_v9, %v661_v10  ;;  %v712_v13 = vld [vmem:[#allocation2 + $0x134] sm:$0xf0]  ;;  %v709_v14 = vld [vmem:[#allocation2 + $0x124] sm:$0xf] }
   0x9   :  { %v629_v15 = vld [vmem:[#allocation2 + $0x138] sm:$0xf0]  ;;  %357 = vmatpush.bf16.msra.mxu1 %v656_v7  ;;  %v628_v16 = vor.u32 %v712_v13, %v627_v11  ;;  %v635_v18 = vld [vmem:[#allocation2 + $0x128] sm:$0xf]  ;;  %v713_v19 = vld [vmem:[#allocation2 + $0x13c] sm:$0xf0] }
   0xa   :  { %376 = vmatpush.bf16.msra.mxu2 %v660_v8  ;;  %v632_v17 = vor.u32 %v709_v14, %v629_v15  ;;  %v710_v20 = vld [vmem:[#allocation2 + $0x12c] sm:$0xf]  ;;  %395 = vmatpush.bf16.msra.mxu3 %v664_v12  ;;  %v636_v21 = vor.u32 %v713_v19, %v635_v18  ;;  %v637_v22 = vld [vmem:[#allocation2 + $0x140] sm:$0xf0]  ;;  %v603_v23 = vld [vmem:[#allocation2 + $0xf0] sm:$0xf] }
   0xb   :  { %v706_v24 = vld [vmem:[#allocation2 + $0x104] sm:$0xf0]  ;;  %v640_v25 = vor.u32 %v710_v20, %v637_v22  ;;  %v703_v26 = vld [vmem:[#allocation2 + $0xf4] sm:$0xf]  ;;  %v605_v27 = vld [vmem:[#allocation2 + $0x108] sm:$0xf0] }
   0xc   :  { %v611_v28 = vld [vmem:[#allocation2 + $0xf8] sm:$0xf]  ;;  %339 = vmatpush.bf16.msra.mxu0 %v628_v16  ;;  %v604_v29 = vor.u32 %v706_v24, %v603_v23  ;;  %v707_v30 = vld [vmem:[#allocation2 + $0x10c] sm:$0xf0]  ;;  %v704_v31 = vld [vmem:[#allocation2 + $0xfc] sm:$0xf]  ;;  %v608_v33 = vor.u32 %v703_v26, %v605_v27 }
   0xd   :  { %v613_v32 = vld [vmem:[#allocation2 + $0x110] sm:$0xf0]  ;;  %358 = vmatpush.bf16.msra.mxu1 %v632_v17  ;;  %v612_v34 = vor.u32 %v707_v30, %v611_v28  ;;  %v579_v35 = vld [vmem:[#allocation2 + $0xc0] sm:$0xf]  ;;  %v700_v36 = vld [vmem:[#allocation2 + $0xd4] sm:$0xf0] }
   0xe   :  { %377 = vmatpush.bf16.msra.mxu2 %v636_v21  ;;  %v697_v37 = vld [vmem:[#allocation2 + $0xc4] sm:$0xf]  ;;  %396 = vmatpush.bf16.msra.mxu3 %v640_v25  ;;  %v616_v38 = vor.u32 %v704_v31, %v613_v32  ;;  %v581_v39 = vld [vmem:[#allocation2 + $0xd8] sm:$0xf0]  ;;  %v587_v40 = vld [vmem:[#allocation2 + $0xc8] sm:$0xf]  ;;  %v580_v44 = vor.u32 %v700_v36, %v579_v35 }
   0xf   :  { %v701_v41 = vld [vmem:[#allocation2 + $0xdc] sm:$0xf0]  ;;  %v698_v42 = vld [vmem:[#allocation2 + $0xcc] sm:$0xf]  ;;  %v589_v43 = vld [vmem:[#allocation2 + $0xe0] sm:$0xf0]  ;;  %v584_v45 = vor.u32 %v697_v37, %v581_v39 }
  0x10   :  { %340 = vmatpush.bf16.msra.mxu0 %v604_v29  ;;  %v588_v46 = vor.u32 %v701_v41, %v587_v40  ;;  %v555_v47 = vld [vmem:[#allocation2 + $0x90] sm:$0xf]  ;;  %v694_v48 = vld [vmem:[#allocation2 + $0xa4] sm:$0xf0]  ;;  %v691_v49 = vld [vmem:[#allocation2 + $0x94] sm:$0xf]  ;;  %v592_v50 = vor.u32 %v698_v42, %v589_v43 }
  0x11   :  { %359 = vmatpush.bf16.msra.mxu1 %v608_v33  ;;  %v557_v51 = vld [vmem:[#allocation2 + $0xa8] sm:$0xf0]  ;;  %v563_v52 = vld [vmem:[#allocation2 + $0x98] sm:$0xf]  ;;  %v695_v53 = vld [vmem:[#allocation2 + $0xac] sm:$0xf0]  ;;  %v556_v56 = vor.u32 %v694_v48, %v555_v47 }
  0x12   :  { %378 = vmatpush.bf16.msra.mxu2 %v612_v34  ;;  %397 = vmatpush.bf16.msra.mxu3 %v616_v38  ;;  %v692_v54 = vld [vmem:[#allocation2 + $0x9c] sm:$0xf]  ;;  %v565_v55 = vld [vmem:[#allocation2 + $0xb0] sm:$0xf0]  ;;  %v560_v57 = vor.u32 %v691_v49, %v557_v51  ;;  %v564_v58 = vor.u32 %v695_v53, %v563_v52  ;;  %v531_v59 = vld [vmem:[#allocation2 + $0x60] sm:$0xf] }
  0x13   :  { %v688_v60 = vld [vmem:[#allocation2 + $0x74] sm:$0xf0]  ;;  %v685_v61 = vld [vmem:[#allocation2 + $0x64] sm:$0xf]  ;;  %v568_v62 = vor.u32 %v692_v54, %v565_v55  ;;  %v533_v63 = vld [vmem:[#allocation2 + $0x78] sm:$0xf0] }
  0x14   :  { %341 = vmatpush.bf16.msra.mxu0 %v580_v44  ;;  %v539_v0 = vld [vmem:[#allocation2 + $0x68] sm:$0xf]  ;;  %v689_v1 = vld [vmem:[#allocation2 + $0x7c] sm:$0xf0]  ;;  %v686_v2 = vld [vmem:[#allocation2 + $0x6c] sm:$0xf]  ;;  %v532_v4 = vor.u32 %v688_v60, %v531_v59  ;;  %v536_v5 = vor.u32 %v685_v61, %v533_v63 }
  0x15   :  { %360 = vmatpush.bf16.msra.mxu1 %v584_v45  ;;  %v541_v3 = vld [vmem:[#allocation2 + $0x80] sm:$0xf0]  ;;  %v540_v6 = vor.u32 %v689_v1, %v539_v0  ;;  %v507_v7 = vld [vmem:[#allocation2 + $0x30] sm:$0xf]  ;;  %v682_v8 = vld [vmem:[#allocation2 + $0x44] sm:$0xf0] }
  0x16   :  { %379 = vmatpush.bf16.msra.mxu2 %v588_v46  ;;  %398 = vmatpush.bf16.msra.mxu3 %v592_v50  ;;  %v679_v9 = vld [vmem:[#allocation2 + $0x34] sm:$0xf]  ;;  %v544_v10 = vor.u32 %v686_v2, %v541_v3  ;;  %v509_v11 = vld [vmem:[#allocation2 + $0x48] sm:$0xf0]  ;;  %v515_v12 = vld [vmem:[#allocation2 + $0x38] sm:$0xf]  ;;  %v508_v16 = vor.u32 %v682_v8, %v507_v7 }
  0x17   :  { %v683_v13 = vld [vmem:[#allocation2 + $0x4c] sm:$0xf0]  ;;  %v680_v14 = vld [vmem:[#allocation2 + $0x3c] sm:$0xf]  ;;  %v517_v15 = vld [vmem:[#allocation2 + $0x50] sm:$0xf0]  ;;  %v512_v19 = vor.u32 %v679_v9, %v509_v11 }
  0x18   :  { %342 = vmatpush.bf16.msra.mxu0 %v556_v56  ;;  %v483_v17 = vld [vmem:[#allocation2] sm:$0xf]  ;;  %v676_v18 = vld [vmem:[#allocation2 + $0x14] sm:$0xf0]  ;;  %v516_v20 = vor.u32 %v683_v13, %v515_v12  ;;  %v673_v21 = vld [vmem:[#allocation2 + $0x4] sm:$0xf]  ;;  %v520_v24 = vor.u32 %v680_v14, %v517_v15 }
  0x19   :  { %361 = vmatpush.bf16.msra.mxu1 %v560_v57  ;;  %v485_v22 = vld [vmem:[#allocation2 + $0x18] sm:$0xf0]  ;;  %v491_v23 = vld [vmem:[#allocation2 + $0x8] sm:$0xf]  ;;  %v677_v25 = vld [vmem:[#allocation2 + $0x1c] sm:$0xf0]  ;;  %v484_v31 = vor.u32 %v676_v18, %v483_v17 }
  0x1a   :  { %380 = vmatpush.bf16.msra.mxu2 %v564_v58  ;;  %399 = vmatpush.bf16.msra.mxu3 %v568_v62  ;;  %v674_v26 = vld [vmem:[#allocation2 + $0xc] sm:$0xf]  ;;  %v493_v27 = vld [vmem:[#allocation2 + $0x20] sm:$0xf0]  ;;  %v667_v29 = vld [vmem:[#allocation2 + $0x160] sm:$0xf]  ;;  %v488_v35 = vor.u32 %v673_v21, %v485_v22  ;;  %v492_v36 = vor.u32 %v677_v25, %v491_v23 }
  0x1b   :  { %v30_v28 = vld [vmem:[%s887_s0] sm:$0xff]  ;;  %v720_v30 = vld [vmem:[#allocation2 + $0x174] sm:$0xf0]  ;;  %v31_v32 = vld [vmem:[%s887_s0 + $0x8] sm:$0xff]  ;;  %v496_v37 = vor.u32 %v674_v26, %v493_v27 }
  0x1c   :  { %343 = vmatpush.bf16.msra.mxu0 %v532_v4  ;;  %v717_v33 = vld [vmem:[#allocation2 + $0x164] sm:$0xf]  ;;  %v669_v34 = vld [vmem:[#allocation2 + $0x178] sm:$0xf0]  ;;  %v668_v38 = vor.u32 %v720_v30, %v667_v29  ;;  %v798_v39 = vpack.c.bf16 %v31_v32, %v30_v28  ;;  %v643_v41 = vld [vmem:[#allocation2 + $0x130] sm:$0xf] }
  0x1d   :  { %362 = vmatpush.bf16.msra.mxu1 %v536_v5  ;;  %v672_v40 = vor.u32 %v717_v33, %v669_v34  ;;  %v714_v42 = vld [vmem:[#allocation2 + $0x144] sm:$0xf0]  ;;  %v711_v43 = vld [vmem:[#allocation2 + $0x134] sm:$0xf]  ;;  %v645_v44 = vld [vmem:[#allocation2 + $0x148] sm:$0xf0] }
  0x1e   :  { %381 = vmatpush.bf16.msra.mxu2 %v540_v6  ;;  %400 = vmatpush.bf16.msra.mxu3 %v544_v10  ;;  %v644_v45 = vor.u32 %v714_v42, %v643_v41  ;;  %v648_v46 = vor.u32 %v711_v43, %v645_v44  ;;  %v619_v47 = vld [vmem:[#allocation2 + $0x100] sm:$0xf]  ;;  %v708_v48 = vld [vmem:[#allocation2 + $0x114] sm:$0xf0]  ;;  %v705_v49 = vld [vmem:[#allocation2 + $0x104] sm:$0xf] }
  0x1f   :  { %v621_v50 = vld [vmem:[#allocation2 + $0x118] sm:$0xf0]  ;;  %v620_v51 = vor.u32 %v708_v48, %v619_v47  ;;  %v595_v53 = vld [vmem:[#allocation2 + $0xd0] sm:$0xf]  ;;  %v702_v54 = vld [vmem:[#allocation2 + $0xe4] sm:$0xf0] }
  0x20   :  { %344 = vmatpush.bf16.msra.mxu0 %v508_v16  ;;  %v624_v52 = vor.u32 %v705_v49, %v621_v50  ;;  %v699_v55 = vld [vmem:[#allocation2 + $0xd4] sm:$0xf]  ;;  %v597_v56 = vld [vmem:[#allocation2 + $0xe8] sm:$0xf0]  ;;  %v596_v57 = vor.u32 %v702_v54, %v595_v53  ;;  %v571_v60 = vld [vmem:[#allocation2 + $0xa0] sm:$0xf] }
  0x21   :  { %363 = vmatpush.bf16.msra.mxu1 %v512_v19  ;;  %v600_v58 = vor.u32 %v699_v55, %v597_v56  ;;  %v32_v59 = vld [vmem:[%s887_s0 + $0x10] sm:$0xff]  ;;  %v696_v61 = vld [vmem:[#allocation2 + $0xb4] sm:$0xf0]  ;;  %v693_v63 = vld [vmem:[#allocation2 + $0xa4] sm:$0xf] }
  0x22   :  { %382 = vmatpush.bf16.msra.mxu2 %v516_v20  ;;  %401 = vmatpush.bf16.msra.mxu3 %v520_v24  ;;  %v33_v62 = vld [vmem:[%s887_s0 + $0x18] sm:$0xff]  ;;  %v572_v1 = vor.u32 %v696_v61, %v571_v60  ;;  %v547_v4 = vld [vmem:[#allocation2 + $0x70] sm:$0xf]  ;;  %v690_v5 = vld [vmem:[#allocation2 + $0x84] sm:$0xf0] }
  0x23   :  { %v573_v0 = vld [vmem:[#allocation2 + $0xb8] sm:$0xf0]  ;;  %v35_v2 = vpack.c.bf16 %v33_v62, %v32_v59  ;;  %v687_v6 = vld [vmem:[#allocation2 + $0x74] sm:$0xf]  ;;  %v549_v7 = vld [vmem:[#allocation2 + $0x88] sm:$0xf0]  ;;  %v548_v8 = vor.u32 %v690_v5, %v547_v4 }
  0x24   :  { %345 = vmatpush.bf16.msra.mxu0 %v484_v31  ;;  %v576_v3 = vor.u32 %v693_v63, %v573_v0  ;;  %v552_v9 = vor.u32 %v687_v6, %v549_v7  ;;  %v523_v10 = vld [vmem:[#allocation2 + $0x40] sm:$0xf]  ;;  %v684_v11 = vld [vmem:[#allocation2 + $0x54] sm:$0xf0]  ;;  %v681_v12 = vld [vmem:[#allocation2 + $0x44] sm:$0xf] }
  0x25   :  { %364 = vmatpush.bf16.msra.mxu1 %v488_v35  ;;  %v525_v13 = vld [vmem:[#allocation2 + $0x58] sm:$0xf0]  ;;  %v524_v14 = vor.u32 %v684_v11, %v523_v10  ;;  %v499_v16 = vld [vmem:[#allocation2 + $0x10] sm:$0xf]  ;;  %v678_v17 = vld [vmem:[#allocation2 + $0x24] sm:$0xf0] }
  0x26   :  { %383 = vmatpush.bf16.msra.mxu2 %v492_v36  ;;  %402 = vmatpush.bf16.msra.mxu3 %v496_v37  ;;  %v528_v15 = vor.u32 %v681_v12, %v525_v13  ;;  %v675_v18 = vld [vmem:[#allocation2 + $0x14] sm:$0xf]  ;;  %v501_v19 = vld [vmem:[#allocation2 + $0x28] sm:$0xf0]  ;;  %v500_v20 = vor.u32 %v678_v17, %v499_v16  ;;  %v84_v22 = vld [vmem:[%s889_s2] sm:$0x3f] }
  0x27   :  { %346 = vmatmul.bf16.vlgmr.msra.gmra.mxu0 %v798_v39  ;;  %v504_v21 = vor.u32 %v675_v18, %v501_v19  ;;  %v86_v23 = vperm.slane %v84_v22, 0  ;;  %v87_v24 = vperm.slane %v84_v22, 1  ;;  %v88_v29 = vperm.slane %v84_v22, 2 }
  0x28   :  { %365 = vmatmul.bf16.vlgmr.msra.gmra.mxu1 %v798_v39  ;;  %414 = vmatpush.bf16.msrb.mxu0 %v668_v38  ;;  %v89_v30 = vperm.slane %v84_v22, 3  ;;  %v90_v55 = vperm.slane %v84_v22, 4 }
  0x29   :  { %384 = vmatmul.bf16.vlgmr.msra.gmra.mxu2 %v798_v39  ;;  %403 = vmatmul.bf16.vlgmr.msra.gmra.mxu3 %v798_v39 }
  0x2a   :  { %721 = vmatpush.bf16.msrb.mxu2 %v668_v38  ;;  %729 = vmatpush.bf16.msrb.mxu3 %v672_v40 }
  0x2b   :  { %433 = vmatpush.bf16.msrb.mxu1 %v672_v40 }
  0x2c   :  { %415 = vmatpush.bf16.msrb.mxu0 %v644_v45 }
  0x2e   :  { %722 = vmatpush.bf16.msrb.mxu2 %v644_v45  ;;  %730 = vmatpush.bf16.msrb.mxu3 %v648_v46 }
  0x2f   :  { %434 = vmatpush.bf16.msrb.mxu1 %v648_v46 }
  0x30   :  { %416 = vmatpush.bf16.msrb.mxu0 %v620_v51 }
  0x32   :  { %723 = vmatpush.bf16.msrb.mxu2 %v620_v51  ;;  %731 = vmatpush.bf16.msrb.mxu3 %v624_v52 }
  0x33   :  { %435 = vmatpush.bf16.msrb.mxu1 %v624_v52 }
  0x34   :  { %417 = vmatpush.bf16.msrb.mxu0 %v596_v57 }
  0x36   :  { %724 = vmatpush.bf16.msrb.mxu2 %v596_v57  ;;  %732 = vmatpush.bf16.msrb.mxu3 %v600_v58  ;;  %v91_v57 = vperm.slane %v84_v22, 5 }
  0x37   :  { %436 = vmatpush.bf16.msrb.mxu1 %v600_v58  ;;  %351 = vmatmul.bf16.gmra.mxu0 %v35_v2 }
  0x38   :  { %370 = vmatmul.bf16.gmra.mxu1 %v35_v2  ;;  %418 = vmatpush.bf16.msrb.mxu0 %v572_v1 }
  0x39   :  { %389 = vmatmul.bf16.gmra.mxu2 %v35_v2  ;;  %408 = vmatmul.bf16.gmra.mxu3 %v35_v2 }
  0x3a   :  { %725 = vmatpush.bf16.msrb.mxu2 %v572_v1  ;;  %733 = vmatpush.bf16.msrb.mxu3 %v576_v3 }
  0x3b   :  { %437 = vmatpush.bf16.msrb.mxu1 %v576_v3 }
  0x3c   :  { %419 = vmatpush.bf16.msrb.mxu0 %v548_v8 }
  0x3e   :  { %726 = vmatpush.bf16.msrb.mxu2 %v548_v8  ;;  %734 = vmatpush.bf16.msrb.mxu3 %v552_v9 }
  0x3f   :  { %438 = vmatpush.bf16.msrb.mxu1 %v552_v9 }
  0x40   :  { %420 = vmatpush.bf16.msrb.mxu0 %v524_v14 }
  0x42   :  { %727 = vmatpush.bf16.msrb.mxu2 %v524_v14  ;;  %735 = vmatpush.bf16.msrb.mxu3 %v528_v15 }
  0x43   :  { %439 = vmatpush.bf16.msrb.mxu1 %v528_v15 }
  0x44   :  { %421 = vmatpush.bf16.msrb.mxu0 %v500_v20 }
  0x46   :  { %728 = vmatpush.bf16.msrb.mxu2 %v500_v20  ;;  %736 = vmatpush.bf16.msrb.mxu3 %v504_v21 }
  0x47   :  { %440 = vmatpush.bf16.msrb.mxu1 %v504_v21  ;;  %422 = vmatmul.bf16.vlgmr.msrb.gmra.mxu0 %v798_v39 }
  0x49   :  { %427 = vmatmul.bf16.vlgmr.msrb.gmra.mxu2 %v35_v2  ;;  %446 = vmatmul.bf16.vlgmr.msrb.gmra.mxu3 %v35_v2 }
  0x4a   :  { %441 = vmatmul.bf16.vlgmr.msrb.gmra.mxu1 %v798_v39 }
  0xa4   :  { %v347_v25 = vpop.f32.mrf.mxu0 }
  0xa5   :  { %v348_v26 = vadd.f32 %v347_v25, %v86_v23  ;;  %v366_v27 = vpop.f32.mrf.mxu1 }
  0xa6   :  { %v367_v28 = vadd.f32 %v366_v27, %v87_v24 }
  0xa7   :  { %452 = vst [vmem:[%s890_s3] sm:$0xff] %v348_v26 }
  0xa8   :  { %453 = vst [vmem:[%s890_s3 + $0x8] sm:$0xff] %v367_v28 }
  0xac   :  { %v385_v31 = vpop.f32.mrf.mxu2  ;;  %v404_v33 = vpop.f32.mrf.mxu3 }
  0xad   :  { %v386_v32 = vadd.f32 %v385_v31, %v88_v29  ;;  %v349_v34 = vpop.f32.mrf.mxu0  ;;  %v405_v35 = vadd.f32 %v404_v33, %v89_v30  ;;  %v368_v37 = vpop.f32.mrf.mxu1 }
  0xae   :  { %v350_v36 = vadd.f32 %v349_v34, %v86_v23  ;;  %v369_v38 = vadd.f32 %v368_v37, %v87_v24 }
  0xaf   :  { %454 = vst [vmem:[%s890_s3 + $0x10] sm:$0xff] %v386_v32 }
  0xb0   :  { %455 = vst [vmem:[%s890_s3 + $0x18] sm:$0xff] %v405_v35 }
  0xb1   :  { %458 = vst [vmem:[%s890_s3 + $0x30] sm:$0xff] %v350_v36 }
  0xb2   :  { %459 = vst [vmem:[%s890_s3 + $0x38] sm:$0xff] %v369_v38 }
  0xb4   :  { %v387_v39 = vpop.f32.mrf.mxu2  ;;  %v406_v41 = vpop.f32.mrf.mxu3 }
  0xb5   :  { %v388_v40 = vadd.f32 %v387_v39, %v88_v29  ;;  %v352_v42 = vpop.f32.mrf.mxu0  ;;  %v407_v43 = vadd.f32 %v406_v41, %v89_v30  ;;  %v371_v45 = vpop.f32.mrf.mxu1 }
  0xb6   :  { %v353_v44 = vadd.f32 %v352_v42, %v86_v23  ;;  %v372_v46 = vadd.f32 %v371_v45, %v87_v24 }
  0xb7   :  { %460 = vst [vmem:[%s890_s3 + $0x40] sm:$0xff] %v388_v40 }
  0xb8   :  { %461 = vst [vmem:[%s890_s3 + $0x48] sm:$0xff] %v407_v43 }
  0xb9   :  { %464 = vst [vmem:[%s890_s3 + $0x60] sm:$0xff] %v353_v44 }
  0xba   :  { %465 = vst [vmem:[%s890_s3 + $0x68] sm:$0xff] %v372_v46 }
  0xbc   :  { %v390_v47 = vpop.f32.mrf.mxu2  ;;  %v409_v49 = vpop.f32.mrf.mxu3 }
  0xbd   :  { %v391_v48 = vadd.f32 %v390_v47, %v88_v29  ;;  %v354_v50 = vpop.f32.mrf.mxu0  ;;  %v410_v51 = vadd.f32 %v409_v49, %v89_v30  ;;  %v373_v53 = vpop.f32.mrf.mxu1 }
  0xbe   :  { %v355_v52 = vadd.f32 %v354_v50, %v86_v23  ;;  %v374_v54 = vadd.f32 %v373_v53, %v87_v24 }
  0xbf   :  { %466 = vst [vmem:[%s890_s3 + $0x70] sm:$0xff] %v391_v48 }
  0xc0   :  { %467 = vst [vmem:[%s890_s3 + $0x78] sm:$0xff] %v410_v51 }
  0xc1   :  { %470 = vst [vmem:[%s890_s3 + $0x90] sm:$0xff] %v355_v52 }
  0xc2   :  { %471 = vst [vmem:[%s890_s3 + $0x98] sm:$0xff] %v374_v54 }
  0xc4   :  { %v392_v56 = vpop.f32.mrf.mxu2  ;;  %v411_v59 = vpop.f32.mrf.mxu3 }
  0xc5   :  { %v393_v58 = vadd.f32 %v392_v56, %v88_v29  ;;  %v412_v60 = vadd.f32 %v411_v59, %v89_v30  ;;  %v423_v61 = vpop.f32.mrf.mxu0 }
  0xc6   :  { %v424_v62 = vadd.f32 %v423_v61, %v90_v55 }
  0xc7   :  { %472 = vst [vmem:[%s890_s3 + $0xa0] sm:$0xff] %v393_v58  ;;  %v442_v63 = vpop.f32.mrf.mxu1 }
  0xc8   :  { %473 = vst [vmem:[%s890_s3 + $0xa8] sm:$0xff] %v412_v60  ;;  %v443_v0 = vadd.f32 %v442_v63, %v91_v57 }
  0xc9   :  { %456 = vst [vmem:[%s890_s3 + $0x20] sm:$0xff] %v424_v62 }
  0xca   :  { %457 = vst [vmem:[%s890_s3 + $0x28] sm:$0xff] %v443_v0 }
  0xcc   :  { %v428_v1 = vpop.f32.mrf.mxu2  ;;  %v447_v3 = vpop.f32.mrf.mxu3 }
  0xcd   :  { %v429_v2 = vadd.f32 %v428_v1, %v90_v55  ;;  %v448_v4 = vadd.f32 %v447_v3, %v91_v57  ;;  %v425_v5 = vpop.f32.mrf.mxu0 }
  0xce   :  { %v426_v6 = vadd.f32 %v425_v5, %v90_v55 }
  0xcf   :  { %468 = vst [vmem:[%s890_s3 + $0x80] sm:$0xff] %v429_v2  ;;  %v444_v7 = vpop.f32.mrf.mxu1 }
  0xd0   :  { %469 = vst [vmem:[%s890_s3 + $0x88] sm:$0xff] %v448_v4  ;;  %v445_v8 = vadd.f32 %v444_v7, %v91_v57 }
  0xd1   :  { %462 = vst [vmem:[%s890_s3 + $0x50] sm:$0xff] %v426_v6 }
  0xd2   :  { %463 = vst [vmem:[%s890_s3 + $0x58] sm:$0xff] %v445_v8 }
  0xd4   :  { %v430_v9 = vpop.f32.mrf.mxu2  ;;  %v449_v11 = vpop.f32.mrf.mxu3 }
  0xd5   :  { %v431_v10 = vadd.f32 %v430_v9, %v90_v55  ;;  %v450_v12 = vadd.f32 %v449_v11, %v91_v57 }
  0xd7   :  { %474 = vst [vmem:[%s890_s3 + $0xb0] sm:$0xff] %v431_v10 }
  0xd8   :  { %475 = vst [vmem:[%s890_s3 + $0xb8] sm:$0xff] %v450_v12 }
  0xd9   :  { %480 = vsyncpa [#allocation3], 1 }

// kernel: ampnet_forward.12
= control target key start
LH: loop header
LB: loop body
LE: loop exit
PB: predicated region body
PF: predicated region fallthrough
CT: control target
= control target key end

     0   :  { %12 = vsyncpa [#allocation4], 0  ;;  %s3261_s0 = inlined_call_operand.vmem [shape: f32[2,16,3], index: 0, kind: input, shape index: {}]   ;;  %s3262_s1 = inlined_call_operand.hbm [shape: bf16[3,32], index: 1, kind: input, shape index: {}]   ;;  %s3263_s2 = inlined_call_operand.vmem [shape: f32[1,32], index: 2, kind: input, shape index: {}]   ;;  %s3264_s3 = inlined_call_operand.hbm [shape: bf16[8,3,32,64], index: 3, kind: input, shape index: {}]   ;;  %s3265_s4 = inlined_call_operand.hbm [shape: f32[8,1,64], index: 4, kind: input, shape index: {}]   ;;  %s3266_s5 = inlined_call_operand.hbm [shape: bf16[8,32,32], index: 5, kind: input, shape index: {}]   ;;  %s3267_s6 = inlined_call_operand.hbm [shape: f32[8,1,32], index: 6, kind: input, shape index: {}]   ;;  %s3268_s7 = inlined_call_operand.vmem [shape: f32[2,16,32], index: 7, kind: output, shape index: {}]  }
   0x1   :  { %13 = vsyncpa [#allocation6], 0 }
   0x2   :  { %14 = vsyncpa [#allocation9], 0  ;;  %s3034_s24 = smov 0  }
   0x3 LB: > { %s229_s27 = sshll.u32 %s3264_s3, 4  ;;  %s3043_s28 = sadd.s32 4294967295, %s2980_s24   ;;  %s2980_s24 = sphi %s3034_s24, %s20_s24   ;;  %s230_s27 = int_to_ptr.hbm [resolvable:$true] %s229_s27 }
   0x4   : > { %p2243_p0 = scmp.ge.s32.totalorder %s2980_s24, 1  ;;  %p203_p1 = scmp.lt.s32.totalorder %s2980_s24, 3 }
   0x5   : > { %p2669_p2 = scmp.eq.s32.totalorder %s3043_s28, 0  ;;  %s2982_s30 = smov [#allocation5]  }
   0x6   : > { %p3048_p3 = pnand %p2243_p0, %p203_p1  ;;  %s231_s8 = sshll.u32 %s2982_s30, 4  ;;  %s232_s8 = int_to_ptr.vmem [resolvable:$true] %s231_s8 }
   0x7   : > { %s257_s11 = sshll.u32 %s3266_s5, 4  ;;  %s2983_s13 = smov [#allocation8]   ;;  %s258_s11 = int_to_ptr.hbm [resolvable:$true] %s257_s11 }
   0x8   : > { %p2653_p4 = pneg %p3048_p3  ;;  %s259_s14 = sshll.u32 %s2983_s13, 4  ;;  %s260_s14 = int_to_ptr.vmem [resolvable:$true] %s259_s14 }
   0x9   : > { %s215_s17 = sshll.u32 %s3262_s1, 4  ;;  %s2984_s18 = smov 64   ;;  %s216_s17 = int_to_ptr.hbm [resolvable:$true] %s215_s17 }
   0xa   : > { %p3059_p5 = pnand %p2669_p2, %p2653_p4  ;;  %s2985_s19 = smov 4  }
   0xb   : > { %s2986_s20 = smov [#allocation3]   ;;  %s243_s25 = sshll.u32 %s3265_s4, 4  ;;  %s244_s25 = int_to_ptr.hbm [resolvable:$true] %s243_s25 }
   0xc   : > { %2659 = dma.hbm_to_vmem [thread:$0]  (!%p3059_p5), %s230_s27, 6144, %s232_s8, [#allocation6], %s2984_s18, %s2984_s18, %s2985_s19  }
   0xd   : > { %2665 = dma.hbm_to_vmem [thread:$0]  (!%p3059_p5), %s258_s11, 2048, %s260_s14, [#allocation9], %s2984_s18, %s2984_s18, %s2985_s19  }
   0xe   : > { %s217_s21 = sshll.u32 %s2986_s20, 4  ;;  %s2987_s26 = smov [#allocation7]   ;;  %s218_s21 = int_to_ptr.vmem [resolvable:$true] %s217_s21 }
   0xf   : > { %2656 = dma.hbm_to_vmem [thread:$0]  (!%p3059_p5), %s216_s17, 32, %s218_s21, [#allocation4]  }
  0x10   : > { %s245_s30 = sshll.u32 %s2987_s26, 4  ;;  %s271_s27 = sshll.u32 %s3267_s6, 4  ;;  %s246_s30 = int_to_ptr.vmem [resolvable:$true] %s245_s30  ;;  %s272_s27 = int_to_ptr.hbm [resolvable:$true] %s271_s27 }
  0x11   : > { %s2988_s8 = smov 16   ;;  %s2989_s11 = smov 1  }
  0x12   : > { %2662 = dma.hbm_to_vmem [thread:$0]  (!%p3059_p5), %s244_s25, 128, %s246_s30, [#allocation6], %s2988_s8, %s2988_s8, %s2989_s11  }
  0x13   : > { %s2990_s13 = smov [#allocation10]   ;;  %297 = sbr.rel (%p3048_p3) target bundleno = 3632 (0xe30), region = 48 }
  0x14   : > { %s273_s14 = sshll.u32 %s2990_s13, 4  ;;  %s274_s14 = int_to_ptr.vmem [resolvable:$true] %s273_s14 }
  0x15   : > { %2668 = dma.hbm_to_vmem [thread:$0]  (!%p3059_p5), %s272_s27, 128, %s274_s14, [#allocation9], %s2988_s8, %s2988_s8, %s2989_s11  }
  0x18   : > { %2967 = dma.done.wait (%p2669_p2), [#allocation4], 32  }
  0x19   : > { %2969 = vsyncadd (%p2669_p2), [#allocation4], 4294967264 }
  0x1a   : > { %2971 = dma.done.wait (%p2669_p2), [#allocation6], 6272  }
  0x1b   : > { %2973 = vsyncadd (%p2669_p2), [#allocation6], 4294961024 }
  0x1c   : > { %2975 = dma.done.wait (%p2669_p2), [#allocation9], 2176  }
  0x1d   : > { %2977 = vsyncadd (%p2669_p2), [#allocation9], 4294965120  ;;  %vm373_vm0 = vcmask 1040384   ;;  %p350_p6 = scmp.lt.s32.totalorder %s3043_s28, 1  ;;  %vm374_vm1 = vcmask 1041408   ;;  %v2991_v0 = vmov 65535  }
  0x1e   : > { %v375_v1 = vsel %vm373_vm0, 4294967295, %v2991_v0  ;;  %v364_v3 = vld [vmem:[#allocation3] sm:$0x3]  ;;  %vm369_vm2 = vcmask 23552   ;;  %vm394_vm3 = vcmask 261120   ;;  %v2992_v8 = vmov 0.0  }
  0x1f   : > { %s3272_s28 = smov (!%p350_p6, %s3043_s28), 1  ;;  %v376_v2 = vsel %vm374_vm1, %v375_v1, 0  ;;  %411 = vst.msk [vmem:[#allocation2 + $0x80] sm:$0xff] %vm394_vm3, %v2992_v8  ;;  %v2572_v9 = vld [vmem:[#allocation5 + $0x18] sm:$0xff]  ;;  %v2570_v10 = vld [vmem:[#allocation5 + $0x8] sm:$0xff]  ;;  %v2571_v12 = vld [vmem:[#allocation5 + $0x10] sm:$0xff] }
  0x20   : > { %s2567_s29 = sshll.u32 %s3272_s28, 4  ;;  %v378_v6 = vand.u32 %v376_v2, %v364_v3  ;;  %v2574_v11 = vld [vmem:[#allocation5 + $0x28] sm:$0xff]  ;;  %470 = vmatpush.bf16.msra.mxu1 %v2572_v9  ;;  %499 = vmatpush.bf16.msra.mxu2 %v2570_v10  ;;  %v2569_v13 = vld [vmem:[#allocation5] sm:$0xff]  ;;  %395 = vst.msk [vmem:[#allocation2] sm:$0xff] %vm394_vm3, %v2992_v8  ;;  %v2576_v42 = vld [vmem:[#allocation8 + $0x8] sm:$0xff]  ;;  %s2993_s19 = smov 96  }
  0x21   : > { %s354_s16 = scalar_lea.vmem %s3261_s0, %s2567_s29  ;;  %533 = vmatpush.bf16.msra.mxu3 %v2574_v11  ;;  %v2573_v14 = vld [vmem:[#allocation5 + $0x20] sm:$0xff]  ;;  %396 = vst.msk [vmem:[#allocation2 + $0x8] sm:$0xff] %vm394_vm3, %v2992_v8  ;;  %v2699_v15 = vld [vmem:[%s3263_s2] ss:$0 sm:$0xff]  ;;  %s359_s22 = scalar_lea.vmem %s3268_s7, %s2567_s29 }
  0x22   : > { %v361_v4 = vld [vmem:[%s354_s16] sm:$0xff]  ;;  %v362_v5 = vld [vmem:[%s354_s16 + $0x8] sm:$0xff]  ;;  %387 = vmatpush.bf16.msra.mxu0 %v378_v6  ;;  %403 = vst.msk [vmem:[#allocation2 + $0x40] sm:$0xff] %vm394_vm3, %v2992_v8  ;;  %v2700_v33 = vld [vmem:[#allocation7] ss:$0 sm:$0xff] }
  0x23   : > { %v363_v7 = vpack.c.bf16 %v362_v5, %v361_v4  ;;  %404 = vst.msk [vmem:[#allocation2 + $0x48] sm:$0xff] %vm394_vm3, %v2992_v8  ;;  %v2575_v5 = vld [vmem:[#allocation8] sm:$0xff] }
  0x24   : > { %471 = vmatpush.bf16.msra.mxu1 %v2571_v12  ;;  %500 = vmatpush.bf16.msra.mxu2 %v2569_v13  ;;  %407 = vst.msk [vmem:[#allocation2 + $0x60] sm:$0xff] %vm394_vm3, %v2992_v8  ;;  %v2578_v13 = vld [vmem:[#allocation5 + $0x38] sm:$0xff] }
  0x25   : > { %2260 = vmatmul.msk.bf16.vlgmr.msra.gmra.mxu0 %vm369_vm2, %v363_v7  ;;  %534 = vmatpush.bf16.msra.mxu3 %v2573_v14  ;;  %408 = vst.msk [vmem:[#allocation2 + $0x68] sm:$0xff] %vm394_vm3, %v2992_v8  ;;  %v2582_v14 = vld [vmem:[#allocation5 + $0x58] sm:$0xff] }
  0x26   : > { %409 = vst.msk [vmem:[#allocation2 + $0x70] sm:$0xff] %vm394_vm3, %v2992_v8  ;;  %629 = vmatpush.bf16.msrb.mxu0 %v2576_v42 }
  0x27   : > { %410 = vst.msk [vmem:[#allocation2 + $0x78] sm:$0xff] %vm394_vm3, %v2992_v8 }
  0x28   : > { %412 = vst.msk [vmem:[#allocation2 + $0x88] sm:$0xff] %vm394_vm3, %v2992_v8  ;;  %710 = vmatpush.bf16.msrb.mxu2 %v2578_v13 }
  0x29   : > { %413 = vst.msk [vmem:[#allocation2 + $0x90] sm:$0xff] %vm394_vm3, %v2992_v8  ;;  %744 = vmatpush.bf16.msrb.mxu3 %v2582_v14 }
  0x2a   : > { %414 = vst.msk [vmem:[#allocation2 + $0x98] sm:$0xff] %vm394_vm3, %v2992_v8  ;;  %630 = vmatpush.bf16.msrb.mxu0 %v2575_v5 }
  0x2b   : > { %415 = vst.msk [vmem:[#allocation2 + $0xa0] sm:$0xff] %vm394_vm3, %v2992_v8 }
  0x2c   : > { %416 = vst.msk [vmem:[#allocation2 + $0xa8] sm:$0xff] %vm394_vm3, %v2992_v8 }
  0x2d   : > { %419 = vst.msk [vmem:[#allocation2 + $0xc0] sm:$0xff] %vm394_vm3, %v2992_v8 }
  0x2e   : > { %420 = vst.msk [vmem:[#allocation2 + $0xc8] sm:$0xff] %vm394_vm3, %v2992_v8 }
  0x2f   : > { %427 = vst.msk [vmem:[#allocation2 + $0x100] sm:$0xff] %vm394_vm3, %v2992_v8 }
  0x30   : > { %428 = vst.msk [vmem:[#allocation2 + $0x108] sm:$0xff] %vm394_vm3, %v2992_v8 }
  0xa2   : > { %v389_v16 = vpop.f32.mrf.mxu0 }
  0xa3   : > { %v3124_v17 = vadd.f32 %v2699_v15, %v389_v16  ;;  %v2577_v16 = vld [vmem:[#allocation5 + $0x30] sm:$0xff] }
  0xa4   : > { %711 = vmatpush.bf16.msrb.mxu2 %v2577_v16 }
  0xa5   : > { %429 = vst.msk [vmem:[#allocation2 + $0x80] sm:$0xff] %vm394_vm3, %v3124_v17 }
  0xaa   : > { %v391_v18 = vpop.f32.mrf.mxu0 }
  0xab   : > { %v3131_v19 = vadd.f32 %v2699_v15, %v391_v18  ;;  %v2580_v15 = vld [vmem:[#allocation5 + $0x48] sm:$0xff]  ;;  %v2581_v18 = vld [vmem:[#allocation5 + $0x50] sm:$0xff] }
  0xac   : > { %v434_v20 = vld [vmem:[#allocation2 + $0x80] sm:$0xff]  ;;  %681 = vmatpush.bf16.msrb.mxu1 %v2580_v15  ;;  %745 = vmatpush.bf16.msrb.mxu3 %v2581_v18 }
  0xad   : > { %430 = vst.msk [vmem:[#allocation2 + $0x88] sm:$0xff] %vm394_vm3, %v3131_v19  ;;  %v431_v21 = vld [vmem:[#allocation2 + $0x7f] sm:$0xff] }
  0xb4   : > { %v432_v22 = vld [vmem:[#allocation2 + $0x87] sm:$0xff] }
  0xb5   : > { %v437_v23 = vld [vmem:[#allocation2 + $0x81] sm:$0xff]  ;;  %v433_v26 = vpack.c.bf16 %v432_v22, %v431_v21  ;;  %v438_v27 = vld [vmem:[#allocation2 + $0x89] sm:$0xff]  ;;  %v2701_v21 = vld [vmem:[#allocation10] ss:$0 sm:$0xff] }
  0xb6   : > { %v435_v24 = vld [vmem:[#allocation2 + $0x88] sm:$0xff]  ;;  %v439_v28 = vpack.c.bf16 %v438_v27, %v437_v23 }
  0xb7   : > { %v436_v25 = vpack.c.bf16 %v435_v24, %v434_v20  ;;  %2278 = vmatmul.msk.bf16.vlgmr.msra.gmra.mxu2 %vm394_vm3, %v433_v26  ;;  %v2579_v20 = vld [vmem:[#allocation5 + $0x40] sm:$0xff] }
  0xb8   : > { %2287 = vmatmul.msk.bf16.vlgmr.msra.gmra.mxu3 %vm394_vm3, %v439_v28  ;;  %682 = vmatpush.bf16.msrb.mxu1 %v2579_v20 }
  0xb9   : > { %2269 = vmatmul.msk.bf16.vlgmr.msra.gmra.mxu1 %vm394_vm3, %v436_v25 }
 0x136   : > { %v473_v29 = vpop.f32.mrf.mxu1 }
 0x13a   : > { %v502_v30 = vpop.f32.mrf.mxu2 }
 0x13b   : > { %v503_v31 = vadd.f32 %v502_v30, %v473_v29  ;;  %v536_v32 = vpop.f32.mrf.mxu3 }
 0x13d   : > { %v541_v34 = vadd.f32 %v536_v32, %v503_v31 }
 0x13e   : > { %v475_v37 = vpop.f32.mrf.mxu1 }
 0x13f   : > { %v547_v35 = vadd.f32 %v2700_v33, %v541_v34 }
 0x141   : > { %v2288_v36 = vmul.f32 -1.442695, %v547_v35 }
 0x142   : > { %v504_v38 = vpop.f32.mrf.mxu2 }
 0x143   : > { %2716 = vpow2.f32 %v2288_v36  ;;  %v505_v39 = vadd.f32 %v504_v38, %v475_v37  ;;  %v538_v40 = vpop.f32.mrf.mxu3 }
 0x145   : > { %v542_v41 = vadd.f32 %v538_v40, %v505_v39  ;;  %v2702_v39 = vld [vmem:[#allocation7 + $0x1] ss:$0 sm:$0xff] }
 0x147   : > { %v548_v43 = vadd.f32 %v2700_v33, %v542_v41 }
 0x149   : > { %v2717_v44 = vpop.eup %2716  ;;  %v2289_v45 = vmul.f32 -1.442695, %v548_v43 }
 0x14a   : > { %v557_v46 = vadd.f32 1.0, %v2717_v44 }
 0x14b   : > { %2718 = vpow2.f32 %v2289_v45 }
 0x14c   : > { %2720 = vrcp.f32 %v557_v46  ;;  %v570_v52 = vand.u32 2147483648, %v557_v46  ;;  %v568_v54 = vand.u32 2147483647, %v557_v46  ;;  %vm564_vm5 = vweird.f32 %v557_v46 }
 0x14e   : > { %v571_v57 = vor.u32 1.1754944e-38, %v570_v52  ;;  %vm569_vm7 = vcmp.eq.f32.partialorder %v568_v54, 8.507059e+37 }
 0x151   : > { %v2719_v47 = vpop.eup %2718 }
 0x152   : > { %v2721_v48 = vpop.eup %2720  ;;  %v558_v49 = vadd.f32 1.0, %v2719_v47 }
 0x153   : > { %v560_v50 = vmul.f32 %v2721_v48, %v557_v46  ;;  %vm565_vm4 = vweird.f32 %v2721_v48 }
 0x154   : > { %2722 = vrcp.f32 %v558_v49  ;;  %vm566_vm6 = vmor %vm564_vm5, %vm565_vm4  ;;  %v585_v62 = vand.u32 2147483648, %v558_v49  ;;  %v583_v0 = vand.u32 2147483647, %v558_v49  ;;  %vm579_vm9 = vweird.f32 %v558_v49 }
 0x155   : > { %v561_v51 = vsub.f32 1.0, %v560_v50  ;;  %2724 = vtanh.f32 %v547_v35 }
 0x156   : > { %v586_v2 = vor.u32 1.1754944e-38, %v585_v62  ;;  %vm584_vm11 = vcmp.eq.f32.partialorder %v583_v0, 8.507059e+37  ;;  %2726 = vtanh.f32 %v548_v43 }
 0x157   : > { %v562_v53 = vmul.f32 %v2721_v48, %v561_v51 }
 0x159   : > { %v563_v55 = vadd.f32 %v2721_v48, %v562_v53 }
 0x15a   : > { %v2723_v56 = vpop.eup %2722 }
 0x15b   : > { %v567_v58 = vsel %vm566_vm6, %v2721_v48, %v563_v55  ;;  %v575_v59 = vmul.f32 %v2723_v56, %v558_v49  ;;  %vm580_vm8 = vweird.f32 %v2723_v56  ;;  %v2725_v7 = vpop.eup %2724  ;;  %v2584_v48 = vld [vmem:[#allocation8 + $0x18] sm:$0xff] }
 0x15c   : > { %v572_v60 = vsel %vm569_vm7, %v571_v57, %v567_v58  ;;  %vm581_vm10 = vmor %vm579_vm9, %vm580_vm8  ;;  %v2727_v8 = vpop.eup %2726  ;;  %843 = vmatpush.bf16.msra.mxu0 %v2584_v48 }
 0x15d   : > { %591 = vrot.lane.b32.xlu0 %v572_v60, %s2993_s19  ;;  %v576_v61 = vsub.f32 1.0, %v575_v59 }
 0x15f   : > { %v577_v63 = vmul.f32 %v2723_v56, %v576_v61 }
 0x161   : > { %v578_v1 = vadd.f32 %v2723_v56, %v577_v63 }
 0x163   : > { %v582_v3 = vsel %vm581_vm10, %v2723_v56, %v578_v1 }
 0x164   : > { %v587_v4 = vsel %vm584_vm11, %v586_v2, %v582_v3 }
 0x165   : > { %593 = vrot.lane.b32.xlu0 %v587_v4, %s2993_s19 }
 0x1cf   : > { %v592_v6 = vpop.permute.xlu0 %591 }
 0x1d0   : > { %v597_v10 = vmul.f32 %v2725_v7, %v592_v6 }
 0x1d7   : > { %v594_v9 = vpop.permute.xlu0 %593 }
 0x1d8   : > { %v598_v11 = vmul.f32 %v2727_v8, %v594_v9 }
 0x1da   : > { %v599_v12 = vpack.c.bf16 %v598_v11, %v597_v10  ;;  %v2583_v11 = vld [vmem:[#allocation8 + $0x10] sm:$0xff] }
 0x1db   : > { %844 = vmatpush.bf16.msra.mxu0 %v2583_v11 }
 0x1dc   : > { %2298 = vmatmul.msk.bf16.vlgmr.msrb.gmra.mxu0 %vm394_vm3, %v599_v12 }
 0x259   : > { %v632_v22 = vpop.f32.mrf.mxu0 }
 0x25a   : > { %v3141_v23 = vadd.f32 %v2701_v21, %v632_v22  ;;  %v2590_v22 = vld [vmem:[#allocation5 + $0x88] sm:$0xff] }
 0x25b   : > { %957 = vmatpush.bf16.msra.mxu3 %v2590_v22 }
 0x25c   : > { %639 = vst.msk [vmem:[#allocation2 + $0x80] sm:$0xff] %vm394_vm3, %v3141_v23 }
 0x261   : > { %v634_v24 = vpop.f32.mrf.mxu0 }
 0x262   : > { %v3145_v25 = vadd.f32 %v2701_v21, %v634_v24  ;;  %v2586_v21 = vld [vmem:[#allocation5 + $0x68] sm:$0xff]  ;;  %v2588_v24 = vld [vmem:[#allocation5 + $0x78] sm:$0xff] }
 0x263   : > { %v644_v26 = vld [vmem:[#allocation2 + $0x80] sm:$0xff]  ;;  %923 = vmatpush.bf16.msra.mxu2 %v2586_v21  ;;  %894 = vmatpush.bf16.msra.mxu1 %v2588_v24 }
 0x264   : > { %640 = vst.msk [vmem:[#allocation2 + $0x88] sm:$0xff] %vm394_vm3, %v3145_v25  ;;  %v641_v27 = vld [vmem:[#allocation2 + $0x7e] sm:$0xff] }
 0x26b   : > { %v645_v28 = vld [vmem:[#allocation2 + $0x88] sm:$0xff] }
 0x26c   : > { %v642_v29 = vld [vmem:[#allocation2 + $0x86] sm:$0xff]  ;;  %v646_v31 = vpack.c.bf16 %v645_v28, %v644_v26  ;;  %v2585_v26 = vld [vmem:[#allocation5 + $0x60] sm:$0xff] }
 0x26d   : > { %v647_v30 = vld [vmem:[#allocation2 + $0x82] sm:$0xff]  ;;  %v643_v32 = vpack.c.bf16 %v642_v29, %v641_v27  ;;  %v648_v33 = vld [vmem:[#allocation2 + $0x8a] sm:$0xff]  ;;  %v2589_v27 = vld [vmem:[#allocation5 + $0x80] sm:$0xff]  ;;  %924 = vmatpush.bf16.msra.mxu2 %v2585_v26 }
 0x26e   : > { %v649_v34 = vpack.c.bf16 %v648_v33, %v647_v30  ;;  %2307 = vmatmul.msk.bf16.vlgmr.msrb.gmra.mxu1 %vm394_vm3, %v646_v31  ;;  %v2587_v28 = vld [vmem:[#allocation5 + $0x70] sm:$0xff]  ;;  %958 = vmatpush.bf16.msra.mxu3 %v2589_v27  ;;  %v2703_v29 = vld [vmem:[#allocation10 + $0x1] ss:$0 sm:$0xff]  ;;  %v637_v31 = vadd.f32 %v3141_v23, %v3124_v17 }
 0x26f   : > { %2316 = vmatmul.msk.bf16.vlgmr.msrb.gmra.mxu2 %vm394_vm3, %v643_v32  ;;  %895 = vmatpush.bf16.msra.mxu1 %v2587_v28 }
 0x270   : > { %2325 = vmatmul.msk.bf16.vlgmr.msrb.gmra.mxu3 %vm394_vm3, %v649_v34 }
 0x2eb   : > { %v684_v35 = vpop.f32.mrf.mxu1 }
 0x2f2   : > { %v713_v36 = vpop.f32.mrf.mxu2 }
 0x2f3   : > { %v714_v37 = vadd.f32 %v713_v36, %v684_v35  ;;  %v747_v38 = vpop.f32.mrf.mxu3  ;;  %v686_v43 = vpop.f32.mrf.mxu1  ;;  %v638_v35 = vadd.f32 %v3145_v25, %v3131_v19 }
 0x2f5   : > { %v752_v40 = vadd.f32 %v747_v38, %v714_v37 }
 0x2f7   : > { %v759_v41 = vadd.f32 %v2702_v39, %v752_v40 }
 0x2f9   : > { %v2326_v42 = vmul.f32 -1.442695, %v759_v41 }
 0x2fa   : > { %v715_v44 = vpop.f32.mrf.mxu2 }
 0x2fb   : > { %2728 = vpow2.f32 %v2326_v42  ;;  %v716_v45 = vadd.f32 %v715_v44, %v686_v43  ;;  %v749_v46 = vpop.f32.mrf.mxu3 }
 0x2fd   : > { %v753_v47 = vadd.f32 %v749_v46, %v716_v45  ;;  %v2704_v46 = vld [vmem:[#allocation7 + $0x2] ss:$0 sm:$0xff] }
 0x2ff   : > { %v760_v49 = vadd.f32 %v2702_v39, %v753_v47 }
 0x301   : > { %v2729_v50 = vpop.eup %2728  ;;  %v2327_v51 = vmul.f32 -1.442695, %v760_v49 }
 0x302   : > { %v769_v52 = vadd.f32 1.0, %v2729_v50 }
 0x303   : > { %2730 = vpow2.f32 %v2327_v51 }
 0x304   : > { %2732 = vrcp.f32 %v769_v52  ;;  %v782_v58 = vand.u32 2147483648, %v769_v52  ;;  %v780_v60 = vand.u32 2147483647, %v769_v52  ;;  %vm776_vm13 = vweird.f32 %v769_v52 }
 0x306   : > { %v783_v63 = vor.u32 1.1754944e-38, %v782_v58  ;;  %vm781_vm15 = vcmp.eq.f32.partialorder %v780_v60, 8.507059e+37 }
 0x309   : > { %v2731_v53 = vpop.eup %2730 }
 0x30a   : > { %v2733_v54 = vpop.eup %2732  ;;  %v770_v55 = vadd.f32 1.0, %v2731_v53 }
 0x30b   : > { %v772_v56 = vmul.f32 %v2733_v54, %v769_v52  ;;  %vm777_vm12 = vweird.f32 %v2733_v54 }
 0x30c   : > { %2734 = vrcp.f32 %v770_v55  ;;  %vm778_vm14 = vmor %vm776_vm13, %vm777_vm12  ;;  %v797_v4 = vand.u32 2147483648, %v770_v55  ;;  %v795_v6 = vand.u32 2147483647, %v770_v55  ;;  %vm791_vm1 = vweird.f32 %v770_v55 }
 0x30d   : > { %v773_v57 = vsub.f32 1.0, %v772_v56  ;;  %2736 = vtanh.f32 %v759_v41 }
 0x30e   : > { %v798_v8 = vor.u32 1.1754944e-38, %v797_v4  ;;  %vm796_vm4 = vcmp.eq.f32.partialorder %v795_v6, 8.507059e+37  ;;  %2738 = vtanh.f32 %v760_v49 }
 0x30f   : > { %v774_v59 = vmul.f32 %v2733_v54, %v773_v57 }
 0x311   : > { %v775_v61 = vadd.f32 %v2733_v54, %v774_v59 }
 0x312   : > { %v2735_v62 = vpop.eup %2734 }
 0x313   : > { %v779_v0 = vsel %vm778_vm14, %v2733_v54, %v775_v61  ;;  %v787_v1 = vmul.f32 %v2735_v62, %v770_v55  ;;  %vm792_vm0 = vweird.f32 %v2735_v62  ;;  %v2737_v13 = vpop.eup %2736  ;;  %v2592_v55 = vld [vmem:[#allocation8 + $0x28] sm:$0xff] }
 0x314   : > { %v784_v2 = vsel %vm781_vm15, %v783_v63, %v779_v0  ;;  %vm793_vm2 = vmor %vm791_vm1, %vm792_vm0  ;;  %v2739_v14 = vpop.eup %2738  ;;  %1056 = vmatpush.bf16.msrb.mxu0 %v2592_v55 }
 0x315   : > { %803 = vrot.lane.b32.xlu1 %v784_v2, %s2993_s19  ;;  %v788_v3 = vsub.f32 1.0, %v787_v1 }
 0x317   : > { %v789_v5 = vmul.f32 %v2735_v62, %v788_v3 }
 0x319   : > { %v790_v7 = vadd.f32 %v2735_v62, %v789_v5 }
 0x31b   : > { %v794_v9 = vsel %vm793_vm2, %v2735_v62, %v790_v7 }
 0x31c   : > { %v799_v10 = vsel %vm796_vm4, %v798_v8, %v794_v9 }
 0x31d   : > { %805 = vrot.lane.b32.xlu1 %v799_v10, %s2993_s19 }
 0x387   : > { %v804_v12 = vpop.permute.xlu1 %803 }
 0x388   : > { %v809_v16 = vmul.f32 %v2737_v13, %v804_v12 }
 0x38f   : > { %v806_v15 = vpop.permute.xlu1 %805 }
 0x390   : > { %v810_v18 = vmul.f32 %v2739_v14, %v806_v15 }
 0x392   : > { %v811_v20 = vpack.c.bf16 %v810_v18, %v809_v16 }
 0x394   : > { %2336 = vmatmul.msk.bf16.vlgmr.msra.gmra.mxu0 %vm394_vm3, %v811_v20  ;;  %v2591_v20 = vld [vmem:[#allocation8 + $0x20] sm:$0xff] }
 0x395   : > { %1057 = vmatpush.bf16.msrb.mxu0 %v2591_v20 }
 0x411   : > { %v846_v30 = vpop.f32.mrf.mxu0 }
 0x412   : > { %v847_v32 = vadd.f32 %v2703_v29, %v846_v30  ;;  %v2594_v30 = vld [vmem:[#allocation5 + $0x98] sm:$0xff] }
 0x413   : > { %1135 = vmatpush.bf16.msrb.mxu2 %v2594_v30 }
 0x414   : > { %v3157_v33 = vadd.f32 %v847_v32, %v637_v31  ;;  %853 = vst.msk [vmem:[#allocation2 + $0x80] sm:$0xff] %vm394_vm3, %v847_v32  ;;  %v2598_v31 = vld [vmem:[#allocation5 + $0xb8] sm:$0xff]  ;;  %v2593_v32 = vld [vmem:[#allocation5 + $0x90] sm:$0xff] }
 0x415   : > { %1169 = vmatpush.bf16.msrb.mxu3 %v2598_v31 }
 0x417   : > { %1136 = vmatpush.bf16.msrb.mxu2 %v2593_v32 }
 0x419   : > { %v848_v34 = vpop.f32.mrf.mxu0 }
 0x41a   : > { %v849_v36 = vadd.f32 %v2703_v29, %v848_v34  ;;  %v2596_v34 = vld [vmem:[#allocation5 + $0xa8] sm:$0xff] }
 0x41b   : > { %v858_v38 = vld [vmem:[#allocation2 + $0x80] sm:$0xff]  ;;  %1106 = vmatpush.bf16.msrb.mxu1 %v2596_v34 }
 0x41c   : > { %v3162_v37 = vadd.f32 %v849_v36, %v638_v35  ;;  %854 = vst.msk [vmem:[#allocation2 + $0x88] sm:$0xff] %vm394_vm3, %v849_v36  ;;  %v855_v39 = vld [vmem:[#allocation2 + $0x7c] sm:$0xff]  ;;  %v2595_v36 = vld [vmem:[#allocation5 + $0xa0] sm:$0xff] }
 0x41d   : > { %v2597_v35 = vld [vmem:[#allocation5 + $0xb0] sm:$0xff] }
 0x41e   : > { %1170 = vmatpush.bf16.msrb.mxu3 %v2597_v35 }
 0x41f   : > { %1107 = vmatpush.bf16.msrb.mxu1 %v2595_v36  ;;  %v2606_v36 = vld [vmem:[#allocation5 + $0xe8] sm:$0xff] }
 0x423   : > { %v859_v40 = vld [vmem:[#allocation2 + $0x88] sm:$0xff] }
 0x424   : > { %v856_v41 = vld [vmem:[#allocation2 + $0x84] sm:$0xff]  ;;  %v861_v42 = vld [vmem:[#allocation2 + $0x8c] sm:$0xff]  ;;  %v860_v17 = vpack.c.bf16 %v859_v40, %v858_v38  ;;  %v2705_v38 = vld [vmem:[#allocation10 + $0x2] ss:$0 sm:$0xff] }
 0x425   : > { %v857_v23 = vpack.c.bf16 %v856_v41, %v855_v39  ;;  %v862_v43 = vpack.c.bf16 %v861_v42, %v856_v41 }
 0x426   : > { %2345 = vmatmul.msk.bf16.vlgmr.msra.gmra.mxu1 %vm394_vm3, %v860_v17  ;;  %v3175_v17 = vld [vmem:[#allocation2 + $0x78] sm:$0xff] }
 0x427   : > { %2354 = vmatmul.msk.bf16.vlgmr.msra.gmra.mxu2 %vm394_vm3, %v857_v23  ;;  %2363 = vmatmul.msk.bf16.vlgmr.msra.gmra.mxu3 %vm394_vm3, %v862_v43 }
 0x428   : > { %1383 = vmatpush.bf16.msra.mxu3 %v2606_v36 }
 0x4a3   : > { %v897_v19 = vpop.f32.mrf.mxu1 }
 0x4aa   : > { %v926_v25 = vpop.f32.mrf.mxu2  ;;  %v960_v45 = vpop.f32.mrf.mxu3 }
 0x4ab   : > { %v927_v44 = vadd.f32 %v926_v25, %v897_v19  ;;  %v899_v50 = vpop.f32.mrf.mxu1 }
 0x4ad   : > { %v965_v47 = vadd.f32 %v960_v45, %v927_v44  ;;  %v3183_v44 = vld [vmem:[#allocation2 + $0x90] sm:$0xff] }
 0x4af   : > { %v972_v48 = vadd.f32 %v2704_v46, %v965_v47 }
 0x4b1   : > { %v2364_v49 = vmul.f32 -1.442695, %v972_v48 }
 0x4b2   : > { %v928_v51 = vpop.f32.mrf.mxu2  ;;  %v962_v53 = vpop.f32.mrf.mxu3 }
 0x4b3   : > { %2740 = vpow2.f32 %v2364_v49  ;;  %v929_v52 = vadd.f32 %v928_v51, %v899_v50  ;;  %v2706_v49 = vld [vmem:[#allocation7 + $0x3] ss:$0 sm:$0xff] }
 0x4b5   : > { %v966_v54 = vadd.f32 %v962_v53, %v929_v52 }
 0x4b7   : > { %v973_v56 = vadd.f32 %v2704_v46, %v966_v54 }
 0x4b9   : > { %v2741_v57 = vpop.eup %2740  ;;  %v2365_v58 = vmul.f32 -1.442695, %v973_v56 }
 0x4ba   : > { %v982_v59 = vadd.f32 1.0, %v2741_v57 }
 0x4bb   : > { %2742 = vpow2.f32 %v2365_v58 }
 0x4bc   : > { %2744 = vrcp.f32 %v982_v59  ;;  %v995_v1 = vand.u32 2147483648, %v982_v59  ;;  %v993_v3 = vand.u32 2147483647, %v982_v59  ;;  %vm989_vm6 = vweird.f32 %v982_v59 }
 0x4be   : > { %v996_v6 = vor.u32 1.1754944e-38, %v995_v1  ;;  %vm994_vm8 = vcmp.eq.f32.partialorder %v993_v3, 8.507059e+37 }
 0x4c1   : > { %v2743_v60 = vpop.eup %2742 }
 0x4c2   : > { %v2745_v61 = vpop.eup %2744  ;;  %v983_v62 = vadd.f32 1.0, %v2743_v60 }
 0x4c3   : > { %v985_v63 = vmul.f32 %v2745_v61, %v982_v59  ;;  %vm990_vm5 = vweird.f32 %v2745_v61  ;;  %v2600_v59 = vld [vmem:[#allocation8 + $0x38] sm:$0xff] }
 0x4c4   : > { %2746 = vrcp.f32 %v983_v62  ;;  %vm991_vm7 = vmor %vm989_vm6, %vm990_vm5  ;;  %v1010_v11 = vand.u32 2147483648, %v983_v62  ;;  %v1008_v13 = vand.u32 2147483647, %v983_v62  ;;  %vm1004_vm10 = vweird.f32 %v983_v62  ;;  %1268 = vmatpush.bf16.msra.mxu0 %v2600_v59 }
 0x4c5   : > { %v986_v0 = vsub.f32 1.0, %v985_v63  ;;  %2748 = vtanh.f32 %v972_v48 }
 0x4c6   : > { %v1011_v15 = vor.u32 1.1754944e-38, %v1010_v11  ;;  %vm1009_vm12 = vcmp.eq.f32.partialorder %v1008_v13, 8.507059e+37  ;;  %2750 = vtanh.f32 %v973_v56 }
 0x4c7   : > { %v987_v2 = vmul.f32 %v2745_v61, %v986_v0 }
 0x4c9   : > { %v988_v4 = vadd.f32 %v2745_v61, %v987_v2 }
 0x4ca   : > { %v2747_v5 = vpop.eup %2746 }
 0x4cb   : > { %v992_v7 = vsel %vm991_vm7, %v2745_v61, %v988_v4  ;;  %v1000_v8 = vmul.f32 %v2747_v5, %v983_v62  ;;  %vm1005_vm9 = vweird.f32 %v2747_v5  ;;  %v2749_v22 = vpop.eup %2748 }
 0x4cc   : > { %v997_v9 = vsel %vm994_vm8, %v996_v6, %v992_v7  ;;  %vm1006_vm11 = vmor %vm1004_vm10, %vm1005_vm9  ;;  %v2751_v24 = vpop.eup %2750 }
 0x4cd   : > { %1016 = vrot.lane.b32.xlu2 %v997_v9, %s2993_s19  ;;  %v1001_v10 = vsub.f32 1.0, %v1000_v8 }
 0x4cf   : > { %v1002_v12 = vmul.f32 %v2747_v5, %v1001_v10 }
 0x4d1   : > { %v1003_v14 = vadd.f32 %v2747_v5, %v1002_v12 }
 0x4d3   : > { %v1007_v16 = vsel %vm1006_vm11, %v2747_v5, %v1003_v14 }
 0x4d4   : > { %v1012_v18 = vsel %vm1009_vm12, %v1011_v15, %v1007_v16 }
 0x4d5   : > { %1018 = vrot.lane.b32.xlu2 %v1012_v18, %s2993_s19 }
 0x527   : > { %v1017_v21 = vpop.permute.xlu2 %1016 }
 0x528   : > { %v1022_v27 = vmul.f32 %v2749_v22, %v1017_v21 }
 0x52f   : > { %v1019_v26 = vpop.permute.xlu2 %1018 }
 0x530   : > { %v1023_v28 = vmul.f32 %v2751_v24, %v1019_v26  ;;  %v2599_v26 = vld [vmem:[#allocation8 + $0x30] sm:$0xff] }
 0x531   : > { %1269 = vmatpush.bf16.msra.mxu0 %v2599_v26 }
 0x532   : > { %v1024_v29 = vpack.c.bf16 %v1023_v28, %v1022_v27  ;;  %v2602_v27 = vld [vmem:[#allocation5 + $0xc8] sm:$0xff] }
 0x533   : > { %1349 = vmatpush.bf16.msra.mxu2 %v2602_v27 }
 0x534   : > { %2374 = vmatmul.msk.bf16.vlgmr.msrb.gmra.mxu0 %vm394_vm3, %v1024_v29 }
 0x5b1   : > { %v1059_v39 = vpop.f32.mrf.mxu0 }
 0x5b2   : > { %v1060_v40 = vadd.f32 %v2705_v38, %v1059_v39  ;;  %v2604_v39 = vld [vmem:[#allocation5 + $0xd8] sm:$0xff] }
 0x5b3   : > { %1320 = vmatpush.bf16.msra.mxu1 %v2604_v39 }
 0x5b4   : > { %v3172_v41 = vadd.f32 %v1060_v40, %v3157_v33  ;;  %1066 = vst.msk [vmem:[#allocation2 + $0x80] sm:$0xff] %vm394_vm3, %v1060_v40  ;;  %v2605_v40 = vld [vmem:[#allocation5 + $0xe0] sm:$0xff] }
 0x5b5   : > { %1384 = vmatpush.bf16.msra.mxu3 %v2605_v40 }
 0x5b9   : > { %v1061_v42 = vpop.f32.mrf.mxu0 }
 0x5ba   : > { %v1062_v23 = vadd.f32 %v2705_v38, %v1061_v42  ;;  %v2601_v38 = vld [vmem:[#allocation5 + $0xc0] sm:$0xff] }
 0x5bb   : > { %v1069_v43 = vld [vmem:[#allocation2 + $0x80] sm:$0xff]  ;;  %v1280_v42 = vld [vmem:[#allocation2 + $0x70] sm:$0xff]  ;;  %1350 = vmatpush.bf16.msra.mxu2 %v2601_v38 }
 0x5bc   : > { %v3178_v19 = vadd.f32 %v1062_v23, %v3162_v37  ;;  %1067 = vst.msk [vmem:[#allocation2 + $0x88] sm:$0xff] %vm394_vm3, %v1062_v23  ;;  %v1070_v25 = vpack.c.bf16 %v1069_v43, %v3175_v17  ;;  %v1282_v23 = vpack.c.bf16 %v3175_v17, %v1280_v42  ;;  %v2614_v42 = vld [vmem:[#allocation5 + $0x118] sm:$0xff] }
 0x5be   : > { %2392 = vmatmul.msk.bf16.vlgmr.msrb.gmra.mxu2 %vm394_vm3, %v1070_v25 }
 0x5c3   : > { %v1071_v33 = vld [vmem:[#allocation2 + $0x88] sm:$0xff] }
 0x5c4   : > { %v1072_v45 = vpack.c.bf16 %v1071_v33, %v1069_v43  ;;  %v1074_v46 = vpack.c.bf16 %v3183_v44, %v1071_v33  ;;  %v1287_v43 = vld [vmem:[#allocation2 + $0x98] sm:$0xff]  ;;  %v2603_v33 = vld [vmem:[#allocation5 + $0xd0] sm:$0xff] }
 0x5c5   : > { %v1288_v25 = vpack.c.bf16 %v1287_v43, %v3183_v44  ;;  %1321 = vmatpush.bf16.msra.mxu1 %v2603_v33  ;;  %v2612_v43 = vld [vmem:[#allocation5 + $0x108] sm:$0xff] }
 0x5c6   : > { %2383 = vmatmul.msk.bf16.vlgmr.msrb.gmra.mxu1 %vm394_vm3, %v1072_v45  ;;  %2401 = vmatmul.msk.bf16.vlgmr.msrb.gmra.mxu3 %vm394_vm3, %v1074_v46  ;;  %v2707_v45 = vld [vmem:[#allocation10 + $0x3] ss:$0 sm:$0xff]  ;;  %v1494_v33 = vld [vmem:[#allocation2 + $0x60] sm:$0xff] }
 0x5c7   : > { %1597 = vmatpush.bf16.msrb.mxu3 %v2614_v42 }
 0x5c9   : > { %1534 = vmatpush.bf16.msrb.mxu1 %v2612_v43 }
 0x5ce   : > { %2430 = vmatmul.msk.bf16.vlgmr.msra.gmra.mxu2 %vm394_vm3, %v1282_v23  ;;  %v2609_v23 = vld [vmem:[#allocation5 + $0xf0] sm:$0xff] }
 0x5d6   : > { %2439 = vmatmul.msk.bf16.vlgmr.msra.gmra.mxu3 %vm394_vm3, %v1288_v25  ;;  %v2613_v25 = vld [vmem:[#allocation5 + $0x110] sm:$0xff] }
 0x5d7   : > { %1598 = vmatpush.bf16.msrb.mxu3 %v2613_v25 }
 0x641   : > { %v1138_v48 = vpop.f32.mrf.mxu2 }
 0x643   : > { %v1109_v47 = vpop.f32.mrf.mxu1 }
 0x644   : > { %v1139_v37 = vadd.f32 %v1138_v48, %v1109_v47 }
 0x649   : > { %v1172_v50 = vpop.f32.mrf.mxu3  ;;  %v1140_v55 = vpop.f32.mrf.mxu2 }
 0x64a   : > { %v1177_v51 = vadd.f32 %v1172_v50, %v1139_v37 }
 0x64b   : > { %v1111_v53 = vpop.f32.mrf.mxu1 }
 0x64c   : > { %v1184_v52 = vadd.f32 %v2706_v49, %v1177_v51  ;;  %v1141_v56 = vadd.f32 %v1140_v55, %v1111_v53 }
 0x64e   : > { %v2402_v54 = vmul.f32 -1.442695, %v1184_v52 }
 0x650   : > { %2752 = vpow2.f32 %v2402_v54 }
 0x651   : > { %v1174_v57 = vpop.f32.mrf.mxu3 }
 0x652   : > { %v1178_v58 = vadd.f32 %v1174_v57, %v1141_v56 }
 0x654   : > { %v1185_v60 = vadd.f32 %v2706_v49, %v1178_v58 }
 0x656   : > { %v2753_v61 = vpop.eup %2752  ;;  %v2403_v62 = vmul.f32 -1.442695, %v1185_v60 }
 0x657   : > { %v1194_v63 = vadd.f32 1.0, %v2753_v61 }
 0x658   : > { %2754 = vpow2.f32 %v2403_v62 }
 0x659   : > { %2756 = vrcp.f32 %v1194_v63  ;;  %v1207_v5 = vand.u32 2147483648, %v1194_v63  ;;  %v1205_v7 = vand.u32 2147483647, %v1194_v63  ;;  %vm1201_vm14 = vweird.f32 %v1194_v63  ;;  %v1386_v53 = vpop.f32.mrf.mxu3 }
 0x65b   : > { %v1208_v10 = vor.u32 1.1754944e-38, %v1207_v5  ;;  %vm1206_vm0 = vcmp.eq.f32.partialorder %v1205_v7, 8.507059e+37 }
 0x65e   : > { %v2755_v0 = vpop.eup %2754 }
 0x65f   : > { %v2757_v1 = vpop.eup %2756  ;;  %v1195_v2 = vadd.f32 1.0, %v2755_v0 }
 0x660   : > { %v1197_v3 = vmul.f32 %v2757_v1, %v1194_v63  ;;  %vm1202_vm13 = vweird.f32 %v2757_v1 }
 0x661   : > { %2758 = vrcp.f32 %v1195_v2  ;;  %vm1203_vm15 = vmor %vm1201_vm14, %vm1202_vm13  ;;  %v1222_v15 = vand.u32 2147483648, %v1195_v2  ;;  %v1220_v18 = vand.u32 2147483647, %v1195_v2  ;;  %vm1216_vm2 = vweird.f32 %v1195_v2  ;;  %v1388_v61 = vpop.f32.mrf.mxu3 }
 0x662   : > { %v1198_v4 = vsub.f32 1.0, %v1197_v3  ;;  %2760 = vtanh.f32 %v1184_v52  ;;  %v1352_v52 = vpop.f32.mrf.mxu2 }
 0x663   : > { %v1223_v21 = vor.u32 1.1754944e-38, %v1222_v15  ;;  %vm1221_vm5 = vcmp.eq.f32.partialorder %v1220_v18, 8.507059e+37  ;;  %2762 = vtanh.f32 %v1185_v60 }
 0x664   : > { %v1199_v6 = vmul.f32 %v2757_v1, %v1198_v4 }
 0x666   : > { %v1200_v8 = vadd.f32 %v2757_v1, %v1199_v6 }
 0x667   : > { %v2759_v9 = vpop.eup %2758 }
 0x668   : > { %v1204_v11 = vsel %vm1203_vm15, %v2757_v1, %v1200_v8  ;;  %v1212_v12 = vmul.f32 %v2759_v9, %v1195_v2  ;;  %vm1217_vm1 = vweird.f32 %v2759_v9  ;;  %v2761_v29 = vpop.eup %2760 }
 0x669   : > { %v1209_v13 = vsel %vm1206_vm0, %v1208_v10, %v1204_v11  ;;  %vm1218_vm4 = vmor %vm1216_vm2, %vm1217_vm1  ;;  %v2763_v30 = vpop.eup %2762 }
 0x66a   : > { %1228 = vrot.lane.b32.xlu0 %v1209_v13, %s2993_s19  ;;  %v1213_v14 = vsub.f32 1.0, %v1212_v12  ;;  %v1354_v59 = vpop.f32.mrf.mxu2 }
 0x66c   : > { %v1214_v16 = vmul.f32 %v2759_v9, %v1213_v14 }
 0x66e   : > { %v1215_v20 = vadd.f32 %v2759_v9, %v1214_v16 }
 0x670   : > { %v1219_v22 = vsel %vm1218_vm4, %v2759_v9, %v1215_v20 }
 0x671   : > { %v1224_v24 = vsel %vm1221_vm5, %v1223_v21, %v1219_v22 }
 0x672   : > { %1230 = vrot.lane.b32.xlu1 %v1224_v24, %s2993_s19 }
 0x6dc   : > { %v1229_v28 = vpop.permute.xlu0 %1228 }
 0x6dd   : > { %v1234_v32 = vmul.f32 %v2761_v29, %v1229_v28  ;;  %v2608_v29 = vld [vmem:[#allocation8 + $0x48] sm:$0xff] }
 0x6de   : > { %1482 = vmatpush.bf16.msrb.mxu0 %v2608_v29 }
 0x6e4   : > { %v1231_v31 = vpop.permute.xlu1 %1230 }
 0x6e5   : > { %v1235_v34 = vmul.f32 %v2763_v30, %v1231_v31  ;;  %v2607_v30 = vld [vmem:[#allocation8 + $0x40] sm:$0xff]  ;;  %v2610_v31 = vld [vmem:[#allocation5 + $0xf8] sm:$0xff] }
 0x6e6   : > { %1483 = vmatpush.bf16.msrb.mxu0 %v2607_v30  ;;  %1563 = vmatpush.bf16.msrb.mxu2 %v2610_v31 }
 0x6e7   : > { %v1236_v35 = vpack.c.bf16 %v1235_v34, %v1234_v32 }
 0x6e9   : > { %2412 = vmatmul.msk.bf16.vlgmr.msra.gmra.mxu0 %vm394_vm3, %v1236_v35 }
 0x6ea   : > { %1564 = vmatpush.bf16.msrb.mxu2 %v2609_v23 }
 0x766   : > { %v1271_v46 = vpop.f32.mrf.mxu0 }
 0x767   : > { %v1272_v47 = vadd.f32 %v2707_v45, %v1271_v46 }
 0x769   : > { %v3196_v48 = vadd.f32 %v1272_v47, %v3172_v41  ;;  %1278 = vst.msk [vmem:[#allocation2 + $0x80] sm:$0xff] %vm394_vm3, %v1272_v47  ;;  %v2708_v41 = vld [vmem:[#allocation7 + $0x4] ss:$0 sm:$0xff]  ;;  %v1500_v47 = vld [vmem:[#allocation2 + $0xa0] sm:$0xff] }
 0x76e   : > { %v1273_v37 = vpop.f32.mrf.mxu0 }
 0x76f   : > { %v1274_v17 = vadd.f32 %v2707_v45, %v1273_v37  ;;  %v1495_v45 = vld [vmem:[#allocation2 + $0x68] sm:$0xff] }
 0x770   : > { %v1283_v44 = vld [vmem:[#allocation2 + $0x80] sm:$0xff]  ;;  %v1496_v46 = vpack.c.bf16 %v1495_v45, %v1494_v33  ;;  %v1501_v37 = vld [vmem:[#allocation2 + $0xa8] sm:$0xff] }
 0x771   : > { %v3200_v49 = vadd.f32 %v1274_v17, %v3178_v19  ;;  %1279 = vst.msk [vmem:[#allocation2 + $0x88] sm:$0xff] %vm394_vm3, %v1274_v17  ;;  %v1502_v17 = vpack.c.bf16 %v1501_v37, %v1500_v47  ;;  %v2617_v47 = vld [vmem:[#allocation5 + $0x120] sm:$0xff]  ;;  %v2620_v37 = vld [vmem:[#allocation5 + $0x138] sm:$0xff] }
 0x772   : > { %2468 = vmatmul.msk.bf16.vlgmr.msrb.gmra.mxu2 %vm394_vm3, %v1496_v46  ;;  %v2622_v46 = vld [vmem:[#allocation5 + $0x148] sm:$0xff] }
 0x773   : > { %2477 = vmatmul.msk.bf16.vlgmr.msrb.gmra.mxu3 %vm394_vm3, %v1502_v17  ;;  %v2621_v17 = vld [vmem:[#allocation5 + $0x140] sm:$0xff] }
 0x774   : > { %1811 = vmatpush.bf16.msra.mxu3 %v2622_v46 }
 0x778   : > { %v1284_v50 = vld [vmem:[#allocation2 + $0x88] sm:$0xff]  ;;  %1812 = vmatpush.bf16.msra.mxu3 %v2621_v17 }
 0x779   : > { %v1285_v51 = vpack.c.bf16 %v1284_v50, %v1283_v44  ;;  %v2611_v44 = vld [vmem:[#allocation5 + $0x100] sm:$0xff]  ;;  %v2709_v50 = vld [vmem:[#allocation10 + $0x4] ss:$0 sm:$0xff] }
 0x77a   : > { %1535 = vmatpush.bf16.msrb.mxu1 %v2611_v44  ;;  %v1708_v44 = vld [vmem:[#allocation2 + $0x40] sm:$0xff] }
 0x77b   : > { %2421 = vmatmul.msk.bf16.vlgmr.msra.gmra.mxu1 %vm394_vm3, %v1285_v51 }
 0x77e   : > { %1748 = vmatpush.bf16.msra.mxu1 %v2620_v37 }
 0x7f8   : > { %v1323_v54 = vpop.f32.mrf.mxu1 }
 0x7f9   : > { %v1353_v55 = vadd.f32 %v1352_v52, %v1323_v54 }
 0x7fb   : > { %v1391_v56 = vadd.f32 %v1386_v53, %v1353_v55 }
 0x7fd   : > { %v1398_v57 = vadd.f32 %v2708_v41, %v1391_v56 }
 0x7ff   : > { %v2440_v58 = vmul.f32 -1.442695, %v1398_v57 }
 0x800   : > { %v1325_v60 = vpop.f32.mrf.mxu1 }
 0x801   : > { %2764 = vpow2.f32 %v2440_v58  ;;  %v1355_v19 = vadd.f32 %v1354_v59, %v1325_v60  ;;  %v1566_v59 = vpop.f32.mrf.mxu2  ;;  %v1600_v60 = vpop.f32.mrf.mxu3 }
 0x803   : > { %v1392_v62 = vadd.f32 %v1388_v61, %v1355_v19 }
 0x805   : > { %v1399_v63 = vadd.f32 %v2708_v41, %v1392_v62 }
 0x807   : > { %v2765_v0 = vpop.eup %2764  ;;  %v2441_v1 = vmul.f32 -1.442695, %v1399_v63 }
 0x808   : > { %v1408_v2 = vadd.f32 1.0, %v2765_v0 }
 0x809   : > { %2766 = vpow2.f32 %v2441_v1  ;;  %v1568_v1 = vpop.f32.mrf.mxu2 }
 0x80a   : > { %2768 = vrcp.f32 %v1408_v2  ;;  %v1421_v8 = vand.u32 2147483648, %v1408_v2  ;;  %v1419_v10 = vand.u32 2147483647, %v1408_v2  ;;  %vm1415_vm7 = vweird.f32 %v1408_v2 }
 0x80c   : > { %v1422_v13 = vor.u32 1.1754944e-38, %v1421_v8  ;;  %vm1420_vm9 = vcmp.eq.f32.partialorder %v1419_v10, 8.507059e+37 }
 0x80f   : > { %v2767_v3 = vpop.eup %2766 }
 0x810   : > { %v2769_v4 = vpop.eup %2768  ;;  %v1409_v5 = vadd.f32 1.0, %v2767_v3  ;;  %v1602_v3 = vpop.f32.mrf.mxu3 }
 0x811   : > { %v1411_v6 = vmul.f32 %v2769_v4, %v1408_v2  ;;  %vm1416_vm6 = vweird.f32 %v2769_v4 }
 0x812   : > { %2770 = vrcp.f32 %v1409_v5  ;;  %vm1417_vm8 = vmor %vm1415_vm7, %vm1416_vm6  ;;  %v1436_v20 = vand.u32 2147483648, %v1409_v5  ;;  %v1434_v22 = vand.u32 2147483647, %v1409_v5  ;;  %vm1430_vm11 = vweird.f32 %v1409_v5 }
 0x813   : > { %v1412_v7 = vsub.f32 1.0, %v1411_v6  ;;  %2772 = vtanh.f32 %v1398_v57 }
 0x814   : > { %v1437_v26 = vor.u32 1.1754944e-38, %v1436_v20  ;;  %vm1435_vm13 = vcmp.eq.f32.partialorder %v1434_v22, 8.507059e+37  ;;  %2774 = vtanh.f32 %v1399_v63 }
 0x815   : > { %v1413_v9 = vmul.f32 %v2769_v4, %v1412_v7 }
 0x817   : > { %v1414_v11 = vadd.f32 %v2769_v4, %v1413_v9 }
 0x818   : > { %v2771_v12 = vpop.eup %2770 }
 0x819   : > { %v1418_v14 = vsel %vm1417_vm8, %v2769_v4, %v1414_v11  ;;  %v1426_v15 = vmul.f32 %v2771_v12, %v1409_v5  ;;  %vm1431_vm10 = vweird.f32 %v2771_v12  ;;  %v2773_v34 = vpop.eup %2772 }
 0x81a   : > { %v1423_v16 = vsel %vm1420_vm9, %v1422_v13, %v1418_v14  ;;  %vm1432_vm12 = vmor %vm1430_vm11, %vm1431_vm10  ;;  %v2775_v35 = vpop.eup %2774 }
 0x81b   : > { %1442 = vrot.lane.b32.xlu2 %v1423_v16, %s2993_s19  ;;  %v1427_v18 = vsub.f32 1.0, %v1426_v15 }
 0x81d   : > { %v1428_v21 = vmul.f32 %v2771_v12, %v1427_v18 }
 0x81f   : > { %v1429_v24 = vadd.f32 %v2771_v12, %v1428_v21 }
 0x821   : > { %v1433_v27 = vsel %vm1432_vm12, %v2771_v12, %v1429_v24 }
 0x822   : > { %v1438_v28 = vsel %vm1435_vm13, %v1437_v26, %v1433_v27 }
 0x823   : > { %1444 = vrot.lane.b32.xlu0 %v1438_v28, %s2993_s19 }
 0x875   : > { %v1443_v32 = vpop.permute.xlu2 %1442 }
 0x876   : > { %v1448_v38 = vmul.f32 %v2773_v34, %v1443_v32 }
 0x895   : > { %v1445_v36 = vpop.permute.xlu0 %1444 }
 0x896   : > { %v1449_v39 = vmul.f32 %v2775_v35, %v1445_v36  ;;  %v2616_v36 = vld [vmem:[#allocation8 + $0x58] sm:$0xff] }
 0x897   : > { %1696 = vmatpush.bf16.msra.mxu0 %v2616_v36 }
 0x898   : > { %v1450_v40 = vpack.c.bf16 %v1449_v39, %v1448_v38  ;;  %v2615_v38 = vld [vmem:[#allocation8 + $0x50] sm:$0xff]  ;;  %v2618_v39 = vld [vmem:[#allocation5 + $0x128] sm:$0xff] }
 0x899   : > { %1777 = vmatpush.bf16.msra.mxu2 %v2618_v39 }
 0x89a   : > { %2450 = vmatmul.msk.bf16.vlgmr.msrb.gmra.mxu0 %vm394_vm3, %v1450_v40 }
 0x89b   : > { %1697 = vmatpush.bf16.msra.mxu0 %v2615_v38 }
 0x89d   : > { %1778 = vmatpush.bf16.msra.mxu2 %v2617_v47 }
 0x917   : > { %v1485_v51 = vpop.f32.mrf.mxu0 }
 0x918   : > { %v1486_v52 = vadd.f32 %v2709_v50, %v1485_v51 }
 0x91a   : > { %v3210_v53 = vadd.f32 %v1486_v52, %v3196_v48  ;;  %1492 = vst.msk [vmem:[#allocation2 + $0x80] sm:$0xff] %vm394_vm3, %v1486_v52  ;;  %v2710_v48 = vld [vmem:[#allocation7 + $0x5] ss:$0 sm:$0xff]  ;;  %v1714_v52 = vld [vmem:[#allocation2 + $0xc0] sm:$0xff] }
 0x91f   : > { %v1487_v54 = vpop.f32.mrf.mxu0 }
 0x920   : > { %v1488_v55 = vadd.f32 %v2709_v50, %v1487_v54  ;;  %v1709_v50 = vld [vmem:[#allocation2 + $0x48] sm:$0xff] }
 0x921   : > { %v1497_v56 = vld [vmem:[#allocation2 + $0x80] sm:$0xff]  ;;  %v1710_v51 = vpack.c.bf16 %v1709_v50, %v1708_v44  ;;  %v1715_v54 = vld [vmem:[#allocation2 + $0xc8] sm:$0xff] }
 0x922   : > { %v3214_v41 = vadd.f32 %v1488_v55, %v3200_v49  ;;  %1493 = vst.msk [vmem:[#allocation2 + $0x88] sm:$0xff] %vm394_vm3, %v1488_v55  ;;  %v1716_v55 = vpack.c.bf16 %v1715_v54, %v1714_v52  ;;  %v2625_v52 = vld [vmem:[#allocation5 + $0x150] sm:$0xff]  ;;  %v2628_v54 = vld [vmem:[#allocation5 + $0x168] sm:$0xff] }
 0x923   : > { %2506 = vmatmul.msk.bf16.vlgmr.msra.gmra.mxu2 %vm394_vm3, %v1710_v51  ;;  %v2630_v51 = vld [vmem:[#allocation5 + $0x178] sm:$0xff] }
 0x924   : > { %2515 = vmatmul.msk.bf16.vlgmr.msra.gmra.mxu3 %vm394_vm3, %v1716_v55  ;;  %v2629_v55 = vld [vmem:[#allocation5 + $0x170] sm:$0xff] }
 0x925   : > { %2025 = vmatpush.bf16.msrb.mxu3 %v2630_v51 }
 0x929   : > { %v1498_v57 = vld [vmem:[#allocation2 + $0x88] sm:$0xff]  ;;  %2026 = vmatpush.bf16.msrb.mxu3 %v2629_v55 }
 0x92a   : > { %v1499_v58 = vpack.c.bf16 %v1498_v57, %v1497_v56  ;;  %v2619_v56 = vld [vmem:[#allocation5 + $0x130] sm:$0xff]  ;;  %v2711_v57 = vld [vmem:[#allocation10 + $0x5] ss:$0 sm:$0xff] }
 0x92b   : > { %1749 = vmatpush.bf16.msra.mxu1 %v2619_v56  ;;  %v1922_v56 = vld [vmem:[#allocation2] sm:$0xff] }
 0x92c   : > { %2459 = vmatmul.msk.bf16.vlgmr.msrb.gmra.mxu1 %vm394_vm3, %v1499_v58 }
 0x92f   : > { %1962 = vmatpush.bf16.msrb.mxu1 %v2628_v54 }
 0x9a9   : > { %v1537_v19 = vpop.f32.mrf.mxu1 }
 0x9aa   : > { %v1567_v61 = vadd.f32 %v1566_v59, %v1537_v19 }
 0x9ac   : > { %v1605_v62 = vadd.f32 %v1600_v60, %v1567_v61 }
 0x9ae   : > { %v1612_v63 = vadd.f32 %v2710_v48, %v1605_v62 }
 0x9b0   : > { %v2478_v0 = vmul.f32 -1.442695, %v1612_v63 }
 0x9b1   : > { %v1539_v2 = vpop.f32.mrf.mxu1 }
 0x9b2   : > { %2776 = vpow2.f32 %v2478_v0  ;;  %v1569_v49 = vadd.f32 %v1568_v1, %v1539_v2  ;;  %v1780_v1 = vpop.f32.mrf.mxu2  ;;  %v1814_v2 = vpop.f32.mrf.mxu3 }
 0x9b4   : > { %v1606_v4 = vadd.f32 %v1602_v3, %v1569_v49 }
 0x9b6   : > { %v1613_v5 = vadd.f32 %v2710_v48, %v1606_v4 }
 0x9b8   : > { %v2777_v6 = vpop.eup %2776  ;;  %v2479_v7 = vmul.f32 -1.442695, %v1613_v5 }
 0x9b9   : > { %v1622_v8 = vadd.f32 1.0, %v2777_v6 }
 0x9ba   : > { %2778 = vpow2.f32 %v2479_v7  ;;  %v1782_v7 = vpop.f32.mrf.mxu2 }
 0x9bb   : > { %2780 = vrcp.f32 %v1622_v8  ;;  %v1635_v14 = vand.u32 2147483648, %v1622_v8  ;;  %v1633_v16 = vand.u32 2147483647, %v1622_v8  ;;  %vm1629_vm15 = vweird.f32 %v1622_v8 }
 0x9bd   : > { %v1636_v21 = vor.u32 1.1754944e-38, %v1635_v14  ;;  %vm1634_vm1 = vcmp.eq.f32.partialorder %v1633_v16, 8.507059e+37 }
 0x9c0   : > { %v2779_v9 = vpop.eup %2778 }
 0x9c1   : > { %v2781_v10 = vpop.eup %2780  ;;  %v1623_v11 = vadd.f32 1.0, %v2779_v9  ;;  %v1816_v9 = vpop.f32.mrf.mxu3 }
 0x9c2   : > { %v1625_v12 = vmul.f32 %v2781_v10, %v1622_v8  ;;  %vm1630_vm14 = vweird.f32 %v2781_v10 }
 0x9c3   : > { %2782 = vrcp.f32 %v1623_v11  ;;  %vm1631_vm0 = vmor %vm1629_vm15, %vm1630_vm14  ;;  %v1650_v28 = vand.u32 2147483648, %v1623_v11  ;;  %v1648_v30 = vand.u32 2147483647, %v1623_v11  ;;  %vm1644_vm4 = vweird.f32 %v1623_v11 }
 0x9c4   : > { %v1626_v13 = vsub.f32 1.0, %v1625_v12  ;;  %2784 = vtanh.f32 %v1612_v63 }
 0x9c5   : > { %v1651_v32 = vor.u32 1.1754944e-38, %v1650_v28  ;;  %vm1649_vm6 = vcmp.eq.f32.partialorder %v1648_v30, 8.507059e+37  ;;  %2786 = vtanh.f32 %v1613_v5 }
 0x9c6   : > { %v1627_v15 = vmul.f32 %v2781_v10, %v1626_v13 }
 0x9c8   : > { %v1628_v18 = vadd.f32 %v2781_v10, %v1627_v15 }
 0x9c9   : > { %v2783_v20 = vpop.eup %2782 }
 0x9ca   : > { %v1632_v22 = vsel %vm1631_vm0, %v2781_v10, %v1628_v18  ;;  %v1640_v24 = vmul.f32 %v2783_v20, %v1623_v11  ;;  %vm1645_vm2 = vweird.f32 %v2783_v20  ;;  %v2785_v42 = vpop.eup %2784  ;;  %v2624_v11 = vld [vmem:[#allocation8 + $0x68] sm:$0xff] }
 0x9cb   : > { %v1637_v26 = vsel %vm1634_vm1, %v1636_v21, %v1632_v22  ;;  %vm1646_vm5 = vmor %vm1644_vm4, %vm1645_vm2  ;;  %v2787_v23 = vpop.eup %2786  ;;  %1910 = vmatpush.bf16.msrb.mxu0 %v2624_v11 }
 0x9cc   : > { %1656 = vrot.lane.b32.xlu1 %v1637_v26, %s2993_s19  ;;  %v1641_v27 = vsub.f32 1.0, %v1640_v24 }
 0x9ce   : > { %v1642_v29 = vmul.f32 %v2783_v20, %v1641_v27 }
 0x9d0   : > { %v1643_v31 = vadd.f32 %v2783_v20, %v1642_v29 }
 0x9d2   : > { %v1647_v34 = vsel %vm1646_vm5, %v2783_v20, %v1643_v31 }
 0x9d3   : > { %v1652_v35 = vsel %vm1649_vm6, %v1651_v32, %v1647_v34 }
 0x9d4   : > { %1658 = vrot.lane.b32.xlu2 %v1652_v35, %s2993_s19 }
 0xa2e   : > { %v1659_v40 = vpop.permute.xlu2 %1658 }
 0xa2f   : > { %v1663_v25 = vmul.f32 %v2787_v23, %v1659_v40 }
 0xa3e   : > { %v1657_v43 = vpop.permute.xlu1 %1656 }
 0xa3f   : > { %v1662_v33 = vmul.f32 %v2785_v42, %v1657_v43 }
 0xa41   : > { %v1664_v45 = vpack.c.bf16 %v1663_v25, %v1662_v33  ;;  %v2623_v25 = vld [vmem:[#allocation8 + $0x60] sm:$0xff]  ;;  %v2626_v33 = vld [vmem:[#allocation5 + $0x158] sm:$0xff] }
 0xa42   : > { %1911 = vmatpush.bf16.msrb.mxu0 %v2623_v25  ;;  %1991 = vmatpush.bf16.msrb.mxu2 %v2626_v33 }
 0xa43   : > { %2488 = vmatmul.msk.bf16.vlgmr.msra.gmra.mxu0 %vm394_vm3, %v1664_v45 }
 0xa46   : > { %1992 = vmatpush.bf16.msrb.mxu2 %v2625_v52 }
 0xac0   : > { %v1699_v58 = vpop.f32.mrf.mxu0 }
 0xac1   : > { %v1700_v59 = vadd.f32 %v2711_v57, %v1699_v58 }
 0xac3   : > { %v3224_v60 = vadd.f32 %v1700_v59, %v3210_v53  ;;  %1706 = vst.msk [vmem:[#allocation2 + $0x80] sm:$0xff] %vm394_vm3, %v1700_v59  ;;  %v2712_v53 = vld [vmem:[#allocation7 + $0x6] ss:$0 sm:$0xff]  ;;  %v1928_v59 = vld [vmem:[#allocation2 + $0x100] sm:$0xff] }
 0xac8   : > { %v1701_v19 = vpop.f32.mrf.mxu0 }
 0xac9   : > { %v1702_v61 = vadd.f32 %v2711_v57, %v1701_v19  ;;  %v1923_v57 = vld [vmem:[#allocation2 + $0x8] sm:$0xff] }
 0xaca   : > { %v1711_v62 = vld [vmem:[#allocation2 + $0x80] sm:$0xff]  ;;  %v1924_v58 = vpack.c.bf16 %v1923_v57, %v1922_v56  ;;  %v1929_v19 = vld [vmem:[#allocation2 + $0x108] sm:$0xff] }
 0xacb   : > { %v3228_v48 = vadd.f32 %v1702_v61, %v3214_v41  ;;  %1707 = vst.msk [vmem:[#allocation2 + $0x88] sm:$0xff] %vm394_vm3, %v1702_v61  ;;  %v1930_v61 = vpack.c.bf16 %v1929_v19, %v1928_v59  ;;  %v2715_v57 = vld [vmem:[#allocation10 + $0x7] ss:$0 sm:$0xff] }
 0xacc   : > { %2544 = vmatmul.msk.bf16.vlgmr.msrb.gmra.mxu2 %vm394_vm3, %v1924_v58 }
 0xacd   : > { %2553 = vmatmul.msk.bf16.vlgmr.msrb.gmra.mxu3 %vm394_vm3, %v1930_v61 }
 0xad2   : > { %v1712_v63 = vld [vmem:[#allocation2 + $0x88] sm:$0xff] }
 0xad3   : > { %v1713_v0 = vpack.c.bf16 %v1712_v63, %v1711_v62  ;;  %v2627_v62 = vld [vmem:[#allocation5 + $0x160] sm:$0xff]  ;;  %v2713_v63 = vld [vmem:[#allocation10 + $0x6] ss:$0 sm:$0xff] }
 0xad4   : > { %1963 = vmatpush.bf16.msrb.mxu1 %v2627_v62 }
 0xad5   : > { %2497 = vmatmul.msk.bf16.vlgmr.msra.gmra.mxu1 %vm394_vm3, %v1713_v0 }
 0xb52   : > { %v1751_v49 = vpop.f32.mrf.mxu1 }
 0xb53   : > { %v1781_v3 = vadd.f32 %v1780_v1, %v1751_v49 }
 0xb55   : > { %v1819_v4 = vadd.f32 %v1814_v2, %v1781_v3 }
 0xb57   : > { %v1826_v5 = vadd.f32 %v2712_v53, %v1819_v4 }
 0xb59   : > { %v2516_v6 = vmul.f32 -1.442695, %v1826_v5 }
 0xb5a   : > { %v1753_v8 = vpop.f32.mrf.mxu1 }
 0xb5b   : > { %2788 = vpow2.f32 %v2516_v6  ;;  %v1783_v41 = vadd.f32 %v1782_v7, %v1753_v8  ;;  %v1994_v7 = vpop.f32.mrf.mxu2  ;;  %v2028_v8 = vpop.f32.mrf.mxu3 }
 0xb5d   : > { %v1820_v10 = vadd.f32 %v1816_v9, %v1783_v41 }
 0xb5f   : > { %v1827_v12 = vadd.f32 %v2712_v53, %v1820_v10 }
 0xb61   : > { %v2789_v13 = vpop.eup %2788  ;;  %v2517_v14 = vmul.f32 -1.442695, %v1827_v12 }
 0xb62   : > { %v1836_v15 = vadd.f32 1.0, %v2789_v13 }
 0xb63   : > { %2790 = vpow2.f32 %v2517_v14  ;;  %v1996_v13 = vpop.f32.mrf.mxu2 }
 0xb64   : > { %2792 = vrcp.f32 %v1836_v15  ;;  %v1849_v24 = vand.u32 2147483648, %v1836_v15  ;;  %v1847_v27 = vand.u32 2147483647, %v1836_v15  ;;  %vm1843_vm8 = vweird.f32 %v1836_v15 }
 0xb66   : > { %v1850_v30 = vor.u32 1.1754944e-38, %v1849_v24  ;;  %vm1848_vm10 = vcmp.eq.f32.partialorder %v1847_v27, 8.507059e+37 }
 0xb69   : > { %v2791_v16 = vpop.eup %2790 }
 0xb6a   : > { %v2793_v18 = vpop.eup %2792  ;;  %v1837_v20 = vadd.f32 1.0, %v2791_v16 }
 0xb6b   : > { %v1839_v21 = vmul.f32 %v2793_v18, %v1836_v15  ;;  %vm1844_vm7 = vweird.f32 %v2793_v18  ;;  %v2030_v15 = vpop.f32.mrf.mxu3 }
 0xb6c   : > { %2794 = vrcp.f32 %v1837_v20  ;;  %vm1845_vm9 = vmor %vm1843_vm8, %vm1844_vm7  ;;  %v1864_v36 = vand.u32 2147483648, %v1837_v20  ;;  %v1862_v39 = vand.u32 2147483647, %v1837_v20  ;;  %vm1858_vm12 = vweird.f32 %v1837_v20 }
 0xb6d   : > { %v1840_v22 = vsub.f32 1.0, %v1839_v21  ;;  %2796 = vtanh.f32 %v1826_v5 }
 0xb6e   : > { %v1865_v42 = vor.u32 1.1754944e-38, %v1864_v36  ;;  %vm1863_vm14 = vcmp.eq.f32.partialorder %v1862_v39, 8.507059e+37  ;;  %2798 = vtanh.f32 %v1827_v12 }
 0xb6f   : > { %v1841_v26 = vmul.f32 %v2793_v18, %v1840_v22 }
 0xb71   : > { %v1842_v28 = vadd.f32 %v2793_v18, %v1841_v26 }
 0xb72   : > { %v2795_v29 = vpop.eup %2794 }
 0xb73   : > { %v1846_v31 = vsel %vm1845_vm9, %v2793_v18, %v1842_v28  ;;  %v1854_v32 = vmul.f32 %v2795_v29, %v1837_v20  ;;  %vm1859_vm11 = vweird.f32 %v2795_v29  ;;  %v2797_v46 = vpop.eup %2796 }
 0xb74   : > { %v1851_v34 = vsel %vm1848_vm10, %v1850_v30, %v1846_v31  ;;  %vm1860_vm13 = vmor %vm1858_vm12, %vm1859_vm11  ;;  %v2799_v47 = vpop.eup %2798 }
 0xb75   : > { %1870 = vrot.lane.b32.xlu0 %v1851_v34, %s2993_s19  ;;  %v1855_v35 = vsub.f32 1.0, %v1854_v32 }
 0xb77   : > { %v1856_v38 = vmul.f32 %v2795_v29, %v1855_v35 }
 0xb79   : > { %v1857_v40 = vadd.f32 %v2795_v29, %v1856_v38 }
 0xb7b   : > { %v1861_v23 = vsel %vm1860_vm13, %v2795_v29, %v1857_v40 }
 0xb7c   : > { %v1866_v43 = vsel %vm1863_vm14, %v1865_v42, %v1861_v23 }
 0xb7d   : > { %1872 = vrot.lane.b32.xlu1 %v1866_v43, %s2993_s19 }
 0xbe7   : > { %v1871_v45 = vpop.permute.xlu0 %1870 }
 0xbe8   : > { %v1876_v17 = vmul.f32 %v2797_v46, %v1871_v45 }
 0xbef   : > { %v1873_v37 = vpop.permute.xlu1 %1872 }
 0xbf0   : > { %v1877_v44 = vmul.f32 %v2799_v47, %v1873_v37  ;;  %v2632_v37 = vld [vmem:[#allocation8 + $0x78] sm:$0xff] }
 0xbf1   : > { %2124 = vmatpush.bf16.msra.mxu0 %v2632_v37 }
 0xbf2   : > { %v1878_v50 = vpack.c.bf16 %v1877_v44, %v1876_v17  ;;  %v2631_v17 = vld [vmem:[#allocation8 + $0x70] sm:$0xff] }
 0xbf4   : > { %2526 = vmatmul.msk.bf16.vlgmr.msrb.gmra.mxu0 %vm394_vm3, %v1878_v50 }
 0xbf5   : > { %2125 = vmatpush.bf16.msra.mxu0 %v2631_v17 }
 0xc71   : > { %v1913_v0 = vpop.f32.mrf.mxu0 }
 0xc72   : > { %v1914_v1 = vadd.f32 %v2713_v63, %v1913_v0 }
 0xc74   : > { %v3238_v2 = vadd.f32 %v1914_v1, %v3224_v60  ;;  %1920 = vst.msk [vmem:[#allocation2 + $0x80] sm:$0xff] %vm394_vm3, %v1914_v1  ;;  %v2714_v60 = vld [vmem:[#allocation7 + $0x7] ss:$0 sm:$0xff] }
 0xc79   : > { %v1915_v49 = vpop.f32.mrf.mxu0 }
 0xc7a   : > { %v1916_v3 = vadd.f32 %v2713_v63, %v1915_v49 }
 0xc7b   : > { %v1925_v4 = vld [vmem:[#allocation2 + $0x80] sm:$0xff] }
 0xc7c   : > { %v3242_v53 = vadd.f32 %v1916_v3, %v3228_v48  ;;  %1921 = vst.msk [vmem:[#allocation2 + $0x88] sm:$0xff] %vm394_vm3, %v1916_v3 }
 0xc83   : > { %v1926_v5 = vld [vmem:[#allocation2 + $0x88] sm:$0xff] }
 0xc84   : > { %v1927_v6 = vpack.c.bf16 %v1926_v5, %v1925_v4 }
 0xc86   : > { %2535 = vmatmul.msk.bf16.vlgmr.msrb.gmra.mxu1 %vm394_vm3, %v1927_v6 }
 0xd03   : > { %v1965_v41 = vpop.f32.mrf.mxu1 }
 0xd04   : > { %v1995_v9 = vadd.f32 %v1994_v7, %v1965_v41 }
 0xd06   : > { %v2033_v10 = vadd.f32 %v2028_v8, %v1995_v9 }
 0xd08   : > { %v2040_v11 = vadd.f32 %v2714_v60, %v2033_v10 }
 0xd0a   : > { %v2554_v12 = vmul.f32 -1.442695, %v2040_v11 }
 0xd0b   : > { %v1967_v14 = vpop.f32.mrf.mxu1 }
 0xd0c   : > { %2800 = vpow2.f32 %v2554_v12  ;;  %v1997_v48 = vadd.f32 %v1996_v13, %v1967_v14 }
 0xd0e   : > { %v2034_v16 = vadd.f32 %v2030_v15, %v1997_v48 }
 0xd10   : > { %v2041_v18 = vadd.f32 %v2714_v60, %v2034_v16 }
 0xd12   : > { %v2801_v20 = vpop.eup %2800  ;;  %v2555_v21 = vmul.f32 -1.442695, %v2041_v18 }
 0xd13   : > { %v2050_v22 = vadd.f32 1.0, %v2801_v20 }
 0xd14   : > { %2802 = vpow2.f32 %v2555_v21 }
 0xd15   : > { %2804 = vrcp.f32 %v2050_v22  ;;  %v2063_v30 = vand.u32 2147483648, %v2050_v22  ;;  %v2061_v32 = vand.u32 2147483647, %v2050_v22  ;;  %vm2057_vm0 = vweird.f32 %v2050_v22 }
 0xd17   : > { %v2064_v36 = vor.u32 1.1754944e-38, %v2063_v30  ;;  %vm2062_vm2 = vcmp.eq.f32.partialorder %v2061_v32, 8.507059e+37 }
 0xd1a   : > { %v2803_v24 = vpop.eup %2802 }
 0xd1b   : > { %v2805_v26 = vpop.eup %2804  ;;  %v2051_v27 = vadd.f32 1.0, %v2803_v24 }
 0xd1c   : > { %v2053_v28 = vmul.f32 %v2805_v26, %v2050_v22  ;;  %vm2058_vm15 = vweird.f32 %v2805_v26 }
 0xd1d   : > { %2806 = vrcp.f32 %v2051_v27  ;;  %vm2059_vm1 = vmor %vm2057_vm0, %vm2058_vm15  ;;  %v2078_v23 = vand.u32 2147483648, %v2051_v27  ;;  %v2076_v25 = vand.u32 2147483647, %v2051_v27  ;;  %vm2072_vm5 = vweird.f32 %v2051_v27 }
 0xd1e   : > { %v2054_v29 = vsub.f32 1.0, %v2053_v28  ;;  %2808 = vtanh.f32 %v2040_v11 }
 0xd1f   : > { %v2079_v45 = vor.u32 1.1754944e-38, %v2078_v23  ;;  %vm2077_vm7 = vcmp.eq.f32.partialorder %v2076_v25, 8.507059e+37  ;;  %2810 = vtanh.f32 %v2041_v18 }
 0xd20   : > { %v2055_v31 = vmul.f32 %v2805_v26, %v2054_v29 }
 0xd22   : > { %v2056_v34 = vadd.f32 %v2805_v26, %v2055_v31 }
 0xd23   : > { %v2807_v35 = vpop.eup %2806 }
 0xd24   : > { %v2060_v38 = vsel %vm2059_vm1, %v2805_v26, %v2056_v34  ;;  %v2068_v39 = vmul.f32 %v2807_v35, %v2051_v27  ;;  %vm2073_vm4 = vweird.f32 %v2807_v35  ;;  %v2809_v50 = vpop.eup %2808 }
 0xd25   : > { %v2065_v40 = vsel %vm2062_vm2, %v2064_v36, %v2060_v38  ;;  %vm2074_vm6 = vmor %vm2072_vm5, %vm2073_vm4  ;;  %v2811_v51 = vpop.eup %2810 }
 0xd26   : > { %2084 = vrot.lane.b32.xlu2 %v2065_v40, %s2993_s19  ;;  %v2069_v42 = vsub.f32 1.0, %v2068_v39 }
 0xd28   : > { %v2070_v43 = vmul.f32 %v2807_v35, %v2069_v42 }
 0xd2a   : > { %v2071_v33 = vadd.f32 %v2807_v35, %v2070_v43 }
 0xd2c   : > { %v2075_v46 = vsel %vm2074_vm6, %v2807_v35, %v2071_v33 }
 0xd2d   : > { %v2080_v47 = vsel %vm2077_vm7, %v2079_v45, %v2075_v46 }
 0xd2e   : > { %2086 = vrot.lane.b32.xlu0 %v2080_v47, %s2993_s19 }
 0xd80   : > { %v2085_v44 = vpop.permute.xlu2 %2084 }
 0xd81   : > { %v2090_v54 = vmul.f32 %v2809_v50, %v2085_v44 }
 0xda0   : > { %v2087_v52 = vpop.permute.xlu0 %2086 }
 0xda1   : > { %v2091_v55 = vmul.f32 %v2811_v51, %v2087_v52 }
 0xda3   : > { %v2092_v56 = vpack.c.bf16 %v2091_v55, %v2090_v54 }
 0xda5   : > { %2564 = vmatmul.msk.bf16.vlgmr.msra.gmra.mxu0 %vm394_vm3, %v2092_v56 }
 0xe22   : > { %v2127_v58 = vpop.f32.mrf.mxu0 }
 0xe23   : > { %v2128_v59 = vadd.f32 %v2715_v57, %v2127_v58 }
 0xe25   : > { %v2132_v19 = vadd.f32 %v2128_v59, %v3238_v2 }
 0xe27   : > { %2134 = vst.msk [vmem:[%s359_s22] sm:$0xff] %vm394_vm3, %v2132_v19 }
 0xe2a   : > { %v2129_v61 = vpop.f32.mrf.mxu0 }
 0xe2b   : > { %v2130_v62 = vadd.f32 %v2715_v57, %v2129_v61 }
 0xe2d   : > { %v2133_v63 = vadd.f32 %v2130_v62, %v3242_v53 }
 0xe2f   : > { %2135 = vst.msk [vmem:[%s359_s22 + $0x8] sm:$0xff] %vm394_vm3, %v2133_v63 }
 0xe30 PF: > { %s20_s24 = sadd.s32 1, %s2980_s24  }
 0xe31   : > { %p17_p7 = scmp.ge.s32.totalorder %s20_s24, 4  }
 0xe33   :  { %19 = sbr.rel (!%p17_p7) target bundleno = 3 (0x3), region = 143 }
 0xe38   :  { %2157 = vsyncpa [#allocation4], 1 }
 0xe39   :  { %2159 = vsyncpa [#allocation4 + $0x1], 1 }
 0xe3a   :  { %2160 = vsyncpa [#allocation6], 1 }
 0xe3b   :  { %2161 = vsyncpa [#allocation9], 1 }

// kernel: ampnet_forward.13
= control target key start
LH: loop header
LB: loop body
LE: loop exit
PB: predicated region body
PF: predicated region fallthrough
CT: control target
= control target key end

     0   :  { %12 = vsyncpa [#allocation4], 0  ;;  %s2575_s0 = inlined_call_operand.vmem [shape: f32[2,16,32], index: 0, kind: input, shape index: {}]   ;;  %s2576_s1 = inlined_call_operand.hbm [shape: bf16[32,64], index: 1, kind: input, shape index: {}]   ;;  %s2577_s2 = inlined_call_operand.hbm [shape: f32[1,64], index: 2, kind: input, shape index: {}]   ;;  %s2578_s3 = inlined_call_operand.hbm [shape: bf16[4,3,64,128], index: 3, kind: input, shape index: {}]   ;;  %s2579_s4 = inlined_call_operand.hbm [shape: f32[4,1,128], index: 4, kind: input, shape index: {}]   ;;  %s2580_s5 = inlined_call_operand.hbm [shape: bf16[4,64,64], index: 5, kind: input, shape index: {}]   ;;  %s2581_s6 = inlined_call_operand.hbm [shape: f32[4,1,64], index: 6, kind: input, shape index: {}]   ;;  %s2582_s7 = inlined_call_operand.vmem [shape: f32[2,16,64], index: 7, kind: output, shape index: {}]  }
   0x1   :  { %13 = vsyncpa [#allocation6], 0 }
   0x2   :  { %14 = vsyncpa [#allocation9], 0 }
   0x3   :  { %15 = vsyncpa [#allocation12], 0  ;;  %s2414_s24 = smov 0  }
   0x4 LB: > { %s230_s27 = sshll.u32 %s2577_s2, 4  ;;  %s2423_s28 = sadd.s32 4294967295, %s2360_s24   ;;  %s2360_s24 = sphi %s2414_s24, %s21_s24   ;;  %s231_s27 = int_to_ptr.hbm [resolvable:$true] %s230_s27 }
   0x5   : > { %p1648_p0 = scmp.ge.s32.totalorder %s2360_s24, 1  ;;  %p204_p1 = scmp.lt.s32.totalorder %s2360_s24, 3 }
   0x6   : > { %p2069_p2 = scmp.eq.s32.totalorder %s2423_s28, 0  ;;  %s2362_s30 = smov [#allocation5]  }
   0x7   : > { %p2428_p3 = pnand %p1648_p0, %p204_p1  ;;  %s232_s8 = sshll.u32 %s2362_s30, 4  ;;  %s233_s8 = int_to_ptr.vmem [resolvable:$true] %s232_s8 }
   0x8   : > { %s255_s11 = sshll.u32 %s2579_s4, 4  ;;  %s2363_s13 = smov [#allocation8]   ;;  %s256_s11 = int_to_ptr.hbm [resolvable:$true] %s255_s11 }
   0x9   : > { %p2050_p4 = pneg %p2428_p3  ;;  %s257_s14 = sshll.u32 %s2363_s13, 4  ;;  %s258_s14 = int_to_ptr.vmem [resolvable:$true] %s257_s14 }
   0xa   : > { %s215_s17 = sshll.u32 %s2576_s1, 4  ;;  %s2364_s18 = smov 16   ;;  %s216_s17 = int_to_ptr.hbm [resolvable:$true] %s215_s17 }
   0xb   : > { %p2439_p5 = pnand %p2069_p2, %p2050_p4  ;;  %s2365_s19 = smov 1  }
   0xc   : > { %s2366_s20 = smov [#allocation3]   ;;  %s2367_s22 = smov 64  }
   0xd   : > { %2056 = dma.hbm_to_vmem [thread:$0]  (!%p2439_p5), %s231_s27, 16, %s233_s8, [#allocation6]  }
   0xe   : > { %2062 = dma.hbm_to_vmem [thread:$0]  (!%p2439_p5), %s256_s11, 64, %s258_s14, [#allocation9], %s2364_s18, %s2364_s18, %s2365_s19  }
   0xf   : > { %s217_s21 = sshll.u32 %s2366_s20, 4  ;;  %s2368_s23 = smov 4   ;;  %s218_s21 = int_to_ptr.vmem [resolvable:$true] %s217_s21 }
  0x10   : > { %2053 = dma.hbm_to_vmem [thread:$0]  (!%p2439_p5), %s216_s17, 256, %s218_s21, [#allocation4], %s2367_s22, %s2367_s22, %s2368_s23  }
  0x11   : > { %s241_s27 = sshll.u32 %s2578_s3, 4  ;;  %s2369_s30 = smov [#allocation7]   ;;  %s242_s27 = int_to_ptr.hbm [resolvable:$true] %s241_s27 }
  0x12   : > { %s243_s8 = sshll.u32 %s2369_s30, 4  ;;  %s269_s11 = sshll.u32 %s2580_s5, 4  ;;  %s244_s8 = int_to_ptr.vmem [resolvable:$true] %s243_s8  ;;  %s270_s11 = int_to_ptr.hbm [resolvable:$true] %s269_s11 }
  0x13   : > { %2059 = dma.hbm_to_vmem [thread:$0]  (!%p2439_p5), %s242_s27, 6144, %s244_s8, [#allocation6], %s2367_s22, %s2367_s22, %s2368_s23  }
  0x14   : > { %s2370_s13 = smov [#allocation10]   ;;  %s283_s17 = sshll.u32 %s2581_s6, 4  ;;  %s284_s17 = int_to_ptr.hbm [resolvable:$true] %s283_s17 }
  0x15   : > { %s271_s14 = sshll.u32 %s2370_s13, 4  ;;  %s2371_s20 = smov [#allocation11]   ;;  %s272_s14 = int_to_ptr.vmem [resolvable:$true] %s271_s14 }
  0x16   : > { %2065 = dma.hbm_to_vmem [thread:$0]  (!%p2439_p5), %s270_s11, 2048, %s272_s14, [#allocation9], %s2367_s22, %s2367_s22, %s2368_s23  }
  0x17   : > { %s285_s21 = sshll.u32 %s2371_s20, 4  ;;  %309 = sbr.rel (%p2428_p3) target bundleno = 1915 (0x77b), region = 48  ;;  %s286_s21 = int_to_ptr.vmem [resolvable:$true] %s285_s21 }
  0x18   : > { %2068 = dma.hbm_to_vmem [thread:$0]  (!%p2439_p5), %s284_s17, 64, %s286_s21, [#allocation12], %s2364_s18, %s2364_s18, %s2365_s19  }
  0x1c   : > { %2343 = dma.done.wait (%p2069_p2), [#allocation4], 256  }
  0x1d   : > { %2345 = vsyncadd (%p2069_p2), [#allocation4], 4294967040 }
  0x1e   : > { %2347 = dma.done.wait (%p2069_p2), [#allocation6], 6160  }
  0x1f   : > { %2349 = vsyncadd (%p2069_p2), [#allocation6], 4294961136 }
  0x20   : > { %2351 = dma.done.wait (%p2069_p2), [#allocation9], 2112  }
  0x21   : > { %2353 = vsyncadd (%p2069_p2), [#allocation9], 4294965184 }
  0x22   : > { %2355 = dma.done.wait (%p2069_p2), [#allocation12], 64  }
  0x23   : > { %2357 = vsyncadd (%p2069_p2), [#allocation12], 4294967232  ;;  %p367_p6 = scmp.lt.s32.totalorder %s2423_s28, 1  ;;  %v1961_v0 = vld [vmem:[#allocation3 + $0x8] sm:$0xff]  ;;  %v1960_v1 = vld [vmem:[#allocation3] sm:$0xff]  ;;  %vm401_vm0 = vcmask 261120  }
  0x24   : > { %411 = vmatpush.bf16.msra.mxu0 %v1961_v0  ;;  %vm419_vm1 = vcmask 523264   ;;  %v2372_v5 = vmov 0.0   ;;  %v1969_v6 = vld [vmem:[#allocation7 + $0x38] sm:$0xff]  ;;  %v1968_v9 = vld [vmem:[#allocation7 + $0x30] sm:$0xff]  ;;  %v1967_v12 = vld [vmem:[#allocation7 + $0x28] sm:$0xff]  ;;  %s2373_s22 = smov 64  }
  0x25   : > { %s2586_s28 = smov (!%p367_p6, %s2423_s28), 1  ;;  %420 = vst.msk [vmem:[#allocation2] sm:$0xff] %vm419_vm1, %v2372_v5  ;;  %v1965_v7 = vld [vmem:[#allocation7 + $0x18] sm:$0xff]  ;;  %483 = vmatpush.bf16.msra.mxu1 %v1969_v6  ;;  %v1964_v10 = vld [vmem:[#allocation7 + $0x10] sm:$0xff]  ;;  %v1963_v13 = vld [vmem:[#allocation7 + $0x8] sm:$0xff] }
  0x26   : > { %s1958_s29 = sshll.u32 %s2586_s28, 4  ;;  %421 = vst.msk [vmem:[#allocation2 + $0x8] sm:$0xff] %vm419_vm1, %v2372_v5  ;;  %v1973_v8 = vld [vmem:[#allocation7 + $0x58] sm:$0xff]  ;;  %524 = vmatpush.bf16.msra.mxu2 %v1965_v7  ;;  %v1972_v11 = vld [vmem:[#allocation7 + $0x50] sm:$0xff]  ;;  %v1971_v14 = vld [vmem:[#allocation7 + $0x48] sm:$0xff] }
  0x27   : > { %s371_s19 = scalar_lea.vmem %s2575_s0, %s1958_s29  ;;  %423 = vst.msk [vmem:[#allocation2 + $0x18] sm:$0xff] %vm419_vm1, %v2372_v5  ;;  %574 = vmatpush.bf16.msra.mxu3 %v1973_v8  ;;  %v1966_v15 = vld [vmem:[#allocation7 + $0x20] sm:$0xff]  ;;  %v2101_v18 = vld [vmem:[#allocation5] ss:$0 sm:$0xff]  ;;  %v1976_v8 = vld [vmem:[#allocation10 + $0x10] sm:$0xff]  ;;  %s376_s26 = scalar_lea.vmem %s2582_s7, %s1958_s29 }
  0x28   : > { %v378_v2 = vld [vmem:[%s371_s19] sm:$0xff]  ;;  %v379_v3 = vld [vmem:[%s371_s19 + $0x8] sm:$0xff]  ;;  %412 = vmatpush.bf16.msra.mxu0 %v1960_v1  ;;  %422 = vst.msk [vmem:[#allocation2 + $0x10] sm:$0xff] %vm419_vm1, %v2372_v5  ;;  %v1962_v16 = vld [vmem:[#allocation7] sm:$0xff] }
  0x29   : > { %v380_v4 = vpack.c.bf16 %v379_v3, %v378_v2  ;;  %484 = vmatpush.bf16.msra.mxu1 %v1968_v9  ;;  %v1970_v17 = vld [vmem:[#allocation7 + $0x40] sm:$0xff]  ;;  %v1975_v9 = vld [vmem:[#allocation10 + $0x8] sm:$0xff] }
  0x2a   : > { %525 = vmatpush.bf16.msra.mxu2 %v1964_v10  ;;  %v2102_v36 = vld [vmem:[#allocation8] ss:$0 sm:$0xff]  ;;  %v1974_v10 = vld [vmem:[#allocation10] sm:$0xff] }
  0x2b   : > { %1675 = vmatmul.msk.bf16.vlgmr.msra.gmra.mxu0 %vm401_vm0, %v380_v4  ;;  %575 = vmatpush.bf16.msra.mxu3 %v1972_v11  ;;  %v1977_v45 = vld [vmem:[#allocation10 + $0x18] sm:$0xff] }
  0x2c   : > { %686 = vmatpush.bf16.msrb.mxu0 %v1977_v45 }
  0x2d   : > { %485 = vmatpush.bf16.msra.mxu1 %v1967_v12 }
  0x2e   : > { %526 = vmatpush.bf16.msra.mxu2 %v1963_v13 }
  0x2f   : > { %576 = vmatpush.bf16.msra.mxu3 %v1971_v14 }
  0x30   : > { %687 = vmatpush.bf16.msrb.mxu0 %v1976_v8 }
  0x31   : > { %486 = vmatpush.bf16.msra.mxu1 %v1966_v15 }
  0x32   : > { %527 = vmatpush.bf16.msra.mxu2 %v1962_v16 }
  0x33   : > { %577 = vmatpush.bf16.msra.mxu3 %v1970_v17 }
  0x34   : > { %688 = vmatpush.bf16.msrb.mxu0 %v1975_v9 }
  0x38   : > { %689 = vmatpush.bf16.msrb.mxu0 %v1974_v10 }
  0xa8   : > { %v414_v19 = vpop.f32.mrf.mxu0 }
  0xa9   : > { %v2505_v20 = vadd.f32 %v2101_v18, %v414_v19  ;;  %v1985_v19 = vld [vmem:[#allocation7 + $0x98] sm:$0xff] }
  0xaa   : > { %758 = vmatpush.bf16.msrb.mxu1 %v1985_v19 }
  0xab   : > { %424 = vst.msk [vmem:[#allocation2 + $0x8] sm:$0xff] %vm419_vm1, %v2505_v20 }
  0xb0   : > { %v416_v21 = vpop.f32.mrf.mxu0 }
  0xb1   : > { %v2509_v22 = vadd.f32 %v2101_v18, %v416_v21  ;;  %v1981_v18 = vld [vmem:[#allocation7 + $0x78] sm:$0xff] }
  0xb2   : > { %v429_v23 = vld [vmem:[#allocation2 + $0x8] sm:$0xff]  ;;  %799 = vmatpush.bf16.msrb.mxu2 %v1981_v18 }
  0xb3   : > { %425 = vst.msk [vmem:[#allocation2 + $0x10] sm:$0xff] %vm419_vm1, %v2509_v22  ;;  %v426_v24 = vld [vmem:[#allocation2 + $0x7] sm:$0xff] }
  0xb4   : > { %v1989_v21 = vld [vmem:[#allocation7 + $0xb8] sm:$0xff] }
  0xb5   : > { %849 = vmatpush.bf16.msrb.mxu3 %v1989_v21 }
  0xba   : > { %v430_v25 = vld [vmem:[#allocation2 + $0x10] sm:$0xff] }
  0xbb   : > { %v427_v26 = vld [vmem:[#allocation2 + $0xf] sm:$0xff]  ;;  %v431_v28 = vpack.c.bf16 %v430_v25, %v429_v23  ;;  %v1980_v23 = vld [vmem:[#allocation7 + $0x70] sm:$0xff] }
  0xbc   : > { %v432_v27 = vld [vmem:[#allocation2 + $0x9] sm:$0xff]  ;;  %v428_v29 = vpack.c.bf16 %v427_v26, %v426_v24  ;;  %v433_v30 = vld [vmem:[#allocation2 + $0x11] sm:$0xff]  ;;  %800 = vmatpush.bf16.msrb.mxu2 %v1980_v23  ;;  %v1979_v26 = vld [vmem:[#allocation7 + $0x68] sm:$0xff] }
  0xbd   : > { %v434_v31 = vpack.c.bf16 %v433_v30, %v432_v27  ;;  %1692 = vmatmul.msk.bf16.vlgmr.msra.gmra.mxu1 %vm419_vm1, %v431_v28  ;;  %v1984_v24 = vld [vmem:[#allocation7 + $0x90] sm:$0xff]  ;;  %v1983_v27 = vld [vmem:[#allocation7 + $0x88] sm:$0xff]  ;;  %v1982_v30 = vld [vmem:[#allocation7 + $0x80] sm:$0xff] }
  0xbe   : > { %1709 = vmatmul.msk.bf16.vlgmr.msra.gmra.mxu2 %vm419_vm1, %v428_v29  ;;  %v1988_v25 = vld [vmem:[#allocation7 + $0xb0] sm:$0xff]  ;;  %759 = vmatpush.bf16.msrb.mxu1 %v1984_v24  ;;  %v1987_v28 = vld [vmem:[#allocation7 + $0xa8] sm:$0xff]  ;;  %v1978_v29 = vld [vmem:[#allocation7 + $0x60] sm:$0xff] }
  0xbf   : > { %1726 = vmatmul.msk.bf16.vlgmr.msra.gmra.mxu3 %vm419_vm1, %v434_v31  ;;  %v1986_v31 = vld [vmem:[#allocation7 + $0xa0] sm:$0xff]  ;;  %v1992_v24 = vld [vmem:[#allocation10 + $0x30] sm:$0xff] }
  0xc0   : > { %850 = vmatpush.bf16.msrb.mxu3 %v1988_v25  ;;  %801 = vmatpush.bf16.msrb.mxu2 %v1979_v26  ;;  %v1991_v25 = vld [vmem:[#allocation10 + $0x28] sm:$0xff]  ;;  %v1990_v26 = vld [vmem:[#allocation10 + $0x20] sm:$0xff] }
  0xc2   : > { %760 = vmatpush.bf16.msrb.mxu1 %v1983_v27 }
  0xc4   : > { %851 = vmatpush.bf16.msrb.mxu3 %v1987_v28  ;;  %802 = vmatpush.bf16.msrb.mxu2 %v1978_v29 }
  0xc6   : > { %761 = vmatpush.bf16.msrb.mxu1 %v1982_v30 }
  0xc8   : > { %852 = vmatpush.bf16.msrb.mxu3 %v1986_v31 }
 0x13a   : > { %v488_v32 = vpop.f32.mrf.mxu1 }
 0x141   : > { %v529_v33 = vpop.f32.mrf.mxu2 }
 0x142   : > { %v530_v34 = vadd.f32 %v529_v33, %v488_v32  ;;  %v579_v35 = vpop.f32.mrf.mxu3  ;;  %v490_v40 = vpop.f32.mrf.mxu1  ;;  %v2103_v32 = vld [vmem:[#allocation11] ss:$0 sm:$0xff] }
 0x144   : > { %v584_v37 = vadd.f32 %v579_v35, %v530_v34 }
 0x146   : > { %v590_v38 = vadd.f32 %v2102_v36, %v584_v37 }
 0x148   : > { %v1727_v39 = vmul.f32 -1.442695, %v590_v38 }
 0x149   : > { %v531_v41 = vpop.f32.mrf.mxu2 }
 0x14a   : > { %2110 = vpow2.f32 %v1727_v39  ;;  %v532_v42 = vadd.f32 %v531_v41, %v490_v40  ;;  %v581_v43 = vpop.f32.mrf.mxu3 }
 0x14c   : > { %v585_v44 = vadd.f32 %v581_v43, %v532_v42 }
 0x14e   : > { %v591_v46 = vadd.f32 %v2102_v36, %v585_v44 }
 0x150   : > { %v2111_v47 = vpop.eup %2110  ;;  %v1728_v48 = vmul.f32 -1.442695, %v591_v46 }
 0x151   : > { %v600_v49 = vadd.f32 1.0, %v2111_v47 }
 0x152   : > { %2112 = vpow2.f32 %v1728_v48 }
 0x153   : > { %2114 = vrcp.f32 %v600_v49  ;;  %v613_v55 = vand.u32 2147483648, %v600_v49  ;;  %v611_v57 = vand.u32 2147483647, %v600_v49  ;;  %vm607_vm3 = vweird.f32 %v600_v49 }
 0x155   : > { %v614_v60 = vor.u32 1.1754944e-38, %v613_v55  ;;  %vm612_vm5 = vcmp.eq.f32.partialorder %v611_v57, 8.507059e+37 }
 0x158   : > { %v2113_v50 = vpop.eup %2112 }
 0x159   : > { %v2115_v51 = vpop.eup %2114  ;;  %v601_v52 = vadd.f32 1.0, %v2113_v50  ;;  %v2104_v50 = vld [vmem:[#allocation8 + $0x1] ss:$0 sm:$0xff] }
 0x15a   : > { %v603_v53 = vmul.f32 %v2115_v51, %v600_v49  ;;  %vm608_vm2 = vweird.f32 %v2115_v51 }
 0x15b   : > { %2116 = vrcp.f32 %v601_v52  ;;  %vm609_vm4 = vmor %vm607_vm3, %vm608_vm2  ;;  %v628_v1 = vand.u32 2147483648, %v601_v52  ;;  %v626_v3 = vand.u32 2147483647, %v601_v52  ;;  %vm622_vm7 = vweird.f32 %v601_v52 }
 0x15c   : > { %v604_v54 = vsub.f32 1.0, %v603_v53  ;;  %2118 = vtanh.f32 %v590_v38 }
 0x15d   : > { %v629_v5 = vor.u32 1.1754944e-38, %v628_v1  ;;  %vm627_vm9 = vcmp.eq.f32.partialorder %v626_v3, 8.507059e+37  ;;  %2120 = vtanh.f32 %v591_v46 }
 0x15e   : > { %v605_v56 = vmul.f32 %v2115_v51, %v604_v54 }
 0x160   : > { %v606_v58 = vadd.f32 %v2115_v51, %v605_v56 }
 0x161   : > { %v2117_v59 = vpop.eup %2116 }
 0x162   : > { %v610_v61 = vsel %vm609_vm4, %v2115_v51, %v606_v58  ;;  %v618_v62 = vmul.f32 %v2117_v59, %v601_v52  ;;  %vm623_vm6 = vweird.f32 %v2117_v59  ;;  %v2119_v12 = vpop.eup %2118 }
 0x163   : > { %v615_v63 = vsel %vm612_vm5, %v614_v60, %v610_v61  ;;  %vm624_vm8 = vmor %vm622_vm7, %vm623_vm6  ;;  %v2121_v13 = vpop.eup %2120 }
 0x164   : > { %634 = vrot.lane.b32.xlu0 %v615_v63, %s2373_s22  ;;  %v619_v0 = vsub.f32 1.0, %v618_v62 }
 0x166   : > { %v620_v2 = vmul.f32 %v2117_v59, %v619_v0 }
 0x168   : > { %v621_v4 = vadd.f32 %v2117_v59, %v620_v2 }
 0x16a   : > { %v625_v6 = vsel %vm624_vm8, %v2117_v59, %v621_v4  ;;  %v1993_v59 = vld [vmem:[#allocation10 + $0x38] sm:$0xff] }
 0x16b   : > { %v630_v7 = vsel %vm627_vm9, %v629_v5, %v625_v6  ;;  %964 = vmatpush.bf16.msra.mxu0 %v1993_v59 }
 0x16c   : > { %636 = vrot.lane.b32.xlu0 %v630_v7, %s2373_s22 }
 0x16f   : > { %965 = vmatpush.bf16.msra.mxu0 %v1992_v24 }
 0x173   : > { %966 = vmatpush.bf16.msra.mxu0 %v1991_v25 }
 0x177   : > { %967 = vmatpush.bf16.msra.mxu0 %v1990_v26 }
 0x1d6   : > { %v635_v11 = vpop.permute.xlu0 %634 }
 0x1d7   : > { %v640_v15 = vmul.f32 %v2119_v12, %v635_v11 }
 0x1de   : > { %v637_v14 = vpop.permute.xlu0 %636 }
 0x1df   : > { %v641_v16 = vmul.f32 %v2121_v13, %v637_v14 }
 0x1e1   : > { %v642_v17 = vpack.c.bf16 %v641_v16, %v640_v15 }
 0x1e3   : > { %1745 = vmatmul.msk.bf16.vlgmr.msrb.gmra.mxu0 %vm419_vm1, %v642_v17 }
 0x260   : > { %v691_v33 = vpop.f32.mrf.mxu0 }
 0x261   : > { %v2519_v34 = vadd.f32 %v2103_v32, %v691_v33 }
 0x263   : > { %698 = vst.msk [vmem:[#allocation2 + $0x8] sm:$0xff] %vm419_vm1, %v2519_v34 }
 0x268   : > { %v693_v35 = vpop.f32.mrf.mxu0 }
 0x269   : > { %v2523_v36 = vadd.f32 %v2103_v32, %v693_v35  ;;  %v1997_v35 = vld [vmem:[#allocation7 + $0xd8] sm:$0xff] }
 0x26a   : > { %v703_v37 = vld [vmem:[#allocation2 + $0x8] sm:$0xff]  ;;  %1076 = vmatpush.bf16.msra.mxu2 %v1997_v35 }
 0x26b   : > { %699 = vst.msk [vmem:[#allocation2 + $0x10] sm:$0xff] %vm419_vm1, %v2523_v36  ;;  %v700_v38 = vld [vmem:[#allocation2 + $0x6] sm:$0xff] }
 0x272   : > { %v704_v39 = vld [vmem:[#allocation2 + $0x10] sm:$0xff] }
 0x273   : > { %v701_v40 = vld [vmem:[#allocation2 + $0xe] sm:$0xff]  ;;  %v705_v42 = vpack.c.bf16 %v704_v39, %v703_v37  ;;  %v1996_v39 = vld [vmem:[#allocation7 + $0xd0] sm:$0xff] }
 0x274   : > { %v706_v41 = vld [vmem:[#allocation2 + $0xa] sm:$0xff]  ;;  %v702_v43 = vpack.c.bf16 %v701_v40, %v700_v38  ;;  %v707_v44 = vld [vmem:[#allocation2 + $0x12] sm:$0xff]  ;;  %v2000_v40 = vld [vmem:[#allocation7 + $0xf0] sm:$0xff]  ;;  %1077 = vmatpush.bf16.msra.mxu2 %v1996_v39 }
 0x275   : > { %v708_v45 = vpack.c.bf16 %v707_v44, %v706_v41  ;;  %1762 = vmatmul.msk.bf16.vlgmr.msrb.gmra.mxu1 %vm419_vm1, %v705_v42  ;;  %v2001_v37 = vld [vmem:[#allocation7 + $0xf8] sm:$0xff]  ;;  %v2004_v41 = vld [vmem:[#allocation7 + $0x110] sm:$0xff]  ;;  %v1995_v42 = vld [vmem:[#allocation7 + $0xc8] sm:$0xff] }
 0x276   : > { %1779 = vmatmul.msk.bf16.vlgmr.msrb.gmra.mxu2 %vm419_vm1, %v702_v43  ;;  %v2005_v38 = vld [vmem:[#allocation7 + $0x118] sm:$0xff]  ;;  %1035 = vmatpush.bf16.msra.mxu1 %v2001_v37  ;;  %v1999_v43 = vld [vmem:[#allocation7 + $0xe8] sm:$0xff] }
 0x277   : > { %1796 = vmatmul.msk.bf16.vlgmr.msrb.gmra.mxu3 %vm419_vm1, %v708_v45  ;;  %v2003_v44 = vld [vmem:[#allocation7 + $0x108] sm:$0xff]  ;;  %v1994_v45 = vld [vmem:[#allocation7 + $0xc0] sm:$0xff] }
 0x278   : > { %1126 = vmatpush.bf16.msra.mxu3 %v2005_v38  ;;  %1078 = vmatpush.bf16.msra.mxu2 %v1995_v42  ;;  %v2007_v42 = vld [vmem:[#allocation10 + $0x48] sm:$0xff] }
 0x27a   : > { %1036 = vmatpush.bf16.msra.mxu1 %v2000_v40 }
 0x27c   : > { %1127 = vmatpush.bf16.msra.mxu3 %v2004_v41  ;;  %1079 = vmatpush.bf16.msra.mxu2 %v1994_v45  ;;  %v2008_v41 = vld [vmem:[#allocation10 + $0x50] sm:$0xff] }
 0x27e   : > { %1037 = vmatpush.bf16.msra.mxu1 %v1999_v43  ;;  %v2006_v43 = vld [vmem:[#allocation10 + $0x40] sm:$0xff] }
 0x280   : > { %1128 = vmatpush.bf16.msra.mxu3 %v2003_v44  ;;  %v2013_v44 = vld [vmem:[#allocation7 + $0x138] sm:$0xff] }
 0x281   : > { %1352 = vmatpush.bf16.msrb.mxu2 %v2013_v44 }
 0x2f2   : > { %v763_v46 = vpop.f32.mrf.mxu1 }
 0x2f9   : > { %v804_v47 = vpop.f32.mrf.mxu2 }
 0x2fa   : > { %v805_v48 = vadd.f32 %v804_v47, %v763_v46  ;;  %v854_v49 = vpop.f32.mrf.mxu3  ;;  %v765_v54 = vpop.f32.mrf.mxu1  ;;  %v1998_v46 = vld [vmem:[#allocation7 + $0xe0] sm:$0xff] }
 0x2fb   : > { %v2002_v47 = vld [vmem:[#allocation7 + $0x100] sm:$0xff]  ;;  %1038 = vmatpush.bf16.msra.mxu1 %v1998_v46 }
 0x2fc   : > { %v859_v51 = vadd.f32 %v854_v49, %v805_v48  ;;  %1129 = vmatpush.bf16.msra.mxu3 %v2002_v47  ;;  %v2105_v48 = vld [vmem:[#allocation11 + $0x1] ss:$0 sm:$0xff] }
 0x2fe   : > { %v866_v52 = vadd.f32 %v2104_v50, %v859_v51 }
 0x300   : > { %v1797_v53 = vmul.f32 -1.442695, %v866_v52 }
 0x301   : > { %v806_v55 = vpop.f32.mrf.mxu2 }
 0x302   : > { %2122 = vpow2.f32 %v1797_v53  ;;  %v807_v56 = vadd.f32 %v806_v55, %v765_v54  ;;  %v856_v57 = vpop.f32.mrf.mxu3  ;;  %v697_v54 = vadd.f32 %v2523_v36, %v2509_v22 }
 0x304   : > { %v860_v58 = vadd.f32 %v856_v57, %v807_v56 }
 0x306   : > { %v867_v60 = vadd.f32 %v2104_v50, %v860_v58  ;;  %v696_v50 = vadd.f32 %v2519_v34, %v2505_v20 }
 0x308   : > { %v2123_v61 = vpop.eup %2122  ;;  %v1798_v62 = vmul.f32 -1.442695, %v867_v60 }
 0x309   : > { %v876_v63 = vadd.f32 1.0, %v2123_v61 }
 0x30a   : > { %2124 = vpow2.f32 %v1798_v62 }
 0x30b   : > { %2126 = vrcp.f32 %v876_v63  ;;  %v889_v5 = vand.u32 2147483648, %v876_v63  ;;  %v887_v7 = vand.u32 2147483647, %v876_v63  ;;  %vm883_vm11 = vweird.f32 %v876_v63 }
 0x30d   : > { %v890_v10 = vor.u32 1.1754944e-38, %v889_v5  ;;  %vm888_vm13 = vcmp.eq.f32.partialorder %v887_v7, 8.507059e+37 }
 0x310   : > { %v2125_v0 = vpop.eup %2124 }
 0x311   : > { %v2127_v1 = vpop.eup %2126  ;;  %v877_v2 = vadd.f32 1.0, %v2125_v0 }
 0x312   : > { %v879_v3 = vmul.f32 %v2127_v1, %v876_v63  ;;  %vm884_vm10 = vweird.f32 %v2127_v1 }
 0x313   : > { %2128 = vrcp.f32 %v877_v2  ;;  %vm885_vm12 = vmor %vm883_vm11, %vm884_vm10  ;;  %v904_v15 = vand.u32 2147483648, %v877_v2  ;;  %v902_v17 = vand.u32 2147483647, %v877_v2  ;;  %vm898_vm15 = vweird.f32 %v877_v2 }
 0x314   : > { %v880_v4 = vsub.f32 1.0, %v879_v3  ;;  %2130 = vtanh.f32 %v866_v52 }
 0x315   : > { %v905_v19 = vor.u32 1.1754944e-38, %v904_v15  ;;  %vm903_vm2 = vcmp.eq.f32.partialorder %v902_v17, 8.507059e+37  ;;  %2132 = vtanh.f32 %v867_v60 }
 0x316   : > { %v881_v6 = vmul.f32 %v2127_v1, %v880_v4 }
 0x318   : > { %v882_v8 = vadd.f32 %v2127_v1, %v881_v6 }
 0x319   : > { %v2129_v9 = vpop.eup %2128 }
 0x31a   : > { %v886_v11 = vsel %vm885_vm12, %v2127_v1, %v882_v8  ;;  %v894_v12 = vmul.f32 %v2129_v9, %v877_v2  ;;  %vm899_vm14 = vweird.f32 %v2129_v9  ;;  %v2131_v28 = vpop.eup %2130  ;;  %v2106_v1 = vld [vmem:[#allocation8 + $0x2] ss:$0 sm:$0xff] }
 0x31b   : > { %v891_v13 = vsel %vm888_vm13, %v890_v10, %v886_v11  ;;  %vm900_vm0 = vmor %vm898_vm15, %vm899_vm14  ;;  %v2133_v29 = vpop.eup %2132  ;;  %v2009_v10 = vld [vmem:[#allocation10 + $0x58] sm:$0xff] }
 0x31c   : > { %910 = vrot.lane.b32.xlu1 %v891_v13, %s2373_s22  ;;  %v895_v14 = vsub.f32 1.0, %v894_v12  ;;  %1241 = vmatpush.bf16.msrb.mxu0 %v2009_v10 }
 0x31e   : > { %v896_v16 = vmul.f32 %v2129_v9, %v895_v14 }
 0x320   : > { %v897_v18 = vadd.f32 %v2129_v9, %v896_v16  ;;  %1242 = vmatpush.bf16.msrb.mxu0 %v2008_v41 }
 0x322   : > { %v901_v21 = vsel %vm900_vm0, %v2129_v9, %v897_v18 }
 0x323   : > { %v906_v23 = vsel %vm903_vm2, %v905_v19, %v901_v21 }
 0x324   : > { %912 = vrot.lane.b32.xlu1 %v906_v23, %s2373_s22  ;;  %1243 = vmatpush.bf16.msrb.mxu0 %v2007_v42 }
 0x328   : > { %1244 = vmatpush.bf16.msrb.mxu0 %v2006_v43 }
 0x38e   : > { %v911_v27 = vpop.permute.xlu1 %910 }
 0x38f   : > { %v916_v31 = vmul.f32 %v2131_v28, %v911_v27 }
 0x396   : > { %v913_v30 = vpop.permute.xlu1 %912 }
 0x397   : > { %v917_v32 = vmul.f32 %v2133_v29, %v913_v30 }
 0x399   : > { %v918_v33 = vpack.c.bf16 %v917_v32, %v916_v31 }
 0x39b   : > { %1815 = vmatmul.msk.bf16.vlgmr.msra.gmra.mxu0 %vm419_vm1, %v918_v33 }
 0x418   : > { %v969_v49 = vpop.f32.mrf.mxu0 }
 0x419   : > { %v970_v51 = vadd.f32 %v2105_v48, %v969_v49 }
 0x41b   : > { %v2535_v52 = vadd.f32 %v970_v51, %v696_v50  ;;  %976 = vst.msk [vmem:[#allocation2 + $0x8] sm:$0xff] %vm419_vm1, %v970_v51 }
 0x420   : > { %v971_v53 = vpop.f32.mrf.mxu0 }
 0x421   : > { %v972_v55 = vadd.f32 %v2105_v48, %v971_v53  ;;  %v2012_v53 = vld [vmem:[#allocation7 + $0x130] sm:$0xff] }
 0x422   : > { %v981_v57 = vld [vmem:[#allocation2 + $0x8] sm:$0xff]  ;;  %1353 = vmatpush.bf16.msrb.mxu2 %v2012_v53 }
 0x423   : > { %v2540_v56 = vadd.f32 %v972_v55, %v697_v54  ;;  %977 = vst.msk [vmem:[#allocation2 + $0x10] sm:$0xff] %vm419_vm1, %v972_v55  ;;  %v978_v58 = vld [vmem:[#allocation2 + $0x4] sm:$0xff] }
 0x424   : > { %v2021_v54 = vld [vmem:[#allocation7 + $0x178] sm:$0xff] }
 0x425   : > { %v2017_v55 = vld [vmem:[#allocation7 + $0x158] sm:$0xff]  ;;  %1402 = vmatpush.bf16.msrb.mxu3 %v2021_v54 }
 0x426   : > { %1311 = vmatpush.bf16.msrb.mxu1 %v2017_v55  ;;  %v2024_v54 = vld [vmem:[#allocation10 + $0x70] sm:$0xff]  ;;  %v2023_v55 = vld [vmem:[#allocation10 + $0x68] sm:$0xff] }
 0x42a   : > { %v982_v59 = vld [vmem:[#allocation2 + $0x10] sm:$0xff] }
 0x42b   : > { %v979_v60 = vld [vmem:[#allocation2 + $0xc] sm:$0xff]  ;;  %v984_v61 = vld [vmem:[#allocation2 + $0x14] sm:$0xff]  ;;  %v983_v20 = vpack.c.bf16 %v982_v59, %v981_v57  ;;  %v2016_v59 = vld [vmem:[#allocation7 + $0x150] sm:$0xff] }
 0x42c   : > { %v980_v34 = vpack.c.bf16 %v979_v60, %v978_v58  ;;  %v985_v62 = vpack.c.bf16 %v984_v61, %v979_v60  ;;  %v2011_v57 = vld [vmem:[#allocation7 + $0x128] sm:$0xff]  ;;  %v2020_v58 = vld [vmem:[#allocation7 + $0x170] sm:$0xff]  ;;  %v2010_v60 = vld [vmem:[#allocation7 + $0x120] sm:$0xff]  ;;  %1312 = vmatpush.bf16.msrb.mxu1 %v2016_v59 }
 0x42d   : > { %1832 = vmatmul.msk.bf16.vlgmr.msra.gmra.mxu1 %vm419_vm1, %v983_v20  ;;  %1354 = vmatpush.bf16.msrb.mxu2 %v2011_v57  ;;  %v2019_v61 = vld [vmem:[#allocation7 + $0x168] sm:$0xff] }
 0x42e   : > { %1849 = vmatmul.msk.bf16.vlgmr.msra.gmra.mxu2 %vm419_vm1, %v980_v34  ;;  %1866 = vmatmul.msk.bf16.vlgmr.msra.gmra.mxu3 %vm419_vm1, %v985_v62  ;;  %v2015_v20 = vld [vmem:[#allocation7 + $0x148] sm:$0xff]  ;;  %v2018_v34 = vld [vmem:[#allocation7 + $0x160] sm:$0xff] }
 0x42f   : > { %1403 = vmatpush.bf16.msrb.mxu3 %v2020_v58  ;;  %v2014_v62 = vld [vmem:[#allocation7 + $0x140] sm:$0xff] }
 0x430   : > { %1313 = vmatpush.bf16.msrb.mxu1 %v2015_v20  ;;  %v2022_v57 = vld [vmem:[#allocation10 + $0x60] sm:$0xff] }
 0x431   : > { %1355 = vmatpush.bf16.msrb.mxu2 %v2010_v60 }
 0x433   : > { %1404 = vmatpush.bf16.msrb.mxu3 %v2019_v61 }
 0x434   : > { %1314 = vmatpush.bf16.msrb.mxu1 %v2014_v62 }
 0x437   : > { %1405 = vmatpush.bf16.msrb.mxu3 %v2018_v34 }
 0x4aa   : > { %v1040_v22 = vpop.f32.mrf.mxu1 }
 0x4b1   : > { %v1081_v36 = vpop.f32.mrf.mxu2  ;;  %v1131_v0 = vpop.f32.mrf.mxu3 }
 0x4b2   : > { %v1082_v63 = vadd.f32 %v1081_v36, %v1040_v22  ;;  %v1042_v5 = vpop.f32.mrf.mxu1  ;;  %v2107_v22 = vld [vmem:[#allocation11 + $0x2] ss:$0 sm:$0xff] }
 0x4b4   : > { %v1136_v2 = vadd.f32 %v1131_v0, %v1082_v63 }
 0x4b6   : > { %v1143_v3 = vadd.f32 %v2106_v1, %v1136_v2  ;;  %v1255_v2 = vld [vmem:[#allocation2] sm:$0xff] }
 0x4b8   : > { %v1867_v4 = vmul.f32 -1.442695, %v1143_v3 }
 0x4b9   : > { %v1083_v6 = vpop.f32.mrf.mxu2  ;;  %v1133_v8 = vpop.f32.mrf.mxu3 }
 0x4ba   : > { %2134 = vpow2.f32 %v1867_v4  ;;  %v1084_v7 = vadd.f32 %v1083_v6, %v1042_v5 }
 0x4bc   : > { %v1137_v9 = vadd.f32 %v1133_v8, %v1084_v7  ;;  %v1260_v7 = vld [vmem:[#allocation2 + $0x18] sm:$0xff] }
 0x4be   : > { %v1144_v11 = vadd.f32 %v2106_v1, %v1137_v9 }
 0x4c0   : > { %v2135_v12 = vpop.eup %2134  ;;  %v1868_v13 = vmul.f32 -1.442695, %v1144_v11 }
 0x4c1   : > { %v1153_v14 = vadd.f32 1.0, %v2135_v12 }
 0x4c2   : > { %2136 = vpow2.f32 %v1868_v13  ;;  %v2108_v13 = vld [vmem:[#allocation8 + $0x3] ss:$0 sm:$0xff] }
 0x4c3   : > { %2138 = vrcp.f32 %v1153_v14  ;;  %v1166_v21 = vand.u32 2147483648, %v1153_v14  ;;  %v1164_v24 = vand.u32 2147483647, %v1153_v14  ;;  %vm1160_vm4 = vweird.f32 %v1153_v14 }
 0x4c5   : > { %v1167_v27 = vor.u32 1.1754944e-38, %v1166_v21  ;;  %vm1165_vm6 = vcmp.eq.f32.partialorder %v1164_v24, 8.507059e+37  ;;  %v2025_v24 = vld [vmem:[#allocation10 + $0x78] sm:$0xff] }
 0x4c6   : > { %1517 = vmatpush.bf16.msra.mxu0 %v2025_v24 }
 0x4c8   : > { %v2137_v15 = vpop.eup %2136 }
 0x4c9   : > { %v2139_v16 = vpop.eup %2138  ;;  %v1154_v17 = vadd.f32 1.0, %v2137_v15 }
 0x4ca   : > { %v1156_v18 = vmul.f32 %v2139_v16, %v1153_v14  ;;  %vm1161_vm3 = vweird.f32 %v2139_v16  ;;  %1518 = vmatpush.bf16.msra.mxu0 %v2024_v54 }
 0x4cb   : > { %2140 = vrcp.f32 %v1154_v17  ;;  %vm1162_vm5 = vmor %vm1160_vm4, %vm1161_vm3  ;;  %v1181_v32 = vand.u32 2147483648, %v1154_v17  ;;  %v1179_v35 = vand.u32 2147483647, %v1154_v17  ;;  %vm1175_vm8 = vweird.f32 %v1154_v17 }
 0x4cc   : > { %v1157_v19 = vsub.f32 1.0, %v1156_v18  ;;  %2142 = vtanh.f32 %v1143_v3 }
 0x4cd   : > { %v1182_v38 = vor.u32 1.1754944e-38, %v1181_v32  ;;  %vm1180_vm10 = vcmp.eq.f32.partialorder %v1179_v35, 8.507059e+37  ;;  %2144 = vtanh.f32 %v1144_v11 }
 0x4ce   : > { %v1158_v23 = vmul.f32 %v2139_v16, %v1157_v19  ;;  %1519 = vmatpush.bf16.msra.mxu0 %v2023_v55 }
 0x4d0   : > { %v1159_v25 = vadd.f32 %v2139_v16, %v1158_v23 }
 0x4d1   : > { %v2141_v26 = vpop.eup %2140 }
 0x4d2   : > { %v1163_v28 = vsel %vm1162_vm5, %v2139_v16, %v1159_v25  ;;  %v1171_v29 = vmul.f32 %v2141_v26, %v1154_v17  ;;  %vm1176_vm7 = vweird.f32 %v2141_v26  ;;  %v2143_v46 = vpop.eup %2142  ;;  %1520 = vmatpush.bf16.msra.mxu0 %v2022_v57 }
 0x4d3   : > { %v1168_v30 = vsel %vm1165_vm6, %v1167_v27, %v1163_v28  ;;  %vm1177_vm9 = vmor %vm1175_vm8, %vm1176_vm7  ;;  %v2145_v47 = vpop.eup %2144 }
 0x4d4   : > { %1187 = vrot.lane.b32.xlu2 %v1168_v30, %s2373_s22  ;;  %v1172_v31 = vsub.f32 1.0, %v1171_v29 }
 0x4d6   : > { %v1173_v33 = vmul.f32 %v2141_v26, %v1172_v31 }
 0x4d8   : > { %v1174_v37 = vadd.f32 %v2141_v26, %v1173_v33 }
 0x4da   : > { %v1178_v39 = vsel %vm1177_vm9, %v2141_v26, %v1174_v37 }
 0x4db   : > { %v1183_v40 = vsel %vm1180_vm10, %v1182_v38, %v1178_v39 }
 0x4dc   : > { %1189 = vrot.lane.b32.xlu2 %v1183_v40, %s2373_s22 }
 0x52e   : > { %v1188_v45 = vpop.permute.xlu2 %1187 }
 0x52f   : > { %v1193_v49 = vmul.f32 %v2143_v46, %v1188_v45 }
 0x536   : > { %v1190_v48 = vpop.permute.xlu2 %1189 }
 0x537   : > { %v1194_v50 = vmul.f32 %v2145_v47, %v1190_v48 }
 0x539   : > { %v1195_v51 = vpack.c.bf16 %v1194_v50, %v1193_v49 }
 0x53b   : > { %1885 = vmatmul.msk.bf16.vlgmr.msrb.gmra.mxu0 %vm419_vm1, %v1195_v51 }
 0x5b8   : > { %v1246_v36 = vpop.f32.mrf.mxu0 }
 0x5b9   : > { %v1247_v63 = vadd.f32 %v2107_v22, %v1246_v36 }
 0x5bb   : > { %v2550_v0 = vadd.f32 %v1247_v63, %v2535_v52  ;;  %1253 = vst.msk [vmem:[#allocation2 + $0x8] sm:$0xff] %vm419_vm1, %v1247_v63 }
 0x5c0   : > { %v1248_v1 = vpop.f32.mrf.mxu0 }
 0x5c1   : > { %v1249_v3 = vadd.f32 %v2107_v22, %v1248_v1  ;;  %v2109_v22 = vld [vmem:[#allocation11 + $0x3] ss:$0 sm:$0xff] }
 0x5c2   : > { %v1256_v4 = vld [vmem:[#allocation2 + $0x8] sm:$0xff] }
 0x5c3   : > { %v2554_v5 = vadd.f32 %v1249_v3, %v2540_v56  ;;  %1254 = vst.msk [vmem:[#allocation2 + $0x10] sm:$0xff] %vm419_vm1, %v1249_v3  ;;  %v1257_v6 = vpack.c.bf16 %v1256_v4, %v1255_v2 }
 0x5c5   : > { %1919 = vmatmul.msk.bf16.vlgmr.msrb.gmra.mxu2 %vm419_vm1, %v1257_v6 }
 0x5ca   : > { %v1258_v8 = vld [vmem:[#allocation2 + $0x10] sm:$0xff] }
 0x5cb   : > { %v1259_v9 = vpack.c.bf16 %v1258_v8, %v1256_v4  ;;  %v1261_v10 = vpack.c.bf16 %v1260_v7, %v1258_v8 }
 0x5cd   : > { %1902 = vmatmul.msk.bf16.vlgmr.msrb.gmra.mxu1 %vm419_vm1, %v1259_v9  ;;  %1936 = vmatmul.msk.bf16.vlgmr.msrb.gmra.mxu3 %vm419_vm1, %v1261_v10 }
 0x648   : > { %v1357_v11 = vpop.f32.mrf.mxu2 }
 0x64a   : > { %v1316_v52 = vpop.f32.mrf.mxu1 }
 0x64b   : > { %v1358_v12 = vadd.f32 %v1357_v11, %v1316_v52 }
 0x650   : > { %v1407_v14 = vpop.f32.mrf.mxu3  ;;  %v1359_v18 = vpop.f32.mrf.mxu2 }
 0x651   : > { %v1412_v56 = vadd.f32 %v1407_v14, %v1358_v12 }
 0x652   : > { %v1318_v16 = vpop.f32.mrf.mxu1 }
 0x653   : > { %v1419_v15 = vadd.f32 %v2108_v13, %v1412_v56  ;;  %v1360_v19 = vadd.f32 %v1359_v18, %v1318_v16 }
 0x655   : > { %v1937_v17 = vmul.f32 -1.442695, %v1419_v15 }
 0x657   : > { %2146 = vpow2.f32 %v1937_v17 }
 0x658   : > { %v1409_v21 = vpop.f32.mrf.mxu3 }
 0x659   : > { %v1413_v23 = vadd.f32 %v1409_v21, %v1360_v19 }
 0x65b   : > { %v1420_v25 = vadd.f32 %v2108_v13, %v1413_v23 }
 0x65d   : > { %v2147_v26 = vpop.eup %2146  ;;  %v1938_v27 = vmul.f32 -1.442695, %v1420_v25 }
 0x65e   : > { %v1429_v28 = vadd.f32 1.0, %v2147_v26 }
 0x65f   : > { %2148 = vpow2.f32 %v1938_v27 }
 0x660   : > { %2150 = vrcp.f32 %v1429_v28  ;;  %v1442_v35 = vand.u32 2147483648, %v1429_v28  ;;  %v1440_v38 = vand.u32 2147483647, %v1429_v28  ;;  %vm1436_vm12 = vweird.f32 %v1429_v28 }
 0x662   : > { %v1443_v41 = vor.u32 1.1754944e-38, %v1442_v35  ;;  %vm1441_vm14 = vcmp.eq.f32.partialorder %v1440_v38, 8.507059e+37 }
 0x665   : > { %v2149_v29 = vpop.eup %2148 }
 0x666   : > { %v2151_v30 = vpop.eup %2150  ;;  %v1430_v31 = vadd.f32 1.0, %v2149_v29 }
 0x667   : > { %v1432_v32 = vmul.f32 %v2151_v30, %v1429_v28  ;;  %vm1437_vm11 = vweird.f32 %v2151_v30 }
 0x668   : > { %2152 = vrcp.f32 %v1430_v31  ;;  %vm1438_vm13 = vmor %vm1436_vm12, %vm1437_vm11  ;;  %v1457_v46 = vand.u32 2147483648, %v1430_v31  ;;  %v1455_v48 = vand.u32 2147483647, %v1430_v31  ;;  %vm1451_vm0 = vweird.f32 %v1430_v31 }
 0x669   : > { %v1433_v33 = vsub.f32 1.0, %v1432_v32  ;;  %2154 = vtanh.f32 %v1419_v15 }
 0x66a   : > { %v1458_v50 = vor.u32 1.1754944e-38, %v1457_v46  ;;  %vm1456_vm3 = vcmp.eq.f32.partialorder %v1455_v48, 8.507059e+37  ;;  %2156 = vtanh.f32 %v1420_v25 }
 0x66b   : > { %v1434_v37 = vmul.f32 %v2151_v30, %v1433_v33 }
 0x66d   : > { %v1435_v39 = vadd.f32 %v2151_v30, %v1434_v37 }
 0x66e   : > { %v2153_v40 = vpop.eup %2152 }
 0x66f   : > { %v1439_v42 = vsel %vm1438_vm13, %v2151_v30, %v1435_v39  ;;  %v1447_v43 = vmul.f32 %v2153_v40, %v1430_v31  ;;  %vm1452_vm15 = vweird.f32 %v2153_v40  ;;  %v2155_v59 = vpop.eup %2154 }
 0x670   : > { %v1444_v44 = vsel %vm1441_vm14, %v1443_v41, %v1439_v42  ;;  %vm1453_vm2 = vmor %vm1451_vm0, %vm1452_vm15  ;;  %v2157_v60 = vpop.eup %2156 }
 0x671   : > { %1463 = vrot.lane.b32.xlu0 %v1444_v44, %s2373_s22  ;;  %v1448_v45 = vsub.f32 1.0, %v1447_v43 }
 0x673   : > { %v1449_v47 = vmul.f32 %v2153_v40, %v1448_v45 }
 0x675   : > { %v1450_v49 = vadd.f32 %v2153_v40, %v1449_v47 }
 0x677   : > { %v1454_v51 = vsel %vm1453_vm2, %v2153_v40, %v1450_v49 }
 0x678   : > { %v1459_v53 = vsel %vm1456_vm3, %v1458_v50, %v1454_v51 }
 0x679   : > { %1465 = vrot.lane.b32.xlu1 %v1459_v53, %s2373_s22 }
 0x6e3   : > { %v1464_v58 = vpop.permute.xlu0 %1463 }
 0x6e4   : > { %v1469_v20 = vmul.f32 %v2155_v59, %v1464_v58 }
 0x6eb   : > { %v1466_v61 = vpop.permute.xlu1 %1465 }
 0x6ec   : > { %v1470_v34 = vmul.f32 %v2157_v60, %v1466_v61 }
 0x6ee   : > { %v1471_v62 = vpack.c.bf16 %v1470_v34, %v1469_v20 }
 0x6f0   : > { %1955 = vmatmul.msk.bf16.vlgmr.msra.gmra.mxu0 %vm419_vm1, %v1471_v62 }
 0x76d   : > { %v1522_v36 = vpop.f32.mrf.mxu0 }
 0x76e   : > { %v1523_v63 = vadd.f32 %v2109_v22, %v1522_v36 }
 0x770   : > { %v1527_v1 = vadd.f32 %v1523_v63, %v2550_v0 }
 0x772   : > { %1529 = vst.msk [vmem:[%s376_s26] sm:$0xff] %vm419_vm1, %v1527_v1 }
 0x775   : > { %v1524_v2 = vpop.f32.mrf.mxu0 }
 0x776   : > { %v1525_v3 = vadd.f32 %v2109_v22, %v1524_v2 }
 0x778   : > { %v1528_v4 = vadd.f32 %v1525_v3, %v2554_v5 }
 0x77a   : > { %1530 = vst.msk [vmem:[%s376_s26 + $0x8] sm:$0xff] %vm419_vm1, %v1528_v4 }
 0x77b PF: > { %s21_s24 = sadd.s32 1, %s2360_s24  }
 0x77c   : > { %p18_p7 = scmp.ge.s32.totalorder %s21_s24, 4  }
 0x77e   :  { %20 = sbr.rel (!%p18_p7) target bundleno = 4 (0x4), region = 123 }
 0x783   :  { %1552 = vsyncpa [#allocation4], 1 }
 0x784   :  { %1554 = vsyncpa [#allocation4 + $0x1], 1 }
 0x785   :  { %1555 = vsyncpa [#allocation6], 1 }
 0x786   :  { %1556 = vsyncpa [#allocation9], 1 }
 0x787   :  { %1557 = vsyncpa [#allocation12], 1 }

// kernel: ampnet_forward.23
= control target key start
LH: loop header
LB: loop body
LE: loop exit
PB: predicated region body
PF: predicated region fallthrough
CT: control target
= control target key end

     0   :  { %s408_s1 = inlined_call_operand.vmem [shape: bf16[256,128], index: 1, kind: input, shape index: {}]   ;;  %s409_s2 = inlined_call_operand.vmem [shape: f32[1,128], index: 2, kind: input, shape index: {}]   ;;  %s410_s0 = inlined_call_operand.vmem [shape: f32[32,256], index: 0, kind: input, shape index: {}]   ;;  %s411_s3 = inlined_call_operand.vmem [shape: f32[32,128], index: 3, kind: output, shape index: {}]  }
   0x1   :  { %v275_v0 = vld [vmem:[%s408_s1 + $0x38] sm:$0xff]  ;;  %v274_v2 = vld [vmem:[%s408_s1 + $0x30] sm:$0xff]  ;;  %v273_v4 = vld [vmem:[%s408_s1 + $0x28] sm:$0xff] }
   0x2   :  { %v283_v1 = vld [vmem:[%s408_s1 + $0x78] sm:$0xff]  ;;  %158 = vmatpush.bf16.msra.mxu0 %v275_v0  ;;  %284 = vmatpush.bf16.msra.mxu2 %v275_v0  ;;  %v282_v3 = vld [vmem:[%s408_s1 + $0x70] sm:$0xff]  ;;  %v281_v5 = vld [vmem:[%s408_s1 + $0x68] sm:$0xff] }
   0x3   :  { %177 = vmatpush.bf16.msra.mxu1 %v283_v1  ;;  %292 = vmatpush.bf16.msra.mxu3 %v283_v1  ;;  %v272_v6 = vld [vmem:[%s408_s1 + $0x20] sm:$0xff]  ;;  %v271_v8 = vld [vmem:[%s408_s1 + $0x18] sm:$0xff]  ;;  %v270_v10 = vld [vmem:[%s408_s1 + $0x10] sm:$0xff] }
   0x4   :  { %v280_v7 = vld [vmem:[%s408_s1 + $0x60] sm:$0xff]  ;;  %v279_v9 = vld [vmem:[%s408_s1 + $0x58] sm:$0xff]  ;;  %v278_v11 = vld [vmem:[%s408_s1 + $0x50] sm:$0xff] }
   0x5   :  { %v269_v12 = vld [vmem:[%s408_s1 + $0x8] sm:$0xff]  ;;  %v268_v14 = vld [vmem:[%s408_s1] sm:$0xff]  ;;  %v16_v17 = vld [vmem:[%s410_s0 + $0x10] sm:$0xff] }
   0x6   :  { %159 = vmatpush.bf16.msra.mxu0 %v274_v2  ;;  %285 = vmatpush.bf16.msra.mxu2 %v274_v2  ;;  %v277_v13 = vld [vmem:[%s408_s1 + $0x48] sm:$0xff]  ;;  %v276_v15 = vld [vmem:[%s408_s1 + $0x40] sm:$0xff]  ;;  %v20_v19 = vld [vmem:[%s410_s0 + $0x30] sm:$0xff] }
   0x7   :  { %178 = vmatpush.bf16.msra.mxu1 %v282_v3  ;;  %293 = vmatpush.bf16.msra.mxu3 %v282_v3  ;;  %v14_v16 = vld [vmem:[%s410_s0] sm:$0xff]  ;;  %v15_v20 = vld [vmem:[%s410_s0 + $0x8] sm:$0xff]  ;;  %v17_v21 = vld [vmem:[%s410_s0 + $0x18] sm:$0xff] }
   0x8   :  { %v18_v18 = vld [vmem:[%s410_s0 + $0x20] sm:$0xff]  ;;  %v19_v22 = vld [vmem:[%s410_s0 + $0x28] sm:$0xff]  ;;  %v21_v23 = vld [vmem:[%s410_s0 + $0x38] sm:$0xff]  ;;  %v22_v24 = vpack.c.bf16 %v16_v17, %v14_v16  ;;  %v23_v26 = vpack.c.bf16 %v17_v21, %v15_v20 }
   0x9   :  { %v24_v25 = vpack.c.bf16 %v20_v19, %v18_v18  ;;  %v25_v27 = vpack.c.bf16 %v21_v23, %v19_v22  ;;  %v300_v28 = vld [vmem:[%s409_s2] ss:$0 sm:$0xff] }
   0xa   :  { %160 = vmatpush.bf16.msra.mxu0 %v273_v4  ;;  %286 = vmatpush.bf16.msra.mxu2 %v273_v4 }
   0xb   :  { %179 = vmatpush.bf16.msra.mxu1 %v281_v5  ;;  %294 = vmatpush.bf16.msra.mxu3 %v281_v5 }
   0xe   :  { %161 = vmatpush.bf16.msra.mxu0 %v272_v6  ;;  %287 = vmatpush.bf16.msra.mxu2 %v272_v6 }
   0xf   :  { %180 = vmatpush.bf16.msra.mxu1 %v280_v7  ;;  %295 = vmatpush.bf16.msra.mxu3 %v280_v7 }
  0x12   :  { %162 = vmatpush.bf16.msra.mxu0 %v271_v8  ;;  %288 = vmatpush.bf16.msra.mxu2 %v271_v8 }
  0x13   :  { %181 = vmatpush.bf16.msra.mxu1 %v279_v9  ;;  %296 = vmatpush.bf16.msra.mxu3 %v279_v9 }
  0x16   :  { %163 = vmatpush.bf16.msra.mxu0 %v270_v10  ;;  %289 = vmatpush.bf16.msra.mxu2 %v270_v10 }
  0x17   :  { %182 = vmatpush.bf16.msra.mxu1 %v278_v11  ;;  %297 = vmatpush.bf16.msra.mxu3 %v278_v11 }
  0x1a   :  { %164 = vmatpush.bf16.msra.mxu0 %v269_v12  ;;  %290 = vmatpush.bf16.msra.mxu2 %v269_v12 }
  0x1b   :  { %183 = vmatpush.bf16.msra.mxu1 %v277_v13  ;;  %298 = vmatpush.bf16.msra.mxu3 %v277_v13 }
  0x1e   :  { %165 = vmatpush.bf16.msra.mxu0 %v268_v14  ;;  %291 = vmatpush.bf16.msra.mxu2 %v268_v14 }
  0x1f   :  { %184 = vmatpush.bf16.msra.mxu1 %v276_v15  ;;  %299 = vmatpush.bf16.msra.mxu3 %v276_v15 }
  0x21   :  { %166 = vmatmul.bf16.vlgmr.msra.gmra.mxu0 %v22_v24  ;;  %171 = vmatmul.bf16.vlgmr.msra.gmra.mxu2 %v24_v25 }
  0x22   :  { %185 = vmatmul.bf16.vlgmr.msra.gmra.mxu1 %v23_v26  ;;  %190 = vmatmul.bf16.vlgmr.msra.gmra.mxu3 %v25_v27 }
  0x9e   :  { %v167_v29 = vpop.f32.mrf.mxu0 }
  0x9f   :  { %v168_v30 = vadd.f32 %v300_v28, %v167_v29  ;;  %v186_v31 = vpop.f32.mrf.mxu1 }
  0xa1   :  { %v187_v32 = vadd.f32 %v186_v31, %v168_v30 }
  0xa3   :  { %196 = vst [vmem:[%s411_s3] sm:$0xff] %v187_v32 }
  0xa4   :  { %v172_v33 = vpop.f32.mrf.mxu2 }
  0xa5   :  { %v173_v34 = vadd.f32 %v300_v28, %v172_v33  ;;  %v191_v35 = vpop.f32.mrf.mxu3 }
  0xa6   :  { %v169_v36 = vpop.f32.mrf.mxu0 }
  0xa7   :  { %v192_v37 = vadd.f32 %v191_v35, %v173_v34  ;;  %v170_v38 = vadd.f32 %v300_v28, %v169_v36  ;;  %v188_v39 = vpop.f32.mrf.mxu1 }
  0xa9   :  { %198 = vst [vmem:[%s411_s3 + $0x10] sm:$0xff] %v192_v37  ;;  %v189_v40 = vadd.f32 %v188_v39, %v170_v38 }
  0xab   :  { %197 = vst [vmem:[%s411_s3 + $0x8] sm:$0xff] %v189_v40 }
  0xac   :  { %v174_v41 = vpop.f32.mrf.mxu2 }
  0xad   :  { %v175_v42 = vadd.f32 %v300_v28, %v174_v41  ;;  %v193_v43 = vpop.f32.mrf.mxu3 }
  0xaf   :  { %v194_v44 = vadd.f32 %v193_v43, %v175_v42 }
  0xb1   :  { %199 = vst [vmem:[%s411_s3 + $0x18] sm:$0xff] %v194_v44 }

// kernel: ampnet_forward.16
= control target key start
LH: loop header
LB: loop body
LE: loop exit
PB: predicated region body
PF: predicated region fallthrough
CT: control target
= control target key end

     0   :  { %v1031_v0 = vmov 0.0   ;;  %s1052_s12 = smov 0   ;;  %s1491_s0 = inlined_call_operand.vmem [shape: f32[16,2,768], index: 0, kind: input, shape index: {}]   ;;  %s1492_s1 = inlined_call_operand.vmem [shape: bf16[2,128,384], index: 1, kind: input, shape index: {}]   ;;  %s1493_s2 = inlined_call_operand.vmem [shape: f32[2,1,384], index: 2, kind: input, shape index: {}]   ;;  %s1494_s3 = inlined_call_operand.vmem [shape: f32[16,2,256], index: 3, kind: output, shape index: {}]  }
   0x1   :  { %14 = vst [vmem:[#allocation2] sm:$0x3] %v1031_v0 }
   0x2   :  { %15 = vst [vmem:[#allocation3] sm:$0x3] %v1031_v0 }
   0x3 LB: > { %v799_v1 = vld [vmem:[%s1492_s1 + $0xa8] sm:$0xf]  ;;  %v968_v2 = vld [vmem:[%s1492_s1 + $0xb0] sm:$0xf0]  ;;  %v787_v6 = vld [vmem:[%s1492_s1 + $0x90] sm:$0xf]  ;;  %s1029_s12 = sphi %s1052_s12, %s21_s12  }
   0x4   : > { %v930_v3 = vld [vmem:[%s1492_s1 + $0x168] sm:$0xf]  ;;  %v800_v4 = vor.u32 %v968_v2, %v799_v1  ;;  %v992_v5 = vld [vmem:[%s1492_s1 + $0x170] sm:$0xf0]  ;;  %v965_v7 = vld [vmem:[%s1492_s1 + $0x98] sm:$0xf0] }
   0x5   : > { %v931_v8 = vor.u32 %v992_v5, %v930_v3  ;;  %v918_v9 = vld [vmem:[%s1492_s1 + $0x150] sm:$0xf]  ;;  %v989_v10 = vld [vmem:[%s1492_s1 + $0x158] sm:$0xf0]  ;;  %v788_v11 = vor.u32 %v965_v7, %v787_v6  ;;  %v967_v12 = vld [vmem:[%s1492_s1 + $0xac] sm:$0xf] }
   0x6   : > { %202 = vmatpush.bf16.msra.mxu0 %v800_v4  ;;  %v801_v13 = vld [vmem:[%s1492_s1 + $0xb4] sm:$0xf0]  ;;  %v919_v14 = vor.u32 %v989_v10, %v918_v9  ;;  %v962_v16 = vld [vmem:[%s1492_s1 + $0x80] sm:$0xf0]  ;;  %v964_v20 = vld [vmem:[%s1492_s1 + $0x94] sm:$0xf] }
   0x7   : > { %465 = vmatpush.bf16.msra.mxu3 %v931_v8  ;;  %v775_v15 = vld [vmem:[%s1492_s1 + $0x78] sm:$0xf]  ;;  %v804_v17 = vor.u32 %v967_v12, %v801_v13  ;;  %v986_v19 = vld [vmem:[%s1492_s1 + $0x140] sm:$0xf0]  ;;  %v789_v21 = vld [vmem:[%s1492_s1 + $0x9c] sm:$0xf0] }
   0x8   : > { %v906_v18 = vld [vmem:[%s1492_s1 + $0x138] sm:$0xf]  ;;  %v792_v22 = vor.u32 %v964_v20, %v789_v21  ;;  %v776_v23 = vor.u32 %v962_v16, %v775_v15  ;;  %v961_v24 = vld [vmem:[%s1492_s1 + $0x7c] sm:$0xf]  ;;  %v777_v25 = vld [vmem:[%s1492_s1 + $0x84] sm:$0xf0] }
   0x9   : > { %215 = vmatpush.bf16.msra.mxu1 %v804_v17  ;;  %v907_v26 = vor.u32 %v986_v19, %v906_v18  ;;  %v763_v27 = vld [vmem:[%s1492_s1 + $0x60] sm:$0xf]  ;;  %v959_v28 = vld [vmem:[%s1492_s1 + $0x68] sm:$0xf0]  ;;  %v780_v31 = vor.u32 %v961_v24, %v777_v25  ;;  %v751_v33 = vld [vmem:[%s1492_s1 + $0x48] sm:$0xf] }
   0xa   : > { %203 = vmatpush.bf16.msra.mxu0 %v788_v11  ;;  %v894_v29 = vld [vmem:[%s1492_s1 + $0x120] sm:$0xf]  ;;  %v983_v30 = vld [vmem:[%s1492_s1 + $0x128] sm:$0xf0]  ;;  %v764_v32 = vor.u32 %v959_v28, %v763_v27  ;;  %v958_v34 = vld [vmem:[%s1492_s1 + $0x64] sm:$0xf] }
   0xb   : > { %466 = vmatpush.bf16.msra.mxu3 %v919_v14  ;;  %v765_v35 = vld [vmem:[%s1492_s1 + $0x6c] sm:$0xf0]  ;;  %v895_v36 = vor.u32 %v983_v30, %v894_v29  ;;  %v956_v37 = vld [vmem:[%s1492_s1 + $0x50] sm:$0xf0]  ;;  %v969_v39 = vld [vmem:[%s1492_s1 + $0xb8] sm:$0xf0] }
   0xc   : > { %v807_v38 = vld [vmem:[%s1492_s1 + $0xb0] sm:$0xf]  ;;  %v882_v40 = vld [vmem:[%s1492_s1 + $0x108] sm:$0xf]  ;;  %v980_v41 = vld [vmem:[%s1492_s1 + $0x110] sm:$0xf0]  ;;  %v768_v43 = vor.u32 %v958_v34, %v765_v35  ;;  %v752_v45 = vor.u32 %v956_v37, %v751_v33 }
   0xd   : > { %216 = vmatpush.bf16.msra.mxu1 %v792_v22  ;;  %v808_v42 = vor.u32 %v969_v39, %v807_v38  ;;  %v795_v44 = vld [vmem:[%s1492_s1 + $0x98] sm:$0xf]  ;;  %v955_v46 = vld [vmem:[%s1492_s1 + $0x4c] sm:$0xf]  ;;  %v966_v48 = vld [vmem:[%s1492_s1 + $0xa0] sm:$0xf0]  ;;  %v883_v49 = vor.u32 %v980_v41, %v882_v40 }
   0xe   : > { %204 = vmatpush.bf16.msra.mxu0 %v776_v23  ;;  %v753_v47 = vld [vmem:[%s1492_s1 + $0x54] sm:$0xf0]  ;;  %v739_v50 = vld [vmem:[%s1492_s1 + $0x30] sm:$0xf]  ;;  %v953_v51 = vld [vmem:[%s1492_s1 + $0x38] sm:$0xf0]  ;;  %v796_v52 = vor.u32 %v966_v48, %v795_v44 }
   0xf   : > { %467 = vmatpush.bf16.msra.mxu3 %v907_v26  ;;  %228 = vmatpush.bf16.msra.mxu2 %v808_v42  ;;  %v870_v53 = vld [vmem:[%s1492_s1 + $0xf0] sm:$0xf]  ;;  %v977_v54 = vld [vmem:[%s1492_s1 + $0xf8] sm:$0xf0]  ;;  %v783_v55 = vld [vmem:[%s1492_s1 + $0x80] sm:$0xf]  ;;  %v756_v56 = vor.u32 %v955_v46, %v753_v47  ;;  %v740_v58 = vor.u32 %v953_v51, %v739_v50 }
  0x10   : > { %v963_v57 = vld [vmem:[%s1492_s1 + $0x88] sm:$0xf0]  ;;  %v727_v59 = vld [vmem:[%s1492_s1 + $0x18] sm:$0xf]  ;;  %v952_v60 = vld [vmem:[%s1492_s1 + $0x34] sm:$0xf]  ;;  %v871_v63 = vor.u32 %v977_v54, %v870_v53 }
  0x11   : > { %217 = vmatpush.bf16.msra.mxu1 %v780_v31  ;;  %v741_v61 = vld [vmem:[%s1492_s1 + $0x3c] sm:$0xf0]  ;;  %v784_v62 = vor.u32 %v963_v57, %v783_v55  ;;  %v950_v0 = vld [vmem:[%s1492_s1 + $0x20] sm:$0xf0]  ;;  %v771_v1 = vld [vmem:[%s1492_s1 + $0x68] sm:$0xf] }
  0x12   : > { %205 = vmatpush.bf16.msra.mxu0 %v764_v32  ;;  %v960_v2 = vld [vmem:[%s1492_s1 + $0x70] sm:$0xf0]  ;;  %v858_v3 = vld [vmem:[%s1492_s1 + $0xd8] sm:$0xf]  ;;  %v974_v4 = vld [vmem:[%s1492_s1 + $0xe0] sm:$0xf0]  ;;  %v744_v6 = vor.u32 %v952_v60, %v741_v61  ;;  %v728_v7 = vor.u32 %v950_v0, %v727_v59 }
  0x13   : > { %468 = vmatpush.bf16.msra.mxu3 %v895_v36  ;;  %229 = vmatpush.bf16.msra.mxu2 %v796_v52  ;;  %v715_v5 = vld [vmem:[%s1492_s1] sm:$0xf]  ;;  %v947_v8 = vld [vmem:[%s1492_s1 + $0x8] sm:$0xf0]  ;;  %v949_v9 = vld [vmem:[%s1492_s1 + $0x1c] sm:$0xf]  ;;  %v772_v11 = vor.u32 %v960_v2, %v771_v1  ;;  %v859_v12 = vor.u32 %v974_v4, %v858_v3 }
  0x14   : > { %v729_v10 = vld [vmem:[%s1492_s1 + $0x24] sm:$0xf0]  ;;  %v846_v13 = vld [vmem:[%s1492_s1 + $0xc0] sm:$0xf]  ;;  %v759_v14 = vld [vmem:[%s1492_s1 + $0x50] sm:$0xf]  ;;  %v716_v21 = vor.u32 %v947_v8, %v715_v5 }
  0x15   : > { %218 = vmatpush.bf16.msra.mxu1 %v768_v43  ;;  %v957_v15 = vld [vmem:[%s1492_s1 + $0x58] sm:$0xf0]  ;;  %v971_v16 = vld [vmem:[%s1492_s1 + $0xc8] sm:$0xf0]  ;;  %v932_v18 = vld [vmem:[%s1492_s1 + $0x174] sm:$0xf0]  ;;  %v732_v20 = vor.u32 %v949_v9, %v729_v10 }
  0x16   : > { %206 = vmatpush.bf16.msra.mxu0 %v752_v45  ;;  %v991_v17 = vld [vmem:[%s1492_s1 + $0x16c] sm:$0xf]  ;;  %v1231_v19 = vld [vmem:[#allocation2] sm:$0x3]  ;;  %v1233_v22 = vld [vmem:[#allocation3] sm:$0x3]  ;;  %v760_v25 = vor.u32 %v957_v15, %v759_v14  ;;  %v847_v26 = vor.u32 %v971_v16, %v846_v13 }
  0x17   : > { %469 = vmatpush.bf16.msra.mxu3 %v883_v49  ;;  %230 = vmatpush.bf16.msra.mxu2 %v784_v62  ;;  %v946_v23 = vld [vmem:[%s1492_s1 + $0x4] sm:$0xf]  ;;  %v717_v24 = vld [vmem:[%s1492_s1 + $0xc] sm:$0xf0]  ;;  %v935_v27 = vor.u32 %v991_v17, %v932_v18  ;;  %v988_v28 = vld [vmem:[%s1492_s1 + $0x154] sm:$0xf]  ;;  %v66_v34 = vpack.c.bf16 %v1231_v19, %v1231_v19  ;;  %v1263_v36 = vpack.c.bf16 %v1233_v22, %v1233_v22 }
  0x18   : > { %v938_v29 = vld [vmem:[%s1492_s1 + $0x170] sm:$0xf]  ;;  %v993_v30 = vld [vmem:[%s1492_s1 + $0x178] sm:$0xf0]  ;;  %v920_v31 = vld [vmem:[%s1492_s1 + $0x15c] sm:$0xf0]  ;;  %v720_v35 = vor.u32 %v946_v23, %v717_v24 }
  0x19   : > { %219 = vmatpush.bf16.msra.mxu1 %v756_v56  ;;  %v747_v32 = vld [vmem:[%s1492_s1 + $0x38] sm:$0xf]  ;;  %v954_v33 = vld [vmem:[%s1492_s1 + $0x40] sm:$0xf0]  ;;  %v939_v37 = vor.u32 %v993_v30, %v938_v29  ;;  %v923_v38 = vor.u32 %v988_v28, %v920_v31  ;;  %v985_v39 = vld [vmem:[%s1492_s1 + $0x13c] sm:$0xf] }
  0x1a   : > { %207 = vmatpush.bf16.msra.mxu0 %v740_v58  ;;  %v926_v40 = vld [vmem:[%s1492_s1 + $0x158] sm:$0xf]  ;;  %v990_v41 = vld [vmem:[%s1492_s1 + $0x160] sm:$0xf0]  ;;  %v748_v42 = vor.u32 %v954_v33, %v747_v32  ;;  %v908_v43 = vld [vmem:[%s1492_s1 + $0x144] sm:$0xf0] }
  0x1b   : > { %470 = vmatpush.bf16.msra.mxu3 %v871_v63  ;;  %231 = vmatpush.bf16.msra.mxu2 %v772_v11  ;;  %v735_v44 = vld [vmem:[%s1492_s1 + $0x20] sm:$0xf]  ;;  %v951_v45 = vld [vmem:[%s1492_s1 + $0x28] sm:$0xf0]  ;;  %v927_v46 = vor.u32 %v990_v41, %v926_v40  ;;  %v911_v47 = vor.u32 %v985_v39, %v908_v43  ;;  %v982_v48 = vld [vmem:[%s1492_s1 + $0x124] sm:$0xf] }
  0x1c   : > { %v914_v49 = vld [vmem:[%s1492_s1 + $0x140] sm:$0xf]  ;;  %v987_v50 = vld [vmem:[%s1492_s1 + $0x148] sm:$0xf0]  ;;  %v736_v51 = vor.u32 %v951_v45, %v735_v44  ;;  %v896_v52 = vld [vmem:[%s1492_s1 + $0x12c] sm:$0xf0] }
  0x1d   : > { %220 = vmatpush.bf16.msra.mxu1 %v744_v6  ;;  %v723_v53 = vld [vmem:[%s1492_s1 + $0x8] sm:$0xf]  ;;  %v948_v54 = vld [vmem:[%s1492_s1 + $0x10] sm:$0xf0]  ;;  %v915_v55 = vor.u32 %v987_v50, %v914_v49  ;;  %v899_v56 = vor.u32 %v982_v48, %v896_v52  ;;  %v979_v60 = vld [vmem:[%s1492_s1 + $0x10c] sm:$0xf] }
  0x1e   : > { %208 = vmatpush.bf16.msra.mxu0 %v728_v7  ;;  %v902_v57 = vld [vmem:[%s1492_s1 + $0x128] sm:$0xf]  ;;  %v984_v58 = vld [vmem:[%s1492_s1 + $0x130] sm:$0xf0]  ;;  %v724_v59 = vor.u32 %v948_v54, %v723_v53  ;;  %v884_v61 = vld [vmem:[%s1492_s1 + $0x114] sm:$0xf0] }
  0x1f   : > { %471 = vmatpush.bf16.msra.mxu3 %v859_v12  ;;  %232 = vmatpush.bf16.msra.mxu2 %v760_v25  ;;  %v903_v62 = vor.u32 %v984_v58, %v902_v57  ;;  %v887_v63 = vor.u32 %v979_v60, %v884_v61  ;;  %v890_v0 = vld [vmem:[%s1492_s1 + $0x110] sm:$0xf]  ;;  %v981_v1 = vld [vmem:[%s1492_s1 + $0x118] sm:$0xf0]  ;;  %v976_v2 = vld [vmem:[%s1492_s1 + $0xf4] sm:$0xf] }
  0x20   : > { %v872_v3 = vld [vmem:[%s1492_s1 + $0xfc] sm:$0xf0]  ;;  %v891_v4 = vor.u32 %v981_v1, %v890_v0  ;;  %v878_v6 = vld [vmem:[%s1492_s1 + $0xf8] sm:$0xf]  ;;  %v978_v7 = vld [vmem:[%s1492_s1 + $0x100] sm:$0xf0] }
  0x21   : > { %221 = vmatpush.bf16.msra.mxu1 %v732_v20  ;;  %v875_v5 = vor.u32 %v976_v2, %v872_v3  ;;  %v973_v8 = vld [vmem:[%s1492_s1 + $0xdc] sm:$0xf]  ;;  %v860_v9 = vld [vmem:[%s1492_s1 + $0xe4] sm:$0xf0]  ;;  %v879_v10 = vor.u32 %v978_v7, %v878_v6  ;;  %v866_v12 = vld [vmem:[%s1492_s1 + $0xe0] sm:$0xf] }
  0x22   : > { %209 = vmatpush.bf16.msra.mxu0 %v716_v21  ;;  %v863_v11 = vor.u32 %v973_v8, %v860_v9  ;;  %v975_v13 = vld [vmem:[%s1492_s1 + $0xe8] sm:$0xf0]  ;;  %v970_v14 = vld [vmem:[%s1492_s1 + $0xc4] sm:$0xf]  ;;  %v848_v15 = vld [vmem:[%s1492_s1 + $0xcc] sm:$0xf0] }
  0x23   : > { %472 = vmatpush.bf16.msra.mxu3 %v847_v26  ;;  %233 = vmatpush.bf16.msra.mxu2 %v748_v42  ;;  %v867_v16 = vor.u32 %v975_v13, %v866_v12  ;;  %v851_v17 = vor.u32 %v970_v14, %v848_v15  ;;  %v854_v18 = vld [vmem:[%s1492_s1 + $0xc8] sm:$0xf]  ;;  %v972_v20 = vld [vmem:[%s1492_s1 + $0xd0] sm:$0xf0]  ;;  %s944_s23 = smul.u32 12, %s1029_s12  ;;  %s22_s24 = ssub.s32 15, %s1029_s12 }
  0x24   : > { %v855_v21 = vor.u32 %v972_v20, %v854_v18  ;;  %v1363_v23 = vld [vmem:[%s1493_s2] sm:$0x7]  ;;  %s945_s27 = smul.u32 12, %s22_s24  ;;  %v1382_v29 = vld [vmem:[%s1493_s2 + $0x3] sm:$0x7]  ;;  %s942_s9 = sshll.u32 %s1029_s12, 1 }
  0x25   : > { %210 = vmatmul.bf16.vlgmr.msra.gmra.mxu0 %v66_v34  ;;  %222 = vmatpush.bf16.msra.mxu1 %v720_v35  ;;  %s25_s30 = scalar_lea.vmem %s1491_s0, %s944_s23  ;;  %v68_v24 = vperm.slane %v1363_v23, 0  ;;  %s560_s10 = scalar_lea.vmem [#allocation4], %s942_s9 }
  0x26   : > { %478 = vmatpush.bf16.msrb.mxu0 %v935_v27  ;;  %473 = vmatmul.bf16.vlgmr.msra.gmra.mxu3 %v1263_v36  ;;  %v1371_v25 = vld [vmem:[%s25_s30] sm:$0xff]  ;;  %s1376_s6 = scalar_lea.vmem %s1491_s0, %s945_s27  ;;  %v69_v27 = vperm.slane %v1363_v23, 1  ;;  %s943_s11 = sshll.u32 %s22_s24, 1 }
  0x27   : > { %234 = vmatpush.bf16.msra.mxu2 %v736_v51  ;;  %v262_v30 = vrot.slane %v1371_v25, 2  ;;  %v30_v32 = vld [vmem:[%s1376_s6] sm:$0xff]  ;;  %v31_v6 = vld [vmem:[%s1376_s6 + $0x8] sm:$0xf]  ;;  %s563_s13 = scalar_lea.vmem [#allocation5], %s943_s11  ;;  %s21_s12 = sadd.s32 1, %s1029_s12  }
  0x28   : > { %223 = vmatmul.bf16.vlgmr.msra.gmra.mxu1 %v66_v34  ;;  %p18_p0 = scmp.ge.s32.totalorder %s21_s12, 16  }
  0x29   : > { %491 = vmatpush.bf16.msrb.mxu1 %v939_v37  ;;  %v505_v37 = vrot.slane %v30_v32, 6 }
  0x2a   : > { %479 = vmatpush.bf16.msrb.mxu0 %v923_v38 }
  0x2b   : > { %235 = vmatpush.bf16.msra.mxu2 %v724_v59 }
  0x2d   : > { %492 = vmatpush.bf16.msrb.mxu1 %v927_v46 }
  0x2e   : > { %480 = vmatpush.bf16.msrb.mxu0 %v911_v47  ;;  %236 = vmatmul.bf16.vlgmr.msra.gmra.mxu2 %v66_v34  ;;  %v331_v34 = vperm.slane %v1382_v29, 0 }
  0x31   : > { %493 = vmatpush.bf16.msrb.mxu1 %v915_v55 }
  0x32   : > { %481 = vmatpush.bf16.msrb.mxu0 %v899_v56  ;;  %v70_v56 = vperm.slane %v1363_v23, 2 }
  0x35   : > { %494 = vmatpush.bf16.msrb.mxu1 %v903_v62  ;;  %v332_v62 = vperm.slane %v1382_v29, 1 }
  0x36   : > { %482 = vmatpush.bf16.msrb.mxu0 %v887_v63 }
  0x39   : > { %495 = vmatpush.bf16.msrb.mxu1 %v891_v4 }
  0x3a   : > { %483 = vmatpush.bf16.msrb.mxu0 %v875_v5 }
  0x3d   : > { %496 = vmatpush.bf16.msrb.mxu1 %v879_v10 }
  0x3e   : > { %484 = vmatpush.bf16.msrb.mxu0 %v863_v11 }
  0x41   : > { %497 = vmatpush.bf16.msrb.mxu1 %v867_v16  ;;  %v285_v16 = vrot.slane %v1371_v25, 4 }
  0x42   : > { %485 = vmatpush.bf16.msrb.mxu0 %v851_v17 }
  0x45   : > { %486 = vmatmul.bf16.vlgmr.msrb.gmra.mxu0 %v1263_v36  ;;  %498 = vmatpush.bf16.msrb.mxu1 %v855_v21 }
  0x48   : > { %499 = vmatmul.bf16.vlgmr.msrb.gmra.mxu1 %v1263_v36 }
  0xa2   : > { %v211_v26 = vpop.f32.mrf.mxu0 }
  0xa3   : > { %v212_v28 = vadd.f32 %v211_v26, %v68_v24 }
  0xa5   : > { %v241_v31 = vadd.f32 %v212_v28, %v1371_v25  ;;  %v224_v33 = vpop.f32.mrf.mxu1 }
  0xa6   : > { %v225_v35 = vadd.f32 %v224_v33, %v69_v27 }
  0xa7   : > { %v809_v36 = vmul.f32 -1.442695, %v241_v31 }
  0xa8   : > { %v264_v38 = vadd.f32 %v262_v30, %v225_v35 }
  0xa9   : > { %1003 = vpow2.f32 %v809_v36  ;;  %v474_v39 = vpop.f32.mrf.mxu3 }
  0xaa   : > { %v475_v40 = vadd.f32 %v474_v39, %v331_v34  ;;  %v810_v41 = vmul.f32 -1.442695, %v264_v38  ;;  %v213_v42 = vpop.f32.mrf.mxu0  ;;  %v333_v39 = vperm.slane %v1382_v29, 2 }
  0xac   : > { %v507_v43 = vadd.f32 %v505_v37, %v475_v40  ;;  %1005 = vpow2.f32 %v810_v41 }
  0xad   : > { %v226_v44 = vpop.f32.mrf.mxu1 }
  0xae   : > { %v940_v45 = vmul.f32 -1.442695, %v507_v43 }
  0xaf   : > { %v1004_v46 = vpop.eup %1003 }
  0xb0   : > { %v245_v47 = vadd.f32 1.0, %v1004_v46  ;;  %1007 = vpow2.f32 %v940_v45 }
  0xb1   : > { %v476_v48 = vpop.f32.mrf.mxu3  ;;  %v237_v51 = vpop.f32.mrf.mxu2 }
  0xb2   : > { %v1006_v49 = vpop.eup %1005  ;;  %1009 = vrcp.f32 %v245_v47  ;;  %v257_v57 = vand.u32 2147483648, %v245_v47  ;;  %vm251_vm0 = vweird.f32 %v245_v47  ;;  %v255_v60 = vand.u32 2147483647, %v245_v47 }
  0xb3   : > { %v268_v50 = vadd.f32 1.0, %v1006_v49  ;;  %v238_v8 = vadd.f32 %v237_v51, %v70_v56 }
  0xb4   : > { %v258_v3 = vor.u32 1.1754944e-38, %v257_v57  ;;  %vm256_vm5 = vcmp.eq.f32.partialorder %v255_v60, 8.507059e+37 }
  0xb5   : > { %1011 = vrcp.f32 %v268_v50  ;;  %vm274_vm2 = vweird.f32 %v268_v50  ;;  %v280_v5 = vand.u32 2147483648, %v268_v50  ;;  %v278_v12 = vand.u32 2147483647, %v268_v50 }
  0xb6   : > { %v1008_v52 = vpop.eup %1007 }
  0xb7   : > { %v1388_v53 = vadd.f32 1.0, %v1008_v52  ;;  %v281_v24 = vor.u32 1.1754944e-38, %v280_v5  ;;  %vm279_vm7 = vcmp.eq.f32.partialorder %v278_v12, 8.507059e+37 }
  0xb8   : > { %v1010_v54 = vpop.eup %1009 }
  0xb9   : > { %1013 = vrcp.f32 %v1388_v53  ;;  %v247_v55 = vmul.f32 %v1010_v54, %v245_v47  ;;  %vm252_vm1 = vweird.f32 %v1010_v54  ;;  %v239_v0 = vpop.f32.mrf.mxu2  ;;  %vm517_vm8 = vweird.f32 %v1388_v53 }
  0xba   : > { %vm1393_vm4 = vmor %vm251_vm0, %vm252_vm1  ;;  %v523_v25 = vand.u32 2147483648, %v1388_v53  ;;  %v521_v35 = vand.u32 2147483647, %v1388_v53  ;;  %vm645_vm0 = vcmask (%p18_p0), 1041408  }
  0xbb   : > { %v1012_v58 = vpop.eup %1011  ;;  %v248_v59 = vsub.f32 1.0, %v247_v55 }
  0xbc   : > { %v270_v61 = vmul.f32 %v1012_v58, %v268_v50  ;;  %vm275_vm3 = vweird.f32 %v1012_v58  ;;  %v524_v42 = vor.u32 1.1754944e-38, %v523_v25  ;;  %vm522_vm11 = vcmp.eq.f32.partialorder %v521_v35, 8.507059e+37 }
  0xbd   : > { %v249_v63 = vmul.f32 %v1010_v54, %v248_v59  ;;  %vm1400_vm6 = vmor %vm274_vm2, %vm275_vm3  ;;  %v549_v50 = vrot.slane %v31_v6, 2 }
  0xbe   : > { %v271_v1 = vsub.f32 1.0, %v270_v61 }
  0xbf   : > { %v1014_v4 = vpop.eup %1013  ;;  %v250_v9 = vadd.f32 %v1010_v54, %v249_v63 }
  0xc0   : > { %v272_v10 = vmul.f32 %v1012_v58, %v271_v1  ;;  %v513_v13 = vmul.f32 %v1014_v4, %v1388_v53  ;;  %vm518_vm9 = vweird.f32 %v1014_v4 }
  0xc1   : > { %v254_v15 = vsel %vm1393_vm4, %v1010_v54, %v250_v9  ;;  %vm1412_vm10 = vmor %vm517_vm8, %vm518_vm9 }
  0xc2   : > { %v487_v7 = vpop.f32.mrf.mxu0  ;;  %v259_v18 = vsel %vm256_vm5, %v258_v3, %v254_v15  ;;  %v273_v20 = vadd.f32 %v1012_v58, %v272_v10  ;;  %v514_v23 = vsub.f32 1.0, %v513_v13 }
  0xc3   : > { %v488_v11 = vadd.f32 %v487_v7, %v332_v62  ;;  %v284_v26 = vmul.f32 %v259_v18, %v238_v8 }
  0xc4   : > { %v277_v28 = vsel %vm1400_vm6, %v1012_v58, %v273_v20  ;;  %v515_v31 = vmul.f32 %v1014_v4, %v514_v23 }
  0xc5   : > { %v527_v17 = vadd.f32 %v488_v11, %v31_v6  ;;  %v500_v21 = vpop.f32.mrf.mxu1  ;;  %v287_v30 = vadd.f32 %v285_v16, %v284_v26  ;;  %v282_v32 = vsel %vm279_vm7, %v281_v24, %v277_v28 }
  0xc6   : > { %v516_v34 = vadd.f32 %v1014_v4, %v515_v31  ;;  %v289_v36 = vsub.f32 1.0, %v282_v32  ;;  %v291_v41 = vmul.f32 %v282_v32, %v1231_v19  ;;  %v501_v47 = vadd.f32 %v500_v21, %v333_v39 }
  0xc7   : > { %v941_v27 = vmul.f32 -1.442695, %v527_v17 }
  0xc8   : > { %v520_v45 = vsel %vm1412_vm10, %v1014_v4, %v516_v34 }
  0xc9   : > { %1015 = vpow2.f32 %v941_v27  ;;  %v525_v49 = vsel %vm522_vm11, %v524_v42, %v520_v45 }
  0xca   : > { %1017 = vtanh.f32 %v287_v30  ;;  %v489_v33 = vpop.f32.mrf.mxu0  ;;  %v547_v29 = vmul.f32 %v525_v49, %v501_v47 }
  0xcc   : > { %v551_v52 = vadd.f32 %v549_v50, %v547_v29 }
  0xcd   : > { %v502_v38 = vpop.f32.mrf.mxu1 }
  0xcf   : > { %v1016_v40 = vpop.eup %1015 }
  0xd0   : > { %v1018_v43 = vpop.eup %1017  ;;  %v531_v44 = vadd.f32 1.0, %v1016_v40 }
  0xd1   : > { %v290_v46 = vmul.f32 %v1018_v43, %v289_v36 }
  0xd2   : > { %1019 = vrcp.f32 %v531_v44  ;;  %v543_v54 = vand.u32 2147483648, %v531_v44  ;;  %v541_v56 = vand.u32 2147483647, %v531_v44  ;;  %vm537_vm13 = vweird.f32 %v531_v44 }
  0xd3   : > { %v292_v48 = vadd.f32 %v291_v41, %v290_v46  ;;  %1021 = vtanh.f32 %v551_v52 }
  0xd4   : > { %v544_v58 = vor.u32 1.1754944e-38, %v543_v54  ;;  %vm542_vm15 = vcmp.eq.f32.partialorder %v541_v56, 8.507059e+37 }
  0xd5   : > { %557 = vst [vmem:[#allocation2] sm:$0x3] %v292_v48 }
  0xd6   : > { %561 = vst [vmem:[%s560_s10] sm:$0x3] %v292_v48 }
  0xd8   : > { %v1020_v51 = vpop.eup %1019 }
  0xd9   : > { %v533_v19 = vmul.f32 %v1020_v51, %v531_v44  ;;  %vm538_vm12 = vweird.f32 %v1020_v51  ;;  %v1022_v62 = vpop.eup %1021 }
  0xda   : > { %vm539_vm14 = vmor %vm537_vm13, %vm538_vm12 }
  0xdb   : > { %v534_v53 = vsub.f32 1.0, %v533_v19 }
  0xdd   : > { %v535_v55 = vmul.f32 %v1020_v51, %v534_v53  ;;  %v565_v2 = vld [vmem:[#allocation4] sm:$0x3] (%p18_p0)  ;;  %v566_v5 = vld [vmem:[#allocation4 + $0x2] sm:$0x3] (%p18_p0)  ;;  %v567_v8 = vld [vmem:[#allocation4 + $0x4] sm:$0x3] (%p18_p0) }
  0xde   :  { %v568_v11 = vld [vmem:[#allocation4 + $0x6] sm:$0x3] (%p18_p0)  ;;  %v569_v15 = vld [vmem:[#allocation4 + $0x8] sm:$0x3] (%p18_p0)  ;;  %v570_v20 = vld [vmem:[#allocation4 + $0xa] sm:$0x3] (%p18_p0) }
  0xdf   : > { %v536_v57 = vadd.f32 %v1020_v51, %v535_v55  ;;  %v571_v24 = vld [vmem:[#allocation4 + $0xc] sm:$0x3] (%p18_p0)  ;;  %v572_v31 = vld [vmem:[#allocation4 + $0xe] sm:$0x3] (%p18_p0)  ;;  %v573_v25 = vld [vmem:[#allocation4 + $0x10] sm:$0x3] (%p18_p0) }
  0xe0   :  { %v574_v38 = vld [vmem:[#allocation4 + $0x12] sm:$0x3] (%p18_p0)  ;;  %v575_v40 = vld [vmem:[#allocation4 + $0x14] sm:$0x3] (%p18_p0)  ;;  %v576_v45 = vld [vmem:[#allocation4 + $0x16] sm:$0x3] (%p18_p0) }
  0xe1   : > { %v540_v59 = vsel %vm539_vm14, %v1020_v51, %v536_v57  ;;  %v577_v50 = vld [vmem:[#allocation4 + $0x18] sm:$0x3] (%p18_p0)  ;;  %v578_v19 = vld [vmem:[#allocation4 + $0x1a] sm:$0x3] (%p18_p0)  ;;  %v579_v56 = vld [vmem:[#allocation4 + $0x1c] sm:$0x3] (%p18_p0) }
  0xe2   : > { %v545_v60 = vsel %vm542_vm15, %v544_v58, %v540_v59  ;;  %v580_v59 = vld [vmem:[#allocation4 + $0x1e] sm:$0x3] (%p18_p0) }
  0xe3   : > { %v553_v61 = vsub.f32 1.0, %v545_v60  ;;  %v555_v0 = vmul.f32 %v545_v60, %v1233_v22 }
  0xe5   : > { %v554_v63 = vmul.f32 %v1022_v62, %v553_v61 }
  0xe6   :  { %20 = sbr.rel (!%p18_p0) target bundleno = 3 (0x3), region = 45 }
  0xe7   : > { %v556_v1 = vadd.f32 %v555_v0, %v554_v63 }
  0xe9   : > { %558 = vst [vmem:[#allocation3] sm:$0x3] %v556_v1 }
  0xea   : > { %564 = vst [vmem:[%s563_s13] sm:$0x3] %v556_v1 }
  0xf1   :  { %v581_v3 = vld [vmem:[#allocation5] sm:$0x3]  ;;  %v582_v6 = vld [vmem:[#allocation5 + $0x2] sm:$0x3]  ;;  %v583_v9 = vld [vmem:[#allocation5 + $0x4] sm:$0x3] }
  0xf2   :  { %v629_v4 = vrot.slane %v581_v3, 6  ;;  %v630_v7 = vrot.slane %v582_v6, 6  ;;  %v631_v10 = vrot.slane %v583_v9, 6  ;;  %v584_v12 = vld [vmem:[#allocation5 + $0x6] sm:$0x3] }
  0xf3   :  { %v632_v14 = vrot.slane %v584_v12, 6  ;;  %v585_v16 = vld [vmem:[#allocation5 + $0x8] sm:$0x3]  ;;  %v586_v23 = vld [vmem:[#allocation5 + $0xa] sm:$0x3] }
  0xf4   :  { %v646_v22 = vsel %vm645_vm0, %v565_v2, %v629_v4  ;;  %v647_v13 = vsel %vm645_vm0, %v566_v5, %v630_v7  ;;  %v648_v17 = vsel %vm645_vm0, %v567_v8, %v631_v10  ;;  %v633_v18 = vrot.slane %v585_v16, 6  ;;  %v587_v28 = vld [vmem:[#allocation5 + $0xc] sm:$0x3]  ;;  %v588_v33 = vld [vmem:[#allocation5 + $0xe] sm:$0x3] }
  0xf5   :  { %678 = vst [vmem:[%s1494_s3] sm:$0xf] %v646_v22  ;;  %v649_v21 = vsel %vm645_vm0, %v568_v11, %v632_v14  ;;  %v634_v27 = vrot.slane %v586_v23, 6  ;;  %v635_v30 = vrot.slane %v587_v28, 6  ;;  %v589_v34 = vld [vmem:[#allocation5 + $0x10] sm:$0x3]  ;;  %v636_v36 = vrot.slane %v588_v33, 6 }
  0xf6   :  { %679 = vst [vmem:[%s1494_s3 + $0x4] sm:$0xf] %v647_v13  ;;  %v650_v26 = vsel %vm645_vm0, %v569_v15, %v633_v18  ;;  %v637_v37 = vrot.slane %v589_v34, 6  ;;  %v590_v39 = vld [vmem:[#allocation5 + $0x12] sm:$0x3] }
  0xf7   :  { %680 = vst [vmem:[%s1494_s3 + $0x8] sm:$0xf] %v648_v17  ;;  %v651_v32 = vsel %vm645_vm0, %v570_v20, %v634_v27  ;;  %v652_v35 = vsel %vm645_vm0, %v571_v24, %v635_v30  ;;  %v653_v41 = vsel %vm645_vm0, %v572_v31, %v636_v36  ;;  %v638_v43 = vrot.slane %v590_v39, 6  ;;  %v591_v44 = vld [vmem:[#allocation5 + $0x14] sm:$0x3] }
  0xf8   :  { %681 = vst [vmem:[%s1494_s3 + $0xc] sm:$0xf] %v649_v21  ;;  %v654_v42 = vsel %vm645_vm0, %v573_v25, %v637_v37  ;;  %v639_v46 = vrot.slane %v591_v44, 6  ;;  %v592_v47 = vld [vmem:[#allocation5 + $0x16] sm:$0x3] }
  0xf9   :  { %682 = vst [vmem:[%s1494_s3 + $0x10] sm:$0xf] %v650_v26  ;;  %v655_v48 = vsel %vm645_vm0, %v574_v38, %v638_v43  ;;  %v640_v49 = vrot.slane %v592_v47, 6  ;;  %v593_v51 = vld [vmem:[#allocation5 + $0x18] sm:$0x3] }
  0xfa   :  { %683 = vst [vmem:[%s1494_s3 + $0x14] sm:$0xf] %v651_v32  ;;  %v656_v29 = vsel %vm645_vm0, %v575_v40, %v639_v46  ;;  %v641_v53 = vrot.slane %v593_v51, 6  ;;  %v594_v54 = vld [vmem:[#allocation5 + $0x1a] sm:$0x3] }
  0xfb   :  { %684 = vst [vmem:[%s1494_s3 + $0x18] sm:$0xf] %v652_v35  ;;  %v657_v52 = vsel %vm645_vm0, %v576_v45, %v640_v49  ;;  %v642_v55 = vrot.slane %v594_v54, 6  ;;  %v595_v58 = vld [vmem:[#allocation5 + $0x1c] sm:$0x3] }
  0xfc   :  { %685 = vst [vmem:[%s1494_s3 + $0x1c] sm:$0xf] %v653_v41  ;;  %v658_v57 = vsel %vm645_vm0, %v577_v50, %v641_v53  ;;  %v596_v60 = vld [vmem:[#allocation5 + $0x1e] sm:$0x3]  ;;  %v643_v62 = vrot.slane %v595_v58, 6 }
  0xfd   :  { %686 = vst [vmem:[%s1494_s3 + $0x20] sm:$0xf] %v654_v42  ;;  %v659_v61 = vsel %vm645_vm0, %v578_v19, %v642_v55  ;;  %v644_v63 = vrot.slane %v596_v60, 6 }
  0xfe   :  { %687 = vst [vmem:[%s1494_s3 + $0x24] sm:$0xf] %v655_v48  ;;  %v660_v0 = vsel %vm645_vm0, %v579_v56, %v643_v62 }
  0xff   :  { %688 = vst [vmem:[%s1494_s3 + $0x28] sm:$0xf] %v656_v29  ;;  %v661_v1 = vsel %vm645_vm0, %v580_v59, %v644_v63 }
 0x100   :  { %689 = vst [vmem:[%s1494_s3 + $0x2c] sm:$0xf] %v657_v52 }
 0x101   :  { %690 = vst [vmem:[%s1494_s3 + $0x30] sm:$0xf] %v658_v57 }
 0x102   :  { %691 = vst [vmem:[%s1494_s3 + $0x34] sm:$0xf] %v659_v61 }
 0x103   :  { %692 = vst [vmem:[%s1494_s3 + $0x38] sm:$0xf] %v660_v0 }
 0x104   :  { %693 = vst [vmem:[%s1494_s3 + $0x3c] sm:$0xf] %v661_v1 }

// kernel: ampnet_forward.17
= control target key start
LH: loop header
LB: loop body
LE: loop exit
PB: predicated region body
PF: predicated region fallthrough
CT: control target
= control target key end

     0   :  { %s2087_s1 = inlined_call_operand.vmem [shape: bf16[256,768], index: 1, kind: input, shape index: {}]   ;;  %s2088_s0 = inlined_call_operand.vmem [shape: f32[32,256], index: 0, kind: input, shape index: {}]   ;;  %s2089_s2 = inlined_call_operand.vmem [shape: f32[1,768], index: 2, kind: input, shape index: {}]   ;;  %s2090_s3 = inlined_call_operand.vmem [shape: f32[32,768], index: 3, kind: output, shape index: {}]  }
   0x1   :  { %v1042_v0 = vld [vmem:[%s2087_s1 + $0x150] sm:$0xf]  ;;  %v1301_v1 = vld [vmem:[%s2087_s1 + $0x164] sm:$0xf0]  ;;  %v1298_v5 = vld [vmem:[%s2087_s1 + $0x154] sm:$0xf] }
   0x2   :  { %v1234_v2 = vld [vmem:[%s2087_s1 + $0x2d0] sm:$0xf]  ;;  %v1043_v3 = vor.u32 %v1301_v1, %v1042_v0  ;;  %v1349_v4 = vld [vmem:[%s2087_s1 + $0x2e4] sm:$0xf0]  ;;  %v1044_v6 = vld [vmem:[%s2087_s1 + $0x168] sm:$0xf0] }
   0x3   :  { %v1235_v7 = vor.u32 %v1349_v4, %v1234_v2  ;;  %v1047_v8 = vor.u32 %v1298_v5, %v1044_v6  ;;  %v1346_v9 = vld [vmem:[%s2087_s1 + $0x2d4] sm:$0xf]  ;;  %v1236_v10 = vld [vmem:[%s2087_s1 + $0x2e8] sm:$0xf0]  ;;  %v1018_v11 = vld [vmem:[%s2087_s1 + $0x120] sm:$0xf] }
   0x4   :  { %616 = vmatpush.bf16.msra.mxu0 %v1043_v3  ;;  %v1239_v12 = vor.u32 %v1346_v9, %v1236_v10  ;;  %v1295_v13 = vld [vmem:[%s2087_s1 + $0x134] sm:$0xf0]  ;;  %v1210_v14 = vld [vmem:[%s2087_s1 + $0x2a0] sm:$0xf]  ;;  %v1292_v18 = vld [vmem:[%s2087_s1 + $0x124] sm:$0xf] }
   0x5   :  { %v1343_v15 = vld [vmem:[%s2087_s1 + $0x2b4] sm:$0xf0]  ;;  %635 = vmatpush.bf16.msra.mxu1 %v1235_v7  ;;  %654 = vmatpush.bf16.msra.mxu2 %v1047_v8  ;;  %v1019_v16 = vor.u32 %v1295_v13, %v1018_v11  ;;  %v1020_v19 = vld [vmem:[%s2087_s1 + $0x138] sm:$0xf0]  ;;  %v1340_v20 = vld [vmem:[%s2087_s1 + $0x2a4] sm:$0xf] }
   0x6   :  { %v1211_v17 = vor.u32 %v1343_v15, %v1210_v14  ;;  %673 = vmatpush.bf16.msra.mxu3 %v1239_v12  ;;  %v1023_v21 = vor.u32 %v1292_v18, %v1020_v19  ;;  %v1212_v22 = vld [vmem:[%s2087_s1 + $0x2b8] sm:$0xf0]  ;;  %v994_v23 = vld [vmem:[%s2087_s1 + $0xf0] sm:$0xf]  ;;  %v1289_v24 = vld [vmem:[%s2087_s1 + $0x104] sm:$0xf0] }
   0x7   :  { %v1215_v25 = vor.u32 %v1340_v20, %v1212_v22  ;;  %v1186_v26 = vld [vmem:[%s2087_s1 + $0x270] sm:$0xf]  ;;  %v1337_v27 = vld [vmem:[%s2087_s1 + $0x284] sm:$0xf0]  ;;  %v1286_v28 = vld [vmem:[%s2087_s1 + $0xf4] sm:$0xf]  ;;  %v995_v29 = vor.u32 %v1289_v24, %v994_v23 }
   0x8   :  { %617 = vmatpush.bf16.msra.mxu0 %v1019_v16  ;;  %v996_v30 = vld [vmem:[%s2087_s1 + $0x108] sm:$0xf0]  ;;  %v1334_v31 = vld [vmem:[%s2087_s1 + $0x274] sm:$0xf]  ;;  %v1187_v33 = vor.u32 %v1337_v27, %v1186_v26  ;;  %v970_v35 = vld [vmem:[%s2087_s1 + $0xc0] sm:$0xf] }
   0x9   :  { %v1188_v32 = vld [vmem:[%s2087_s1 + $0x288] sm:$0xf0]  ;;  %636 = vmatpush.bf16.msra.mxu1 %v1211_v17  ;;  %655 = vmatpush.bf16.msra.mxu2 %v1023_v21  ;;  %v999_v34 = vor.u32 %v1286_v28, %v996_v30  ;;  %v1283_v36 = vld [vmem:[%s2087_s1 + $0xd4] sm:$0xf0]  ;;  %v1162_v37 = vld [vmem:[%s2087_s1 + $0x240] sm:$0xf] }
   0xa   :  { %674 = vmatpush.bf16.msra.mxu3 %v1215_v25  ;;  %v1191_v38 = vor.u32 %v1334_v31, %v1188_v32  ;;  %v1331_v39 = vld [vmem:[%s2087_s1 + $0x254] sm:$0xf0]  ;;  %v1280_v40 = vld [vmem:[%s2087_s1 + $0xc4] sm:$0xf]  ;;  %v972_v41 = vld [vmem:[%s2087_s1 + $0xd8] sm:$0xf0]  ;;  %v971_v44 = vor.u32 %v1283_v36, %v970_v35 }
   0xb   :  { %v1328_v42 = vld [vmem:[%s2087_s1 + $0x244] sm:$0xf]  ;;  %v1164_v43 = vld [vmem:[%s2087_s1 + $0x258] sm:$0xf0]  ;;  %v1163_v45 = vor.u32 %v1331_v39, %v1162_v37  ;;  %v975_v46 = vor.u32 %v1280_v40, %v972_v41  ;;  %v946_v47 = vld [vmem:[%s2087_s1 + $0x90] sm:$0xf] }
   0xc   :  { %618 = vmatpush.bf16.msra.mxu0 %v995_v29  ;;  %v1277_v48 = vld [vmem:[%s2087_s1 + $0xa4] sm:$0xf0]  ;;  %v1138_v49 = vld [vmem:[%s2087_s1 + $0x210] sm:$0xf]  ;;  %v1167_v50 = vor.u32 %v1328_v42, %v1164_v43  ;;  %v1274_v52 = vld [vmem:[%s2087_s1 + $0x94] sm:$0xf] }
   0xd   :  { %637 = vmatpush.bf16.msra.mxu1 %v1187_v33  ;;  %656 = vmatpush.bf16.msra.mxu2 %v999_v34  ;;  %v1325_v51 = vld [vmem:[%s2087_s1 + $0x224] sm:$0xf0]  ;;  %v948_v53 = vld [vmem:[%s2087_s1 + $0xa8] sm:$0xf0]  ;;  %v1322_v54 = vld [vmem:[%s2087_s1 + $0x214] sm:$0xf]  ;;  %v947_v56 = vor.u32 %v1277_v48, %v946_v47 }
   0xe   :  { %675 = vmatpush.bf16.msra.mxu3 %v1191_v38  ;;  %v1140_v55 = vld [vmem:[%s2087_s1 + $0x228] sm:$0xf0]  ;;  %v1139_v57 = vor.u32 %v1325_v51, %v1138_v49  ;;  %v951_v58 = vor.u32 %v1274_v52, %v948_v53  ;;  %v922_v59 = vld [vmem:[%s2087_s1 + $0x60] sm:$0xf]  ;;  %v1271_v60 = vld [vmem:[%s2087_s1 + $0x74] sm:$0xf0] }
   0xf   :  { %v1114_v61 = vld [vmem:[%s2087_s1 + $0x1e0] sm:$0xf]  ;;  %v1143_v62 = vor.u32 %v1322_v54, %v1140_v55  ;;  %v1319_v63 = vld [vmem:[%s2087_s1 + $0x1f4] sm:$0xf0]  ;;  %v1268_v0 = vld [vmem:[%s2087_s1 + $0x64] sm:$0xf]  ;;  %v923_v4 = vor.u32 %v1271_v60, %v922_v59 }
  0x10   :  { %619 = vmatpush.bf16.msra.mxu0 %v971_v44  ;;  %v924_v1 = vld [vmem:[%s2087_s1 + $0x78] sm:$0xf0]  ;;  %v1316_v2 = vld [vmem:[%s2087_s1 + $0x1e4] sm:$0xf]  ;;  %v1115_v5 = vor.u32 %v1319_v63, %v1114_v61  ;;  %v898_v7 = vld [vmem:[%s2087_s1 + $0x30] sm:$0xf] }
  0x11   :  { %638 = vmatpush.bf16.msra.mxu1 %v1163_v45  ;;  %657 = vmatpush.bf16.msra.mxu2 %v975_v46  ;;  %v1116_v3 = vld [vmem:[%s2087_s1 + $0x1f8] sm:$0xf0]  ;;  %v927_v6 = vor.u32 %v1268_v0, %v924_v1  ;;  %v1265_v8 = vld [vmem:[%s2087_s1 + $0x44] sm:$0xf0]  ;;  %v1090_v9 = vld [vmem:[%s2087_s1 + $0x1b0] sm:$0xf] }
  0x12   :  { %676 = vmatpush.bf16.msra.mxu3 %v1167_v50  ;;  %v1119_v10 = vor.u32 %v1316_v2, %v1116_v3  ;;  %v1313_v11 = vld [vmem:[%s2087_s1 + $0x1c4] sm:$0xf0]  ;;  %v1262_v12 = vld [vmem:[%s2087_s1 + $0x34] sm:$0xf]  ;;  %v900_v13 = vld [vmem:[%s2087_s1 + $0x48] sm:$0xf0]  ;;  %v899_v16 = vor.u32 %v1265_v8, %v898_v7 }
  0x13   :  { %v1310_v14 = vld [vmem:[%s2087_s1 + $0x1b4] sm:$0xf]  ;;  %v1092_v15 = vld [vmem:[%s2087_s1 + $0x1c8] sm:$0xf0]  ;;  %v874_v17 = vld [vmem:[%s2087_s1] sm:$0xf]  ;;  %v1091_v19 = vor.u32 %v1313_v11, %v1090_v9  ;;  %v903_v20 = vor.u32 %v1262_v12, %v900_v13 }
  0x14   :  { %620 = vmatpush.bf16.msra.mxu0 %v947_v56  ;;  %v1259_v18 = vld [vmem:[%s2087_s1 + $0x14] sm:$0xf0]  ;;  %v1066_v21 = vld [vmem:[%s2087_s1 + $0x180] sm:$0xf]  ;;  %v1256_v23 = vld [vmem:[%s2087_s1 + $0x4] sm:$0xf]  ;;  %v1095_v24 = vor.u32 %v1310_v14, %v1092_v15 }
  0x15   :  { %639 = vmatpush.bf16.msra.mxu1 %v1139_v57  ;;  %658 = vmatpush.bf16.msra.mxu2 %v951_v58  ;;  %v1307_v22 = vld [vmem:[%s2087_s1 + $0x194] sm:$0xf0]  ;;  %v876_v25 = vld [vmem:[%s2087_s1 + $0x18] sm:$0xf0]  ;;  %v1304_v26 = vld [vmem:[%s2087_s1 + $0x184] sm:$0xf]  ;;  %v875_v31 = vor.u32 %v1259_v18, %v874_v17 }
  0x16   :  { %677 = vmatpush.bf16.msra.mxu3 %v1143_v62  ;;  %v1068_v27 = vld [vmem:[%s2087_s1 + $0x198] sm:$0xf0]  ;;  %v14_v28 = vld [vmem:[%s2088_s0] sm:$0xff]  ;;  %v1052_v30 = vld [vmem:[%s2087_s1 + $0x170] sm:$0xf0]  ;;  %v1067_v35 = vor.u32 %v1307_v22, %v1066_v21  ;;  %v879_v36 = vor.u32 %v1256_v23, %v876_v25 }
  0x17   :  { %v1299_v29 = vld [vmem:[%s2087_s1 + $0x15c] sm:$0xf]  ;;  %v16_v32 = vld [vmem:[%s2088_s0 + $0x10] sm:$0xff]  ;;  %v1242_v33 = vld [vmem:[%s2087_s1 + $0x2d8] sm:$0xf]  ;;  %v1071_v39 = vor.u32 %v1304_v26, %v1068_v27 }
  0x18   :  { %621 = vmatpush.bf16.msra.mxu0 %v923_v4  ;;  %v1350_v34 = vld [vmem:[%s2087_s1 + $0x2ec] sm:$0xf0]  ;;  %v15_v37 = vld [vmem:[%s2088_s0 + $0x8] sm:$0xff]  ;;  %v17_v38 = vld [vmem:[%s2088_s0 + $0x18] sm:$0xff]  ;;  %v1055_v40 = vor.u32 %v1299_v29, %v1052_v30  ;;  %v1597_v44 = vpack.c.bf16 %v16_v32, %v14_v28 }
  0x19   :  { %640 = vmatpush.bf16.msra.mxu1 %v1115_v5  ;;  %659 = vmatpush.bf16.msra.mxu2 %v927_v6  ;;  %v1050_v41 = vld [vmem:[%s2087_s1 + $0x158] sm:$0xf]  ;;  %v1302_v42 = vld [vmem:[%s2087_s1 + $0x16c] sm:$0xf0]  ;;  %v1347_v43 = vld [vmem:[%s2087_s1 + $0x2dc] sm:$0xf]  ;;  %v1243_v45 = vor.u32 %v1350_v34, %v1242_v33  ;;  %v1608_v49 = vpack.c.bf16 %v17_v38, %v15_v37 }
  0x1a   :  { %678 = vmatpush.bf16.msra.mxu3 %v1119_v10  ;;  %v1244_v46 = vld [vmem:[%s2087_s1 + $0x2f0] sm:$0xf0]  ;;  %v1293_v47 = vld [vmem:[%s2087_s1 + $0x12c] sm:$0xf]  ;;  %v1028_v48 = vld [vmem:[%s2087_s1 + $0x140] sm:$0xf0]  ;;  %v1051_v52 = vor.u32 %v1302_v42, %v1050_v41 }
  0x1b   :  { %v1218_v50 = vld [vmem:[%s2087_s1 + $0x2a8] sm:$0xf]  ;;  %v1344_v51 = vld [vmem:[%s2087_s1 + $0x2bc] sm:$0xf0]  ;;  %v1247_v53 = vor.u32 %v1347_v43, %v1244_v46  ;;  %v1031_v54 = vor.u32 %v1293_v47, %v1028_v48  ;;  %v1341_v57 = vld [vmem:[%s2087_s1 + $0x2ac] sm:$0xf] }
  0x1c   :  { %622 = vmatpush.bf16.msra.mxu0 %v899_v16  ;;  %v1026_v55 = vld [vmem:[%s2087_s1 + $0x128] sm:$0xf]  ;;  %v1296_v56 = vld [vmem:[%s2087_s1 + $0x13c] sm:$0xf0]  ;;  %v1219_v58 = vor.u32 %v1344_v51, %v1218_v50  ;;  %v1220_v59 = vld [vmem:[%s2087_s1 + $0x2c0] sm:$0xf0] }
  0x1d   :  { %641 = vmatpush.bf16.msra.mxu1 %v1091_v19  ;;  %660 = vmatpush.bf16.msra.mxu2 %v903_v20  ;;  %v1287_v60 = vld [vmem:[%s2087_s1 + $0xfc] sm:$0xf]  ;;  %v1004_v61 = vld [vmem:[%s2087_s1 + $0x110] sm:$0xf0]  ;;  %v1194_v62 = vld [vmem:[%s2087_s1 + $0x278] sm:$0xf]  ;;  %v1027_v0 = vor.u32 %v1296_v56, %v1026_v55  ;;  %v1223_v1 = vor.u32 %v1341_v57, %v1220_v59 }
  0x1e   :  { %679 = vmatpush.bf16.msra.mxu3 %v1095_v24  ;;  %v1338_v63 = vld [vmem:[%s2087_s1 + $0x28c] sm:$0xf0]  ;;  %v1007_v2 = vor.u32 %v1287_v60, %v1004_v61  ;;  %v1002_v3 = vld [vmem:[%s2087_s1 + $0xf8] sm:$0xf]  ;;  %v1335_v5 = vld [vmem:[%s2087_s1 + $0x27c] sm:$0xf] }
  0x1f   :  { %v1290_v4 = vld [vmem:[%s2087_s1 + $0x10c] sm:$0xf0]  ;;  %v1195_v6 = vor.u32 %v1338_v63, %v1194_v62  ;;  %v1196_v7 = vld [vmem:[%s2087_s1 + $0x290] sm:$0xf0]  ;;  %v1281_v8 = vld [vmem:[%s2087_s1 + $0xcc] sm:$0xf] }
  0x20   :  { %623 = vmatpush.bf16.msra.mxu0 %v875_v31  ;;  %v980_v9 = vld [vmem:[%s2087_s1 + $0xe0] sm:$0xf0]  ;;  %v1170_v10 = vld [vmem:[%s2087_s1 + $0x248] sm:$0xf]  ;;  %v1332_v11 = vld [vmem:[%s2087_s1 + $0x25c] sm:$0xf0]  ;;  %v1003_v12 = vor.u32 %v1290_v4, %v1002_v3  ;;  %v1199_v14 = vor.u32 %v1335_v5, %v1196_v7 }
  0x21   :  { %642 = vmatpush.bf16.msra.mxu1 %v1067_v35  ;;  %661 = vmatpush.bf16.msra.mxu2 %v879_v36  ;;  %v978_v13 = vld [vmem:[%s2087_s1 + $0xc8] sm:$0xf]  ;;  %v983_v15 = vor.u32 %v1281_v8, %v980_v9  ;;  %v1284_v16 = vld [vmem:[%s2087_s1 + $0xdc] sm:$0xf0]  ;;  %v1329_v17 = vld [vmem:[%s2087_s1 + $0x24c] sm:$0xf]  ;;  %v1171_v19 = vor.u32 %v1332_v11, %v1170_v10 }
  0x22   :  { %680 = vmatpush.bf16.msra.mxu3 %v1071_v39  ;;  %v1172_v18 = vld [vmem:[%s2087_s1 + $0x260] sm:$0xf0]  ;;  %v1275_v21 = vld [vmem:[%s2087_s1 + $0x9c] sm:$0xf]  ;;  %v956_v22 = vld [vmem:[%s2087_s1 + $0xb0] sm:$0xf0]  ;;  %v979_v26 = vor.u32 %v1284_v16, %v978_v13 }
  0x23   :  { %624 = vmatmul.bf16.vlgmr.msra.gmra.mxu0 %v1597_v44  ;;  %v18_v20 = vld [vmem:[%s2088_s0 + $0x20] sm:$0xff]  ;;  %v20_v23 = vld [vmem:[%s2088_s0 + $0x30] sm:$0xff]  ;;  %v1146_v24 = vld [vmem:[%s2087_s1 + $0x218] sm:$0xf]  ;;  %v1175_v29 = vor.u32 %v1329_v17, %v1172_v18  ;;  %v959_v30 = vor.u32 %v1275_v21, %v956_v22 }
  0x24   :  { %643 = vmatmul.bf16.vlgmr.msra.gmra.mxu1 %v1608_v49  ;;  %662 = vmatmul.bf16.vlgmr.msra.gmra.mxu2 %v1597_v44  ;;  %v1326_v25 = vld [vmem:[%s2087_s1 + $0x22c] sm:$0xf0]  ;;  %v19_v27 = vld [vmem:[%s2088_s0 + $0x28] sm:$0xff]  ;;  %v21_v28 = vld [vmem:[%s2088_s0 + $0x38] sm:$0xff]  ;;  %v1713_v34 = vpack.c.bf16 %v20_v23, %v18_v20 }
  0x25   :  { %730 = vmatpush.bf16.msrb.mxu2 %v1055_v40  ;;  %711 = vmatpush.bf16.msrb.mxu1 %v1243_v45  ;;  %v954_v31 = vld [vmem:[%s2087_s1 + $0x98] sm:$0xf]  ;;  %v1278_v32 = vld [vmem:[%s2087_s1 + $0xac] sm:$0xf0]  ;;  %v1323_v33 = vld [vmem:[%s2087_s1 + $0x21c] sm:$0xf]  ;;  %v1147_v35 = vor.u32 %v1326_v25, %v1146_v24  ;;  %v1724_v39 = vpack.c.bf16 %v21_v28, %v19_v27 }
  0x26   :  { %681 = vmatmul.bf16.vlgmr.msra.gmra.mxu3 %v1608_v49  ;;  %692 = vmatpush.bf16.msrb.mxu0 %v1051_v52  ;;  %v1148_v36 = vld [vmem:[%s2087_s1 + $0x230] sm:$0xf0]  ;;  %v1269_v37 = vld [vmem:[%s2087_s1 + $0x6c] sm:$0xf]  ;;  %v932_v38 = vld [vmem:[%s2087_s1 + $0x80] sm:$0xf0]  ;;  %v955_v42 = vor.u32 %v1278_v32, %v954_v31 }
  0x27   :  { %749 = vmatpush.bf16.msrb.mxu3 %v1247_v53  ;;  %v1122_v40 = vld [vmem:[%s2087_s1 + $0x1e8] sm:$0xf]  ;;  %v1320_v41 = vld [vmem:[%s2087_s1 + $0x1fc] sm:$0xf0]  ;;  %v1151_v43 = vor.u32 %v1323_v33, %v1148_v36  ;;  %v935_v45 = vor.u32 %v1269_v37, %v932_v38  ;;  %v1317_v48 = vld [vmem:[%s2087_s1 + $0x1ec] sm:$0xf] }
  0x28   :  { %v930_v46 = vld [vmem:[%s2087_s1 + $0x68] sm:$0xf]  ;;  %v1272_v47 = vld [vmem:[%s2087_s1 + $0x7c] sm:$0xf0]  ;;  %v1123_v50 = vor.u32 %v1320_v41, %v1122_v40  ;;  %v1124_v51 = vld [vmem:[%s2087_s1 + $0x200] sm:$0xf0] }
  0x29   :  { %731 = vmatpush.bf16.msrb.mxu2 %v1031_v54  ;;  %712 = vmatpush.bf16.msrb.mxu1 %v1219_v58  ;;  %v1263_v52 = vld [vmem:[%s2087_s1 + $0x3c] sm:$0xf]  ;;  %v908_v53 = vld [vmem:[%s2087_s1 + $0x50] sm:$0xf0]  ;;  %v1098_v54 = vld [vmem:[%s2087_s1 + $0x1b8] sm:$0xf]  ;;  %v931_v56 = vor.u32 %v1272_v47, %v930_v46  ;;  %v1127_v58 = vor.u32 %v1317_v48, %v1124_v51 }
  0x2a   :  { %693 = vmatpush.bf16.msrb.mxu0 %v1027_v0  ;;  %v1314_v55 = vld [vmem:[%s2087_s1 + $0x1cc] sm:$0xf0]  ;;  %v906_v57 = vld [vmem:[%s2087_s1 + $0x38] sm:$0xf]  ;;  %v911_v59 = vor.u32 %v1263_v52, %v908_v53  ;;  %v1311_v61 = vld [vmem:[%s2087_s1 + $0x1bc] sm:$0xf] }
  0x2b   :  { %750 = vmatpush.bf16.msrb.mxu3 %v1223_v1  ;;  %v1266_v60 = vld [vmem:[%s2087_s1 + $0x4c] sm:$0xf0]  ;;  %v1100_v62 = vld [vmem:[%s2087_s1 + $0x1d0] sm:$0xf0]  ;;  %v1099_v63 = vor.u32 %v1314_v55, %v1098_v54  ;;  %v1257_v0 = vld [vmem:[%s2087_s1 + $0xc] sm:$0xf] }
  0x2c   :  { %v884_v1 = vld [vmem:[%s2087_s1 + $0x20] sm:$0xf0]  ;;  %v1308_v3 = vld [vmem:[%s2087_s1 + $0x19c] sm:$0xf0]  ;;  %v1060_v5 = vld [vmem:[%s2087_s1 + $0x178] sm:$0xf0]  ;;  %v1103_v10 = vor.u32 %v1311_v61, %v1100_v62 }
  0x2d   :  { %732 = vmatpush.bf16.msrb.mxu2 %v1007_v2  ;;  %713 = vmatpush.bf16.msrb.mxu1 %v1195_v6  ;;  %v1074_v2 = vld [vmem:[%s2087_s1 + $0x188] sm:$0xf]  ;;  %v1300_v4 = vld [vmem:[%s2087_s1 + $0x164] sm:$0xf]  ;;  %v907_v6 = vor.u32 %v1266_v60, %v906_v57  ;;  %v1250_v8 = vld [vmem:[%s2087_s1 + $0x2e0] sm:$0xf]  ;;  %v887_v11 = vor.u32 %v1257_v0, %v884_v1 }
  0x2e   :  { %694 = vmatpush.bf16.msrb.mxu0 %v1003_v12  ;;  %v882_v7 = vld [vmem:[%s2087_s1 + $0x8] sm:$0xf]  ;;  %v1351_v9 = vld [vmem:[%s2087_s1 + $0x2f4] sm:$0xf0]  ;;  %v1260_v12 = vld [vmem:[%s2087_s1 + $0x1c] sm:$0xf0]  ;;  %v1063_v16 = vor.u32 %v1300_v4, %v1060_v5 }
  0x2f   :  { %751 = vmatpush.bf16.msrb.mxu3 %v1199_v14  ;;  %v1305_v13 = vld [vmem:[%s2087_s1 + $0x18c] sm:$0xf]  ;;  %v1076_v14 = vld [vmem:[%s2087_s1 + $0x1a0] sm:$0xf0]  ;;  %v1058_v17 = vld [vmem:[%s2087_s1 + $0x160] sm:$0xf]  ;;  %v1251_v20 = vor.u32 %v1351_v9, %v1250_v8  ;;  %v883_v24 = vor.u32 %v1260_v12, %v882_v7 }
  0x30   :  { %v1303_v18 = vld [vmem:[%s2087_s1 + $0x174] sm:$0xf0]  ;;  %v1252_v21 = vld [vmem:[%s2087_s1 + $0x2f8] sm:$0xf0]  ;;  %v1294_v22 = vld [vmem:[%s2087_s1 + $0x134] sm:$0xf]  ;;  %v1079_v25 = vor.u32 %v1305_v13, %v1076_v14 }
  0x31   :  { %733 = vmatpush.bf16.msrb.mxu2 %v983_v15  ;;  %714 = vmatpush.bf16.msrb.mxu1 %v1171_v19  ;;  %v1075_v15 = vor.u32 %v1308_v3, %v1074_v2  ;;  %v1348_v19 = vld [vmem:[%s2087_s1 + $0x2e4] sm:$0xf]  ;;  %v1036_v23 = vld [vmem:[%s2087_s1 + $0x148] sm:$0xf0]  ;;  %v1034_v27 = vld [vmem:[%s2087_s1 + $0x130] sm:$0xf] }
  0x32   :  { %695 = vmatpush.bf16.msrb.mxu0 %v979_v26  ;;  %v1059_v26 = vor.u32 %v1303_v18, %v1058_v17  ;;  %v1297_v28 = vld [vmem:[%s2087_s1 + $0x144] sm:$0xf0]  ;;  %v1226_v31 = vld [vmem:[%s2087_s1 + $0x2b0] sm:$0xf]  ;;  %v1342_v33 = vld [vmem:[%s2087_s1 + $0x2b4] sm:$0xf] }
  0x33   :  { %752 = vmatpush.bf16.msrb.mxu3 %v1175_v29  ;;  %629 = vmatmul.bf16.gmra.mxu0 %v1713_v34  ;;  %v1255_v29 = vor.u32 %v1348_v19, %v1252_v21  ;;  %v1345_v32 = vld [vmem:[%s2087_s1 + $0x2c4] sm:$0xf0]  ;;  %v1288_v36 = vld [vmem:[%s2087_s1 + $0x104] sm:$0xf]  ;;  %v1012_v37 = vld [vmem:[%s2087_s1 + $0x118] sm:$0xf0]  ;;  %v1035_v38 = vor.u32 %v1297_v28, %v1034_v27 }
  0x34   :  { %648 = vmatmul.bf16.gmra.mxu1 %v1724_v39  ;;  %667 = vmatmul.bf16.gmra.mxu2 %v1713_v34  ;;  %v1227_v40 = vor.u32 %v1345_v32, %v1226_v31  ;;  %v1010_v41 = vld [vmem:[%s2087_s1 + $0x100] sm:$0xf]  ;;  %v1339_v47 = vld [vmem:[%s2087_s1 + $0x294] sm:$0xf0]  ;;  %v1336_v48 = vld [vmem:[%s2087_s1 + $0x284] sm:$0xf] }
  0x35   :  { %734 = vmatpush.bf16.msrb.mxu2 %v959_v30  ;;  %715 = vmatpush.bf16.msrb.mxu1 %v1147_v35  ;;  %v1039_v30 = vor.u32 %v1294_v22, %v1036_v23  ;;  %v1228_v35 = vld [vmem:[%s2087_s1 + $0x2c8] sm:$0xf0]  ;;  %v1202_v46 = vld [vmem:[%s2087_s1 + $0x280] sm:$0xf]  ;;  %v1282_v51 = vld [vmem:[%s2087_s1 + $0xd4] sm:$0xf] }
  0x36   :  { %686 = vmatmul.bf16.gmra.mxu3 %v1724_v39  ;;  %696 = vmatpush.bf16.msrb.mxu0 %v955_v42  ;;  %v1291_v42 = vld [vmem:[%s2087_s1 + $0x114] sm:$0xf0]  ;;  %v988_v52 = vld [vmem:[%s2087_s1 + $0xe8] sm:$0xf0]  ;;  %v1203_v54 = vor.u32 %v1339_v47, %v1202_v46  ;;  %v986_v55 = vld [vmem:[%s2087_s1 + $0xd0] sm:$0xf] }
  0x37   :  { %753 = vmatpush.bf16.msrb.mxu3 %v1151_v43  ;;  %v1231_v43 = vor.u32 %v1342_v33, %v1228_v35  ;;  %v1011_v53 = vor.u32 %v1291_v42, %v1010_v41  ;;  %v1333_v60 = vld [vmem:[%s2087_s1 + $0x264] sm:$0xf0]  ;;  %v1330_v61 = vld [vmem:[%s2087_s1 + $0x254] sm:$0xf]  ;;  %v1180_v62 = vld [vmem:[%s2087_s1 + $0x268] sm:$0xf0] }
  0x38   :  { %v964_v0 = vld [vmem:[%s2087_s1 + $0xb8] sm:$0xf0]  ;;  %v962_v3 = vld [vmem:[%s2087_s1 + $0xa0] sm:$0xf]  ;;  %v1279_v4 = vld [vmem:[%s2087_s1 + $0xb4] sm:$0xf0]  ;;  %v1183_v5 = vor.u32 %v1330_v61, %v1180_v62 }
  0x39   :  { %735 = vmatpush.bf16.msrb.mxu2 %v935_v45  ;;  %716 = vmatpush.bf16.msrb.mxu1 %v1123_v50  ;;  %v1015_v45 = vor.u32 %v1288_v36, %v1012_v37  ;;  %v1204_v50 = vld [vmem:[%s2087_s1 + $0x298] sm:$0xf0]  ;;  %v1154_v7 = vld [vmem:[%s2087_s1 + $0x220] sm:$0xf]  ;;  %v1327_v8 = vld [vmem:[%s2087_s1 + $0x234] sm:$0xf0]  ;;  %v963_v13 = vor.u32 %v1279_v4, %v962_v3 }
  0x3a   :  { %697 = vmatpush.bf16.msrb.mxu0 %v931_v56  ;;  %v1285_v56 = vld [vmem:[%s2087_s1 + $0xe4] sm:$0xf0]  ;;  %v1207_v57 = vor.u32 %v1336_v48, %v1204_v50  ;;  %v1324_v9 = vld [vmem:[%s2087_s1 + $0x224] sm:$0xf]  ;;  %v940_v12 = vld [vmem:[%s2087_s1 + $0x88] sm:$0xf0]  ;;  %v1155_v14 = vor.u32 %v1327_v8, %v1154_v7 }
  0x3b   :  { %754 = vmatpush.bf16.msrb.mxu3 %v1127_v58  ;;  %v991_v58 = vor.u32 %v1282_v51, %v988_v52  ;;  %v987_v1 = vor.u32 %v1285_v56, %v986_v55  ;;  %v1130_v19 = vld [vmem:[%s2087_s1 + $0x1f0] sm:$0xf]  ;;  %v1318_v21 = vld [vmem:[%s2087_s1 + $0x1f4] sm:$0xf]  ;;  %v1132_v22 = vld [vmem:[%s2087_s1 + $0x208] sm:$0xf0] }
  0x3c   :  { %v1264_v23 = vld [vmem:[%s2087_s1 + $0x44] sm:$0xf]  ;;  %v914_v27 = vld [vmem:[%s2087_s1 + $0x40] sm:$0xf]  ;;  %v1267_v28 = vld [vmem:[%s2087_s1 + $0x54] sm:$0xf0] }
  0x3d   :  { %736 = vmatpush.bf16.msrb.mxu2 %v911_v59  ;;  %717 = vmatpush.bf16.msrb.mxu1 %v1099_v63  ;;  %v1178_v59 = vld [vmem:[%s2087_s1 + $0x250] sm:$0xf]  ;;  %v1276_v63 = vld [vmem:[%s2087_s1 + $0xa4] sm:$0xf]  ;;  %v1106_v31 = vld [vmem:[%s2087_s1 + $0x1c0] sm:$0xf] }
  0x3e   :  { %698 = vmatpush.bf16.msrb.mxu0 %v907_v6  ;;  %v1179_v2 = vor.u32 %v1333_v60, %v1178_v59  ;;  %v967_v6 = vor.u32 %v1276_v63, %v964_v0  ;;  %v1315_v32 = vld [vmem:[%s2087_s1 + $0x1d4] sm:$0xf0]  ;;  %v1312_v33 = vld [vmem:[%s2087_s1 + $0x1c4] sm:$0xf]  ;;  %v1108_v35 = vld [vmem:[%s2087_s1 + $0x1d8] sm:$0xf0] }
  0x3f   :  { %755 = vmatpush.bf16.msrb.mxu3 %v1103_v10  ;;  %v1156_v10 = vld [vmem:[%s2087_s1 + $0x238] sm:$0xf0]  ;;  %v1258_v36 = vld [vmem:[%s2087_s1 + $0x14] sm:$0xf]  ;;  %v892_v37 = vld [vmem:[%s2087_s1 + $0x28] sm:$0xf0]  ;;  %v1111_v42 = vor.u32 %v1312_v33, %v1108_v35 }
  0x40   :  { %v1159_v17 = vor.u32 %v1324_v9, %v1156_v10  ;;  %v890_v41 = vld [vmem:[%s2087_s1 + $0x10] sm:$0xf]  ;;  %v1309_v47 = vld [vmem:[%s2087_s1 + $0x1a4] sm:$0xf0]  ;;  %v1306_v48 = vld [vmem:[%s2087_s1 + $0x194] sm:$0xf] }
  0x41   :  { %737 = vmatpush.bf16.msrb.mxu2 %v887_v11  ;;  %718 = vmatpush.bf16.msrb.mxu1 %v1075_v15  ;;  %v1270_v11 = vld [vmem:[%s2087_s1 + $0x74] sm:$0xf]  ;;  %v938_v15 = vld [vmem:[%s2087_s1 + $0x70] sm:$0xf]  ;;  %v1084_v50 = vld [vmem:[%s2087_s1 + $0x1a8] sm:$0xf0] }
  0x42   :  { %699 = vmatpush.bf16.msrb.mxu0 %v883_v24  ;;  %v943_v18 = vor.u32 %v1270_v11, %v940_v12  ;;  %v916_v24 = vld [vmem:[%s2087_s1 + $0x58] sm:$0xf0]  ;;  %v1082_v46 = vld [vmem:[%s2087_s1 + $0x190] sm:$0xf] }
  0x43   :  { %756 = vmatpush.bf16.msrb.mxu3 %v1079_v25  ;;  %v1083_v52 = vor.u32 %v1309_v47, %v1082_v46 }
  0x44   :  { %719 = vmatmul.bf16.vlgmr.msrb.gmra.mxu1 %v1608_v49  ;;  %738 = vmatmul.bf16.vlgmr.msrb.gmra.mxu2 %v1597_v44 }
  0x45   :  { %806 = vmatpush.bf16.msra.mxu2 %v1063_v16  ;;  %787 = vmatpush.bf16.msra.mxu1 %v1251_v20  ;;  %v1273_v16 = vld [vmem:[%s2087_s1 + $0x84] sm:$0xf0] }
  0x46   :  { %768 = vmatpush.bf16.msra.mxu0 %v1059_v26  ;;  %757 = vmatmul.bf16.vlgmr.msrb.gmra.mxu3 %v1608_v49  ;;  %v1321_v20 = vld [vmem:[%s2087_s1 + $0x204] sm:$0xf0]  ;;  %v939_v25 = vor.u32 %v1273_v16, %v938_v15 }
  0x47   :  { %825 = vmatpush.bf16.msra.mxu3 %v1255_v29  ;;  %700 = vmatmul.bf16.vlgmr.msrb.gmra.mxu0 %v1597_v44  ;;  %v1131_v26 = vor.u32 %v1321_v20, %v1130_v19  ;;  %v1135_v29 = vor.u32 %v1318_v21, %v1132_v22 }
  0x49   :  { %807 = vmatpush.bf16.msra.mxu2 %v1039_v30  ;;  %788 = vmatpush.bf16.msra.mxu1 %v1227_v40  ;;  %v919_v30 = vor.u32 %v1264_v23, %v916_v24  ;;  %v1107_v40 = vor.u32 %v1315_v32, %v1106_v31 }
  0x4a   :  { %769 = vmatpush.bf16.msra.mxu0 %v1035_v38  ;;  %v915_v38 = vor.u32 %v1267_v28, %v914_v27 }
  0x4b   :  { %826 = vmatpush.bf16.msra.mxu3 %v1231_v43  ;;  %v895_v43 = vor.u32 %v1258_v36, %v892_v37 }
  0x4d   :  { %808 = vmatpush.bf16.msra.mxu2 %v1015_v45  ;;  %789 = vmatpush.bf16.msra.mxu1 %v1203_v54  ;;  %v1261_v45 = vld [vmem:[%s2087_s1 + $0x24] sm:$0xf0]  ;;  %v2007_v54 = vld [vmem:[%s2089_s2] sm:$0x3f] }
  0x4e   :  { %770 = vmatpush.bf16.msra.mxu0 %v1011_v53  ;;  %v891_v51 = vor.u32 %v1261_v45, %v890_v41  ;;  %v1087_v53 = vor.u32 %v1306_v48, %v1084_v50  ;;  %v124_v55 = vperm.slane %v2007_v54, 0 }
  0x4f   :  { %827 = vmatpush.bf16.msra.mxu3 %v1207_v57 }
  0x51   :  { %809 = vmatpush.bf16.msra.mxu2 %v991_v58  ;;  %790 = vmatpush.bf16.msra.mxu1 %v1179_v2 }
  0x52   :  { %771 = vmatpush.bf16.msra.mxu0 %v987_v1 }
  0x53   :  { %828 = vmatpush.bf16.msra.mxu3 %v1183_v5 }
  0x54   :  { %724 = vmatmul.bf16.gmra.mxu1 %v1724_v39  ;;  %743 = vmatmul.bf16.gmra.mxu2 %v1713_v34 }
  0x55   :  { %810 = vmatpush.bf16.msra.mxu2 %v967_v6  ;;  %791 = vmatpush.bf16.msra.mxu1 %v1155_v14 }
  0x56   :  { %772 = vmatpush.bf16.msra.mxu0 %v963_v13  ;;  %762 = vmatmul.bf16.gmra.mxu3 %v1724_v39 }
  0x57   :  { %829 = vmatpush.bf16.msra.mxu3 %v1159_v17  ;;  %705 = vmatmul.bf16.gmra.mxu0 %v1713_v34  ;;  %v126_v17 = vperm.slane %v2007_v54, 2 }
  0x59   :  { %811 = vmatpush.bf16.msra.mxu2 %v943_v18  ;;  %792 = vmatpush.bf16.msra.mxu1 %v1131_v26  ;;  %v127_v26 = vperm.slane %v2007_v54, 3 }
  0x5a   :  { %773 = vmatpush.bf16.msra.mxu0 %v939_v25 }
  0x5b   :  { %830 = vmatpush.bf16.msra.mxu3 %v1135_v29 }
  0x5d   :  { %812 = vmatpush.bf16.msra.mxu2 %v919_v30  ;;  %793 = vmatpush.bf16.msra.mxu1 %v1107_v40 }
  0x5e   :  { %774 = vmatpush.bf16.msra.mxu0 %v915_v38 }
  0x5f   :  { %831 = vmatpush.bf16.msra.mxu3 %v1111_v42 }
  0x61   :  { %813 = vmatpush.bf16.msra.mxu2 %v895_v43  ;;  %794 = vmatpush.bf16.msra.mxu1 %v1083_v52 }
  0x62   :  { %775 = vmatpush.bf16.msra.mxu0 %v891_v51 }
  0x63   :  { %832 = vmatpush.bf16.msra.mxu3 %v1087_v53 }
  0x64   :  { %795 = vmatmul.bf16.vlgmr.msra.gmra.mxu1 %v1608_v49  ;;  %814 = vmatmul.bf16.vlgmr.msra.gmra.mxu2 %v1597_v44 }
  0x66   :  { %833 = vmatmul.bf16.vlgmr.msra.gmra.mxu3 %v1608_v49  ;;  %v125_v49 = vperm.slane %v2007_v54, 1 }
  0x67   :  { %776 = vmatmul.bf16.vlgmr.msra.gmra.mxu0 %v1597_v44 }
  0x74   :  { %800 = vmatmul.bf16.gmra.mxu1 %v1724_v39  ;;  %819 = vmatmul.bf16.gmra.mxu2 %v1713_v34 }
  0x76   :  { %838 = vmatmul.bf16.gmra.mxu3 %v1724_v39 }
  0x77   :  { %781 = vmatmul.bf16.gmra.mxu0 %v1713_v34 }
  0xa0   :  { %v625_v56 = vpop.f32.mrf.mxu0 }
  0xa1   :  { %v626_v57 = vadd.f32 %v625_v56, %v124_v55  ;;  %v644_v44 = vpop.f32.mrf.mxu1  ;;  %v128_v56 = vperm.slane %v2007_v54, 4 }
  0xa3   :  { %v645_v58 = vadd.f32 %v644_v44, %v626_v57 }
  0xa5   :  { %844 = vst [vmem:[%s2090_s3] sm:$0xff] %v645_v58 }
  0xa7   :  { %v663_v34 = vpop.f32.mrf.mxu2 }
  0xa8   :  { %v664_v59 = vadd.f32 %v663_v34, %v125_v49  ;;  %v627_v60 = vpop.f32.mrf.mxu0 }
  0xa9   :  { %v682_v39 = vpop.f32.mrf.mxu3  ;;  %v628_v61 = vadd.f32 %v627_v60, %v124_v55  ;;  %v646_v62 = vpop.f32.mrf.mxu1 }
  0xaa   :  { %v683_v63 = vadd.f32 %v682_v39, %v664_v59 }
  0xab   :  { %v647_v0 = vadd.f32 %v646_v62, %v628_v61  ;;  %v129_v61 = vperm.slane %v2007_v54, 5 }
  0xac   :  { %845 = vst [vmem:[%s2090_s3 + $0x8] sm:$0xff] %v683_v63 }
  0xad   :  { %850 = vst [vmem:[%s2090_s3 + $0x30] sm:$0xff] %v647_v0 }
  0xaf   :  { %v665_v1 = vpop.f32.mrf.mxu2 }
  0xb0   :  { %v666_v2 = vadd.f32 %v665_v1, %v125_v49  ;;  %v630_v4 = vpop.f32.mrf.mxu0 }
  0xb1   :  { %v684_v3 = vpop.f32.mrf.mxu3  ;;  %v631_v5 = vadd.f32 %v630_v4, %v124_v55  ;;  %v649_v6 = vpop.f32.mrf.mxu1 }
  0xb2   :  { %v685_v7 = vadd.f32 %v684_v3, %v666_v2 }
  0xb3   :  { %v650_v8 = vadd.f32 %v649_v6, %v631_v5 }
  0xb4   :  { %851 = vst [vmem:[%s2090_s3 + $0x38] sm:$0xff] %v685_v7 }
  0xb5   :  { %856 = vst [vmem:[%s2090_s3 + $0x60] sm:$0xff] %v650_v8 }
  0xb7   :  { %v668_v9 = vpop.f32.mrf.mxu2 }
  0xb8   :  { %v669_v10 = vadd.f32 %v668_v9, %v125_v49  ;;  %v632_v12 = vpop.f32.mrf.mxu0 }
  0xb9   :  { %v687_v11 = vpop.f32.mrf.mxu3  ;;  %v633_v13 = vadd.f32 %v632_v12, %v124_v55  ;;  %v651_v14 = vpop.f32.mrf.mxu1 }
  0xba   :  { %v688_v15 = vadd.f32 %v687_v11, %v669_v10 }
  0xbb   :  { %v652_v16 = vadd.f32 %v651_v14, %v633_v13 }
  0xbc   :  { %857 = vst [vmem:[%s2090_s3 + $0x68] sm:$0xff] %v688_v15 }
  0xbd   :  { %862 = vst [vmem:[%s2090_s3 + $0x90] sm:$0xff] %v652_v16 }
  0xbf   :  { %v670_v18 = vpop.f32.mrf.mxu2 }
  0xc0   :  { %v671_v19 = vadd.f32 %v670_v18, %v125_v49 }
  0xc1   :  { %v689_v20 = vpop.f32.mrf.mxu3  ;;  %v720_v22 = vpop.f32.mrf.mxu1 }
  0xc2   :  { %v690_v23 = vadd.f32 %v689_v20, %v671_v19 }
  0xc4   :  { %v701_v21 = vpop.f32.mrf.mxu0  ;;  %863 = vst [vmem:[%s2090_s3 + $0x98] sm:$0xff] %v690_v23 }
  0xc5   :  { %v702_v24 = vadd.f32 %v701_v21, %v126_v17 }
  0xc7   :  { %v721_v25 = vadd.f32 %v720_v22, %v702_v24  ;;  %v739_v27 = vpop.f32.mrf.mxu2 }
  0xc8   :  { %v740_v29 = vadd.f32 %v739_v27, %v127_v26 }
  0xc9   :  { %846 = vst [vmem:[%s2090_s3 + $0x10] sm:$0xff] %v721_v25  ;;  %v758_v28 = vpop.f32.mrf.mxu3  ;;  %v722_v31 = vpop.f32.mrf.mxu1 }
  0xca   :  { %v759_v33 = vadd.f32 %v758_v28, %v740_v29 }
  0xcc   :  { %v703_v30 = vpop.f32.mrf.mxu0  ;;  %847 = vst [vmem:[%s2090_s3 + $0x18] sm:$0xff] %v759_v33 }
  0xcd   :  { %v704_v32 = vadd.f32 %v703_v30, %v126_v17 }
  0xcf   :  { %v723_v35 = vadd.f32 %v722_v31, %v704_v32  ;;  %v741_v36 = vpop.f32.mrf.mxu2 }
  0xd0   :  { %v742_v38 = vadd.f32 %v741_v36, %v127_v26 }
  0xd1   :  { %852 = vst [vmem:[%s2090_s3 + $0x40] sm:$0xff] %v723_v35  ;;  %v760_v37 = vpop.f32.mrf.mxu3  ;;  %v725_v41 = vpop.f32.mrf.mxu1 }
  0xd2   :  { %v761_v43 = vadd.f32 %v760_v37, %v742_v38 }
  0xd4   :  { %v706_v40 = vpop.f32.mrf.mxu0  ;;  %853 = vst [vmem:[%s2090_s3 + $0x48] sm:$0xff] %v761_v43 }
  0xd5   :  { %v707_v42 = vadd.f32 %v706_v40, %v126_v17 }
  0xd7   :  { %v726_v45 = vadd.f32 %v725_v41, %v707_v42  ;;  %v744_v46 = vpop.f32.mrf.mxu2 }
  0xd8   :  { %v745_v48 = vadd.f32 %v744_v46, %v127_v26 }
  0xd9   :  { %858 = vst [vmem:[%s2090_s3 + $0x70] sm:$0xff] %v726_v45  ;;  %v763_v47 = vpop.f32.mrf.mxu3  ;;  %v727_v51 = vpop.f32.mrf.mxu1 }
  0xda   :  { %v764_v53 = vadd.f32 %v763_v47, %v745_v48 }
  0xdc   :  { %v708_v50 = vpop.f32.mrf.mxu0  ;;  %859 = vst [vmem:[%s2090_s3 + $0x78] sm:$0xff] %v764_v53 }
  0xdd   :  { %v709_v52 = vadd.f32 %v708_v50, %v126_v17 }
  0xdf   :  { %v728_v55 = vadd.f32 %v727_v51, %v709_v52  ;;  %v746_v57 = vpop.f32.mrf.mxu2 }
  0xe0   :  { %v747_v58 = vadd.f32 %v746_v57, %v127_v26 }
  0xe1   :  { %864 = vst [vmem:[%s2090_s3 + $0xa0] sm:$0xff] %v728_v55  ;;  %v765_v44 = vpop.f32.mrf.mxu3  ;;  %v796_v34 = vpop.f32.mrf.mxu1 }
  0xe2   :  { %v766_v39 = vadd.f32 %v765_v44, %v747_v58 }
  0xe4   :  { %v777_v49 = vpop.f32.mrf.mxu0  ;;  %865 = vst [vmem:[%s2090_s3 + $0xa8] sm:$0xff] %v766_v39 }
  0xe5   :  { %v778_v59 = vadd.f32 %v777_v49, %v128_v56 }
  0xe7   :  { %v797_v60 = vadd.f32 %v796_v34, %v778_v59  ;;  %v815_v62 = vpop.f32.mrf.mxu2 }
  0xe8   :  { %v816_v0 = vadd.f32 %v815_v62, %v129_v61 }
  0xe9   :  { %848 = vst [vmem:[%s2090_s3 + $0x20] sm:$0xff] %v797_v60  ;;  %v834_v63 = vpop.f32.mrf.mxu3  ;;  %v798_v2 = vpop.f32.mrf.mxu1 }
  0xea   :  { %v835_v4 = vadd.f32 %v834_v63, %v816_v0 }
  0xec   :  { %v779_v1 = vpop.f32.mrf.mxu0  ;;  %849 = vst [vmem:[%s2090_s3 + $0x28] sm:$0xff] %v835_v4 }
  0xed   :  { %v780_v3 = vadd.f32 %v779_v1, %v128_v56 }
  0xef   :  { %v799_v5 = vadd.f32 %v798_v2, %v780_v3  ;;  %v817_v54 = vpop.f32.mrf.mxu2 }
  0xf0   :  { %v818_v7 = vadd.f32 %v817_v54, %v129_v61 }
  0xf1   :  { %854 = vst [vmem:[%s2090_s3 + $0x50] sm:$0xff] %v799_v5  ;;  %v836_v6 = vpop.f32.mrf.mxu3  ;;  %v801_v9 = vpop.f32.mrf.mxu1 }
  0xf2   :  { %v837_v11 = vadd.f32 %v836_v6, %v818_v7 }
  0xf4   :  { %v782_v8 = vpop.f32.mrf.mxu0  ;;  %855 = vst [vmem:[%s2090_s3 + $0x58] sm:$0xff] %v837_v11 }
  0xf5   :  { %v783_v10 = vadd.f32 %v782_v8, %v128_v56 }
  0xf7   :  { %v802_v12 = vadd.f32 %v801_v9, %v783_v10  ;;  %v820_v13 = vpop.f32.mrf.mxu2 }
  0xf8   :  { %v821_v15 = vadd.f32 %v820_v13, %v129_v61 }
  0xf9   :  { %860 = vst [vmem:[%s2090_s3 + $0x80] sm:$0xff] %v802_v12  ;;  %v839_v14 = vpop.f32.mrf.mxu3  ;;  %v803_v19 = vpop.f32.mrf.mxu1 }
  0xfa   :  { %v840_v18 = vadd.f32 %v839_v14, %v821_v15 }
  0xfc   :  { %v784_v16 = vpop.f32.mrf.mxu0  ;;  %861 = vst [vmem:[%s2090_s3 + $0x88] sm:$0xff] %v840_v18 }
  0xfd   :  { %v785_v17 = vadd.f32 %v784_v16, %v128_v56 }
  0xff   :  { %v804_v20 = vadd.f32 %v803_v19, %v785_v17  ;;  %v822_v21 = vpop.f32.mrf.mxu2 }
 0x100   :  { %v823_v22 = vadd.f32 %v822_v21, %v129_v61 }
 0x101   :  { %866 = vst [vmem:[%s2090_s3 + $0xb0] sm:$0xff] %v804_v20  ;;  %v841_v23 = vpop.f32.mrf.mxu3 }
 0x102   :  { %v842_v24 = vadd.f32 %v841_v23, %v823_v22 }
 0x104   :  { %867 = vst [vmem:[%s2090_s3 + $0xb8] sm:$0xff] %v842_v24 }

</bundles_post_ra>
